<compile_context>
chip_gen: v7x
topology: tpu7x:2x2x1
jax: 0.10.0
libtpu: 0.0.40
codegen_flags: <defaults>
</compile_context>

<pallas_src>
import functools
import math

import jax
import jax.numpy as jnp
from jax.experimental import pallas as pl
from jax.experimental.pallas import tpu as pltpu

LN_EPS = 1e-5  # torch.nn.LayerNorm default


# ----------------------------------------------------------------------------- helpers

def _erf_exact(x):
    # Abramowitz & Stegun 7.1.26 rational approximation (max abs err ~1.5e-7).
    a1, a2, a3, a4, a5 = 0.254829592, -0.284496736, 1.421413741, -1.453152027, 1.061405429
    p = 0.3275911
    sign = jnp.where(x >= 0.0, 1.0, -1.0)
    ax = jnp.abs(x)
    t = 1.0 / (1.0 + p * ax)
    poly = ((((a5 * t + a4) * t + a3) * t + a2) * t + a1) * t
    return sign * (1.0 - poly * jnp.exp(-ax * ax))


def _gelu_exact(x):
    # matches torch.nn.functional.gelu (erf form), computed in f32
    return 0.5 * x * (1.0 + _erf_exact(x * (1.0 / math.sqrt(2.0))))


def _ln_rows(x, g, b):
    # x: (rows, D) f32; g, b: (1, D) f32
    mu = jnp.mean(x, axis=-1, keepdims=True)
    var = jnp.mean(jnp.square(x - mu), axis=-1, keepdims=True)
    return (x - mu) * jax.lax.rsqrt(var + LN_EPS) * g + b


def _attn_core(xn, cn, wq_ref, wkv_ref, wo_ref, bo_ref, heads, dim_head, scale):
    # xn: (n, dq) f32 normed query rows; cn: (m, dc) f32 normed context rows.
    # Weights (refs) are stored bf16; accumulate in f32 on the MXU.
    inner = heads * dim_head
    q = jnp.dot(xn.astype(jnp.bfloat16), wq_ref[...],
                preferred_element_type=jnp.float32)                      # (n, inner)
    kv = jnp.dot(cn.astype(jnp.bfloat16), wkv_ref[...],
                 preferred_element_type=jnp.float32)                     # (m, 2*inner)
    k_all = kv[:, :inner].astype(jnp.bfloat16)
    v_all = kv[:, inner:].astype(jnp.bfloat16)

    outs = []
    for h in range(heads):                                               # static unroll (1 or 4)
        sl = slice(h * dim_head, (h + 1) * dim_head)
        qh = q[:, sl].astype(jnp.bfloat16)
        sim = jax.lax.dot_general(qh, k_all[:, sl], (((1,), (1,)), ((), ())),
                                  preferred_element_type=jnp.float32) * scale
        sim = sim - jnp.max(sim, axis=-1, keepdims=True)
        p = jnp.exp(sim)
        attn = p * pl.reciprocal(jnp.sum(p, axis=-1, keepdims=True), approx=True)
        outs.append(jnp.dot(attn.astype(jnp.bfloat16), v_all[:, sl],
                            preferred_element_type=jnp.float32))
    o = outs[0] if heads == 1 else jnp.concatenate(outs, axis=-1)        # (n, inner)
    return jnp.dot(o.astype(jnp.bfloat16), wo_ref[...],
                   preferred_element_type=jnp.float32) + bo_ref[...]


# ----------------------------------------------------------------------------- kernels

def _cross_attn_block_kernel(x_ref, ctx_ref, gq_ref, bq_ref, gc_ref, bc_ref,
                             wq_ref, wkv_ref, wo_ref, bo_ref, o_ref,
                             *, heads, dim_head, scale):
    # Fused PreNorm(Attention(cross)) + residual, one batch element per grid step.
    x = x_ref[0].astype(jnp.float32)                                     # (n, dq)
    ctx = ctx_ref[0].astype(jnp.float32)                                 # (m, dc)
    xn = _ln_rows(x, gq_ref[...], bq_ref[...])
    cn = _ln_rows(ctx, gc_ref[...], bc_ref[...])
    out = _attn_core(xn, cn, wq_ref, wkv_ref, wo_ref, bo_ref, heads, dim_head, scale)
    o_ref[0] = (out + x).astype(o_ref.dtype)                             # fused residual


def _self_attn_block_kernel(x_ref, g_ref, b_ref,
                            wq_ref, wkv_ref, wo_ref, bo_ref, o_ref,
                            *, heads, dim_head, scale):
    # Fused PreNorm(Attention(self)) + residual. Context = the normed query input.
    x = x_ref[0].astype(jnp.float32)                                     # (n, dq)
    xn = _ln_rows(x, g_ref[...], b_ref[...])
    out = _attn_core(xn, xn, wq_ref, wkv_ref, wo_ref, bo_ref, heads, dim_head, scale)
    o_ref[0] = (out + x).astype(o_ref.dtype)                             # fused residual


def _ff_block_kernel(x_ref, g_ref, b_ref, w1_ref, b1_ref, w2_ref, b2_ref, o_ref):
    # Fused PreNorm(Linear -> GEGLU -> Linear) + residual on a (tm, d) row slab.
    x = x_ref[...].astype(jnp.float32)
    xn = _ln_rows(x, g_ref[...], b_ref[...])
    h = jnp.dot(xn.astype(jnp.bfloat16), w1_ref[...],
                preferred_element_type=jnp.float32) + b1_ref[...]
    half = h.shape[-1] // 2
    a, gates = h[:, :half], h[:, half:]
    hg = a * _gelu_exact(gates)
    out = jnp.dot(hg.astype(jnp.bfloat16), w2_ref[...],
                  preferred_element_type=jnp.float32) + b2_ref[...]
    o_ref[...] = (out + x).astype(o_ref.dtype)                           # fused residual


def _head_kernel(x_ref, g_ref, bln_ref, w_ref, bo_ref, o_ref):
    # mean over latent axis -> LayerNorm -> Linear(num_classes)
    x = jnp.mean(x_ref[...].astype(jnp.float32), axis=1)                 # (b, d)
    xn = _ln_rows(x, g_ref[...], bln_ref[...])
    o_ref[...] = (jnp.dot(xn.astype(jnp.bfloat16), w_ref[...],
                          preferred_element_type=jnp.float32)
                  + bo_ref[...]).astype(o_ref.dtype)


# ------------------------------------------------------------------------ kernel wrappers

def cross_attention_block(x, context, p, heads, dim_head):
    b, n, dq = x.shape
    m, dc = context.shape[1], context.shape[2]
    inner = heads * dim_head
    kern = functools.partial(_cross_attn_block_kernel,
                             heads=heads, dim_head=dim_head, scale=dim_head ** -0.5)
    # TODO(synk): for realistic image contexts (m >> 1k) switch to a k/v-tiled
    # online-softmax loop; full (m, dc) context blocks only make sense at toy sizes.
    return pl.pallas_call(
        kern,
        out_shape=jax.ShapeDtypeStruct((b, n, dq), jnp.float32),
        grid=(b,),
        in_specs=[pl.BlockSpec((1, n, dq), lambda i: (i, 0, 0)),
                  pl.BlockSpec((1, m, dc), lambda i: (i, 0, 0)),
                  pl.BlockSpec((1, dq), lambda i: (0, 0)),
                  pl.BlockSpec((1, dq), lambda i: (0, 0)),
                  pl.BlockSpec((1, dc), lambda i: (0, 0)),
                  pl.BlockSpec((1, dc), lambda i: (0, 0)),
                  pl.BlockSpec((dq, inner), lambda i: (0, 0)),
                  pl.BlockSpec((dc, 2 * inner), lambda i: (0, 0)),
                  pl.BlockSpec((inner, dq), lambda i: (0, 0)),
                  pl.BlockSpec((1, dq), lambda i: (0, 0))],
        out_specs=pl.BlockSpec((1, n, dq), lambda i: (i, 0, 0)),
        compiler_params=pltpu.CompilerParams(dimension_semantics=("parallel",)),
    )(x, context,
      p["norm_g"].reshape(1, dq), p["norm_b"].reshape(1, dq),
      p["norm_ctx_g"].reshape(1, dc), p["norm_ctx_b"].reshape(1, dc),
      p["wq"], p["wkv"], p["wo"], p["bo"].reshape(1, dq))


def self_attention_block(x, p, heads, dim_head):
    b, n, dq = x.shape
    inner = heads * dim_head
    kern = functools.partial(_self_attn_block_kernel,
                             heads=heads, dim_head=dim_head, scale=dim_head ** -0.5)
    return pl.pallas_call(
        kern,
        out_shape=jax.ShapeDtypeStruct((b, n, dq), jnp.float32),
        grid=(b,),
        in_specs=[pl.BlockSpec((1, n, dq), lambda i: (i, 0, 0)),
                  pl.BlockSpec((1, dq), lambda i: (0, 0)),
                  pl.BlockSpec((1, dq), lambda i: (0, 0)),
                  pl.BlockSpec((dq, inner), lambda i: (0, 0)),
                  pl.BlockSpec((dq, 2 * inner), lambda i: (0, 0)),
                  pl.BlockSpec((inner, dq), lambda i: (0, 0)),
                  pl.BlockSpec((1, dq), lambda i: (0, 0))],
        out_specs=pl.BlockSpec((1, n, dq), lambda i: (i, 0, 0)),
        compiler_params=pltpu.CompilerParams(dimension_semantics=("parallel",)),
    )(x, p["norm_g"].reshape(1, dq), p["norm_b"].reshape(1, dq),
      p["wq"], p["wkv"], p["wo"], p["bo"].reshape(1, dq))


def ff_block(x, p):
    b, n, d = x.shape
    M = b * n
    x2 = x.reshape(M, d)
    hidden2 = p["w1"].shape[1]
    hidden = hidden2 // 2
    tm = M if M <= 256 else 256                      # row-tile for pipelining / megacore
    out = pl.pallas_call(
        _ff_block_kernel,
        out_shape=jax.ShapeDtypeStruct((M, d), jnp.float32),
        grid=(pl.cdiv(M, tm),),
        in_specs=[pl.BlockSpec((tm, d), lambda i: (i, 0)),
                  pl.BlockSpec((1, d), lambda i: (0, 0)),
                  pl.BlockSpec((1, d), lambda i: (0, 0)),
                  pl.BlockSpec((d, hidden2), lambda i: (0, 0)),
                  pl.BlockSpec((1, hidden2), lambda i: (0, 0)),
                  pl.BlockSpec((hidden, d), lambda i: (0, 0)),
                  pl.BlockSpec((1, d), lambda i: (0, 0))],
        out_specs=pl.BlockSpec((tm, d), lambda i: (i, 0)),
        compiler_params=pltpu.CompilerParams(dimension_semantics=("parallel",)),
    )(x2, p["norm_g"].reshape(1, d), p["norm_b"].reshape(1, d),
      p["w1"], p["b1"].reshape(1, hidden2), p["w2"], p["b2"].reshape(1, d))
    return out.reshape(b, n, d)


def classifier_head(x, p, num_classes):
    b, n, d = x.shape
    return pl.pallas_call(
        _head_kernel,
        out_shape=jax.ShapeDtypeStruct((b, num_classes), jnp.float32),
        grid=(1,),
        in_specs=[pl.BlockSpec((b, n, d), lambda i: (0, 0, 0)),
                  pl.BlockSpec((1, d), lambda i: (0, 0)),
                  pl.BlockSpec((1, d), lambda i: (0, 0)),
                  pl.BlockSpec((d, num_classes), lambda i: (0, 0)),
                  pl.BlockSpec((1, num_classes), lambda i: (0, 0))],
        out_specs=pl.BlockSpec((b, num_classes), lambda i: (0, 0)),
    )(x, p["ln_g"].reshape(1, d), p["ln_b"].reshape(1, d),
      p["w"], p["b"].reshape(1, num_classes))


# --------------------------------------------------------------------------- module glue

def fourier_encode(x, max_freq, num_bands):
    # matches perceiver_pytorch.fourier_encode: returns [sin, cos, orig] along new last dim
    x = x[..., None]
    scales = jnp.linspace(1.0, max_freq / 2.0, num_bands, dtype=x.dtype)
    xs = x * scales * math.pi
    return jnp.concatenate([jnp.sin(xs), jnp.cos(xs), x], axis=-1)


def build_pos_encoding(H, W, max_freq, num_bands):
    # data-independent; precomputed once outside the jitted forward
    axis_pos = [jnp.linspace(-1.0, 1.0, H, dtype=jnp.float32),
                jnp.linspace(-1.0, 1.0, W, dtype=jnp.float32)]
    pos = jnp.stack(jnp.meshgrid(*axis_pos, indexing="ij"), axis=-1)     # (H, W, 2)
    enc = fourier_encode(pos, max_freq, num_bands)                       # (H, W, 2, 2K+1)
    return enc.reshape(H, W, -1)                                         # (H, W, 2*(2K+1))


def perceiver_forward(params, data, pos_enc, cfg):
    b, H, W, _ = data.shape
    enc = jnp.broadcast_to(pos_enc[None], (b,) + pos_enc.shape)
    data = jnp.concatenate([data, enc], axis=-1).reshape(b, H * W, -1)   # (b, N, input_dim)

    x = jnp.broadcast_to(params["latents"][None], (b,) + params["latents"].shape)

    for layer in params["layers"]:
        x = cross_attention_block(x, data, layer["cross_attn"],
                                  cfg["cross_heads"], cfg["cross_dim_head"])
        x = ff_block(x, layer["cross_ff"])
        for sa in layer["self_attns"]:
            x = self_attention_block(x, sa["attn"],
                                     cfg["latent_heads"], cfg["latent_dim_head"])
            x = ff_block(x, sa["ff"])

    # TODO(synk): dropout layers are identity at eval (dropout=0.0); mask path unused (mask=None).
    return classifier_head(x, params["head"], cfg["num_classes"])


# ----------------------------------------------------------------------------- init

class _KeyGen:
    def __init__(self, key):
        self.key = key

    def __call__(self):
        self.key, sub = jax.random.split(self.key)
        return sub


def _init_attn(kg, query_dim, context_dim, heads, dim_head, with_context_norm):
    inner = heads * dim_head
    p = dict(
        norm_g=jnp.ones((query_dim,), jnp.float32),
        norm_b=jnp.zeros((query_dim,), jnp.float32),
        # matmul weights stored bf16 (MXU-native operands, half the DMA bytes)
        wq=(0.02 * jax.random.normal(kg(), (query_dim, inner), jnp.float32)).astype(jnp.bfloat16),
        wkv=(0.02 * jax.random.normal(kg(), (context_dim, 2 * inner), jnp.float32)).astype(jnp.bfloat16),
        wo=(0.02 * jax.random.normal(kg(), (inner, query_dim), jnp.float32)).astype(jnp.bfloat16),
        bo=jnp.zeros((query_dim,), jnp.float32),
    )
    if with_context_norm:
        p["norm_ctx_g"] = jnp.ones((context_dim,), jnp.float32)
        p["norm_ctx_b"] = jnp.zeros((context_dim,), jnp.float32)
    return p


def _init_ff(kg, dim, mult=4):
    return dict(
        norm_g=jnp.ones((dim,), jnp.float32),
        norm_b=jnp.zeros((dim,), jnp.float32),
        w1=(0.02 * jax.random.normal(kg(), (dim, dim * mult * 2), jnp.float32)).astype(jnp.bfloat16),
        b1=jnp.zeros((dim * mult * 2,), jnp.float32),
        w2=(0.02 * jax.random.normal(kg(), (dim * mult, dim), jnp.float32)).astype(jnp.bfloat16),
        b2=jnp.zeros((dim,), jnp.float32),
    )


def init_perceiver_params(key, cfg):
    kg = _KeyGen(key)
    fourier_channels = cfg["input_axis"] * (cfg["num_freq_bands"] * 2 + 1)
    input_dim = fourier_channels + cfg["input_channels"]
    latent_dim = cfg["latent_dim"]

    params = dict(
        latents=jax.random.normal(kg(), (cfg["num_latents"], latent_dim), jnp.float32),
        layers=[],
        head=dict(
            ln_g=jnp.ones((latent_dim,), jnp.float32),
            ln_b=jnp.zeros((latent_dim,), jnp.float32),
            w=(0.02 * jax.random.normal(kg(), (latent_dim, cfg["num_classes"]),
                                        jnp.float32)).astype(jnp.bfloat16),
            b=jnp.zeros((cfg["num_classes"],), jnp.float32),
        ),
    )
    for _ in range(cfg["depth"]):
        layer = dict(
            cross_attn=_init_attn(kg, latent_dim, input_dim,
                                  cfg["cross_heads"], cfg["cross_dim_head"],
                                  with_context_norm=True),
            cross_ff=_init_ff(kg, latent_dim),
            self_attns=[dict(attn=_init_attn(kg, latent_dim, latent_dim,
                                             cfg["latent_heads"], cfg["latent_dim_head"],
                                             with_context_norm=False),
                             ff=_init_ff(kg, latent_dim))
                        for _ in range(cfg["self_per_cross_attn"])],
        )
        params["layers"].append(layer)
    return params


# ----------------------------------------------------------------------------- main

if __name__ == "__main__":
    cfg = dict(
        num_freq_bands=4,
        max_freq=10.0,
        depth=2,
        input_channels=4,
        input_axis=2,
        num_latents=64,
        latent_dim=128,
        cross_heads=1,
        cross_dim_head=32,
        latent_heads=4,
        latent_dim_head=32,
        num_classes=16,
        self_per_cross_attn=1,
    )

    key = jax.random.PRNGKey(0)
    k_data, k_params = jax.random.split(key)

    B, H, W, C = 2, 16, 16, cfg["input_channels"]
    data = jax.random.normal(k_data, (B, H, W, C), jnp.float32)

    params = init_perceiver_params(k_params, cfg)
    pos_enc = build_pos_encoding(H, W, cfg["max_freq"], cfg["num_freq_bands"])

    fwd = jax.jit(lambda p, d, pe: perceiver_forward(p, d, pe, cfg))
    out = fwd(params, data, pos_enc)
    out = jax.block_until_ready(out)

    assert out.shape == (B, cfg["num_classes"]), out.shape
    assert bool(jnp.all(jnp.isfinite(out)))
    print("KERNEL_OK")
</pallas_src>

<mosaic_0001>
module attributes {stable_mosaic.version = 11 : i64} {
  func.func @_cross_attn_block_kernel(%arg0: i32, %arg1: memref<1x64x128xf32, #tpu.memory_space<vmem>>, %arg2: memref<1x256x22xf32, #tpu.memory_space<vmem>>, %arg3: memref<1x128xf32, #tpu.memory_space<vmem>>, %arg4: memref<1x128xf32, #tpu.memory_space<vmem>>, %arg5: memref<1x22xf32, #tpu.memory_space<vmem>>, %arg6: memref<1x22xf32, #tpu.memory_space<vmem>>, %arg7: memref<128x32xbf16, #tpu.memory_space<vmem>>, %arg8: memref<22x64xbf16, #tpu.memory_space<vmem>>, %arg9: memref<32x128xbf16, #tpu.memory_space<vmem>>, %arg10: memref<1x128xf32, #tpu.memory_space<vmem>>, %arg11: memref<1x64x128xf32, #tpu.memory_space<vmem>>) attributes {dimension_semantics = [#tpu.dimension_semantics<parallel>], iteration_bounds = array<i64: 2>, scalar_prefetch = 0 : i64, scratch_operands = 0 : i64, tpu.core_type = #tpu.core_type<tc>, window_params = [{transform_indices = @transform_0, window_bounds = array<i64: 1, 64, 128>}, {transform_indices = @transform_1, window_bounds = array<i64: 1, 256, 22>}, {pipeline_mode = #tpu.pipeline_mode<synchronous>, transform_indices = @transform_2, window_bounds = array<i64: 1, 128>}, {pipeline_mode = #tpu.pipeline_mode<synchronous>, transform_indices = @transform_3, window_bounds = array<i64: 1, 128>}, {pipeline_mode = #tpu.pipeline_mode<synchronous>, transform_indices = @transform_4, window_bounds = array<i64: 1, 22>}, {pipeline_mode = #tpu.pipeline_mode<synchronous>, transform_indices = @transform_5, window_bounds = array<i64: 1, 22>}, {pipeline_mode = #tpu.pipeline_mode<synchronous>, transform_indices = @transform_6, window_bounds = array<i64: 128, 32>}, {pipeline_mode = #tpu.pipeline_mode<synchronous>, transform_indices = @transform_7, window_bounds = array<i64: 22, 64>}, {pipeline_mode = #tpu.pipeline_mode<synchronous>, transform_indices = @transform_8, window_bounds = array<i64: 32, 128>}, {pipeline_mode = #tpu.pipeline_mode<synchronous>, transform_indices = @transform_9, window_bounds = array<i64: 1, 128>}, {transform_indices = @transform_10, window_bounds = array<i64: 1, 64, 128>}]} {
    %c0 = arith.constant 0 : index
    %c0_0 = arith.constant 0 : index
    %c0_1 = arith.constant 0 : index
    %0 = vector.load %arg1[%c0, %c0_0, %c0_1] : memref<1x64x128xf32, #tpu.memory_space<vmem>>, vector<1x64x128xf32>
    %1 = vector.shape_cast %0 : vector<1x64x128xf32> to vector<64x128xf32>
    %c0_2 = arith.constant 0 : index
    %c0_3 = arith.constant 0 : index
    %c0_4 = arith.constant 0 : index
    %2 = vector.load %arg2[%c0_2, %c0_3, %c0_4] : memref<1x256x22xf32, #tpu.memory_space<vmem>>, vector<1x256x22xf32>
    %3 = vector.shape_cast %2 : vector<1x256x22xf32> to vector<256x22xf32>
    %c0_5 = arith.constant 0 : index
    %c0_6 = arith.constant 0 : index
    %4 = vector.load %arg3[%c0_5, %c0_6] : memref<1x128xf32, #tpu.memory_space<vmem>>, vector<1x128xf32>
    %c0_7 = arith.constant 0 : index
    %c0_8 = arith.constant 0 : index
    %5 = vector.load %arg4[%c0_7, %c0_8] : memref<1x128xf32, #tpu.memory_space<vmem>>, vector<1x128xf32>
    %cst = arith.constant dense<0.000000e+00> : vector<64xf32>
    %6 = vector.multi_reduction <add>, %1, %cst [1] : vector<64x128xf32> to vector<64xf32>
    %7 = vector.shape_cast %6 : vector<64xf32> to vector<64x1xf32>
    %cst_9 = arith.constant 1.280000e+02 : f32
    %8 = vector.broadcast %cst_9 : f32 to vector<64x1xf32>
    %9 = arith.divf %7, %8 : vector<64x1xf32>
    %10 = vector.broadcast %9 : vector<64x1xf32> to vector<64x128xf32>
    %11 = arith.subf %1, %10 : vector<64x128xf32>
    %12 = arith.mulf %11, %11 : vector<64x128xf32>
    %cst_10 = arith.constant dense<0.000000e+00> : vector<64xf32>
    %13 = vector.multi_reduction <add>, %12, %cst_10 [1] : vector<64x128xf32> to vector<64xf32>
    %14 = vector.shape_cast %13 : vector<64xf32> to vector<64x1xf32>
    %cst_11 = arith.constant 1.280000e+02 : f32
    %15 = vector.broadcast %cst_11 : f32 to vector<64x1xf32>
    %16 = arith.divf %14, %15 : vector<64x1xf32>
    %17 = vector.broadcast %9 : vector<64x1xf32> to vector<64x128xf32>
    %18 = arith.subf %1, %17 : vector<64x128xf32>
    %cst_12 = arith.constant 9.99999974E-6 : f32
    %19 = vector.broadcast %cst_12 : f32 to vector<64x1xf32>
    %20 = arith.addf %16, %19 : vector<64x1xf32>
    %21 = math.rsqrt %20 : vector<64x1xf32>
    %22 = vector.broadcast %21 : vector<64x1xf32> to vector<64x128xf32>
    %23 = arith.mulf %18, %22 : vector<64x128xf32>
    %24 = vector.broadcast %4 : vector<1x128xf32> to vector<64x128xf32>
    %25 = arith.mulf %23, %24 : vector<64x128xf32>
    %26 = vector.broadcast %5 : vector<1x128xf32> to vector<64x128xf32>
    %27 = arith.addf %25, %26 : vector<64x128xf32>
    %c0_13 = arith.constant 0 : index
    %c0_14 = arith.constant 0 : index
    %28 = vector.load %arg5[%c0_13, %c0_14] : memref<1x22xf32, #tpu.memory_space<vmem>>, vector<1x22xf32>
    %c0_15 = arith.constant 0 : index
    %c0_16 = arith.constant 0 : index
    %29 = vector.load %arg6[%c0_15, %c0_16] : memref<1x22xf32, #tpu.memory_space<vmem>>, vector<1x22xf32>
    %cst_17 = arith.constant dense<0.000000e+00> : vector<256xf32>
    %30 = vector.multi_reduction <add>, %3, %cst_17 [1] : vector<256x22xf32> to vector<256xf32>
    %31 = vector.shape_cast %30 : vector<256xf32> to vector<256x1xf32>
    %cst_18 = arith.constant 2.200000e+01 : f32
    %32 = vector.broadcast %cst_18 : f32 to vector<256x1xf32>
    %33 = arith.divf %31, %32 : vector<256x1xf32>
    %34 = vector.broadcast %33 : vector<256x1xf32> to vector<256x22xf32>
    %35 = arith.subf %3, %34 : vector<256x22xf32>
    %36 = arith.mulf %35, %35 : vector<256x22xf32>
    %cst_19 = arith.constant dense<0.000000e+00> : vector<256xf32>
    %37 = vector.multi_reduction <add>, %36, %cst_19 [1] : vector<256x22xf32> to vector<256xf32>
    %38 = vector.shape_cast %37 : vector<256xf32> to vector<256x1xf32>
    %cst_20 = arith.constant 2.200000e+01 : f32
    %39 = vector.broadcast %cst_20 : f32 to vector<256x1xf32>
    %40 = arith.divf %38, %39 : vector<256x1xf32>
    %41 = vector.broadcast %33 : vector<256x1xf32> to vector<256x22xf32>
    %42 = arith.subf %3, %41 : vector<256x22xf32>
    %cst_21 = arith.constant 9.99999974E-6 : f32
    %43 = vector.broadcast %cst_21 : f32 to vector<256x1xf32>
    %44 = arith.addf %40, %43 : vector<256x1xf32>
    %45 = math.rsqrt %44 : vector<256x1xf32>
    %46 = vector.broadcast %45 : vector<256x1xf32> to vector<256x22xf32>
    %47 = arith.mulf %42, %46 : vector<256x22xf32>
    %48 = vector.broadcast %28 : vector<1x22xf32> to vector<256x22xf32>
    %49 = arith.mulf %47, %48 : vector<256x22xf32>
    %50 = vector.broadcast %29 : vector<1x22xf32> to vector<256x22xf32>
    %51 = arith.addf %49, %50 : vector<256x22xf32>
    %52 = arith.truncf %27 : vector<64x128xf32> to vector<64x128xbf16>
    %c0_22 = arith.constant 0 : index
    %c0_23 = arith.constant 0 : index
    %53 = vector.load %arg7[%c0_22, %c0_23] : memref<128x32xbf16, #tpu.memory_space<vmem>>, vector<128x32xbf16>
    %cst_24 = arith.constant dense<0.000000e+00> : vector<64x32xf32>
    %54 = tpu.matmul %52, %53, %cst_24 {dimension_numbers = #tpu.dot_dimension_numbers<[1], [0], [0], [1], [0, 0, 1, 1], [], []>} : vector<64x128xbf16>, vector<128x32xbf16>, vector<64x32xf32> -> vector<64x32xf32>
    %55 = arith.truncf %51 : vector<256x22xf32> to vector<256x22xbf16>
    %c0_25 = arith.constant 0 : index
    %c0_26 = arith.constant 0 : index
    %56 = vector.load %arg8[%c0_25, %c0_26] : memref<22x64xbf16, #tpu.memory_space<vmem>>, vector<22x64xbf16>
    %cst_27 = arith.constant dense<0.000000e+00> : vector<256x64xf32>
    %57 = tpu.matmul %55, %56, %cst_27 {dimension_numbers = #tpu.dot_dimension_numbers<[1], [0], [0], [1], [0, 0, 1, 1], [], []>} : vector<256x22xbf16>, vector<22x64xbf16>, vector<256x64xf32> -> vector<256x64xf32>
    %58 = vector.extract_strided_slice %57 {offsets = [0, 0], sizes = [256, 32], strides = [1, 1]} : vector<256x64xf32> to vector<256x32xf32>
    %59 = arith.truncf %58 : vector<256x32xf32> to vector<256x32xbf16>
    %60 = vector.extract_strided_slice %57 {offsets = [0, 32], sizes = [256, 32], strides = [1, 1]} : vector<256x64xf32> to vector<256x32xf32>
    %61 = arith.truncf %60 : vector<256x32xf32> to vector<256x32xbf16>
    %62 = arith.truncf %54 : vector<64x32xf32> to vector<64x32xbf16>
    %cst_28 = arith.constant dense<0.000000e+00> : vector<64x256xf32>
    %63 = tpu.matmul %62, %59, %cst_28 {dimension_numbers = #tpu.dot_dimension_numbers<[1], [1], [0], [0], [0, 0, 1, 0], [], []>} : vector<64x32xbf16>, vector<256x32xbf16>, vector<64x256xf32> -> vector<64x256xf32>
    %cst_29 = arith.constant 0.176776692 : f32
    %64 = vector.broadcast %cst_29 : f32 to vector<64x256xf32>
    %65 = arith.mulf %63, %64 : vector<64x256xf32>
    %cst_30 = arith.constant dense<0xFF800000> : vector<64xf32>
    %66 = vector.multi_reduction <maximumf>, %65, %cst_30 [1] : vector<64x256xf32> to vector<64xf32>
    %67 = vector.shape_cast %66 : vector<64xf32> to vector<64x1xf32>
    %68 = vector.broadcast %67 : vector<64x1xf32> to vector<64x256xf32>
    %69 = arith.subf %65, %68 : vector<64x256xf32>
    %70 = math.exp %69 : vector<64x256xf32>
    %cst_31 = arith.constant dense<0.000000e+00> : vector<64xf32>
    %71 = vector.multi_reduction <add>, %70, %cst_31 [1] : vector<64x256xf32> to vector<64xf32>
    %72 = vector.shape_cast %71 : vector<64xf32> to vector<64x1xf32>
    %73 = tpu.reciprocal %72 {approx = true} : vector<64x1xf32> -> vector<64x1xf32>
    %74 = vector.broadcast %73 : vector<64x1xf32> to vector<64x256xf32>
    %75 = arith.mulf %70, %74 : vector<64x256xf32>
    %76 = arith.truncf %75 : vector<64x256xf32> to vector<64x256xbf16>
    %cst_32 = arith.constant dense<0.000000e+00> : vector<64x32xf32>
    %77 = tpu.matmul %76, %61, %cst_32 {dimension_numbers = #tpu.dot_dimension_numbers<[1], [0], [0], [1], [0, 0, 1, 1], [], []>} : vector<64x256xbf16>, vector<256x32xbf16>, vector<64x32xf32> -> vector<64x32xf32>
    %78 = arith.truncf %77 : vector<64x32xf32> to vector<64x32xbf16>
    %c0_33 = arith.constant 0 : index
    %c0_34 = arith.constant 0 : index
    %79 = vector.load %arg9[%c0_33, %c0_34] : memref<32x128xbf16, #tpu.memory_space<vmem>>, vector<32x128xbf16>
    %cst_35 = arith.constant dense<0.000000e+00> : vector<64x128xf32>
    %80 = tpu.matmul %78, %79, %cst_35 {dimension_numbers = #tpu.dot_dimension_numbers<[1], [0], [0], [1], [0, 0, 1, 1], [], []>} : vector<64x32xbf16>, vector<32x128xbf16>, vector<64x128xf32> -> vector<64x128xf32>
    %c0_36 = arith.constant 0 : index
    %c0_37 = arith.constant 0 : index
    %81 = vector.load %arg10[%c0_36, %c0_37] : memref<1x128xf32, #tpu.memory_space<vmem>>, vector<1x128xf32>
    %82 = vector.broadcast %81 : vector<1x128xf32> to vector<64x128xf32>
    %83 = arith.addf %80, %82 : vector<64x128xf32>
    %84 = arith.addf %83, %1 : vector<64x128xf32>
    %c0_38 = arith.constant 0 : index
    %c0_39 = arith.constant 0 : index
    %c0_40 = arith.constant 0 : index
    %85 = vector.load %arg11[%c0_38, %c0_39, %c0_40] : memref<1x64x128xf32, #tpu.memory_space<vmem>>, vector<1x64x128xf32>
    %86 = vector.shape_cast %85 : vector<1x64x128xf32> to vector<64x128xf32>
    %87 = vector.shape_cast %84 : vector<64x128xf32> to vector<1x64x128xf32>
    tpu.vector_store %arg11[%c0_38, %c0_39, %c0_40], %87 {strides = array<i32>} : memref<1x64x128xf32, #tpu.memory_space<vmem>>, vector<1x64x128xf32>,
    return
  }
  func.func @transform_0(%arg0: i32) -> (i32, i32, i32) {
    %c0_i32 = arith.constant 0 : i32
    %c0_i32_0 = arith.constant 0 : i32
    %c0_i32_1 = arith.constant 0 : i32
    return %arg0, %c0_i32, %c0_i32_0 : i32, i32, i32
  }
  func.func @transform_1(%arg0: i32) -> (i32, i32, i32) {
    %c0_i32 = arith.constant 0 : i32
    %c0_i32_0 = arith.constant 0 : i32
    %c0_i32_1 = arith.constant 0 : i32
    return %arg0, %c0_i32, %c0_i32_0 : i32, i32, i32
  }
  func.func @transform_2(%arg0: i32) -> (i32, i32) {
    %c0_i32 = arith.constant 0 : i32
    %c0_i32_0 = arith.constant 0 : i32
    %c0_i32_1 = arith.constant 0 : i32
    return %c0_i32, %c0_i32_0 : i32, i32
  }
  func.func @transform_3(%arg0: i32) -> (i32, i32) {
    %c0_i32 = arith.constant 0 : i32
    %c0_i32_0 = arith.constant 0 : i32
    %c0_i32_1 = arith.constant 0 : i32
    return %c0_i32, %c0_i32_0 : i32, i32
  }
  func.func @transform_4(%arg0: i32) -> (i32, i32) {
    %c0_i32 = arith.constant 0 : i32
    %c0_i32_0 = arith.constant 0 : i32
    %c0_i32_1 = arith.constant 0 : i32
    return %c0_i32, %c0_i32_0 : i32, i32
  }
  func.func @transform_5(%arg0: i32) -> (i32, i32) {
    %c0_i32 = arith.constant 0 : i32
    %c0_i32_0 = arith.constant 0 : i32
    %c0_i32_1 = arith.constant 0 : i32
    return %c0_i32, %c0_i32_0 : i32, i32
  }
  func.func @transform_6(%arg0: i32) -> (i32, i32) {
    %c0_i32 = arith.constant 0 : i32
    %c0_i32_0 = arith.constant 0 : i32
    %c0_i32_1 = arith.constant 0 : i32
    return %c0_i32, %c0_i32_0 : i32, i32
  }
  func.func @transform_7(%arg0: i32) -> (i32, i32) {
    %c0_i32 = arith.constant 0 : i32
    %c0_i32_0 = arith.constant 0 : i32
    %c0_i32_1 = arith.constant 0 : i32
    return %c0_i32, %c0_i32_0 : i32, i32
  }
  func.func @transform_8(%arg0: i32) -> (i32, i32) {
    %c0_i32 = arith.constant 0 : i32
    %c0_i32_0 = arith.constant 0 : i32
    %c0_i32_1 = arith.constant 0 : i32
    return %c0_i32, %c0_i32_0 : i32, i32
  }
  func.func @transform_9(%arg0: i32) -> (i32, i32) {
    %c0_i32 = arith.constant 0 : i32
    %c0_i32_0 = arith.constant 0 : i32
    %c0_i32_1 = arith.constant 0 : i32
    return %c0_i32, %c0_i32_0 : i32, i32
  }
  func.func @transform_10(%arg0: i32) -> (i32, i32, i32) {
    %c0_i32 = arith.constant 0 : i32
    %c0_i32_0 = arith.constant 0 : i32
    %c0_i32_1 = arith.constant 0 : i32
    return %arg0, %c0_i32, %c0_i32_0 : i32, i32, i32
  }
}

module attributes {stable_mosaic.version = 11 : i64} {
  func.func @_self_attn_block_kernel(%arg0: i32, %arg1: memref<1x64x128xf32, #tpu.memory_space<vmem>>, %arg2: memref<1x128xf32, #tpu.memory_space<vmem>>, %arg3: memref<1x128xf32, #tpu.memory_space<vmem>>, %arg4: memref<128x128xbf16, #tpu.memory_space<vmem>>, %arg5: memref<128x256xbf16, #tpu.memory_space<vmem>>, %arg6: memref<128x128xbf16, #tpu.memory_space<vmem>>, %arg7: memref<1x128xf32, #tpu.memory_space<vmem>>, %arg8: memref<1x64x128xf32, #tpu.memory_space<vmem>>) attributes {dimension_semantics = [#tpu.dimension_semantics<parallel>], iteration_bounds = array<i64: 2>, scalar_prefetch = 0 : i64, scratch_operands = 0 : i64, tpu.core_type = #tpu.core_type<tc>, window_params = [{transform_indices = @transform_0, window_bounds = array<i64: 1, 64, 128>}, {pipeline_mode = #tpu.pipeline_mode<synchronous>, transform_indices = @transform_1, window_bounds = array<i64: 1, 128>}, {pipeline_mode = #tpu.pipeline_mode<synchronous>, transform_indices = @transform_2, window_bounds = array<i64: 1, 128>}, {pipeline_mode = #tpu.pipeline_mode<synchronous>, transform_indices = @transform_3, window_bounds = array<i64: 128, 128>}, {pipeline_mode = #tpu.pipeline_mode<synchronous>, transform_indices = @transform_4, window_bounds = array<i64: 128, 256>}, {pipeline_mode = #tpu.pipeline_mode<synchronous>, transform_indices = @transform_5, window_bounds = array<i64: 128, 128>}, {pipeline_mode = #tpu.pipeline_mode<synchronous>, transform_indices = @transform_6, window_bounds = array<i64: 1, 128>}, {transform_indices = @transform_7, window_bounds = array<i64: 1, 64, 128>}]} {
    %c0 = arith.constant 0 : index
    %c0_0 = arith.constant 0 : index
    %c0_1 = arith.constant 0 : index
    %0 = vector.load %arg1[%c0, %c0_0, %c0_1] : memref<1x64x128xf32, #tpu.memory_space<vmem>>, vector<1x64x128xf32>
    %1 = vector.shape_cast %0 : vector<1x64x128xf32> to vector<64x128xf32>
    %c0_2 = arith.constant 0 : index
    %c0_3 = arith.constant 0 : index
    %2 = vector.load %arg2[%c0_2, %c0_3] : memref<1x128xf32, #tpu.memory_space<vmem>>, vector<1x128xf32>
    %c0_4 = arith.constant 0 : index
    %c0_5 = arith.constant 0 : index
    %3 = vector.load %arg3[%c0_4, %c0_5] : memref<1x128xf32, #tpu.memory_space<vmem>>, vector<1x128xf32>
    %cst = arith.constant dense<0.000000e+00> : vector<64xf32>
    %4 = vector.multi_reduction <add>, %1, %cst [1] : vector<64x128xf32> to vector<64xf32>
    %5 = vector.shape_cast %4 : vector<64xf32> to vector<64x1xf32>
    %cst_6 = arith.constant 1.280000e+02 : f32
    %6 = vector.broadcast %cst_6 : f32 to vector<64x1xf32>
    %7 = arith.divf %5, %6 : vector<64x1xf32>
    %8 = vector.broadcast %7 : vector<64x1xf32> to vector<64x128xf32>
    %9 = arith.subf %1, %8 : vector<64x128xf32>
    %10 = arith.mulf %9, %9 : vector<64x128xf32>
    %cst_7 = arith.constant dense<0.000000e+00> : vector<64xf32>
    %11 = vector.multi_reduction <add>, %10, %cst_7 [1] : vector<64x128xf32> to vector<64xf32>
    %12 = vector.shape_cast %11 : vector<64xf32> to vector<64x1xf32>
    %cst_8 = arith.constant 1.280000e+02 : f32
    %13 = vector.broadcast %cst_8 : f32 to vector<64x1xf32>
    %14 = arith.divf %12, %13 : vector<64x1xf32>
    %15 = vector.broadcast %7 : vector<64x1xf32> to vector<64x128xf32>
    %16 = arith.subf %1, %15 : vector<64x128xf32>
    %cst_9 = arith.constant 9.99999974E-6 : f32
    %17 = vector.broadcast %cst_9 : f32 to vector<64x1xf32>
    %18 = arith.addf %14, %17 : vector<64x1xf32>
    %19 = math.rsqrt %18 : vector<64x1xf32>
    %20 = vector.broadcast %19 : vector<64x1xf32> to vector<64x128xf32>
    %21 = arith.mulf %16, %20 : vector<64x128xf32>
    %22 = vector.broadcast %2 : vector<1x128xf32> to vector<64x128xf32>
    %23 = arith.mulf %21, %22 : vector<64x128xf32>
    %24 = vector.broadcast %3 : vector<1x128xf32> to vector<64x128xf32>
    %25 = arith.addf %23, %24 : vector<64x128xf32>
    %26 = arith.truncf %25 : vector<64x128xf32> to vector<64x128xbf16>
    %c0_10 = arith.constant 0 : index
    %c0_11 = arith.constant 0 : index
    %27 = vector.load %arg4[%c0_10, %c0_11] : memref<128x128xbf16, #tpu.memory_space<vmem>>, vector<128x128xbf16>
    %cst_12 = arith.constant dense<0.000000e+00> : vector<64x128xf32>
    %28 = tpu.matmul %26, %27, %cst_12 {dimension_numbers = #tpu.dot_dimension_numbers<[1], [0], [0], [1], [0, 0, 1, 1], [], []>} : vector<64x128xbf16>, vector<128x128xbf16>, vector<64x128xf32> -> vector<64x128xf32>
    %29 = arith.truncf %25 : vector<64x128xf32> to vector<64x128xbf16>
    %c0_13 = arith.constant 0 : index
    %c0_14 = arith.constant 0 : index
    %30 = vector.load %arg5[%c0_13, %c0_14] : memref<128x256xbf16, #tpu.memory_space<vmem>>, vector<128x256xbf16>
    %cst_15 = arith.constant dense<0.000000e+00> : vector<64x256xf32>
    %31 = tpu.matmul %29, %30, %cst_15 {dimension_numbers = #tpu.dot_dimension_numbers<[1], [0], [0], [1], [0, 0, 1, 1], [], []>} : vector<64x128xbf16>, vector<128x256xbf16>, vector<64x256xf32> -> vector<64x256xf32>
    %32 = vector.extract_strided_slice %31 {offsets = [0, 0], sizes = [64, 128], strides = [1, 1]} : vector<64x256xf32> to vector<64x128xf32>
    %33 = arith.truncf %32 : vector<64x128xf32> to vector<64x128xbf16>
    %34 = vector.extract_strided_slice %31 {offsets = [0, 128], sizes = [64, 128], strides = [1, 1]} : vector<64x256xf32> to vector<64x128xf32>
    %35 = arith.truncf %34 : vector<64x128xf32> to vector<64x128xbf16>
    %36 = vector.extract_strided_slice %28 {offsets = [0, 0], sizes = [64, 32], strides = [1, 1]} : vector<64x128xf32> to vector<64x32xf32>
    %37 = arith.truncf %36 : vector<64x32xf32> to vector<64x32xbf16>
    %38 = vector.extract_strided_slice %33 {offsets = [0, 0], sizes = [64, 32], strides = [1, 1]} : vector<64x128xbf16> to vector<64x32xbf16>
    %cst_16 = arith.constant dense<0.000000e+00> : vector<64x64xf32>
    %39 = tpu.matmul %37, %38, %cst_16 {dimension_numbers = #tpu.dot_dimension_numbers<[1], [1], [0], [0], [0, 0, 1, 0], [], []>} : vector<64x32xbf16>, vector<64x32xbf16>, vector<64x64xf32> -> vector<64x64xf32>
    %cst_17 = arith.constant 0.176776692 : f32
    %40 = vector.broadcast %cst_17 : f32 to vector<64x64xf32>
    %41 = arith.mulf %39, %40 : vector<64x64xf32>
    %cst_18 = arith.constant dense<0xFF800000> : vector<64xf32>
    %42 = vector.multi_reduction <maximumf>, %41, %cst_18 [1] : vector<64x64xf32> to vector<64xf32>
    %43 = vector.shape_cast %42 : vector<64xf32> to vector<64x1xf32>
    %44 = vector.broadcast %43 : vector<64x1xf32> to vector<64x64xf32>
    %45 = arith.subf %41, %44 : vector<64x64xf32>
    %46 = math.exp %45 : vector<64x64xf32>
    %cst_19 = arith.constant dense<0.000000e+00> : vector<64xf32>
    %47 = vector.multi_reduction <add>, %46, %cst_19 [1] : vector<64x64xf32> to vector<64xf32>
    %48 = vector.shape_cast %47 : vector<64xf32> to vector<64x1xf32>
    %49 = tpu.reciprocal %48 {approx = true} : vector<64x1xf32> -> vector<64x1xf32>
    %50 = vector.broadcast %49 : vector<64x1xf32> to vector<64x64xf32>
    %51 = arith.mulf %46, %50 : vector<64x64xf32>
    %52 = arith.truncf %51 : vector<64x64xf32> to vector<64x64xbf16>
    %53 = vector.extract_strided_slice %35 {offsets = [0, 0], sizes = [64, 32], strides = [1, 1]} : vector<64x128xbf16> to vector<64x32xbf16>
    %cst_20 = arith.constant dense<0.000000e+00> : vector<64x32xf32>
    %54 = tpu.matmul %52, %53, %cst_20 {dimension_numbers = #tpu.dot_dimension_numbers<[1], [0], [0], [1], [0, 0, 1, 1], [], []>} : vector<64x64xbf16>, vector<64x32xbf16>, vector<64x32xf32> -> vector<64x32xf32>
    %55 = vector.extract_strided_slice %28 {offsets = [0, 32], sizes = [64, 32], strides = [1, 1]} : vector<64x128xf32> to vector<64x32xf32>
    %56 = arith.truncf %55 : vector<64x32xf32> to vector<64x32xbf16>
    %57 = vector.extract_strided_slice %33 {offsets = [0, 32], sizes = [64, 32], strides = [1, 1]} : vector<64x128xbf16> to vector<64x32xbf16>
    %cst_21 = arith.constant dense<0.000000e+00> : vector<64x64xf32>
    %58 = tpu.matmul %56, %57, %cst_21 {dimension_numbers = #tpu.dot_dimension_numbers<[1], [1], [0], [0], [0, 0, 1, 0], [], []>} : vector<64x32xbf16>, vector<64x32xbf16>, vector<64x64xf32> -> vector<64x64xf32>
    %cst_22 = arith.constant 0.176776692 : f32
    %59 = vector.broadcast %cst_22 : f32 to vector<64x64xf32>
    %60 = arith.mulf %58, %59 : vector<64x64xf32>
    %cst_23 = arith.constant dense<0xFF800000> : vector<64xf32>
    %61 = vector.multi_reduction <maximumf>, %60, %cst_23 [1] : vector<64x64xf32> to vector<64xf32>
    %62 = vector.shape_cast %61 : vector<64xf32> to vector<64x1xf32>
    %63 = vector.broadcast %62 : vector<64x1xf32> to vector<64x64xf32>
    %64 = arith.subf %60, %63 : vector<64x64xf32>
    %65 = math.exp %64 : vector<64x64xf32>
    %cst_24 = arith.constant dense<0.000000e+00> : vector<64xf32>
    %66 = vector.multi_reduction <add>, %65, %cst_24 [1] : vector<64x64xf32> to vector<64xf32>
    %67 = vector.shape_cast %66 : vector<64xf32> to vector<64x1xf32>
    %68 = tpu.reciprocal %67 {approx = true} : vector<64x1xf32> -> vector<64x1xf32>
    %69 = vector.broadcast %68 : vector<64x1xf32> to vector<64x64xf32>
    %70 = arith.mulf %65, %69 : vector<64x64xf32>
    %71 = arith.truncf %70 : vector<64x64xf32> to vector<64x64xbf16>
    %72 = vector.extract_strided_slice %35 {offsets = [0, 32], sizes = [64, 32], strides = [1, 1]} : vector<64x128xbf16> to vector<64x32xbf16>
    %cst_25 = arith.constant dense<0.000000e+00> : vector<64x32xf32>
    %73 = tpu.matmul %71, %72, %cst_25 {dimension_numbers = #tpu.dot_dimension_numbers<[1], [0], [0], [1], [0, 0, 1, 1], [], []>} : vector<64x64xbf16>, vector<64x32xbf16>, vector<64x32xf32> -> vector<64x32xf32>
    %74 = vector.extract_strided_slice %28 {offsets = [0, 64], sizes = [64, 32], strides = [1, 1]} : vector<64x128xf32> to vector<64x32xf32>
    %75 = arith.truncf %74 : vector<64x32xf32> to vector<64x32xbf16>
    %76 = vector.extract_strided_slice %33 {offsets = [0, 64], sizes = [64, 32], strides = [1, 1]} : vector<64x128xbf16> to vector<64x32xbf16>
    %cst_26 = arith.constant dense<0.000000e+00> : vector<64x64xf32>
    %77 = tpu.matmul %75, %76, %cst_26 {dimension_numbers = #tpu.dot_dimension_numbers<[1], [1], [0], [0], [0, 0, 1, 0], [], []>} : vector<64x32xbf16>, vector<64x32xbf16>, vector<64x64xf32> -> vector<64x64xf32>
    %cst_27 = arith.constant 0.176776692 : f32
    %78 = vector.broadcast %cst_27 : f32 to vector<64x64xf32>
    %79 = arith.mulf %77, %78 : vector<64x64xf32>
    %cst_28 = arith.constant dense<0xFF800000> : vector<64xf32>
    %80 = vector.multi_reduction <maximumf>, %79, %cst_28 [1] : vector<64x64xf32> to vector<64xf32>
    %81 = vector.shape_cast %80 : vector<64xf32> to vector<64x1xf32>
    %82 = vector.broadcast %81 : vector<64x1xf32> to vector<64x64xf32>
    %83 = arith.subf %79, %82 : vector<64x64xf32>
    %84 = math.exp %83 : vector<64x64xf32>
    %cst_29 = arith.constant dense<0.000000e+00> : vector<64xf32>
    %85 = vector.multi_reduction <add>, %84, %cst_29 [1] : vector<64x64xf32> to vector<64xf32>
    %86 = vector.shape_cast %85 : vector<64xf32> to vector<64x1xf32>
    %87 = tpu.reciprocal %86 {approx = true} : vector<64x1xf32> -> vector<64x1xf32>
    %88 = vector.broadcast %87 : vector<64x1xf32> to vector<64x64xf32>
    %89 = arith.mulf %84, %88 : vector<64x64xf32>
    %90 = arith.truncf %89 : vector<64x64xf32> to vector<64x64xbf16>
    %91 = vector.extract_strided_slice %35 {offsets = [0, 64], sizes = [64, 32], strides = [1, 1]} : vector<64x128xbf16> to vector<64x32xbf16>
    %cst_30 = arith.constant dense<0.000000e+00> : vector<64x32xf32>
    %92 = tpu.matmul %90, %91, %cst_30 {dimension_numbers = #tpu.dot_dimension_numbers<[1], [0], [0], [1], [0, 0, 1, 1], [], []>} : vector<64x64xbf16>, vector<64x32xbf16>, vector<64x32xf32> -> vector<64x32xf32>
    %93 = vector.extract_strided_slice %28 {offsets = [0, 96], sizes = [64, 32], strides = [1, 1]} : vector<64x128xf32> to vector<64x32xf32>
    %94 = arith.truncf %93 : vector<64x32xf32> to vector<64x32xbf16>
    %95 = vector.extract_strided_slice %33 {offsets = [0, 96], sizes = [64, 32], strides = [1, 1]} : vector<64x128xbf16> to vector<64x32xbf16>
    %cst_31 = arith.constant dense<0.000000e+00> : vector<64x64xf32>
    %96 = tpu.matmul %94, %95, %cst_31 {dimension_numbers = #tpu.dot_dimension_numbers<[1], [1], [0], [0], [0, 0, 1, 0], [], []>} : vector<64x32xbf16>, vector<64x32xbf16>, vector<64x64xf32> -> vector<64x64xf32>
    %cst_32 = arith.constant 0.176776692 : f32
    %97 = vector.broadcast %cst_32 : f32 to vector<64x64xf32>
    %98 = arith.mulf %96, %97 : vector<64x64xf32>
    %cst_33 = arith.constant dense<0xFF800000> : vector<64xf32>
    %99 = vector.multi_reduction <maximumf>, %98, %cst_33 [1] : vector<64x64xf32> to vector<64xf32>
    %100 = vector.shape_cast %99 : vector<64xf32> to vector<64x1xf32>
    %101 = vector.broadcast %100 : vector<64x1xf32> to vector<64x64xf32>
    %102 = arith.subf %98, %101 : vector<64x64xf32>
    %103 = math.exp %102 : vector<64x64xf32>
    %cst_34 = arith.constant dense<0.000000e+00> : vector<64xf32>
    %104 = vector.multi_reduction <add>, %103, %cst_34 [1] : vector<64x64xf32> to vector<64xf32>
    %105 = vector.shape_cast %104 : vector<64xf32> to vector<64x1xf32>
    %106 = tpu.reciprocal %105 {approx = true} : vector<64x1xf32> -> vector<64x1xf32>
    %107 = vector.broadcast %106 : vector<64x1xf32> to vector<64x64xf32>
    %108 = arith.mulf %103, %107 : vector<64x64xf32>
    %109 = arith.truncf %108 : vector<64x64xf32> to vector<64x64xbf16>
    %110 = vector.extract_strided_slice %35 {offsets = [0, 96], sizes = [64, 32], strides = [1, 1]} : vector<64x128xbf16> to vector<64x32xbf16>
    %cst_35 = arith.constant dense<0.000000e+00> : vector<64x32xf32>
    %111 = tpu.matmul %109, %110, %cst_35 {dimension_numbers = #tpu.dot_dimension_numbers<[1], [0], [0], [1], [0, 0, 1, 1], [], []>} : vector<64x64xbf16>, vector<64x32xbf16>, vector<64x32xf32> -> vector<64x32xf32>
    %112 = tpu.concatenate %54, %73, %92, %111 in 1 : vector<64x32xf32>, vector<64x32xf32>, vector<64x32xf32>, vector<64x32xf32> -> vector<64x128xf32>
    %113 = arith.truncf %112 : vector<64x128xf32> to vector<64x128xbf16>
    %c0_36 = arith.constant 0 : index
    %c0_37 = arith.constant 0 : index
    %114 = vector.load %arg6[%c0_36, %c0_37] : memref<128x128xbf16, #tpu.memory_space<vmem>>, vector<128x128xbf16>
    %cst_38 = arith.constant dense<0.000000e+00> : vector<64x128xf32>
    %115 = tpu.matmul %113, %114, %cst_38 {dimension_numbers = #tpu.dot_dimension_numbers<[1], [0], [0], [1], [0, 0, 1, 1], [], []>} : vector<64x128xbf16>, vector<128x128xbf16>, vector<64x128xf32> -> vector<64x128xf32>
    %c0_39 = arith.constant 0 : index
    %c0_40 = arith.constant 0 : index
    %116 = vector.load %arg7[%c0_39, %c0_40] : memref<1x128xf32, #tpu.memory_space<vmem>>, vector<1x128xf32>
    %117 = vector.broadcast %116 : vector<1x128xf32> to vector<64x128xf32>
    %118 = arith.addf %115, %117 : vector<64x128xf32>
    %119 = arith.addf %118, %1 : vector<64x128xf32>
    %c0_41 = arith.constant 0 : index
    %c0_42 = arith.constant 0 : index
    %c0_43 = arith.constant 0 : index
    %120 = vector.load %arg8[%c0_41, %c0_42, %c0_43] : memref<1x64x128xf32, #tpu.memory_space<vmem>>, vector<1x64x128xf32>
    %121 = vector.shape_cast %120 : vector<1x64x128xf32> to vector<64x128xf32>
    %122 = vector.shape_cast %119 : vector<64x128xf32> to vector<1x64x128xf32>
    tpu.vector_store %arg8[%c0_41, %c0_42, %c0_43], %122 {strides = array<i32>} : memref<1x64x128xf32, #tpu.memory_space<vmem>>, vector<1x64x128xf32>,
    return
  }
  func.func @transform_0(%arg0: i32) -> (i32, i32, i32) {
    %c0_i32 = arith.constant 0 : i32
    %c0_i32_0 = arith.constant 0 : i32
    %c0_i32_1 = arith.constant 0 : i32
    return %arg0, %c0_i32, %c0_i32_0 : i32, i32, i32
  }
  func.func @transform_1(%arg0: i32) -> (i32, i32) {
    %c0_i32 = arith.constant 0 : i32
    %c0_i32_0 = arith.constant 0 : i32
    %c0_i32_1 = arith.constant 0 : i32
    return %c0_i32, %c0_i32_0 : i32, i32
  }
  func.func @transform_2(%arg0: i32) -> (i32, i32) {
    %c0_i32 = arith.constant 0 : i32
    %c0_i32_0 = arith.constant 0 : i32
    %c0_i32_1 = arith.constant 0 : i32
    return %c0_i32, %c0_i32_0 : i32, i32
  }
  func.func @transform_3(%arg0: i32) -> (i32, i32) {
    %c0_i32 = arith.constant 0 : i32
    %c0_i32_0 = arith.constant 0 : i32
    %c0_i32_1 = arith.constant 0 : i32
    return %c0_i32, %c0_i32_0 : i32, i32
  }
  func.func @transform_4(%arg0: i32) -> (i32, i32) {
    %c0_i32 = arith.constant 0 : i32
    %c0_i32_0 = arith.constant 0 : i32
    %c0_i32_1 = arith.constant 0 : i32
    return %c0_i32, %c0_i32_0 : i32, i32
  }
  func.func @transform_5(%arg0: i32) -> (i32, i32) {
    %c0_i32 = arith.constant 0 : i32
    %c0_i32_0 = arith.constant 0 : i32
    %c0_i32_1 = arith.constant 0 : i32
    return %c0_i32, %c0_i32_0 : i32, i32
  }
  func.func @transform_6(%arg0: i32) -> (i32, i32) {
    %c0_i32 = arith.constant 0 : i32
    %c0_i32_0 = arith.constant 0 : i32
    %c0_i32_1 = arith.constant 0 : i32
    return %c0_i32, %c0_i32_0 : i32, i32
  }
  func.func @transform_7(%arg0: i32) -> (i32, i32, i32) {
    %c0_i32 = arith.constant 0 : i32
    %c0_i32_0 = arith.constant 0 : i32
    %c0_i32_1 = arith.constant 0 : i32
    return %arg0, %c0_i32, %c0_i32_0 : i32, i32, i32
  }
}

module attributes {stable_mosaic.version = 11 : i64} {
  func.func @_ff_block_kernel(%arg0: i32, %arg1: memref<128x128xf32, #tpu.memory_space<vmem>>, %arg2: memref<1x128xf32, #tpu.memory_space<vmem>>, %arg3: memref<1x128xf32, #tpu.memory_space<vmem>>, %arg4: memref<128x1024xbf16, #tpu.memory_space<vmem>>, %arg5: memref<1x1024xf32, #tpu.memory_space<vmem>>, %arg6: memref<512x128xbf16, #tpu.memory_space<vmem>>, %arg7: memref<1x128xf32, #tpu.memory_space<vmem>>, %arg8: memref<128x128xf32, #tpu.memory_space<vmem>>) attributes {dimension_semantics = [#tpu.dimension_semantics<parallel>], iteration_bounds = array<i64: 1>, scalar_prefetch = 0 : i64, scratch_operands = 0 : i64, tpu.core_type = #tpu.core_type<tc>, window_params = [{transform_indices = @transform_0, window_bounds = array<i64: 128, 128>}, {pipeline_mode = #tpu.pipeline_mode<synchronous>, transform_indices = @transform_1, window_bounds = array<i64: 1, 128>}, {pipeline_mode = #tpu.pipeline_mode<synchronous>, transform_indices = @transform_2, window_bounds = array<i64: 1, 128>}, {pipeline_mode = #tpu.pipeline_mode<synchronous>, transform_indices = @transform_3, window_bounds = array<i64: 128, 1024>}, {pipeline_mode = #tpu.pipeline_mode<synchronous>, transform_indices = @transform_4, window_bounds = array<i64: 1, 1024>}, {pipeline_mode = #tpu.pipeline_mode<synchronous>, transform_indices = @transform_5, window_bounds = array<i64: 512, 128>}, {pipeline_mode = #tpu.pipeline_mode<synchronous>, transform_indices = @transform_6, window_bounds = array<i64: 1, 128>}, {transform_indices = @transform_7, window_bounds = array<i64: 128, 128>}]} {
    %c0 = arith.constant 0 : index
    %c0_0 = arith.constant 0 : index
    %0 = vector.load %arg1[%c0, %c0_0] : memref<128x128xf32, #tpu.memory_space<vmem>>, vector<128x128xf32>
    %c0_1 = arith.constant 0 : index
    %c0_2 = arith.constant 0 : index
    %1 = vector.load %arg2[%c0_1, %c0_2] : memref<1x128xf32, #tpu.memory_space<vmem>>, vector<1x128xf32>
    %c0_3 = arith.constant 0 : index
    %c0_4 = arith.constant 0 : index
    %2 = vector.load %arg3[%c0_3, %c0_4] : memref<1x128xf32, #tpu.memory_space<vmem>>, vector<1x128xf32>
    %cst = arith.constant dense<0.000000e+00> : vector<128xf32>
    %3 = vector.multi_reduction <add>, %0, %cst [1] : vector<128x128xf32> to vector<128xf32>
    %4 = vector.shape_cast %3 : vector<128xf32> to vector<128x1xf32>
    %cst_5 = arith.constant 1.280000e+02 : f32
    %5 = vector.broadcast %cst_5 : f32 to vector<128x1xf32>
    %6 = arith.divf %4, %5 : vector<128x1xf32>
    %7 = vector.broadcast %6 : vector<128x1xf32> to vector<128x128xf32>
    %8 = arith.subf %0, %7 : vector<128x128xf32>
    %9 = arith.mulf %8, %8 : vector<128x128xf32>
    %cst_6 = arith.constant dense<0.000000e+00> : vector<128xf32>
    %10 = vector.multi_reduction <add>, %9, %cst_6 [1] : vector<128x128xf32> to vector<128xf32>
    %11 = vector.shape_cast %10 : vector<128xf32> to vector<128x1xf32>
    %cst_7 = arith.constant 1.280000e+02 : f32
    %12 = vector.broadcast %cst_7 : f32 to vector<128x1xf32>
    %13 = arith.divf %11, %12 : vector<128x1xf32>
    %14 = vector.broadcast %6 : vector<128x1xf32> to vector<128x128xf32>
    %15 = arith.subf %0, %14 : vector<128x128xf32>
    %cst_8 = arith.constant 9.99999974E-6 : f32
    %16 = vector.broadcast %cst_8 : f32 to vector<128x1xf32>
    %17 = arith.addf %13, %16 : vector<128x1xf32>
    %18 = math.rsqrt %17 : vector<128x1xf32>
    %19 = vector.broadcast %18 : vector<128x1xf32> to vector<128x128xf32>
    %20 = arith.mulf %15, %19 : vector<128x128xf32>
    %21 = vector.broadcast %1 : vector<1x128xf32> to vector<128x128xf32>
    %22 = arith.mulf %20, %21 : vector<128x128xf32>
    %23 = vector.broadcast %2 : vector<1x128xf32> to vector<128x128xf32>
    %24 = arith.addf %22, %23 : vector<128x128xf32>
    %25 = arith.truncf %24 : vector<128x128xf32> to vector<128x128xbf16>
    %c0_9 = arith.constant 0 : index
    %c0_10 = arith.constant 0 : index
    %26 = vector.load %arg4[%c0_9, %c0_10] : memref<128x1024xbf16, #tpu.memory_space<vmem>>, vector<128x1024xbf16>
    %cst_11 = arith.constant dense<0.000000e+00> : vector<128x1024xf32>
    %27 = tpu.matmul %25, %26, %cst_11 {dimension_numbers = #tpu.dot_dimension_numbers<[1], [0], [0], [1], [0, 0, 1, 1], [], []>} : vector<128x128xbf16>, vector<128x1024xbf16>, vector<128x1024xf32> -> vector<128x1024xf32>
    %c0_12 = arith.constant 0 : index
    %c0_13 = arith.constant 0 : index
    %28 = vector.load %arg5[%c0_12, %c0_13] : memref<1x1024xf32, #tpu.memory_space<vmem>>, vector<1x1024xf32>
    %29 = vector.broadcast %28 : vector<1x1024xf32> to vector<128x1024xf32>
    %30 = arith.addf %27, %29 : vector<128x1024xf32>
    %31 = vector.extract_strided_slice %30 {offsets = [0, 0], sizes = [128, 512], strides = [1, 1]} : vector<128x1024xf32> to vector<128x512xf32>
    %32 = vector.extract_strided_slice %30 {offsets = [0, 512], sizes = [128, 512], strides = [1, 1]} : vector<128x1024xf32> to vector<128x512xf32>
    %cst_14 = arith.constant 5.000000e-01 : f32
    %33 = vector.broadcast %cst_14 : f32 to vector<128x512xf32>
    %34 = arith.mulf %33, %32 : vector<128x512xf32>
    %cst_15 = arith.constant 0.707106769 : f32
    %35 = vector.broadcast %cst_15 : f32 to vector<128x512xf32>
    %36 = arith.mulf %32, %35 : vector<128x512xf32>
    %cst_16 = arith.constant 0.000000e+00 : f32
    %37 = vector.broadcast %cst_16 : f32 to vector<128x512xf32>
    %38 = arith.cmpf oge, %36, %37 : vector<128x512xf32>
    %cst_17 = arith.constant 1.000000e+00 : f32
    %cst_18 = arith.constant -1.000000e+00 : f32
    %39 = vector.broadcast %cst_17 : f32 to vector<128x512xf32>
    %40 = vector.broadcast %cst_18 : f32 to vector<128x512xf32>
    %41 = arith.select %38, %39, %40 : vector<128x512xi1>, vector<128x512xf32>
    %42 = math.absf %36 : vector<128x512xf32>
    %cst_19 = arith.constant 0.327591091 : f32
    %43 = vector.broadcast %cst_19 : f32 to vector<128x512xf32>
    %44 = arith.mulf %43, %42 : vector<128x512xf32>
    %cst_20 = arith.constant 1.000000e+00 : f32
    %45 = vector.broadcast %cst_20 : f32 to vector<128x512xf32>
    %46 = arith.addf %45, %44 : vector<128x512xf32>
    %cst_21 = arith.constant 1.000000e+00 : f32
    %47 = vector.broadcast %cst_21 : f32 to vector<128x512xf32>
    %48 = arith.divf %47, %46 : vector<128x512xf32>
    %cst_22 = arith.constant 1.06140542 : f32
    %49 = vector.broadcast %cst_22 : f32 to vector<128x512xf32>
    %50 = arith.mulf %49, %48 : vector<128x512xf32>
    %cst_23 = arith.constant -1.45315206 : f32
    %51 = vector.broadcast %cst_23 : f32 to vector<128x512xf32>
    %52 = arith.addf %50, %51 : vector<128x512xf32>
    %53 = arith.mulf %52, %48 : vector<128x512xf32>
    %cst_24 = arith.constant 1.42141378 : f32
    %54 = vector.broadcast %cst_24 : f32 to vector<128x512xf32>
    %55 = arith.addf %53, %54 : vector<128x512xf32>
    %56 = arith.mulf %55, %48 : vector<128x512xf32>
    %cst_25 = arith.constant -0.284496725 : f32
    %57 = vector.broadcast %cst_25 : f32 to vector<128x512xf32>
    %58 = arith.addf %56, %57 : vector<128x512xf32>
    %59 = arith.mulf %58, %48 : vector<128x512xf32>
    %cst_26 = arith.constant 0.254829586 : f32
    %60 = vector.broadcast %cst_26 : f32 to vector<128x512xf32>
    %61 = arith.addf %59, %60 : vector<128x512xf32>
    %62 = arith.mulf %61, %48 : vector<128x512xf32>
    %cst_27 = arith.constant 0.000000e+00 : f32
    %63 = vector.broadcast %cst_27 : f32 to vector<128x512xf32>
    %64 = arith.subf %63, %42 : vector<128x512xf32>
    %65 = arith.mulf %64, %42 : vector<128x512xf32>
    %66 = math.exp %65 : vector<128x512xf32>
    %67 = arith.mulf %62, %66 : vector<128x512xf32>
    %cst_28 = arith.constant 1.000000e+00 : f32
    %68 = vector.broadcast %cst_28 : f32 to vector<128x512xf32>
    %69 = arith.subf %68, %67 : vector<128x512xf32>
    %70 = arith.mulf %41, %69 : vector<128x512xf32>
    %cst_29 = arith.constant 1.000000e+00 : f32
    %71 = vector.broadcast %cst_29 : f32 to vector<128x512xf32>
    %72 = arith.addf %71, %70 : vector<128x512xf32>
    %73 = arith.mulf %34, %72 : vector<128x512xf32>
    %74 = arith.mulf %31, %73 : vector<128x512xf32>
    %75 = arith.truncf %74 : vector<128x512xf32> to vector<128x512xbf16>
    %c0_30 = arith.constant 0 : index
    %c0_31 = arith.constant 0 : index
    %76 = vector.load %arg6[%c0_30, %c0_31] : memref<512x128xbf16, #tpu.memory_space<vmem>>, vector<512x128xbf16>
    %cst_32 = arith.constant dense<0.000000e+00> : vector<128x128xf32>
    %77 = tpu.matmul %75, %76, %cst_32 {dimension_numbers = #tpu.dot_dimension_numbers<[1], [0], [0], [1], [0, 0, 1, 1], [], []>} : vector<128x512xbf16>, vector<512x128xbf16>, vector<128x128xf32> -> vector<128x128xf32>
    %c0_33 = arith.constant 0 : index
    %c0_34 = arith.constant 0 : index
    %78 = vector.load %arg7[%c0_33, %c0_34] : memref<1x128xf32, #tpu.memory_space<vmem>>, vector<1x128xf32>
    %79 = vector.broadcast %78 : vector<1x128xf32> to vector<128x128xf32>
    %80 = arith.addf %77, %79 : vector<128x128xf32>
    %81 = arith.addf %80, %0 : vector<128x128xf32>
    %c0_35 = arith.constant 0 : index
    %c0_36 = arith.constant 0 : index
    %82 = vector.load %arg8[%c0_35, %c0_36] : memref<128x128xf32, #tpu.memory_space<vmem>>, vector<128x128xf32>
    tpu.vector_store %arg8[%c0_35, %c0_36], %81 {strides = array<i32>} : memref<128x128xf32, #tpu.memory_space<vmem>>, vector<128x128xf32>,
    return
  }
  func.func @transform_0(%arg0: i32) -> (i32, i32) {
    %c0_i32 = arith.constant 0 : i32
    %c0_i32_0 = arith.constant 0 : i32
    return %arg0, %c0_i32 : i32, i32
  }
  func.func @transform_1(%arg0: i32) -> (i32, i32) {
    %c0_i32 = arith.constant 0 : i32
    %c0_i32_0 = arith.constant 0 : i32
    %c0_i32_1 = arith.constant 0 : i32
    return %c0_i32, %c0_i32_0 : i32, i32
  }
  func.func @transform_2(%arg0: i32) -> (i32, i32) {
    %c0_i32 = arith.constant 0 : i32
    %c0_i32_0 = arith.constant 0 : i32
    %c0_i32_1 = arith.constant 0 : i32
    return %c0_i32, %c0_i32_0 : i32, i32
  }
  func.func @transform_3(%arg0: i32) -> (i32, i32) {
    %c0_i32 = arith.constant 0 : i32
    %c0_i32_0 = arith.constant 0 : i32
    %c0_i32_1 = arith.constant 0 : i32
    return %c0_i32, %c0_i32_0 : i32, i32
  }
  func.func @transform_4(%arg0: i32) -> (i32, i32) {
    %c0_i32 = arith.constant 0 : i32
    %c0_i32_0 = arith.constant 0 : i32
    %c0_i32_1 = arith.constant 0 : i32
    return %c0_i32, %c0_i32_0 : i32, i32
  }
  func.func @transform_5(%arg0: i32) -> (i32, i32) {
    %c0_i32 = arith.constant 0 : i32
    %c0_i32_0 = arith.constant 0 : i32
    %c0_i32_1 = arith.constant 0 : i32
    return %c0_i32, %c0_i32_0 : i32, i32
  }
  func.func @transform_6(%arg0: i32) -> (i32, i32) {
    %c0_i32 = arith.constant 0 : i32
    %c0_i32_0 = arith.constant 0 : i32
    %c0_i32_1 = arith.constant 0 : i32
    return %c0_i32, %c0_i32_0 : i32, i32
  }
  func.func @transform_7(%arg0: i32) -> (i32, i32) {
    %c0_i32 = arith.constant 0 : i32
    %c0_i32_0 = arith.constant 0 : i32
    return %arg0, %c0_i32 : i32, i32
  }
}

module attributes {stable_mosaic.version = 11 : i64} {
  func.func @_head_kernel(%arg0: i32, %arg1: memref<2x64x128xf32, #tpu.memory_space<vmem>>, %arg2: memref<1x128xf32, #tpu.memory_space<vmem>>, %arg3: memref<1x128xf32, #tpu.memory_space<vmem>>, %arg4: memref<128x16xbf16, #tpu.memory_space<vmem>>, %arg5: memref<1x16xf32, #tpu.memory_space<vmem>>, %arg6: memref<2x16xf32, #tpu.memory_space<vmem>>) attributes {dimension_semantics = [#tpu.dimension_semantics<arbitrary>], iteration_bounds = array<i64: 1>, scalar_prefetch = 0 : i64, scratch_operands = 0 : i64, tpu.core_type = #tpu.core_type<tc>, window_params = [{pipeline_mode = #tpu.pipeline_mode<synchronous>, transform_indices = @transform_0, window_bounds = array<i64: 2, 64, 128>}, {pipeline_mode = #tpu.pipeline_mode<synchronous>, transform_indices = @transform_1, window_bounds = array<i64: 1, 128>}, {pipeline_mode = #tpu.pipeline_mode<synchronous>, transform_indices = @transform_2, window_bounds = array<i64: 1, 128>}, {pipeline_mode = #tpu.pipeline_mode<synchronous>, transform_indices = @transform_3, window_bounds = array<i64: 128, 16>}, {pipeline_mode = #tpu.pipeline_mode<synchronous>, transform_indices = @transform_4, window_bounds = array<i64: 1, 16>}, {pipeline_mode = #tpu.pipeline_mode<synchronous>, transform_indices = @transform_5, window_bounds = array<i64: 2, 16>}]} {
    %c0 = arith.constant 0 : index
    %c0_0 = arith.constant 0 : index
    %c0_1 = arith.constant 0 : index
    %0 = vector.load %arg1[%c0, %c0_0, %c0_1] : memref<2x64x128xf32, #tpu.memory_space<vmem>>, vector<2x64x128xf32>
    %cst = arith.constant dense<0.000000e+00> : vector<2x128xf32>
    %1 = vector.multi_reduction <add>, %0, %cst [1] : vector<2x64x128xf32> to vector<2x128xf32>
    %cst_2 = arith.constant 6.400000e+01 : f32
    %2 = vector.broadcast %cst_2 : f32 to vector<2x128xf32>
    %3 = arith.divf %1, %2 : vector<2x128xf32>
    %c0_3 = arith.constant 0 : index
    %c0_4 = arith.constant 0 : index
    %4 = vector.load %arg2[%c0_3, %c0_4] : memref<1x128xf32, #tpu.memory_space<vmem>>, vector<1x128xf32>
    %c0_5 = arith.constant 0 : index
    %c0_6 = arith.constant 0 : index
    %5 = vector.load %arg3[%c0_5, %c0_6] : memref<1x128xf32, #tpu.memory_space<vmem>>, vector<1x128xf32>
    %cst_7 = arith.constant dense<0.000000e+00> : vector<2xf32>
    %6 = vector.multi_reduction <add>, %3, %cst_7 [1] : vector<2x128xf32> to vector<2xf32>
    %7 = vector.shape_cast %6 : vector<2xf32> to vector<2x1xf32>
    %cst_8 = arith.constant 1.280000e+02 : f32
    %8 = vector.broadcast %cst_8 : f32 to vector<2x1xf32>
    %9 = arith.divf %7, %8 : vector<2x1xf32>
    %10 = vector.broadcast %9 : vector<2x1xf32> to vector<2x128xf32>
    %11 = arith.subf %3, %10 : vector<2x128xf32>
    %12 = arith.mulf %11, %11 : vector<2x128xf32>
    %cst_9 = arith.constant dense<0.000000e+00> : vector<2xf32>
    %13 = vector.multi_reduction <add>, %12, %cst_9 [1] : vector<2x128xf32> to vector<2xf32>
    %14 = vector.shape_cast %13 : vector<2xf32> to vector<2x1xf32>
    %cst_10 = arith.constant 1.280000e+02 : f32
    %15 = vector.broadcast %cst_10 : f32 to vector<2x1xf32>
    %16 = arith.divf %14, %15 : vector<2x1xf32>
    %17 = vector.broadcast %9 : vector<2x1xf32> to vector<2x128xf32>
    %18 = arith.subf %3, %17 : vector<2x128xf32>
    %cst_11 = arith.constant 9.99999974E-6 : f32
    %19 = vector.broadcast %cst_11 : f32 to vector<2x1xf32>
    %20 = arith.addf %16, %19 : vector<2x1xf32>
    %21 = math.rsqrt %20 : vector<2x1xf32>
    %22 = vector.broadcast %21 : vector<2x1xf32> to vector<2x128xf32>
    %23 = arith.mulf %18, %22 : vector<2x128xf32>
    %24 = vector.broadcast %4 : vector<1x128xf32> to vector<2x128xf32>
    %25 = arith.mulf %23, %24 : vector<2x128xf32>
    %26 = vector.broadcast %5 : vector<1x128xf32> to vector<2x128xf32>
    %27 = arith.addf %25, %26 : vector<2x128xf32>
    %28 = arith.truncf %27 : vector<2x128xf32> to vector<2x128xbf16>
    %c0_12 = arith.constant 0 : index
    %c0_13 = arith.constant 0 : index
    %29 = vector.load %arg4[%c0_12, %c0_13] : memref<128x16xbf16, #tpu.memory_space<vmem>>, vector<128x16xbf16>
    %cst_14 = arith.constant dense<0.000000e+00> : vector<2x16xf32>
    %30 = tpu.matmul %28, %29, %cst_14 {dimension_numbers = #tpu.dot_dimension_numbers<[1], [0], [0], [1], [0, 0, 1, 1], [], []>} : vector<2x128xbf16>, vector<128x16xbf16>, vector<2x16xf32> -> vector<2x16xf32>
    %c0_15 = arith.constant 0 : index
    %c0_16 = arith.constant 0 : index
    %31 = vector.load %arg5[%c0_15, %c0_16] : memref<1x16xf32, #tpu.memory_space<vmem>>, vector<1x16xf32>
    %32 = vector.broadcast %31 : vector<1x16xf32> to vector<2x16xf32>
    %33 = arith.addf %30, %32 : vector<2x16xf32>
    %c0_17 = arith.constant 0 : index
    %c0_18 = arith.constant 0 : index
    %34 = vector.load %arg6[%c0_17, %c0_18] : memref<2x16xf32, #tpu.memory_space<vmem>>, vector<2x16xf32>
    tpu.vector_store %arg6[%c0_17, %c0_18], %33 {strides = array<i32>} : memref<2x16xf32, #tpu.memory_space<vmem>>, vector<2x16xf32>,
    return
  }
  func.func @transform_0(%arg0: i32) -> (i32, i32, i32) {
    %c0_i32 = arith.constant 0 : i32
    %c0_i32_0 = arith.constant 0 : i32
    %c0_i32_1 = arith.constant 0 : i32
    %c0_i32_2 = arith.constant 0 : i32
    return %c0_i32, %c0_i32_0, %c0_i32_1 : i32, i32, i32
  }
  func.func @transform_1(%arg0: i32) -> (i32, i32) {
    %c0_i32 = arith.constant 0 : i32
    %c0_i32_0 = arith.constant 0 : i32
    %c0_i32_1 = arith.constant 0 : i32
    return %c0_i32, %c0_i32_0 : i32, i32
  }
  func.func @transform_2(%arg0: i32) -> (i32, i32) {
    %c0_i32 = arith.constant 0 : i32
    %c0_i32_0 = arith.constant 0 : i32
    %c0_i32_1 = arith.constant 0 : i32
    return %c0_i32, %c0_i32_0 : i32, i32
  }
  func.func @transform_3(%arg0: i32) -> (i32, i32) {
    %c0_i32 = arith.constant 0 : i32
    %c0_i32_0 = arith.constant 0 : i32
    %c0_i32_1 = arith.constant 0 : i32
    return %c0_i32, %c0_i32_0 : i32, i32
  }
  func.func @transform_4(%arg0: i32) -> (i32, i32) {
    %c0_i32 = arith.constant 0 : i32
    %c0_i32_0 = arith.constant 0 : i32
    %c0_i32_1 = arith.constant 0 : i32
    return %c0_i32, %c0_i32_0 : i32, i32
  }
  func.func @transform_5(%arg0: i32) -> (i32, i32) {
    %c0_i32 = arith.constant 0 : i32
    %c0_i32_0 = arith.constant 0 : i32
    %c0_i32_1 = arith.constant 0 : i32
    return %c0_i32, %c0_i32_0 : i32, i32
  }
}

</mosaic_0001>

<bundles_post_ra>
// kernel: _lambda_.17
= control target key start
LH: loop header
LB: loop body
LE: loop exit
PB: predicated region body
PF: predicated region fallthrough
CT: control target
= control target key end

     0   :  { %s464_s0 = inlined_call_operand.vmem [shape: f32[2,64,128], index: 0, kind: input, shape index: {}]   ;;  %s465_s1 = inlined_call_operand.vmem [shape: f32[1,128], index: 1, kind: input, shape index: {}]   ;;  %s466_s2 = inlined_call_operand.vmem [shape: f32[1,128], index: 2, kind: input, shape index: {}]   ;;  %s467_s3 = inlined_call_operand.vmem [shape: bf16[128,16], index: 3, kind: input, shape index: {}]   ;;  %s468_s4 = inlined_call_operand.vmem [shape: f32[1,16], index: 4, kind: input, shape index: {}]   ;;  %s469_s5 = inlined_call_operand.hbm [shape: f32[2,16], index: 5, kind: output, shape index: {}]  }
   0x1   :  { %v22_v0 = vld [vmem:[%s464_s0] sm:$0xff]  ;;  %v23_v1 = vld [vmem:[%s464_s0 + $0x8] sm:$0xff]  ;;  %v24_v2 = vld [vmem:[%s464_s0 + $0x10] sm:$0xff] }
   0x2   :  { %v38_v3 = vadd.f32 %v23_v1, %v22_v0  ;;  %v25_v4 = vld [vmem:[%s464_s0 + $0x18] sm:$0xff]  ;;  %v30_v5 = vld [vmem:[%s464_s0 + $0x40] sm:$0xff]  ;;  %v31_v6 = vld [vmem:[%s464_s0 + $0x48] sm:$0xff] }
   0x3   :  { %v32_v7 = vld [vmem:[%s464_s0 + $0x50] sm:$0xff]  ;;  %v26_v9 = vld [vmem:[%s464_s0 + $0x20] sm:$0xff]  ;;  %v27_v10 = vld [vmem:[%s464_s0 + $0x28] sm:$0xff]  ;;  %v51_v12 = vadd.f32 %v31_v6, %v30_v5 }
   0x4   :  { %v39_v8 = vadd.f32 %v38_v3, %v24_v2  ;;  %v33_v11 = vld [vmem:[%s464_s0 + $0x58] sm:$0xff]  ;;  %v34_v13 = vld [vmem:[%s464_s0 + $0x60] sm:$0xff]  ;;  %v28_v15 = vld [vmem:[%s464_s0 + $0x30] sm:$0xff] }
   0x5   :  { %v52_v16 = vadd.f32 %v51_v12, %v32_v7  ;;  %v35_v17 = vld [vmem:[%s464_s0 + $0x68] sm:$0xff]  ;;  %v29_v19 = vld [vmem:[%s464_s0 + $0x38] sm:$0xff] }
   0x6   :  { %v40_v14 = vadd.f32 %v39_v8, %v25_v4 }
   0x7   :  { %v53_v20 = vadd.f32 %v52_v16, %v33_v11 }
   0x8   :  { %v41_v18 = vadd.f32 %v40_v14, %v26_v9 }
   0x9   :  { %v54_v22 = vadd.f32 %v53_v20, %v34_v13 }
   0xa   :  { %v42_v21 = vadd.f32 %v41_v18, %v27_v10 }
   0xb   :  { %10 = vsyncpa [#allocation3], 0  ;;  %v36_v23 = vld [vmem:[%s464_s0 + $0x70] sm:$0xff]  ;;  %v55_v25 = vadd.f32 %v54_v22, %v35_v17  ;;  %v37_v26 = vld [vmem:[%s464_s0 + $0x78] sm:$0xff]  ;;  %vm71_vm0 = vcmask 1041409   ;;  %vm74_vm1 = vcmask 1041408  }
   0xc   :  { %v43_v24 = vadd.f32 %v42_v21, %v28_v15  ;;  %v301_v56 = vld [vmem:[%s467_s3] sm:$0xff]   ;;  %v335_v57 = vmov 0.0   ;;  %v302_v58 = vld [vmem:[%s467_s3 + $0x8] sm:$0xff]   ;;  %v303_v59 = vld [vmem:[%s467_s3 + $0x10] sm:$0xff]   ;;  %vm336_vm2 = vmmov 0   ;;  %s337_s19 = smov [#allocation2]  }
   0xd   :  { %v56_v28 = vadd.f32 %v55_v25, %v36_v23  ;;  %278 = vmatprep.subr.bf16.mxu0 %v335_v57  ;;  %v304_v60 = vld [vmem:[%s467_s3 + $0x18] sm:$0xff]   ;;  %v305_v61 = vld [vmem:[%s467_s3 + $0x20] sm:$0xff]   ;;  %v306_v62 = vld [vmem:[%s467_s3 + $0x28] sm:$0xff]   ;;  %294 = vmatprep.mubr.msk.bf16.mxu0 %vm336_vm2, %v335_v57  ;;  %vm242_vm3 = vcmask 123904  }
   0xe   :  { %v44_v27 = vadd.f32 %v43_v24, %v29_v19  ;;  %279 = vmatpush3.bf16.msra.mxu0 %v301_v56  ;;  %v307_v63 = vld [vmem:[%s467_s3 + $0x30] sm:$0xff]   ;;  %v308_v0 = vld [vmem:[%s467_s3 + $0x38] sm:$0xff]   ;;  %v258_v5 = vld [vmem:[%s465_s1] ss:$0 sm:$0xff] }
   0xf   :  { %v57_v30 = vadd.f32 %v56_v28, %v37_v26  ;;  %280 = vmatprep.subr.bf16.mxu0 %v335_v57  ;;  %v259_v8 = vld [vmem:[%s466_s2] ss:$0 sm:$0xff]  ;;  %s250_s2 = sshll.u32 %s337_s19, 4  ;;  %s251_s2 = int_to_ptr.vmem [resolvable:$true] %s250_s2 }
  0x10   :  { %v45_v29 = vrot.slane %v44_v27, 4  ;;  %v260_v21 = vld [vmem:[%s468_s4] ss:$0 sm:$0xff]  ;;  %s311_s20 = scalar_lea.vmem %s251_s2, 32  ;;  %p316_p1 = scmp.lt.s32.totalorder %s251_s2, %s251_s2 }
  0x11   :  { %v58_v32 = vrot.slane %v57_v30, 4  ;;  %p312_p0 = scmp.ne.s32.totalorder %s251_s2, %s311_s20  ;;  %p317_p2 = scmp.lt.s32.totalorder %s311_s20, %s311_s20 }
  0x12   :  { %v46_v31 = vadd.f32 %v45_v29, %v44_v27  ;;  %281 = vmatpush3.bf16.msra.mxu0 %v302_v58 }
  0x13   :  { %v59_v34 = vadd.f32 %v58_v32, %v57_v30  ;;  %282 = vmatprep.subr.bf16.mxu0 %v335_v57  ;;  %p318_p3 = por %p317_p2, %p316_p1 }
  0x14   :  { %v47_v33 = vrot.slane %v46_v31, 2 }
  0x15   :  { %v60_v36 = vrot.slane %v59_v34, 2  ;;  %p319_p4 = pnand %p318_p3, %p312_p0 }
  0x16   :  { %v48_v35 = vadd.f32 %v47_v33, %v46_v31  ;;  %283 = vmatpush3.bf16.msra.mxu0 %v303_v59 }
  0x17   :  { %v61_v38 = vadd.f32 %v60_v36, %v59_v34  ;;  %284 = vmatprep.subr.bf16.mxu0 %v335_v57 }
  0x18   :  { %v49_v37 = vrot.slane %v48_v35, 1 }
  0x19   :  { %v62_v40 = vrot.slane %v61_v38, 1 }
  0x1a   :  { %v50_v39 = vadd.f32 %v49_v37, %v48_v35  ;;  %285 = vmatpush3.bf16.msra.mxu0 %v304_v60 }
  0x1b   :  { %v63_v41 = vadd.f32 %v62_v40, %v61_v38  ;;  %286 = vmatprep.subr.bf16.mxu0 %v335_v57 }
  0x1c   :  { %v65_v42 = vmul.f32 0.015625, %v50_v39 }
  0x1d   :  { %v66_v43 = vmul.f32 0.015625, %v63_v41 }
  0x1e   :  { %287 = vmatpush3.bf16.msra.mxu0 %v305_v61 }
  0x1f   :  { %v72_v44 = vsel %vm71_vm0, %v66_v43, %v65_v42  ;;  %288 = vmatprep.subr.bf16.mxu0 %v335_v57 }
  0x20   :  { %v75_v45 = vsel %vm74_vm1, %v72_v44, 0.0 }
  0x21   :  { %76 = vadd.xlane.f32.xlu0 %v75_v45 }
  0x22   :  { %289 = vmatpush3.bf16.msra.mxu0 %v306_v62 }
  0x23   :  { %290 = vmatprep.subr.bf16.mxu0 %v335_v57 }
  0x26   :  { %291 = vmatpush3.bf16.msra.mxu0 %v307_v63 }
  0x27   :  { %292 = vmatprep.subr.bf16.mxu0 %v335_v57 }
  0x2a   :  { %293 = vmatpush3.bf16.msra.mxu0 %v308_v0 }
  0xae   :  { %v77_v46 = vpop.xlane.xlu0 %76 }
  0xaf   :  { %v79_v47 = vmul.f32 0.0078125, %v77_v46 }
  0xb1   :  { %v81_v48 = vrot.slane %v79_v47, 1  ;;  %v84_v49 = vsub.f32 %v65_v42, %v79_v47 }
  0xb3   :  { %v85_v50 = vsub.f32 %v66_v43, %v81_v48  ;;  %v86_v52 = vmul.f32 %v84_v49, %v84_v49 }
  0xb5   :  { %v87_v51 = vmul.f32 %v85_v50, %v85_v50 }
  0xb7   :  { %v90_v53 = vrot.slane %v87_v51, 7 }
  0xb9   :  { %v91_v54 = vsel %vm71_vm0, %v90_v53, %v86_v52 }
  0xba   :  { %v93_v55 = vsel %vm74_vm1, %v91_v54, 0.0 }
  0xbb   :  { %94 = vadd.xlane.f32.xlu0 %v93_v55 }
 0x148   :  { %v95_v1 = vpop.xlane.xlu0 %94 }
 0x149   :  { %v96_v2 = vmul.f32 0.0078125, %v95_v1 }
 0x14b   :  { %v97_v3 = vadd.f32 1e-05, %v96_v2 }
 0x14d   :  { %309 = vrsqrt.f32 %v97_v3 }
 0x157   :  { %v310_v4 = vpop.eup %309 }
 0x158   :  { %v100_v6 = vrot.slane %v310_v4, 1  ;;  %v103_v7 = vmul.f32 %v310_v4, %v84_v49 }
 0x15a   :  { %v104_v9 = vmul.f32 %v100_v6, %v85_v50  ;;  %v111_v10 = vmul.f32 %v258_v5, %v103_v7 }
 0x15c   :  { %v112_v11 = vmul.f32 %v258_v5, %v104_v9  ;;  %v119_v12 = vadd.f32 %v259_v8, %v111_v10 }
 0x15e   :  { %v120_v13 = vadd.f32 %v259_v8, %v112_v11  ;;  %v121_v14 = vpack.c.bf16 %v119_v12, %v119_v12 }
 0x160   :  { %v122_v15 = vpack.c.bf16 %v120_v13, %v120_v13  ;;  %v148_v17 = vunpack.c.l.b16 %v121_v14 }
 0x162   :  { %v149_v16 = vunpack.c.l.b16 %v122_v15 }
 0x164   :  { %v150_v18 = vrot.slane %v149_v16, 7 }
 0x166   :  { %v151_v19 = vsel %vm71_vm0, %v150_v18, %v148_v17 }
 0x167   :  { %v152_v20 = vpack.c.b16 %v151_v19, %v151_v19 }
 0x169   :  { %295 = vmatmul.mubr.bf16.vlgmr.msra.gmra.mrb[0].mxu0 %v152_v20 }
 0x23c   :  { %v236_v22 = vpop.f32.mrb[0].mxu0 }
 0x23d   :  { %v237_v23 = vadd.f32 %v260_v21, %v236_v22  ;;  %v296_v24 = vpop.f32.mrb[1].mxu0 }
 0x23e   :  { %v239_v25 = vpop.f32.mrb[2].mxu0 }
 0x23f   :  { %v297_v26 = vpop.f32.mrb[3].mxu0  ;;  %243 = vst.msk [vmem:[#allocation2] sm:$0x3] %vm242_vm3, %v237_v23 }
 0x240   :  { %322 = shalt.err (!%p319_p4)
}
 0x241   :  { %s323_s4 = scalar_lea.hbm %s469_s5, 32 }
 0x242   :  { %p324_p5 = scmp.ne.s32.totalorder %s469_s5, %s323_s4  ;;  %p327_p6 = scmp.lt.u32.totalorder %s323_s4, %s469_s5 }
 0x244   :  { %p329_p7 = pnand %p327_p6, %p324_p5 }
 0x246   :  { %332 = shalt.err (!%p329_p7)
}
 0x247   :  { %253 = dma.vmem_to_hbm [thread:$0]  %s251_s2, 32, %s469_s5, [#allocation3]  }
 0x248   :  { %333 = dma.done.wait [#allocation3], 32  }
 0x249   :  { %334 = vsyncadd [#allocation3], 4294967264 }
 0x24a   :  { %257 = vsyncpa [#allocation3], 1 }

// kernel: _lambda_.9
= control target key start
LH: loop header
LB: loop body
LE: loop exit
PB: predicated region body
PF: predicated region fallthrough
CT: control target
= control target key end

     0   :  { %s2483_s13 = smov 0   ;;  %s3292_s0 = inlined_call_operand.vmem [shape: f32[2,64,128], index: 0, kind: input, shape index: {}]   ;;  %s3293_s1 = inlined_call_operand.vmem [shape: f32[2,256,22], index: 1, kind: input, shape index: {}]   ;;  %s3294_s2 = inlined_call_operand.vmem [shape: f32[1,128], index: 2, kind: input, shape index: {}]   ;;  %s3295_s3 = inlined_call_operand.vmem [shape: f32[1,128], index: 3, kind: input, shape index: {}]   ;;  %s3296_s4 = inlined_call_operand.vmem [shape: f32[1,22], index: 4, kind: input, shape index: {}]   ;;  %s3297_s5 = inlined_call_operand.vmem [shape: f32[1,22], index: 5, kind: input, shape index: {}]   ;;  %s3298_s6 = inlined_call_operand.vmem [shape: bf16[128,32], index: 6, kind: input, shape index: {}]   ;;  %s3299_s7 = inlined_call_operand.vmem [shape: bf16[22,64], index: 7, kind: input, shape index: {}]   ;;  %s3300_s8 = inlined_call_operand.vmem [shape: bf16[32,128], index: 8, kind: input, shape index: {}]   ;;  %s3301_s9 = inlined_call_operand.vmem [shape: f32[1,128], index: 9, kind: input, shape index: {}]   ;;  %s3302_s10 = inlined_call_operand.vmem [shape: f32[2,64,128], index: 10, kind: output, shape index: {}]  }
   0x1 LB: > { %s2024_s14 = sadd.s32 4294967295, %s2425_s13   ;;  %p2028_p0 = scmp.ge.s32.totalorder %s2425_s13, 1  ;;  %s2425_s13 = sphi %s2483_s13, %s20_s13  }
   0x2   : > { %p322_p1 = scmp.lt.s32.totalorder %s2425_s13, 3 }
   0x4   : > { %p323_p2 = pnand %p2028_p0, %p322_p1 }
   0x5   : > { %p365_p3 = scmp.lt.s32.totalorder (!%p323_p2), %s2024_s14, 1  ;;  %vm542_vm0 = vcmask (!%p323_p2), 179200   ;;  %vm1245_vm1 = vcmask (!%p323_p2), 1042432   ;;  %s2427_s17 = smov (!%p323_p2), 96   ;;  %vm1430_vm2 = vcmask (!%p323_p2), 261120  }
   0x6   : > { %326 = sbr.rel (%p323_p2) target bundleno = 1741 (0x6cd), region = 60 }
   0xd   : > { %s3304_s14 = smov (!%p365_p3, %s2024_s14), 1 }
   0xe   : > { %s2079_s15 = sshll.u32 %s3304_s14, 8  ;;  %s2078_s19 = sshll.u32 %s3304_s14, 6 }
   0xf   : > { %s2497_s18 = scalar_lea.vmem %s3293_s1, %s2079_s15  ;;  %s2665_s22 = scalar_lea.vmem %s3292_s0, %s2078_s19 }
  0x10   : > { %v2500_v0 = vld [vmem:[%s2497_s18] sm:$0xff]  ;;  %v2503_v1 = vld [vmem:[%s2497_s18 + $0x10] sm:$0xff]  ;;  %v2506_v2 = vld [vmem:[%s2497_s18 + $0x8] sm:$0xff]  ;;  %s3271_s28 = scalar_lea.vmem %s3302_s10, %s2078_s19 }
  0x11   : > { %v543_v3 = vsel %vm542_vm0, %v2500_v0, 0.0  ;;  %v549_v4 = vsel %vm542_vm0, %v2503_v1, 0.0  ;;  %v2513_v5 = vld [vmem:[%s2497_s18 + $0x18] sm:$0xff]  ;;  %v546_v6 = vsel %vm542_vm0, %v2506_v2, 0.0  ;;  %v2520_v8 = vld [vmem:[%s2497_s18 + $0x20] sm:$0xff]  ;;  %v2523_v9 = vld [vmem:[%s2497_s18 + $0x28] sm:$0xff] }
  0x12   : > { %544 = vadd.xlane.f32.xlu0 %v543_v3  ;;  %550 = vadd.xlane.f32.xlu1 %v549_v4  ;;  %v552_v7 = vsel %vm542_vm0, %v2513_v5, 0.0  ;;  %v555_v10 = vsel %vm542_vm0, %v2520_v8, 0.0  ;;  %v558_v11 = vsel %vm542_vm0, %v2523_v9, 0.0  ;;  %v2530_v12 = vld [vmem:[%s2497_s18 + $0x30] sm:$0xff]  ;;  %v2533_v13 = vld [vmem:[%s2497_s18 + $0x38] sm:$0xff]  ;;  %v2540_v16 = vld [vmem:[%s2497_s18 + $0x40] sm:$0xff] }
  0x13   : > { %v561_v14 = vsel %vm542_vm0, %v2530_v12, 0.0  ;;  %v564_v15 = vsel %vm542_vm0, %v2533_v13, 0.0  ;;  %v2543_v17 = vld [vmem:[%s2497_s18 + $0x48] sm:$0xff]  ;;  %v567_v18 = vsel %vm542_vm0, %v2540_v16, 0.0  ;;  %v2550_v20 = vld [vmem:[%s2497_s18 + $0x50] sm:$0xff]  ;;  %v2553_v21 = vld [vmem:[%s2497_s18 + $0x58] sm:$0xff] }
  0x14   : > { %v570_v19 = vsel %vm542_vm0, %v2543_v17, 0.0  ;;  %v573_v22 = vsel %vm542_vm0, %v2550_v20, 0.0  ;;  %v576_v23 = vsel %vm542_vm0, %v2553_v21, 0.0  ;;  %v2560_v24 = vld [vmem:[%s2497_s18 + $0x60] sm:$0xff]  ;;  %v2563_v25 = vld [vmem:[%s2497_s18 + $0x68] sm:$0xff]  ;;  %v2570_v28 = vld [vmem:[%s2497_s18 + $0x70] sm:$0xff] }
  0x15   : > { %v579_v26 = vsel %vm542_vm0, %v2560_v24, 0.0  ;;  %v582_v27 = vsel %vm542_vm0, %v2563_v25, 0.0  ;;  %v2573_v29 = vld [vmem:[%s2497_s18 + $0x78] sm:$0xff]  ;;  %v585_v30 = vsel %vm542_vm0, %v2570_v28, 0.0  ;;  %v2580_v32 = vld [vmem:[%s2497_s18 + $0x80] sm:$0xff]  ;;  %v2583_v33 = vld [vmem:[%s2497_s18 + $0x88] sm:$0xff] }
  0x16   : > { %547 = vadd.xlane.f32.xlu0 %v546_v6  ;;  %553 = vadd.xlane.f32.xlu1 %v552_v7  ;;  %v588_v31 = vsel %vm542_vm0, %v2573_v29, 0.0  ;;  %v591_v34 = vsel %vm542_vm0, %v2580_v32, 0.0  ;;  %v594_v35 = vsel %vm542_vm0, %v2583_v33, 0.0  ;;  %v2590_v36 = vld [vmem:[%s2497_s18 + $0x90] sm:$0xff]  ;;  %v2593_v37 = vld [vmem:[%s2497_s18 + $0x98] sm:$0xff]  ;;  %v2600_v40 = vld [vmem:[%s2497_s18 + $0xa0] sm:$0xff] }
  0x17   : > { %v597_v38 = vsel %vm542_vm0, %v2590_v36, 0.0  ;;  %v600_v39 = vsel %vm542_vm0, %v2593_v37, 0.0  ;;  %v2603_v41 = vld [vmem:[%s2497_s18 + $0xa8] sm:$0xff]  ;;  %v603_v42 = vsel %vm542_vm0, %v2600_v40, 0.0  ;;  %v2610_v44 = vld [vmem:[%s2497_s18 + $0xb0] sm:$0xff]  ;;  %v2613_v45 = vld [vmem:[%s2497_s18 + $0xb8] sm:$0xff] }
  0x18   : > { %v606_v43 = vsel %vm542_vm0, %v2603_v41, 0.0  ;;  %v609_v46 = vsel %vm542_vm0, %v2610_v44, 0.0  ;;  %v612_v47 = vsel %vm542_vm0, %v2613_v45, 0.0  ;;  %v2620_v48 = vld [vmem:[%s2497_s18 + $0xc0] sm:$0xff]  ;;  %v2623_v49 = vld [vmem:[%s2497_s18 + $0xc8] sm:$0xff]  ;;  %v2630_v52 = vld [vmem:[%s2497_s18 + $0xd0] sm:$0xff] }
  0x19   : > { %v615_v50 = vsel %vm542_vm0, %v2620_v48, 0.0  ;;  %v618_v51 = vsel %vm542_vm0, %v2623_v49, 0.0  ;;  %v2633_v53 = vld [vmem:[%s2497_s18 + $0xd8] sm:$0xff]  ;;  %v621_v54 = vsel %vm542_vm0, %v2630_v52, 0.0  ;;  %v2640_v56 = vld [vmem:[%s2497_s18 + $0xe0] sm:$0xff]  ;;  %v2643_v57 = vld [vmem:[%s2497_s18 + $0xe8] sm:$0xff] }
  0x1a   : > { %556 = vadd.xlane.f32.xlu0 %v555_v10  ;;  %559 = vadd.xlane.f32.xlu1 %v558_v11  ;;  %v624_v55 = vsel %vm542_vm0, %v2633_v53, 0.0  ;;  %v627_v58 = vsel %vm542_vm0, %v2640_v56, 0.0  ;;  %v630_v59 = vsel %vm542_vm0, %v2643_v57, 0.0  ;;  %v2650_v60 = vld [vmem:[%s2497_s18 + $0xf0] sm:$0xff]  ;;  %v2653_v61 = vld [vmem:[%s2497_s18 + $0xf8] sm:$0xff]  ;;  %v2668_v3 = vld [vmem:[%s2665_s22] sm:$0xff] }
  0x1b   : > { %v633_v62 = vsel %vm542_vm0, %v2650_v60, 0.0  ;;  %v636_v63 = vsel %vm542_vm0, %v2653_v61, 0.0  ;;  %v2671_v4 = vld [vmem:[%s2665_s22 + $0x8] sm:$0xff]  ;;  %v2676_v6 = vld [vmem:[%s2665_s22 + $0x10] sm:$0xff]  ;;  %v2679_v7 = vld [vmem:[%s2665_s22 + $0x18] sm:$0xff] }
  0x1c   : > { %v2684_v10 = vld [vmem:[%s2665_s22 + $0x20] sm:$0xff]  ;;  %v2687_v11 = vld [vmem:[%s2665_s22 + $0x28] sm:$0xff] }
  0x1e   : > { %562 = vadd.xlane.f32.xlu0 %v561_v14  ;;  %565 = vadd.xlane.f32.xlu1 %v564_v15 }
  0x22   : > { %568 = vadd.xlane.f32.xlu0 %v567_v18  ;;  %571 = vadd.xlane.f32.xlu1 %v570_v19 }
  0x26   : > { %574 = vadd.xlane.f32.xlu0 %v573_v22  ;;  %577 = vadd.xlane.f32.xlu1 %v576_v23 }
  0x2a   : > { %580 = vadd.xlane.f32.xlu0 %v579_v26  ;;  %583 = vadd.xlane.f32.xlu1 %v582_v27 }
  0x2e   : > { %586 = vadd.xlane.f32.xlu0 %v585_v30  ;;  %589 = vadd.xlane.f32.xlu1 %v588_v31 }
  0x32   : > { %592 = vadd.xlane.f32.xlu0 %v591_v34  ;;  %595 = vadd.xlane.f32.xlu1 %v594_v35 }
  0x36   : > { %598 = vadd.xlane.f32.xlu0 %v597_v38  ;;  %601 = vadd.xlane.f32.xlu1 %v600_v39 }
  0x3a   : > { %604 = vadd.xlane.f32.xlu0 %v603_v42  ;;  %607 = vadd.xlane.f32.xlu1 %v606_v43 }
  0x3e   : > { %610 = vadd.xlane.f32.xlu0 %v609_v46  ;;  %613 = vadd.xlane.f32.xlu1 %v612_v47 }
  0x42   : > { %616 = vadd.xlane.f32.xlu0 %v615_v50  ;;  %619 = vadd.xlane.f32.xlu1 %v618_v51 }
  0x46   : > { %622 = vadd.xlane.f32.xlu0 %v621_v54  ;;  %625 = vadd.xlane.f32.xlu1 %v624_v55 }
  0x4a   : > { %628 = vadd.xlane.f32.xlu0 %v627_v58  ;;  %631 = vadd.xlane.f32.xlu1 %v630_v59 }
  0x4e   : > { %634 = vadd.xlane.f32.xlu0 %v633_v62  ;;  %637 = vadd.xlane.f32.xlu1 %v636_v63 }
  0x52   : > { %423 = vadd.xlane.f32.xlu0 %v2668_v3  ;;  %425 = vadd.xlane.f32.xlu1 %v2671_v4 }
  0x56   : > { %427 = vadd.xlane.f32.xlu0 %v2676_v6  ;;  %429 = vadd.xlane.f32.xlu1 %v2679_v7 }
  0x5a   : > { %431 = vadd.xlane.f32.xlu0 %v2684_v10  ;;  %433 = vadd.xlane.f32.xlu1 %v2687_v11 }
  0x9f   : > { %v545_v14 = vpop.xlane.xlu0 %544  ;;  %v551_v15 = vpop.xlane.xlu1 %550 }
  0xa0   : > { %v640_v18 = vmul.f32 0.045454547, %v545_v14  ;;  %v642_v19 = vmul.f32 0.045454547, %v551_v15 }
  0xa2   : > { %v2692_v22 = vsub.f32 %v2500_v0, %v640_v18  ;;  %v2695_v23 = vsub.f32 %v2503_v1, %v642_v19 }
  0xa3   : > { %v548_v26 = vpop.xlane.xlu0 %547  ;;  %v554_v27 = vpop.xlane.xlu1 %553 }
  0xa4   : > { %v641_v30 = vmul.f32 0.045454547, %v548_v26  ;;  %v643_v31 = vmul.f32 0.045454547, %v554_v27  ;;  %v704_v34 = vmul.f32 %v2692_v22, %v2692_v22  ;;  %v706_v35 = vmul.f32 %v2695_v23, %v2695_v23 }
  0xa6   : > { %v2702_v38 = vsub.f32 %v2506_v2, %v641_v30  ;;  %v2705_v39 = vsub.f32 %v2513_v5, %v643_v31  ;;  %v736_v0 = vsel %vm542_vm0, %v704_v34, 0.0  ;;  %v742_v43 = vsel %vm542_vm0, %v706_v35, 0.0 }
  0xa7   : > { %v557_v1 = vpop.xlane.xlu0 %556  ;;  %737 = vadd.xlane.f32.xlu0 %v736_v0  ;;  %v560_v42 = vpop.xlane.xlu1 %559 }
  0xa8   : > { %v644_v46 = vmul.f32 0.045454547, %v557_v1  ;;  %v645_v47 = vmul.f32 0.045454547, %v560_v42  ;;  %v705_v50 = vmul.f32 %v2702_v38, %v2702_v38  ;;  %v707_v51 = vmul.f32 %v2705_v39, %v2705_v39 }
  0xaa   : > { %v2714_v2 = vsub.f32 %v2520_v8, %v644_v46  ;;  %v2717_v5 = vsub.f32 %v2523_v9, %v645_v47  ;;  %v739_v54 = vsel %vm542_vm0, %v705_v50, 0.0  ;;  %v745_v59 = vsel %vm542_vm0, %v707_v51, 0.0 }
  0xab   : > { %v563_v55 = vpop.xlane.xlu0 %562  ;;  %740 = vadd.xlane.f32.xlu1 %v739_v54  ;;  %743 = vadd.xlane.f32.xlu0 %v742_v43  ;;  %v566_v58 = vpop.xlane.xlu1 %565 }
  0xac   : > { %v646_v62 = vmul.f32 0.045454547, %v563_v55  ;;  %v647_v63 = vmul.f32 0.045454547, %v566_v58  ;;  %v708_v14 = vmul.f32 %v2714_v2, %v2714_v2  ;;  %v709_v8 = vmul.f32 %v2717_v5, %v2717_v5 }
  0xae   : > { %v2726_v15 = vsub.f32 %v2530_v12, %v646_v62  ;;  %v2729_v9 = vsub.f32 %v2533_v13, %v647_v63  ;;  %v748_v18 = vsel %vm542_vm0, %v708_v14, 0.0  ;;  %v751_v27 = vsel %vm542_vm0, %v709_v8, 0.0 }
  0xaf   : > { %v569_v19 = vpop.xlane.xlu0 %568  ;;  %746 = vadd.xlane.f32.xlu1 %v745_v59  ;;  %749 = vadd.xlane.f32.xlu0 %v748_v18  ;;  %v572_v26 = vpop.xlane.xlu1 %571 }
  0xb0   : > { %v648_v30 = vmul.f32 0.045454547, %v569_v19  ;;  %v649_v31 = vmul.f32 0.045454547, %v572_v26  ;;  %v710_v34 = vmul.f32 %v2726_v15, %v2726_v15  ;;  %v711_v12 = vmul.f32 %v2729_v9, %v2729_v9 }
  0xb2   : > { %v2738_v35 = vsub.f32 %v2540_v16, %v648_v30  ;;  %v2741_v13 = vsub.f32 %v2543_v17, %v649_v31  ;;  %v754_v0 = vsel %vm542_vm0, %v710_v34, 0.0  ;;  %v757_v43 = vsel %vm542_vm0, %v711_v12, 0.0 }
  0xb3   : > { %v575_v1 = vpop.xlane.xlu0 %574  ;;  %752 = vadd.xlane.f32.xlu1 %v751_v27  ;;  %755 = vadd.xlane.f32.xlu0 %v754_v0  ;;  %v578_v42 = vpop.xlane.xlu1 %577 }
  0xb4   : > { %v650_v46 = vmul.f32 0.045454547, %v575_v1  ;;  %v651_v47 = vmul.f32 0.045454547, %v578_v42  ;;  %v712_v50 = vmul.f32 %v2738_v35, %v2738_v35  ;;  %v713_v16 = vmul.f32 %v2741_v13, %v2741_v13 }
  0xb6   : > { %v2750_v51 = vsub.f32 %v2550_v20, %v650_v46  ;;  %v2753_v17 = vsub.f32 %v2553_v21, %v651_v47  ;;  %v760_v54 = vsel %vm542_vm0, %v712_v50, 0.0  ;;  %v763_v59 = vsel %vm542_vm0, %v713_v16, 0.0 }
  0xb7   : > { %v581_v55 = vpop.xlane.xlu0 %580  ;;  %758 = vadd.xlane.f32.xlu1 %v757_v43  ;;  %761 = vadd.xlane.f32.xlu0 %v760_v54  ;;  %v584_v58 = vpop.xlane.xlu1 %583 }
  0xb8   : > { %v652_v62 = vmul.f32 0.045454547, %v581_v55  ;;  %v653_v63 = vmul.f32 0.045454547, %v584_v58  ;;  %v714_v14 = vmul.f32 %v2750_v51, %v2750_v51  ;;  %v715_v20 = vmul.f32 %v2753_v17, %v2753_v17 }
  0xba   : > { %v2762_v8 = vsub.f32 %v2560_v24, %v652_v62  ;;  %v2765_v21 = vsub.f32 %v2563_v25, %v653_v63  ;;  %v766_v18 = vsel %vm542_vm0, %v714_v14, 0.0  ;;  %v769_v27 = vsel %vm542_vm0, %v715_v20, 0.0 }
  0xbb   : > { %v587_v19 = vpop.xlane.xlu0 %586  ;;  %764 = vadd.xlane.f32.xlu1 %v763_v59  ;;  %767 = vadd.xlane.f32.xlu0 %v766_v18  ;;  %v590_v26 = vpop.xlane.xlu1 %589 }
  0xbc   : > { %v654_v30 = vmul.f32 0.045454547, %v587_v19  ;;  %v655_v31 = vmul.f32 0.045454547, %v590_v26  ;;  %v716_v34 = vmul.f32 %v2762_v8, %v2762_v8  ;;  %v717_v24 = vmul.f32 %v2765_v21, %v2765_v21 }
  0xbe   : > { %v2774_v12 = vsub.f32 %v2570_v28, %v654_v30  ;;  %v2777_v25 = vsub.f32 %v2573_v29, %v655_v31  ;;  %v772_v0 = vsel %vm542_vm0, %v716_v34, 0.0  ;;  %v775_v43 = vsel %vm542_vm0, %v717_v24, 0.0 }
  0xbf   : > { %v593_v1 = vpop.xlane.xlu0 %592  ;;  %770 = vadd.xlane.f32.xlu1 %v769_v27  ;;  %773 = vadd.xlane.f32.xlu0 %v772_v0  ;;  %v596_v42 = vpop.xlane.xlu1 %595 }
  0xc0   : > { %v656_v46 = vmul.f32 0.045454547, %v593_v1  ;;  %v657_v47 = vmul.f32 0.045454547, %v596_v42  ;;  %v718_v50 = vmul.f32 %v2774_v12, %v2774_v12  ;;  %v719_v28 = vmul.f32 %v2777_v25, %v2777_v25 }
  0xc2   : > { %v2786_v16 = vsub.f32 %v2580_v32, %v656_v46  ;;  %v2789_v29 = vsub.f32 %v2583_v33, %v657_v47  ;;  %v778_v54 = vsel %vm542_vm0, %v718_v50, 0.0  ;;  %v781_v59 = vsel %vm542_vm0, %v719_v28, 0.0  ;;  %v2821_v50 = vld [vmem:[%s2665_s22 + $0x30] sm:$0xff] }
  0xc3   : > { %v599_v55 = vpop.xlane.xlu0 %598  ;;  %776 = vadd.xlane.f32.xlu1 %v775_v43  ;;  %779 = vadd.xlane.f32.xlu0 %v778_v54  ;;  %v602_v58 = vpop.xlane.xlu1 %601  ;;  %v2271_v43 = vld [vmem:[%s3299_s7] sm:$0xff]  }
  0xc4   : > { %v658_v62 = vmul.f32 0.045454547, %v599_v55  ;;  %v659_v63 = vmul.f32 0.045454547, %v602_v58  ;;  %v720_v14 = vmul.f32 %v2786_v16, %v2786_v16  ;;  %v721_v32 = vmul.f32 %v2789_v29, %v2789_v29  ;;  %2205 = vmatprep.subr.bf16.mxu1 %v2271_v43 }
  0xc5   : > { %2206 = vmatpush3.bf16.msra.mxu1 %v2271_v43 }
  0xc6   : > { %v2798_v20 = vsub.f32 %v2590_v36, %v658_v62  ;;  %v2801_v33 = vsub.f32 %v2593_v37, %v659_v63  ;;  %v784_v18 = vsel %vm542_vm0, %v720_v14, 0.0  ;;  %v787_v26 = vsel %vm542_vm0, %v721_v32, 0.0  ;;  %v2272_v62 = vld [vmem:[%s3299_s7 + $0x8] ss:$0 sps:$4 sm:$0x77]   ;;  %v2838_v14 = vld [vmem:[%s2665_s22 + $0x38] sm:$0xff] }
  0xc7   : > { %782 = vadd.xlane.f32.xlu1 %v781_v59  ;;  %785 = vadd.xlane.f32.xlu0 %v784_v18  ;;  %v605_v19 = vpop.xlane.xlu0 %604  ;;  %v608_v27 = vpop.xlane.xlu1 %607 }
  0xc8   : > { %v660_v30 = vmul.f32 0.045454547, %v605_v19  ;;  %v722_v31 = vmul.f32 %v2798_v20, %v2798_v20  ;;  %v661_v34 = vmul.f32 0.045454547, %v608_v27  ;;  %v723_v36 = vmul.f32 %v2801_v33, %v2801_v33  ;;  %2253 = vmatprep.subr.msk.bf16.mxu1 %vm1245_vm1, %v2272_v62 }
  0xca   : > { %v2810_v37 = vsub.f32 %v2600_v40, %v660_v30  ;;  %v790_v24 = vsel %vm542_vm0, %v722_v31, 0.0  ;;  %v2814_v0 = vsub.f32 %v2603_v41, %v661_v34  ;;  %v793_v47 = vsel %vm542_vm0, %v723_v36, 0.0 }
  0xcb   : > { %788 = vadd.xlane.f32.xlu1 %v787_v26  ;;  %791 = vadd.xlane.f32.xlu0 %v790_v24  ;;  %v611_v1 = vpop.xlane.xlu0 %610  ;;  %v614_v42 = vpop.xlane.xlu1 %613  ;;  %v1247_v34 = vsel %vm1245_vm1, %v2272_v62, 0 }
  0xcc   : > { %v662_v46 = vmul.f32 0.045454547, %v611_v1  ;;  %v663_v40 = vmul.f32 0.045454547, %v614_v42  ;;  %v724_v28 = vmul.f32 %v2810_v37, %v2810_v37  ;;  %v725_v59 = vmul.f32 %v2814_v0, %v2814_v0  ;;  %2208 = vmatpush3.bf16.msra.mxu1 %v1247_v34 }
  0xce   : > { %v2826_v41 = vsub.f32 %v2610_v44, %v662_v46  ;;  %v2830_v54 = vsub.f32 %v2613_v45, %v663_v40  ;;  %v796_v44 = vsel %vm542_vm0, %v724_v28, 0.0  ;;  %v799_v27 = vsel %vm542_vm0, %v725_v59, 0.0 }
  0xcf   : > { %794 = vadd.xlane.f32.xlu1 %v793_v47  ;;  %435 = vadd.xlane.f32.xlu0 %v2821_v50  ;;  %v617_v55 = vpop.xlane.xlu0 %616  ;;  %v620_v58 = vpop.xlane.xlu1 %619 }
  0xd0   : > { %v664_v63 = vmul.f32 0.045454547, %v617_v55  ;;  %v665_v32 = vmul.f32 0.045454547, %v620_v58  ;;  %v726_v18 = vmul.f32 %v2826_v41, %v2826_v41  ;;  %v727_v31 = vmul.f32 %v2830_v54, %v2830_v54 }
  0xd2   : > { %v2844_v45 = vsub.f32 %v2620_v48, %v664_v63  ;;  %v2848_v19 = vsub.f32 %v2623_v49, %v665_v32  ;;  %v802_v24 = vsel %vm542_vm0, %v726_v18, 0.0  ;;  %v805_v46 = vsel %vm542_vm0, %v727_v31, 0.0 }
  0xd3   : > { %437 = vadd.xlane.f32.xlu1 %v2838_v14  ;;  %797 = vadd.xlane.f32.xlu0 %v796_v44  ;;  %v623_v26 = vpop.xlane.xlu0 %622  ;;  %v626_v30 = vpop.xlane.xlu1 %625 }
  0xd4   : > { %v666_v36 = vmul.f32 0.045454547, %v623_v26  ;;  %v667_v48 = vmul.f32 0.045454547, %v626_v30  ;;  %v728_v1 = vmul.f32 %v2844_v45, %v2844_v45  ;;  %v729_v40 = vmul.f32 %v2848_v19, %v2848_v19 }
  0xd6   : > { %v2857_v42 = vsub.f32 %v2630_v52, %v666_v36  ;;  %v2860_v49 = vsub.f32 %v2633_v53, %v667_v48  ;;  %v808_v55 = vsel %vm542_vm0, %v728_v1, 0.0  ;;  %v811_v63 = vsel %vm542_vm0, %v729_v40, 0.0 }
  0xd7   : > { %800 = vadd.xlane.f32.xlu1 %v799_v27  ;;  %803 = vadd.xlane.f32.xlu0 %v802_v24  ;;  %v629_v43 = vpop.xlane.xlu0 %628  ;;  %v632_v47 = vpop.xlane.xlu1 %631 }
  0xd8   : > { %v668_v28 = vmul.f32 0.045454547, %v629_v43  ;;  %v669_v58 = vmul.f32 0.045454547, %v632_v47  ;;  %v730_v52 = vmul.f32 %v2857_v42, %v2857_v42  ;;  %v731_v32 = vmul.f32 %v2860_v49, %v2860_v49 }
  0xda   : > { %v2869_v59 = vsub.f32 %v2640_v56, %v668_v28  ;;  %v2872_v53 = vsub.f32 %v2643_v57, %v669_v58  ;;  %v814_v26 = vsel %vm542_vm0, %v730_v52, 0.0  ;;  %v817_v57 = vsel %vm542_vm0, %v731_v32, 0.0 }
  0xdb   : > { %806 = vadd.xlane.f32.xlu1 %v805_v46  ;;  %809 = vadd.xlane.f32.xlu0 %v808_v55  ;;  %v635_v62 = vpop.xlane.xlu0 %634  ;;  %v638_v44 = vpop.xlane.xlu1 %637 }
  0xdc   : > { %v670_v18 = vmul.f32 0.045454547, %v635_v62  ;;  %v671_v27 = vmul.f32 0.045454547, %v638_v44  ;;  %v732_v56 = vmul.f32 %v2869_v59, %v2869_v59  ;;  %v733_v34 = vmul.f32 %v2872_v53, %v2872_v53 }
  0xde   : > { %v2881_v30 = vsub.f32 %v2650_v60, %v670_v18  ;;  %v2887_v24 = vsub.f32 %v2653_v61, %v671_v27  ;;  %v820_v48 = vsel %vm542_vm0, %v732_v56, 0.0  ;;  %v823_v28 = vsel %vm542_vm0, %v733_v34, 0.0 }
  0xdf   : > { %812 = vadd.xlane.f32.xlu1 %v811_v63  ;;  %815 = vadd.xlane.f32.xlu0 %v814_v26  ;;  %v424_v31 = vpop.xlane.xlu0 %423  ;;  %v426_v36 = vpop.xlane.xlu1 %425 }
  0xe0   : > { %v440_v1 = vmul.f32 0.0078125, %v424_v31  ;;  %v734_v43 = vmul.f32 %v2881_v30, %v2881_v30  ;;  %v441_v60 = vmul.f32 0.0078125, %v426_v36  ;;  %v735_v58 = vmul.f32 %v2887_v24, %v2887_v24 }
  0xe2   : > { %v2893_v46 = vsub.f32 %v2668_v3, %v440_v1  ;;  %v826_v55 = vsel %vm542_vm0, %v734_v43, 0.0  ;;  %v2900_v52 = vsub.f32 %v2671_v4, %v441_v60  ;;  %v829_v32 = vsel %vm542_vm0, %v735_v58, 0.0  ;;  %v2276_v1 = vld [vmem:[%s3298_s6 + $0x18] sm:$0xff]   ;;  %v2277_v43 = vld [vmem:[%s3298_s6 + $0x20] sm:$0xff]   ;;  %v2278_v60 = vld [vmem:[%s3298_s6 + $0x28] sm:$0xff]  }
  0xe3   : > { %818 = vadd.xlane.f32.xlu1 %v817_v57  ;;  %821 = vadd.xlane.f32.xlu0 %v820_v48  ;;  %v428_v47 = vpop.xlane.xlu0 %427  ;;  %v430_v40 = vpop.xlane.xlu1 %429  ;;  %v2275_v48 = vld [vmem:[%s3298_s6 + $0x10] sm:$0xff]  }
  0xe4   : > { %v442_v61 = vmul.f32 0.0078125, %v428_v47  ;;  %v456_v3 = vmul.f32 %v2893_v46, %v2893_v46  ;;  %v443_v63 = vmul.f32 0.0078125, %v430_v40  ;;  %v457_v27 = vmul.f32 %v2900_v52, %v2900_v52  ;;  %v2279_v47 = vld [vmem:[%s3298_s6 + $0x30] sm:$0xff]   ;;  %v2280_v40 = vld [vmem:[%s3298_s6 + $0x38] sm:$0xff]  }
  0xe6   : > { %v2903_v62 = vsub.f32 %v2676_v6, %v442_v61  ;;  %v2911_v4 = vsub.f32 %v2679_v7, %v443_v63 }
  0xe7   : > { %824 = vadd.xlane.f32.xlu1 %v823_v28  ;;  %827 = vadd.xlane.f32.xlu0 %v826_v55  ;;  %v432_v44 = vpop.xlane.xlu0 %431  ;;  %v434_v26 = vpop.xlane.xlu1 %433 }
  0xe8   : > { %v444_v18 = vmul.f32 0.0078125, %v432_v44  ;;  %v458_v56 = vmul.f32 %v2903_v62, %v2903_v62  ;;  %v445_v57 = vmul.f32 0.0078125, %v434_v26  ;;  %v459_v34 = vmul.f32 %v2911_v4, %v2911_v4 }
  0xea   : > { %v2914_v6 = vsub.f32 %v2684_v10, %v444_v18  ;;  %v2919_v31 = vsub.f32 %v2687_v11, %v445_v57  ;;  %v2273_v10 = vld [vmem:[%s3298_s6] sm:$0xff]   ;;  %v2274_v11 = vld [vmem:[%s3298_s6 + $0x8] sm:$0xff]  }
  0xeb   : > { %830 = vadd.xlane.f32.xlu1 %v829_v32  ;;  %464 = vadd.xlane.f32.xlu0 %v456_v3 }
  0xec   : > { %v460_v36 = vmul.f32 %v2914_v6, %v2914_v6  ;;  %v461_v7 = vmul.f32 %v2919_v31, %v2919_v31  ;;  %2181 = vmatprep.subr.bf16.mxu0 %v2273_v10 }
  0xed   : > { %2182 = vmatpush3.bf16.msra.mxu0 %v2273_v10 }
  0xee   : > { %2183 = vmatprep.subr.bf16.mxu0 %v2274_v11 }
  0xef   : > { %466 = vadd.xlane.f32.xlu1 %v457_v27  ;;  %468 = vadd.xlane.f32.xlu0 %v458_v56 }
  0xf1   : > { %2184 = vmatpush3.bf16.msra.mxu0 %v2274_v11 }
  0xf2   : > { %2185 = vmatprep.subr.bf16.mxu0 %v2275_v48 }
  0xf3   : > { %470 = vadd.xlane.f32.xlu1 %v459_v34  ;;  %472 = vadd.xlane.f32.xlu0 %v460_v36 }
  0xf5   : > { %2186 = vmatpush3.bf16.msra.mxu0 %v2275_v48 }
  0xf6   : > { %2187 = vmatprep.subr.bf16.mxu0 %v2276_v1 }
  0xf7   : > { %474 = vadd.xlane.f32.xlu1 %v461_v7 }
  0xf9   : > { %2188 = vmatpush3.bf16.msra.mxu0 %v2276_v1 }
  0xfa   : > { %2189 = vmatprep.subr.bf16.mxu0 %v2277_v43 }
  0xfd   : > { %2190 = vmatpush3.bf16.msra.mxu0 %v2277_v43 }
  0xfe   : > { %2191 = vmatprep.subr.bf16.mxu0 %v2278_v60 }
 0x101   : > { %2192 = vmatpush3.bf16.msra.mxu0 %v2278_v60 }
 0x102   : > { %2193 = vmatprep.subr.bf16.mxu0 %v2279_v47 }
 0x105   : > { %2194 = vmatpush3.bf16.msra.mxu0 %v2279_v47 }
 0x106   : > { %2195 = vmatprep.subr.bf16.mxu0 %v2280_v40 }
 0x109   : > { %2196 = vmatpush3.bf16.msra.mxu0 %v2280_v40 }
 0x134   : > { %v738_v28 = vpop.xlane.xlu0 %737 }
 0x135   : > { %v832_v55 = vmul.f32 0.045454547, %v738_v28 }
 0x137   : > { %v864_v61 = vadd.f32 1e-05, %v832_v55 }
 0x138   : > { %v741_v58 = vpop.xlane.xlu1 %740  ;;  %v744_v3 = vpop.xlane.xlu0 %743 }
 0x139   : > { %2283 = vrsqrt.f32 %v864_v61  ;;  %v833_v63 = vmul.f32 0.045454547, %v741_v58  ;;  %v834_v44 = vmul.f32 0.045454547, %v744_v3  ;;  %v2955_v58 = vld [vmem:[%s3296_s4] ss:$0 sm:$0xff] }
 0x13b   : > { %v865_v32 = vadd.f32 1e-05, %v833_v63  ;;  %v866_v18 = vadd.f32 1e-05, %v834_v44 }
 0x13c   : > { %v747_v26 = vpop.xlane.xlu1 %746  ;;  %v750_v27 = vpop.xlane.xlu0 %749 }
 0x13d   : > { %2285 = vrsqrt.f32 %v865_v32  ;;  %v835_v56 = vmul.f32 0.045454547, %v747_v26  ;;  %v836_v57 = vmul.f32 0.045454547, %v750_v27 }
 0x13e   : > { %2287 = vrsqrt.f32 %v866_v18 }
 0x13f   : > { %v867_v34 = vadd.f32 1e-05, %v835_v56  ;;  %v868_v36 = vadd.f32 1e-05, %v836_v57 }
 0x140   : > { %v753_v7 = vpop.xlane.xlu1 %752  ;;  %v756_v10 = vpop.xlane.xlu0 %755 }
 0x141   : > { %2289 = vrsqrt.f32 %v867_v34  ;;  %v837_v11 = vmul.f32 0.045454547, %v753_v7  ;;  %v838_v48 = vmul.f32 0.045454547, %v756_v10 }
 0x142   : > { %2291 = vrsqrt.f32 %v868_v36  ;;  %v2963_v36 = vld [vmem:[%s3297_s5] ss:$0 sm:$0xff] }
 0x143   : > { %v2284_v1 = vpop.eup %2283  ;;  %v869_v43 = vadd.f32 1e-05, %v837_v11  ;;  %v870_v60 = vadd.f32 1e-05, %v838_v48 }
 0x144   : > { %v759_v47 = vpop.xlane.xlu1 %758  ;;  %v762_v40 = vpop.xlane.xlu0 %761  ;;  %v928_v28 = vmul.f32 %v2284_v1, %v2692_v22 }
 0x145   : > { %2293 = vrsqrt.f32 %v869_v43  ;;  %v839_v55 = vmul.f32 0.045454547, %v759_v47  ;;  %v840_v61 = vmul.f32 0.045454547, %v762_v40 }
 0x146   : > { %2295 = vrsqrt.f32 %v870_v60  ;;  %v966_v56 = vmul.f32 %v2955_v58, %v928_v28 }
 0x147   : > { %v2286_v3 = vpop.eup %2285  ;;  %v871_v63 = vadd.f32 1e-05, %v839_v55  ;;  %v872_v44 = vadd.f32 1e-05, %v840_v61 }
 0x148   : > { %v2288_v32 = vpop.eup %2287  ;;  %v765_v18 = vpop.xlane.xlu1 %764  ;;  %v929_v27 = vmul.f32 %v2286_v3, %v2702_v38 }
 0x149   : > { %v768_v26 = vpop.xlane.xlu0 %767  ;;  %v930_v22 = vmul.f32 %v2288_v32, %v2695_v23  ;;  %2297 = vrsqrt.f32 %v871_v63  ;;  %v841_v57 = vmul.f32 0.045454547, %v765_v18  ;;  %v1004_v23 = vadd.f32 %v2963_v36, %v966_v56 }
 0x14a   : > { %v842_v34 = vmul.f32 0.045454547, %v768_v26  ;;  %2299 = vrsqrt.f32 %v872_v44  ;;  %v967_v7 = vmul.f32 %v2955_v58, %v929_v27 }
 0x14b   : > { %v2290_v10 = vpop.eup %2289  ;;  %v873_v11 = vadd.f32 1e-05, %v841_v57  ;;  %v968_v40 = vmul.f32 %v2955_v58, %v930_v22 }
 0x14c   : > { %v874_v48 = vadd.f32 1e-05, %v842_v34  ;;  %v2292_v1 = vpop.eup %2291  ;;  %v931_v38 = vmul.f32 %v2290_v10, %v2705_v39  ;;  %v771_v43 = vpop.xlane.xlu1 %770  ;;  %v1005_v47 = vadd.f32 %v2963_v36, %v967_v7 }
 0x14d   : > { %v774_v60 = vpop.xlane.xlu0 %773  ;;  %v932_v28 = vmul.f32 %v2292_v1, %v2714_v2  ;;  %2301 = vrsqrt.f32 %v873_v11  ;;  %v843_v55 = vmul.f32 0.045454547, %v771_v43  ;;  %v1006_v22 = vadd.f32 %v2963_v36, %v968_v40 }
 0x14e   : > { %v844_v61 = vmul.f32 0.045454547, %v774_v60  ;;  %2303 = vrsqrt.f32 %v874_v48  ;;  %v1169_v3 = vpack.c.bf16 %v1005_v47, %v1004_v23  ;;  %v969_v63 = vmul.f32 %v2955_v58, %v931_v38 }
 0x14f   : > { %v2294_v44 = vpop.eup %2293  ;;  %v875_v32 = vadd.f32 1e-05, %v843_v55  ;;  %v970_v57 = vmul.f32 %v2955_v58, %v932_v28 }
 0x150   : > { %v876_v39 = vadd.f32 1e-05, %v844_v61  ;;  %v2296_v18 = vpop.eup %2295  ;;  %v933_v26 = vmul.f32 %v2294_v44, %v2717_v5  ;;  %v777_v27 = vpop.xlane.xlu1 %776  ;;  %2209 = vmatprep.mubr.msk.bf16.mxu1 %vm542_vm0, %v1169_v3  ;;  %v1007_v2 = vadd.f32 %v2963_v36, %v969_v63 }
 0x151   : > { %v780_v56 = vpop.xlane.xlu0 %779  ;;  %v934_v34 = vmul.f32 %v2296_v18, %v2726_v15  ;;  %2305 = vrsqrt.f32 %v875_v32  ;;  %v845_v7 = vmul.f32 0.045454547, %v777_v27  ;;  %v1008_v40 = vadd.f32 %v2963_v36, %v970_v57 }
 0x152   : > { %v846_v10 = vmul.f32 0.045454547, %v780_v56  ;;  %2307 = vrsqrt.f32 %v876_v39  ;;  %v1170_v11 = vpack.c.bf16 %v1007_v2, %v1006_v22  ;;  %v971_v48 = vmul.f32 %v2955_v58, %v933_v26 }
 0x153   : > { %v2298_v5 = vpop.eup %2297  ;;  %v877_v1 = vadd.f32 1e-05, %v845_v7  ;;  %v972_v28 = vmul.f32 %v2955_v58, %v934_v34 }
 0x154   : > { %v878_v38 = vadd.f32 1e-05, %v846_v10  ;;  %v2300_v43 = vpop.eup %2299  ;;  %v935_v60 = vmul.f32 %v2298_v5, %v2729_v9  ;;  %v783_v23 = vpop.xlane.xlu1 %782  ;;  %2210 = vmatmul.mubr.msk.bf16.vlgmr.msra.gmra.mrb[0].mxu1 %vm542_vm0, %v1170_v11  ;;  %v1009_v15 = vadd.f32 %v2963_v36, %v971_v48 }
 0x155   : > { %v786_v47 = vpop.xlane.xlu0 %785  ;;  %v936_v55 = vmul.f32 %v2300_v43, %v2738_v35  ;;  %2309 = vrsqrt.f32 %v877_v1  ;;  %v847_v61 = vmul.f32 0.045454547, %v783_v23  ;;  %v1010_v22 = vadd.f32 %v2963_v36, %v972_v28 }
 0x156   : > { %v848_v3 = vmul.f32 0.045454547, %v786_v47  ;;  %2311 = vrsqrt.f32 %v878_v38  ;;  %v1171_v63 = vpack.c.bf16 %v1009_v15, %v1008_v40  ;;  %v973_v44 = vmul.f32 %v2955_v58, %v935_v60 }
 0x157   : > { %v2302_v9 = vpop.eup %2301  ;;  %v879_v32 = vadd.f32 1e-05, %v847_v61  ;;  %v974_v2 = vmul.f32 %v2955_v58, %v936_v55 }
 0x158   : > { %v880_v39 = vadd.f32 1e-05, %v848_v3  ;;  %v2304_v18 = vpop.eup %2303  ;;  %v937_v26 = vmul.f32 %v2302_v9, %v2741_v13  ;;  %v789_v27 = vpop.xlane.xlu1 %788  ;;  %2213 = vmatprep.mubr.msk.bf16.mxu1 %vm542_vm0, %v1171_v63  ;;  %v1011_v35 = vadd.f32 %v2963_v36, %v973_v44 }
 0x159   : > { %v792_v56 = vpop.xlane.xlu0 %791  ;;  %v938_v57 = vmul.f32 %v2304_v18, %v2750_v51  ;;  %2313 = vrsqrt.f32 %v879_v32  ;;  %v849_v34 = vmul.f32 0.045454547, %v789_v27  ;;  %v1012_v23 = vadd.f32 %v2963_v36, %v974_v2 }
 0x15a   : > { %v850_v7 = vmul.f32 0.045454547, %v792_v56  ;;  %2315 = vrsqrt.f32 %v880_v39  ;;  %v1172_v10 = vpack.c.bf16 %v1011_v35, %v1010_v22  ;;  %v975_v11 = vmul.f32 %v2955_v58, %v937_v26 }
 0x15b   : > { %v2306_v13 = vpop.eup %2305  ;;  %v881_v48 = vadd.f32 1e-05, %v849_v34  ;;  %v976_v47 = vmul.f32 %v2955_v58, %v938_v57 }
 0x15c   : > { %v882_v5 = vadd.f32 1e-05, %v850_v7  ;;  %v2308_v1 = vpop.eup %2307  ;;  %v939_v38 = vmul.f32 %v2306_v13, %v2753_v17  ;;  %v795_v43 = vpop.xlane.xlu1 %794  ;;  %2214 = vmatmul.mubr.msk.bf16.gmra.mrb[4].mxu1 %vm542_vm0, %v1172_v10  ;;  %v1013_v51 = vadd.f32 %v2963_v36, %v975_v11 }
 0x15d   : > { %v436_v60 = vpop.xlane.xlu0 %435  ;;  %v940_v40 = vmul.f32 %v2308_v1, %v2762_v8  ;;  %2317 = vrsqrt.f32 %v881_v48  ;;  %v851_v15 = vmul.f32 0.045454547, %v795_v43  ;;  %v1014_v8 = vadd.f32 %v2963_v36, %v976_v47 }
 0x15e   : > { %v446_v28 = vmul.f32 0.0078125, %v436_v60  ;;  %2319 = vrsqrt.f32 %v882_v5  ;;  %v1173_v55 = vpack.c.bf16 %v1013_v51, %v1012_v23  ;;  %v977_v61 = vmul.f32 %v2955_v58, %v939_v38 }
 0x15f   : > { %v2310_v17 = vpop.eup %2309  ;;  %v883_v3 = vadd.f32 1e-05, %v851_v15  ;;  %v978_v26 = vmul.f32 %v2955_v58, %v940_v40 }
 0x160   : > { %v3001_v63 = vsub.f32 %v2821_v50, %v446_v28  ;;  %v2312_v44 = vpop.eup %2311  ;;  %v941_v9 = vmul.f32 %v2310_v17, %v2765_v21  ;;  %v438_v32 = vpop.xlane.xlu1 %437  ;;  %2217 = vmatprep.mubr.msk.bf16.mxu1 %vm542_vm0, %v1173_v55  ;;  %v1015_v18 = vadd.f32 %v2963_v36, %v977_v61 }
 0x161   : > { %v798_v39 = vpop.xlane.xlu0 %797  ;;  %v942_v27 = vmul.f32 %v2312_v44, %v2774_v12  ;;  %2321 = vrsqrt.f32 %v883_v3  ;;  %v447_v56 = vmul.f32 0.0078125, %v438_v32  ;;  %v1016_v48 = vadd.f32 %v2963_v36, %v978_v26 }
 0x162   : > { %v852_v22 = vmul.f32 0.045454547, %v798_v39  ;;  %v462_v50 = vmul.f32 %v3001_v63, %v3001_v63  ;;  %v1174_v35 = vpack.c.bf16 %v1015_v18, %v1014_v8  ;;  %v979_v21 = vmul.f32 %v2955_v58, %v941_v9 }
 0x163   : > { %v2314_v2 = vpop.eup %2313  ;;  %v3013_v57 = vsub.f32 %v2838_v14, %v447_v56  ;;  %v980_v7 = vmul.f32 %v2955_v58, %v942_v27 }
 0x164   : > { %v884_v34 = vadd.f32 1e-05, %v852_v22  ;;  %v2316_v10 = vpop.eup %2315  ;;  %v943_v11 = vmul.f32 %v2314_v2, %v2777_v25  ;;  %476 = vadd.xlane.f32.xlu0 %v462_v50  ;;  %v801_v12 = vpop.xlane.xlu1 %800  ;;  %2218 = vmatmul.mubr.msk.bf16.gmra.mrb[8].mxu1 %vm542_vm0, %v1174_v35  ;;  %v1017_v5 = vadd.f32 %v2963_v36, %v979_v21 }
 0x165   : > { %v804_v13 = vpop.xlane.xlu0 %803  ;;  %v944_v1 = vmul.f32 %v2316_v10, %v2786_v16  ;;  %v853_v14 = vmul.f32 0.045454547, %v801_v12  ;;  %v463_v43 = vmul.f32 %v3013_v57, %v3013_v57  ;;  %v1018_v40 = vadd.f32 %v2963_v36, %v980_v7 }
 0x166   : > { %2323 = vrsqrt.f32 %v884_v34  ;;  %v854_v38 = vmul.f32 0.045454547, %v804_v13  ;;  %v1175_v60 = vpack.c.bf16 %v1017_v5, %v1016_v48  ;;  %v981_v25 = vmul.f32 %v2955_v58, %v943_v11 }
 0x167   : > { %v2318_v23 = vpop.eup %2317  ;;  %v885_v51 = vadd.f32 1e-05, %v853_v14  ;;  %478 = vadd.xlane.f32.xlu1 %v463_v43  ;;  %v982_v17 = vmul.f32 %v2955_v58, %v944_v1 }
 0x168   : > { %v886_v47 = vadd.f32 1e-05, %v854_v38  ;;  %v2320_v15 = vpop.eup %2319  ;;  %v945_v28 = vmul.f32 %v2318_v23, %v2789_v29  ;;  %v807_v55 = vpop.xlane.xlu1 %806  ;;  %2221 = vmatprep.mubr.msk.bf16.mxu1 %vm542_vm0, %v1175_v60  ;;  %v1019_v61 = vadd.f32 %v2963_v36, %v981_v25 }
 0x169   : > { %v810_v16 = vpop.xlane.xlu0 %809  ;;  %v946_v3 = vmul.f32 %v2320_v15, %v2798_v20  ;;  %2325 = vrsqrt.f32 %v885_v51  ;;  %v855_v44 = vmul.f32 0.045454547, %v807_v55  ;;  %v1020_v22 = vadd.f32 %v2963_v36, %v982_v17 }
 0x16a   : > { %v856_v9 = vmul.f32 0.045454547, %v810_v16  ;;  %2327 = vrsqrt.f32 %v886_v47  ;;  %v1176_v32 = vpack.c.bf16 %v1019_v61, %v1018_v40  ;;  %v983_v39 = vmul.f32 %v2955_v58, %v945_v28 }
 0x16b   : > { %v2322_v8 = vpop.eup %2321  ;;  %v887_v29 = vadd.f32 1e-05, %v855_v44  ;;  %v984_v50 = vmul.f32 %v2955_v58, %v946_v3 }
 0x16c   : > { %v888_v18 = vadd.f32 1e-05, %v856_v9  ;;  %v947_v26 = vmul.f32 %v2322_v8, %v2801_v33  ;;  %v813_v27 = vpop.xlane.xlu1 %812  ;;  %2222 = vmatmul.mubr.msk.bf16.gmra.mrb[12].mxu1 %vm542_vm0, %v1176_v32  ;;  %v1021_v20 = vadd.f32 %v2963_v36, %v983_v39 }
 0x16d   : > { %v816_v56 = vpop.xlane.xlu0 %815  ;;  %2329 = vrsqrt.f32 %v887_v29  ;;  %v857_v35 = vmul.f32 0.045454547, %v813_v27  ;;  %v1022_v48 = vadd.f32 %v2963_v36, %v984_v50 }
 0x16e   : > { %v858_v21 = vmul.f32 0.045454547, %v816_v56  ;;  %2331 = vrsqrt.f32 %v888_v18  ;;  %v1177_v2 = vpack.c.bf16 %v1021_v20, %v1020_v22  ;;  %v985_v34 = vmul.f32 %v2955_v58, %v947_v26 }
 0x16f   : > { %v889_v10 = vadd.f32 1e-05, %v857_v35 }
 0x170   : > { %v2324_v7 = vpop.eup %2323  ;;  %v890_v33 = vadd.f32 1e-05, %v858_v21  ;;  %v819_v12 = vpop.xlane.xlu1 %818  ;;  %2225 = vmatprep.mubr.msk.bf16.mxu1 %vm542_vm0, %v1177_v2  ;;  %v1023_v5 = vadd.f32 %v2963_v36, %v985_v34 }
 0x171   : > { %v948_v11 = vmul.f32 %v2324_v7, %v2810_v37  ;;  %v822_v13 = vpop.xlane.xlu0 %821  ;;  %2333 = vrsqrt.f32 %v889_v10  ;;  %v859_v1 = vmul.f32 0.045454547, %v819_v12 }
 0x172   : > { %v860_v14 = vmul.f32 0.045454547, %v822_v13  ;;  %2335 = vrsqrt.f32 %v890_v33  ;;  %v1178_v38 = vpack.c.bf16 %v1023_v5, %v1022_v48 }
 0x173   : > { %v2326_v43 = vpop.eup %2325  ;;  %v891_v60 = vadd.f32 1e-05, %v859_v1  ;;  %v986_v40 = vmul.f32 %v2955_v58, %v948_v11 }
 0x174   : > { %v892_v25 = vadd.f32 1e-05, %v860_v14  ;;  %v2328_v23 = vpop.eup %2327  ;;  %v949_v51 = vmul.f32 %v2326_v43, %v2814_v0  ;;  %v825_v37 = vpop.xlane.xlu1 %824  ;;  %2226 = vmatmul.mubr.msk.bf16.gmra.mrb[16].mxu1 %vm542_vm0, %v1178_v38 }
 0x175   : > { %v828_v47 = vpop.xlane.xlu0 %827  ;;  %v950_v15 = vmul.f32 %v2328_v23, %v2826_v41  ;;  %2337 = vrsqrt.f32 %v891_v60  ;;  %v861_v28 = vmul.f32 0.045454547, %v825_v37  ;;  %v1024_v39 = vadd.f32 %v2963_v36, %v986_v40 }
 0x176   : > { %v862_v55 = vmul.f32 0.045454547, %v828_v47  ;;  %2339 = vrsqrt.f32 %v892_v25  ;;  %v987_v16 = vmul.f32 %v2955_v58, %v949_v51 }
 0x177   : > { %v2330_v61 = vpop.eup %2329  ;;  %v893_v17 = vadd.f32 1e-05, %v861_v28  ;;  %v988_v41 = vmul.f32 %v2955_v58, %v950_v15 }
 0x178   : > { %v894_v3 = vadd.f32 1e-05, %v862_v55  ;;  %v2332_v44 = vpop.eup %2331  ;;  %v951_v0 = vmul.f32 %v2330_v61, %v2830_v54  ;;  %v831_v9 = vpop.xlane.xlu1 %830  ;;  %v1025_v8 = vadd.f32 %v2963_v36, %v987_v16 }
 0x179   : > { %v465_v32 = vpop.xlane.xlu0 %464  ;;  %v952_v29 = vmul.f32 %v2332_v44, %v2844_v45  ;;  %2341 = vrsqrt.f32 %v893_v17  ;;  %v863_v18 = vmul.f32 0.045454547, %v831_v9  ;;  %v1026_v34 = vadd.f32 %v2963_v36, %v988_v41 }
 0x17a   : > { %v480_v26 = vmul.f32 0.0078125, %v465_v32  ;;  %2343 = vrsqrt.f32 %v894_v3  ;;  %v1179_v27 = vpack.c.bf16 %v1025_v8, %v1024_v39  ;;  %v989_v56 = vmul.f32 %v2955_v58, %v951_v0 }
 0x17b   : > { %v2334_v22 = vpop.eup %2333  ;;  %v895_v20 = vadd.f32 1e-05, %v863_v18  ;;  %v990_v7 = vmul.f32 %v2955_v58, %v952_v29 }
 0x17c   : > { %v488_v54 = vadd.f32 1e-05, %v480_v26  ;;  %v2336_v50 = vpop.eup %2335  ;;  %v953_v35 = vmul.f32 %v2334_v22, %v2848_v19  ;;  %v467_v21 = vpop.xlane.xlu1 %466  ;;  %2229 = vmatprep.mubr.msk.bf16.mxu1 %vm542_vm0, %v1179_v27  ;;  %v1027_v45 = vadd.f32 %v2963_v36, %v989_v56  ;;  %v2035_v27 = vld [vmem:[%s3294_s2] ss:$0 sm:$0xff] }
 0x17d   : > { %v469_v2 = vpop.xlane.xlu0 %468  ;;  %v954_v10 = vmul.f32 %v2336_v50, %v2857_v42  ;;  %2345 = vrsqrt.f32 %v895_v20  ;;  %v481_v33 = vmul.f32 0.0078125, %v467_v21  ;;  %v1028_v60 = vadd.f32 %v2963_v36, %v990_v7 }
 0x17e   : > { %v482_v11 = vmul.f32 0.0078125, %v469_v2  ;;  %2347 = vrsqrt.f32 %v488_v54  ;;  %v1180_v12 = vpack.c.bf16 %v1027_v45, %v1026_v34  ;;  %v991_v13 = vmul.f32 %v2955_v58, %v953_v35  ;;  %v2036_v2 = vld [vmem:[%s3295_s3] ss:$0 sm:$0xff] }
 0x17f   : > { %v2338_v19 = vpop.eup %2337  ;;  %v489_v48 = vadd.f32 1e-05, %v481_v33  ;;  %v992_v25 = vmul.f32 %v2955_v58, %v954_v10 }
 0x180   : > { %v490_v5 = vadd.f32 1e-05, %v482_v11  ;;  %v2340_v1 = vpop.eup %2339  ;;  %v955_v14 = vmul.f32 %v2338_v19, %v2860_v49  ;;  %v471_v38 = vpop.xlane.xlu1 %470  ;;  %2230 = vmatmul.mubr.msk.bf16.gmra.mrb[20].mxu1 %vm542_vm0, %v1180_v12  ;;  %v1029_v42 = vadd.f32 %v2963_v36, %v991_v13 }
 0x181   : > { %v473_v43 = vpop.xlane.xlu0 %472  ;;  %v956_v23 = vmul.f32 %v2340_v1, %v2869_v59  ;;  %2349 = vrsqrt.f32 %v489_v48  ;;  %v483_v51 = vmul.f32 0.0078125, %v471_v38  ;;  %v1030_v17 = vadd.f32 %v2963_v36, %v992_v25 }
 0x182   : > { %v484_v37 = vmul.f32 0.0078125, %v473_v43  ;;  %2351 = vrsqrt.f32 %v490_v5  ;;  %v1181_v47 = vpack.c.bf16 %v1029_v42, %v1028_v60  ;;  %v993_v40 = vmul.f32 %v2955_v58, %v955_v14 }
 0x183   : > { %v2342_v49 = vpop.eup %2341  ;;  %v491_v15 = vadd.f32 1e-05, %v483_v51  ;;  %v994_v3 = vmul.f32 %v2955_v58, %v956_v23 }
 0x184   : > { %v492_v28 = vadd.f32 1e-05, %v484_v37  ;;  %v2344_v55 = vpop.eup %2343  ;;  %v957_v16 = vmul.f32 %v2342_v49, %v2872_v53  ;;  %v475_v61 = vpop.xlane.xlu1 %474  ;;  %2233 = vmatprep.mubr.msk.bf16.mxu1 %vm542_vm0, %v1181_v47  ;;  %v1031_v59 = vadd.f32 %v2963_v36, %v993_v40 }
 0x185   : > { %v958_v44 = vmul.f32 %v2344_v55, %v2881_v30  ;;  %2353 = vrsqrt.f32 %v491_v15  ;;  %v485_v0 = vmul.f32 0.0078125, %v475_v61  ;;  %v1032_v18 = vadd.f32 %v2963_v36, %v994_v3 }
 0x186   : > { %2355 = vrsqrt.f32 %v492_v28  ;;  %v1182_v9 = vpack.c.bf16 %v1031_v59, %v1030_v17  ;;  %v995_v32 = vmul.f32 %v2955_v58, %v957_v16 }
 0x187   : > { %v2346_v39 = vpop.eup %2345  ;;  %v493_v8 = vadd.f32 1e-05, %v485_v0  ;;  %v996_v53 = vmul.f32 %v2955_v58, %v958_v44 }
 0x188   : > { %v2348_v41 = vpop.eup %2347  ;;  %v959_v29 = vmul.f32 %v2346_v39, %v2887_v24  ;;  %2234 = vmatmul.mubr.msk.bf16.gmra.mrb[24].mxu1 %vm542_vm0, %v1182_v9  ;;  %v1033_v26 = vadd.f32 %v2963_v36, %v995_v32 }
 0x189   : > { %2357 = vrsqrt.f32 %v493_v8  ;;  %v1034_v30 = vadd.f32 %v2963_v36, %v996_v53  ;;  %v504_v56 = vmul.f32 %v2348_v41, %v2893_v46 }
 0x18a   : > { %v1183_v22 = vpack.c.bf16 %v1033_v26, %v1032_v18  ;;  %v997_v20 = vmul.f32 %v2955_v58, %v959_v29 }
 0x18b   : > { %v2350_v54 = vpop.eup %2349  ;;  %v518_v21 = vmul.f32 %v2035_v27, %v504_v56 }
 0x18c   : > { %v2352_v24 = vpop.eup %2351  ;;  %2237 = vmatprep.mubr.msk.bf16.mxu1 %vm542_vm0, %v1183_v22  ;;  %v1035_v50 = vadd.f32 %v2963_v36, %v997_v20  ;;  %v505_v35 = vmul.f32 %v2350_v54, %v2900_v52 }
 0x18d   : > { %v506_v34 = vmul.f32 %v2352_v24, %v2903_v62  ;;  %v532_v58 = vadd.f32 %v2036_v2, %v518_v21 }
 0x18e   : > { %v1184_v45 = vpack.c.bf16 %v1035_v50, %v1034_v30  ;;  %v519_v46 = vmul.f32 %v2035_v27, %v505_v35 }
 0x18f   : > { %v2354_v7 = vpop.eup %2353  ;;  %v520_v36 = vmul.f32 %v2035_v27, %v506_v34 }
 0x190   : > { %v2356_v10 = vpop.eup %2355  ;;  %2238 = vmatmul.mubr.msk.bf16.gmra.mrb[28].mxu1 %vm542_vm0, %v1184_v45  ;;  %v533_v33 = vadd.f32 %v2036_v2, %v519_v46  ;;  %v507_v11 = vmul.f32 %v2354_v7, %v2911_v4 }
 0x191   : > { %v508_v52 = vmul.f32 %v2356_v10, %v2914_v6  ;;  %v534_v48 = vadd.f32 %v2036_v2, %v520_v36 }
 0x192   : > { %v1036_v12 = vpack.c.bf16 %v533_v33, %v532_v58  ;;  %v521_v13 = vmul.f32 %v2035_v27, %v507_v11 }
 0x193   : > { %v2358_v19 = vpop.eup %2357  ;;  %v522_v1 = vmul.f32 %v2035_v27, %v508_v52 }
 0x194   : > { %2197 = vmatprep.mubr.bf16.mxu0 %v1036_v12  ;;  %v535_v5 = vadd.f32 %v2036_v2, %v521_v13  ;;  %v509_v62 = vmul.f32 %v2358_v19, %v2919_v31 }
 0x195   : > { %v536_v43 = vadd.f32 %v2036_v2, %v522_v1 }
 0x196   : > { %v1037_v14 = vpack.c.bf16 %v535_v5, %v534_v48  ;;  %v523_v38 = vmul.f32 %v2035_v27, %v509_v62 }
 0x198   : > { %2198 = vmatmul.mubr.bf16.vlgmr.msra.gmra.mrb[0].mxu0 %v1037_v14  ;;  %v537_v60 = vadd.f32 %v2036_v2, %v523_v38 }
 0x19a   : > { %v1038_v42 = vpack.c.bf16 %v537_v60, %v536_v43 }
 0x19c   : > { %2201 = vmatprep.mubr.bf16.mxu0 %v1038_v42 }
 0x1f1   : > { %v477_v4 = vpop.xlane.xlu0 %476 }
 0x1f2   : > { %v486_v25 = vmul.f32 0.0078125, %v477_v4 }
 0x1f4   : > { %v494_v23 = vadd.f32 1e-05, %v486_v25  ;;  %v479_v6 = vpop.xlane.xlu1 %478 }
 0x1f5   : > { %v487_v51 = vmul.f32 0.0078125, %v479_v6 }
 0x1f6   : > { %2359 = vrsqrt.f32 %v494_v23 }
 0x1f7   : > { %v495_v37 = vadd.f32 1e-05, %v487_v51 }
 0x1f9   : > { %2361 = vrsqrt.f32 %v495_v37 }
 0x200   : > { %v2360_v47 = vpop.eup %2359 }
 0x201   : > { %v510_v40 = vmul.f32 %v2360_v47, %v3001_v63 }
 0x203   : > { %v2362_v31 = vpop.eup %2361  ;;  %v524_v15 = vmul.f32 %v2035_v27, %v510_v40 }
 0x204   : > { %v511_v49 = vmul.f32 %v2362_v31, %v3013_v57 }
 0x205   : > { %v538_v55 = vadd.f32 %v2036_v2, %v524_v15 }
 0x206   : > { %v525_v28 = vmul.f32 %v2035_v27, %v511_v49 }
 0x208   : > { %v539_v16 = vadd.f32 %v2036_v2, %v525_v28 }
 0x20a   : > { %v1039_v61 = vpack.c.bf16 %v539_v16, %v538_v55 }
 0x20c   : > { %2202 = vmatmul.mubr.bf16.gmra.mrb[4].mxu0 %v1039_v61 }
 0x227   : > { %v2211_v17 = vpop.f32.mrb[0].mxu1 }
 0x228   : > { %v1283_v59 = vpop.f32.mrb[1].mxu1 }
 0x229   : > { %v2212_v3 = vpop.f32.mrb[2].mxu1 }
 0x22a   : > { %v1411_v44 = vpack.c.bf16 %v2212_v3, %v2211_v17  ;;  %v1286_v0 = vpop.f32.mrb[3].mxu1 }
 0x22b   : > { %v1410_v9 = vpack.c.bf16 %v1286_v0, %v1283_v59 }
 0x22c   : > { %1726 = vrot.lane.b32.xlu1 %v1411_v44, %s2427_s17  ;;  %v1447_v33 = vsel %vm1430_vm2, %v1411_v44, 0 }
 0x22d   : > { %v1444_v7 = vsel %vm1430_vm2, %v1410_v9, 0 }
 0x22f   : > { %v2215_v32 = vpop.f32.mrb[4].mxu1 }
 0x230   : > { %1724 = vrot.lane.b32.xlu1 %v1410_v9, %s2427_s17  ;;  %v1299_v63 = vpop.f32.mrb[5].mxu1 }
 0x231   : > { %v2216_v57 = vpop.f32.mrb[6].mxu1 }
 0x232   : > { %v1413_v39 = vpack.c.bf16 %v2216_v57, %v2215_v32  ;;  %v1302_v8 = vpop.f32.mrb[7].mxu1 }
 0x233   : > { %v1412_v53 = vpack.c.bf16 %v1302_v8, %v1299_v63 }
 0x234   : > { %1730 = vrot.lane.b32.xlu1 %v1413_v39, %s2427_s17  ;;  %v1453_v60 = vsel %vm1430_vm2, %v1413_v39, 0 }
 0x235   : > { %v1450_v48 = vsel %vm1430_vm2, %v1412_v53, 0 }
 0x237   : > { %v2219_v41 = vpop.f32.mrb[8].mxu1 }
 0x238   : > { %1728 = vrot.lane.b32.xlu1 %v1412_v53, %s2427_s17  ;;  %v1315_v29 = vpop.f32.mrb[9].mxu1 }
 0x239   : > { %v2220_v18 = vpop.f32.mrb[10].mxu1 }
 0x23a   : > { %v3101_v26 = vpack.c.bf16 %v2220_v18, %v2219_v41  ;;  %v1318_v30 = vpop.f32.mrb[11].mxu1 }
 0x23b   : > { %v1414_v27 = vpack.c.bf16 %v1318_v30, %v1315_v29 }
 0x23c   : > { %v1459_v15 = vsel %vm1430_vm2, %v3101_v26, 0 }
 0x23d   : > { %1732 = vrot.lane.b32.xlu1 %v1414_v27, %s2427_s17  ;;  %v1456_v37 = vsel %vm1430_vm2, %v1414_v27, 0 }
 0x23f   : > { %v2223_v56 = vpop.f32.mrb[12].mxu1 }
 0x240   : > { %v1331_v22 = vpop.f32.mrb[13].mxu1 }
 0x241   : > { %v2224_v20 = vpop.f32.mrb[14].mxu1 }
 0x242   : > { %v3104_v54 = vpack.c.bf16 %v2224_v20, %v2223_v56  ;;  %v1334_v24 = vpop.f32.mrb[15].mxu1 }
 0x243   : > { %v3106_v50 = vpack.c.bf16 %v1334_v24, %v1331_v22 }
 0x244   : > { %v1465_v55 = vsel %vm1430_vm2, %v3104_v54, 0 }
 0x245   : > { %v1462_v28 = vsel %vm1430_vm2, %v3106_v50, 0 }
 0x247   : > { %v2227_v35 = vpop.f32.mrb[16].mxu1 }
 0x248   : > { %v1347_v21 = vpop.f32.mrb[17].mxu1 }
 0x249   : > { %v2228_v2 = vpop.f32.mrb[18].mxu1 }
 0x24a   : > { %v1419_v34 = vpack.c.bf16 %v2228_v2, %v2227_v35  ;;  %v1350_v45 = vpop.f32.mrb[19].mxu1 }
 0x24b   : > { %v1418_v46 = vpack.c.bf16 %v1350_v45, %v1347_v21 }
 0x24c   : > { %1742 = vrot.lane.b32.xlu0 %v1419_v34, %s2427_s17 }
 0x24d   : > { %2254 = vmatprep.subr.msk.bf16.mxu1 %vm1430_vm2, %v1418_v46 }
 0x24e   : > { %2112 = vmatpush3.bf16.xpose.msra.mxu1 %v1444_v7 }
 0x24f   : > { %2255 = vmatprep.subr.msk.bf16.mxu1 %vm1430_vm2, %v1419_v34 }
 0x250   : > { %1740 = vrot.lane.b32.xlu0 %v1418_v46, %s2427_s17 }
 0x253   : > { %v2231_v10 = vpop.f32.mrb[20].mxu1 }
 0x254   : > { %v1363_v58 = vpop.f32.mrb[21].mxu1 }
 0x255   : > { %v2232_v11 = vpop.f32.mrb[22].mxu1 }
 0x256   : > { %v1421_v36 = vpack.c.bf16 %v2232_v11, %v2231_v10  ;;  %v1366_v52 = vpop.f32.mrb[23].mxu1  ;;  %2114 = vmatpush3.bf16.xpose.msra.mxu1 %v1447_v33 }
 0x257   : > { %v1420_v12 = vpack.c.bf16 %v1366_v52, %v1363_v58 }
 0x258   : > { %1746 = vrot.lane.b32.xlu0 %v1421_v36, %s2427_s17 }
 0x259   : > { %1744 = vrot.lane.b32.xlu1 %v1420_v12, %s2427_s17  ;;  %2256 = vmatprep.subr.msk.bf16.mxu1 %vm1430_vm2, %v1420_v12 }
 0x25b   : > { %v2235_v13 = vpop.f32.mrb[24].mxu1 }
 0x25c   : > { %v1379_v19 = vpop.f32.mrb[25].mxu1 }
 0x25d   : > { %v2236_v5 = vpop.f32.mrb[26].mxu1 }
 0x25e   : > { %v3118_v62 = vpack.c.bf16 %v2236_v5, %v2235_v13  ;;  %v1382_v1 = vpop.f32.mrb[27].mxu1  ;;  %2116 = vmatpush3.bf16.xpose.msra.mxu1 %v1450_v48 }
 0x25f   : > { %v1422_v14 = vpack.c.bf16 %v1382_v1, %v1379_v19  ;;  %2257 = vmatprep.subr.msk.bf16.mxu1 %vm1430_vm2, %v1421_v36 }
 0x261   : > { %1748 = vrot.lane.b32.xlu0 %v1422_v14, %s2427_s17 }
 0x263   : > { %v2239_v38 = vpop.f32.mrb[28].mxu1 }
 0x264   : > { %v1395_v43 = vpop.f32.mrb[29].mxu1 }
 0x265   : > { %v2240_v42 = vpop.f32.mrb[30].mxu1 }
 0x266   : > { %v3123_v4 = vpack.c.bf16 %v2240_v42, %v2239_v38  ;;  %v1398_v25 = vpop.f32.mrb[31].mxu1  ;;  %2118 = vmatpush3.bf16.xpose.msra.mxu1 %v1453_v60 }
 0x267   : > { %v3125_v23 = vpack.c.bf16 %v1398_v25, %v1395_v43  ;;  %2258 = vmatprep.subr.msk.bf16.mxu1 %vm1430_vm2, %v1422_v14 }
 0x26b   : > { %v2199_v6 = vpop.f32.mrb[0].mxu0 }
 0x26c   : > { %v1138_v51 = vpop.f32.mrb[1].mxu0 }
 0x26d   : > { %v2200_v47 = vpop.f32.mrb[2].mxu0 }
 0x26e   : > { %v1427_v40 = vpack.c.bf16 %v2200_v47, %v2199_v6  ;;  %v1141_v31 = vpop.f32.mrb[3].mxu0  ;;  %2120 = vmatpush3.bf16.xpose.msra.mxu1 %v1456_v37 }
 0x26f   : > { %v1426_v49 = vpack.c.bf16 %v1141_v31, %v1138_v51  ;;  %2259 = vmatprep.subr.msk.bf16.mxu1 %vm1430_vm2, %v3118_v62 }
 0x271   : > { %2127 = vmatprep.mubr.msk.bf16.mxu1 %vm1430_vm2, %v1426_v49 }
 0x276   : > { %2122 = vmatpush3.bf16.xpose.msra.mxu1 %v1459_v15 }
 0x277   : > { %2260 = vmatprep.subr.msk.bf16.mxu1 %vm1430_vm2, %v3125_v23 }
 0x27e   : > { %2124 = vmatpush3.bf16.xpose.msra.mxu1 %v1462_v28 }
 0x27f   : > { %2261 = vmatprep.subr.msk.bf16.mxu1 %vm1430_vm2, %v3123_v4 }
 0x286   : > { %2126 = vmatpush3.bf16.xpose.msra.mxu1 %v1465_v55 }
 0x28d   : > { %2128 = vmatmul.mubr.msk.bf16.vlgmr.msra.gmra.mrb[32].mxu1 %vm1430_vm2, %v1426_v49 }
 0x28e   : > { %2129 = vmatprep.mubr.msk.bf16.mxu1 %vm1430_vm2, %v1427_v40 }
 0x295   : > { %2130 = vmatmul.mubr.msk.bf16.gmra.mrb[36].mxu1 %vm1430_vm2, %v1427_v40 }
 0x29e   : > { %v1727_v16 = vpop.permute.xlu1 %1726 }
 0x2a2   : > { %v1725_v61 = vpop.permute.xlu1 %1724 }
 0x2a6   : > { %v1731_v17 = vpop.permute.xlu1 %1730 }
 0x2aa   : > { %v1729_v3 = vpop.permute.xlu1 %1728 }
 0x2af   : > { %v1733_v0 = vpop.permute.xlu1 %1732 }
 0x2be   : > { %v1743_v59 = vpop.permute.xlu0 %1742 }
 0x2c2   : > { %v1741_v44 = vpop.permute.xlu0 %1740 }
 0x2c3   : > { %2135 = vmatprep.subr.bf16.mxu0 %v1741_v44 }
 0x2c4   : > { %2136 = vmatpush3.bf16.msra.mxu0 %v1725_v61 }
 0x2c5   : > { %2137 = vmatprep.subr.bf16.mxu0 %v1743_v59 }
 0x2c8   : > { %2138 = vmatpush3.bf16.msra.mxu0 %v1727_v16 }
 0x2ca   : > { %v1747_v32 = vpop.permute.xlu0 %1746 }
 0x2cb   : > { %v1745_v9 = vpop.permute.xlu1 %1744 }
 0x2cc   : > { %2139 = vmatprep.subr.bf16.mxu0 %v1745_v9 }
 0x2cd   : > { %2140 = vmatpush3.bf16.msra.mxu0 %v1729_v3 }
 0x2ce   : > { %2141 = vmatprep.subr.bf16.mxu0 %v1747_v32 }
 0x2d1   : > { %2142 = vmatpush3.bf16.msra.mxu0 %v1731_v17 }
 0x2d3   : > { %v1749_v63 = vpop.permute.xlu0 %1748 }
 0x2d4   : > { %2143 = vmatprep.subr.bf16.mxu0 %v1749_v63 }
 0x2d5   : > { %2144 = vmatpush3.bf16.msra.mxu0 %v1733_v0 }
 0x2df   : > { %v2203_v57 = vpop.f32.mrb[4].mxu0 }
 0x2e0   : > { %v1154_v39 = vpop.f32.mrb[5].mxu0 }
 0x2e1   : > { %v2204_v8 = vpop.f32.mrb[6].mxu0 }
 0x2e2   : > { %v1429_v53 = vpack.c.bf16 %v2204_v8, %v2203_v57  ;;  %v1157_v41 = vpop.f32.mrb[7].mxu0 }
 0x2e3   : > { %v1428_v29 = vpack.c.bf16 %v1157_v41, %v1154_v39 }
 0x2e5   : > { %2131 = vmatprep.mubr.msk.bf16.mxu1 %vm1430_vm2, %v1428_v29 }
 0x2e6   : > { %2132 = vmatmul.mubr.msk.bf16.gmra.mrb[40].mxu1 %vm1430_vm2, %v1428_v29 }
 0x2e7   : > { %2133 = vmatprep.mubr.msk.bf16.mxu1 %vm1430_vm2, %v1429_v53 }
 0x2ee   : > { %2134 = vmatmul.mubr.msk.bf16.gmra.mrb[44].mxu1 %vm1430_vm2, %v1429_v53 }
 0x360   : > { %v1525_v18 = vpop.f32.mrb[32].mxu1 }
 0x361   : > { %v1564_v30 = vmul.f32 0.17677669, %v1525_v18  ;;  %v1527_v27 = vpop.f32.mrb[33].mxu1 }
 0x362   : > { %v1565_v56 = vmul.f32 0.17677669, %v1527_v27  ;;  %v1529_v22 = vpop.f32.mrb[34].mxu1 }
 0x363   : > { %v1566_v20 = vmul.f32 0.17677669, %v1529_v22  ;;  %v1531_v24 = vpop.f32.mrb[35].mxu1 }
 0x364   : > { %v1567_v35 = vmul.f32 0.17677669, %v1531_v24  ;;  %v1580_v21 = vmax.f32 %v1564_v30, %v1565_v56 }
 0x366   : > { %1581 = vmax.xlane.f32.xlu0 %v1580_v21  ;;  %v1583_v2 = vmax.f32 %v1566_v20, %v1567_v35 }
 0x368   : > { %1584 = vmax.xlane.f32.xlu1 %v1583_v2  ;;  %v1535_v34 = vpop.f32.mrb[36].mxu1 }
 0x369   : > { %v1568_v45 = vmul.f32 0.17677669, %v1535_v34  ;;  %v1537_v46 = vpop.f32.mrb[37].mxu1 }
 0x36a   : > { %v1569_v7 = vmul.f32 0.17677669, %v1537_v46  ;;  %v1539_v10 = vpop.f32.mrb[38].mxu1 }
 0x36b   : > { %v1541_v58 = vpop.f32.mrb[39].mxu1  ;;  %v3153_v11 = vmul.f32 0.17677669, %v1539_v10 }
 0x36c   : > { %v1586_v33 = vmax.f32 %v1568_v45, %v1569_v7  ;;  %v3155_v36 = vmul.f32 0.17677669, %v1541_v58 }
 0x36e   : > { %1587 = vmax.xlane.f32.xlu0 %v1586_v33  ;;  %v1589_v52 = vmax.f32 %v3153_v11, %v3155_v36 }
 0x379   : > { %1734 = vrot.lane.b32.xlu1 %v3101_v26, %s2427_s17 }
 0x384   : > { %1750 = vrot.lane.b32.xlu0 %v3118_v62, %s2427_s17 }
 0x39d   : > { %1590 = vmax.xlane.f32.xlu1 %v1589_v52 }
 0x3b9   : > { %v1545_v12 = vpop.f32.mrb[40].mxu1 }
 0x3ba   : > { %v3159_v13 = vmul.f32 0.17677669, %v1545_v12  ;;  %v1547_v19 = vpop.f32.mrb[41].mxu1 }
 0x3bb   : > { %v3161_v48 = vmul.f32 0.17677669, %v1547_v19  ;;  %v1549_v5 = vpop.f32.mrb[42].mxu1 }
 0x3bc   : > { %v3163_v1 = vmul.f32 0.17677669, %v1549_v5  ;;  %v1551_v26 = vpop.f32.mrb[43].mxu1 }
 0x3bd   : > { %v3165_v14 = vmul.f32 0.17677669, %v1551_v26  ;;  %v1592_v62 = vmax.f32 %v3159_v13, %v3161_v48 }
 0x3bf   : > { %v1595_v38 = vmax.f32 %v3163_v1, %v3165_v14  ;;  %1593 = vmax.xlane.f32.xlu0 %v1592_v62 }
 0x3c1   : > { %1596 = vmax.xlane.f32.xlu1 %v1595_v38  ;;  %v1555_v43 = vpop.f32.mrb[44].mxu1 }
 0x3c2   : > { %v3171_v60 = vmul.f32 0.17677669, %v1555_v43  ;;  %v1557_v42 = vpop.f32.mrb[45].mxu1 }
 0x3c3   : > { %v3173_v25 = vmul.f32 0.17677669, %v1557_v42  ;;  %v1559_v6 = vpop.f32.mrb[46].mxu1 }
 0x3c4   : > { %v3175_v51 = vmul.f32 0.17677669, %v1559_v6  ;;  %v1561_v37 = vpop.f32.mrb[47].mxu1 }
 0x3c5   : > { %v3177_v47 = vmul.f32 0.17677669, %v1561_v37  ;;  %v1598_v40 = vmax.f32 %v3171_v60, %v3173_v25 }
 0x3c7   : > { %v1601_v31 = vmax.f32 %v3175_v51, %v3177_v47  ;;  %1599 = vmax.xlane.f32.xlu0 %v1598_v40 }
 0x3c9   : > { %1602 = vmax.xlane.f32.xlu1 %v1601_v31 }
 0x3da   : > { %1736 = vrot.lane.b32.xlu1 %v3106_v50, %s2427_s17 }
 0x3dd   : > { %1752 = vrot.lane.b32.xlu0 %v3125_v23, %s2427_s17 }
 0x3f3   : > { %v1582_v49 = vpop.xlane.xlu0 %1581 }
 0x3f4   : > { %v1604_v15 = vsub.f32 %v1564_v30, %v1582_v49  ;;  %v1605_v28 = vsub.f32 %v1565_v56, %v1582_v49 }
 0x3f5   : > { %v1585_v55 = vpop.xlane.xlu1 %1584 }
 0x3f6   : > { %v1620_v16 = vmul.f32 1.442695, %v1604_v15  ;;  %v1622_v61 = vmul.f32 1.442695, %v1605_v28  ;;  %v1606_v17 = vsub.f32 %v1566_v20, %v1585_v55  ;;  %v1607_v59 = vsub.f32 %v1567_v35, %v1585_v55 }
 0x3f8   : > { %2363 = vpow2.f32 %v1620_v16  ;;  %v1624_v3 = vmul.f32 1.442695, %v1606_v17  ;;  %v1626_v44 = vmul.f32 1.442695, %v1607_v59 }
 0x3f9   : > { %2365 = vpow2.f32 %v1622_v61  ;;  %v1735_v57 = vpop.permute.xlu1 %1734 }
 0x3fa   : > { %2367 = vpow2.f32 %v1624_v3 }
 0x3fb   : > { %2369 = vpow2.f32 %v1626_v44  ;;  %v1588_v0 = vpop.xlane.xlu0 %1587 }
 0x3fc   : > { %v1608_v9 = vsub.f32 %v1568_v45, %v1588_v0  ;;  %v1609_v50 = vsub.f32 %v1569_v7, %v1588_v0 }
 0x3fe   : > { %v1628_v32 = vmul.f32 1.442695, %v1608_v9  ;;  %v1630_v63 = vmul.f32 1.442695, %v1609_v50 }
 0x3ff   : > { %v1751_v23 = vpop.permute.xlu0 %1750 }
 0x400   : > { %2371 = vpow2.f32 %v1628_v32  ;;  %2145 = vmatprep.subr.bf16.mxu0 %v1751_v23 }
 0x401   : > { %2373 = vpow2.f32 %v1630_v63  ;;  %2146 = vmatpush3.bf16.msra.mxu0 %v1735_v57 }
 0x402   : > { %v3187_v39 = vpop.eup %2363 }
 0x403   : > { %v3189_v8 = vpop.eup %2365 }
 0x404   : > { %v3191_v53 = vpop.eup %2367  ;;  %v1652_v41 = vadd.f32 %v3189_v8, %v3187_v39 }
 0x405   : > { %v3195_v29 = vpop.eup %2369 }
 0x406   : > { %1653 = vadd.xlane.f32.xlu1 %v1652_v41  ;;  %v1655_v18 = vadd.f32 %v3195_v29, %v3191_v53 }
 0x408   : > { %1656 = vadd.xlane.f32.xlu0 %v1655_v18 }
 0x40a   : > { %v3199_v30 = vpop.eup %2371 }
 0x40b   : > { %v3201_v27 = vpop.eup %2373 }
 0x40c   : > { %v1658_v56 = vadd.f32 %v3201_v27, %v3199_v30 }
 0x40e   : > { %1659 = vadd.xlane.f32.xlu0 %v1658_v56 }
 0x42a   : > { %v1591_v22 = vpop.xlane.xlu1 %1590 }
 0x42b   : > { %v1610_v20 = vsub.f32 %v3153_v11, %v1591_v22  ;;  %v1611_v24 = vsub.f32 %v3155_v36, %v1591_v22 }
 0x42d   : > { %v1632_v35 = vmul.f32 1.442695, %v1610_v20  ;;  %v1634_v21 = vmul.f32 1.442695, %v1611_v24 }
 0x42f   : > { %2375 = vpow2.f32 %v1632_v35 }
 0x430   : > { %2377 = vpow2.f32 %v1634_v21 }
 0x439   : > { %v3207_v2 = vpop.eup %2375 }
 0x43a   : > { %v3209_v34 = vpop.eup %2377 }
 0x43b   : > { %v1661_v45 = vadd.f32 %v3209_v34, %v3207_v2 }
 0x43d   : > { %1662 = vadd.xlane.f32.xlu1 %v1661_v45 }
 0x44c   : > { %v1594_v46 = vpop.xlane.xlu0 %1593 }
 0x44d   : > { %v1612_v7 = vsub.f32 %v3159_v13, %v1594_v46  ;;  %v1613_v10 = vsub.f32 %v3161_v48, %v1594_v46 }
 0x44e   : > { %v1597_v58 = vpop.xlane.xlu1 %1596 }
 0x44f   : > { %v1636_v33 = vmul.f32 1.442695, %v1612_v7  ;;  %v1638_v11 = vmul.f32 1.442695, %v1613_v10  ;;  %v1614_v36 = vsub.f32 %v3163_v1, %v1597_v58  ;;  %v1615_v52 = vsub.f32 %v3165_v14, %v1597_v58 }
 0x451   : > { %2379 = vpow2.f32 %v1636_v33  ;;  %v1640_v12 = vmul.f32 1.442695, %v1614_v36  ;;  %v1642_v19 = vmul.f32 1.442695, %v1615_v52 }
 0x452   : > { %2381 = vpow2.f32 %v1638_v11 }
 0x453   : > { %2383 = vpow2.f32 %v1640_v12 }
 0x454   : > { %2385 = vpow2.f32 %v1642_v19  ;;  %v1600_v5 = vpop.xlane.xlu0 %1599 }
 0x455   : > { %v1616_v26 = vsub.f32 %v3171_v60, %v1600_v5  ;;  %v1617_v13 = vsub.f32 %v3173_v25, %v1600_v5 }
 0x456   : > { %v1603_v62 = vpop.xlane.xlu1 %1602 }
 0x457   : > { %v1644_v48 = vmul.f32 1.442695, %v1616_v26  ;;  %v1646_v38 = vmul.f32 1.442695, %v1617_v13  ;;  %v1618_v43 = vsub.f32 %v3175_v51, %v1603_v62  ;;  %v1619_v1 = vsub.f32 %v3177_v47, %v1603_v62  ;;  %v2282_v62 = vld [vmem:[%s3300_s8 + $0x8] sm:$0xff]  }
 0x458   : > { %v1753_v42 = vpop.permute.xlu0 %1752 }
 0x459   : > { %2387 = vpow2.f32 %v1644_v48  ;;  %v1648_v14 = vmul.f32 1.442695, %v1618_v43  ;;  %v1650_v6 = vmul.f32 1.442695, %v1619_v1  ;;  %2147 = vmatprep.subr.bf16.mxu0 %v1753_v42 }
 0x45a   : > { %2389 = vpow2.f32 %v1646_v38  ;;  %v1737_v37 = vpop.permute.xlu1 %1736 }
 0x45b   : > { %v3221_v40 = vpop.eup %2379  ;;  %2391 = vpow2.f32 %v1648_v14  ;;  %2148 = vmatpush3.bf16.msra.mxu0 %v1737_v37 }
 0x45c   : > { %v2382_v60 = vpop.eup %2381  ;;  %2393 = vpow2.f32 %v1650_v6 }
 0x45d   : > { %v3223_v25 = vpop.eup %2383  ;;  %v1664_v31 = vadd.f32 %v2382_v60, %v3221_v40 }
 0x45e   : > { %v2386_v51 = vpop.eup %2385 }
 0x45f   : > { %1665 = vadd.xlane.f32.xlu0 %v1664_v31  ;;  %v1667_v47 = vadd.f32 %v2386_v51, %v3223_v25 }
 0x461   : > { %1668 = vadd.xlane.f32.xlu1 %v1667_v47 }
 0x463   : > { %v3227_v49 = vpop.eup %2387 }
 0x464   : > { %v3229_v15 = vpop.eup %2389 }
 0x465   : > { %v3231_v28 = vpop.eup %2391  ;;  %v1670_v55 = vadd.f32 %v3229_v15, %v3227_v49 }
 0x466   : > { %v2394_v16 = vpop.eup %2393 }
 0x467   : > { %1671 = vadd.xlane.f32.xlu0 %v1670_v55  ;;  %v1673_v61 = vadd.f32 %v2394_v16, %v3231_v28 }
 0x469   : > { %1674 = vadd.xlane.f32.xlu1 %v1673_v61 }
 0x47a   : > { %1738 = vrot.lane.b32.xlu1 %v3104_v54, %s2427_s17 }
 0x47d   : > { %1754 = vrot.lane.b32.xlu0 %v3123_v4, %s2427_s17 }
 0x493   : > { %v1654_v17 = vpop.xlane.xlu1 %1653 }
 0x494   : > { %2395 = vrcp.f32 %v1654_v17 }
 0x495   : > { %v1657_v59 = vpop.xlane.xlu0 %1656 }
 0x496   : > { %2397 = vrcp.f32 %v1657_v59 }
 0x49b   : > { %v1660_v57 = vpop.xlane.xlu0 %1659 }
 0x49e   : > { %v2396_v3 = vpop.eup %2395 }
 0x49f   : > { %v1684_v0 = vmul.f32 %v2396_v3, %v3187_v39  ;;  %v1685_v50 = vmul.f32 %v2396_v3, %v3189_v8  ;;  %v2281_v8 = vld [vmem:[%s3300_s8] sm:$0xff]  }
 0x4a0   : > { %v2398_v44 = vpop.eup %2397 }
 0x4a1   : > { %v1686_v9 = vmul.f32 %v2398_v44, %v3191_v53  ;;  %v1687_v32 = vmul.f32 %v2398_v44, %v3195_v29 }
 0x4a3   : > { %v1701_v63 = vpack.c.bf16 %v1687_v32, %v1685_v50  ;;  %v1700_v23 = vpack.c.bf16 %v1686_v9, %v1684_v0 }
 0x4a5   : > { %1804 = vmatprep.mubr.bf16.mxu0 %v1701_v63  ;;  %v2069_v63 = vld [vmem:[%s3301_s9] ss:$0 sm:$0xff] }
 0x4ca   : > { %v1663_v54 = vpop.xlane.xlu1 %1662 }
 0x4cb   : > { %2399 = vrcp.f32 %v1663_v54 }
 0x4cc   : > { %2401 = vrcp.f32 %v1660_v57 }
 0x4d5   : > { %v2400_v56 = vpop.eup %2399 }
 0x4d6   : > { %v2402_v22 = vpop.eup %2401  ;;  %v1691_v29 = vmul.f32 %v2400_v56, %v3209_v34  ;;  %v1690_v46 = vmul.f32 %v2400_v56, %v3207_v2 }
 0x4d7   : > { %v1689_v24 = vmul.f32 %v2402_v22, %v3201_v27  ;;  %v1688_v10 = vmul.f32 %v2402_v22, %v3199_v30 }
 0x4d9   : > { %v1703_v35 = vpack.c.bf16 %v1691_v29, %v1689_v24  ;;  %v1702_v34 = vpack.c.bf16 %v1690_v46, %v1688_v10 }
 0x4ec   : > { %v1666_v4 = vpop.xlane.xlu0 %1665 }
 0x4ee   : > { %v1669_v41 = vpop.xlane.xlu1 %1668 }
 0x4ef   : > { %2403 = vrcp.f32 %v1669_v41 }
 0x4f0   : > { %2405 = vrcp.f32 %v1666_v4 }
 0x4f4   : > { %v1672_v18 = vpop.xlane.xlu0 %1671 }
 0x4f6   : > { %v1675_v39 = vpop.xlane.xlu1 %1674 }
 0x4f7   : > { %2407 = vrcp.f32 %v1675_v39 }
 0x4f8   : > { %v1755_v53 = vpop.permute.xlu0 %1754  ;;  %2409 = vrcp.f32 %v1672_v18  ;;  %v2411_v18 = vld [vmem:[%s2665_s22 + $0x10] sm:$0xff] }
 0x4f9   : > { %2149 = vmatprep.subr.bf16.mxu0 %v1755_v53  ;;  %v2404_v21 = vpop.eup %2403  ;;  %v2412_v53 = vld [vmem:[%s2665_s22] sm:$0xff] }
 0x4fa   : > { %v1739_v20 = vpop.permute.xlu1 %1738  ;;  %v2406_v45 = vpop.eup %2405  ;;  %v1695_v7 = vmul.f32 %v2404_v21, %v2386_v51  ;;  %v1694_v36 = vmul.f32 %v2404_v21, %v3223_v25 }
 0x4fb   : > { %2150 = vmatpush3.bf16.msra.mxu0 %v1739_v20  ;;  %v1693_v58 = vmul.f32 %v2406_v45, %v2382_v60  ;;  %v1692_v12 = vmul.f32 %v2406_v45, %v3221_v40  ;;  %v2413_v20 = vld [vmem:[%s2665_s22 + $0x18] sm:$0xff] }
 0x4fc   : > { %2241 = vmatprep.subr.bf16.mxu0 %v2281_v8 }
 0x4fd   : > { %v1705_v33 = vpack.c.bf16 %v1695_v7, %v1693_v58  ;;  %v1704_v5 = vpack.c.bf16 %v1694_v36, %v1692_v12  ;;  %v2416_v36 = vld [vmem:[%s2665_s22 + $0x20] sm:$0xff] }
 0x4fe   : > { %1805 = vmatmul.mubr.bf16.vlgmr.msra.gmra.mrb[8].mxu0 %v1700_v23 }
 0x4ff   : > { %1812 = vmatprep.mubr.bf16.mxu0 %v1703_v35  ;;  %2242 = vmatpush3.bf16.msra.mxu0 %v2281_v8  ;;  %v2414_v35 = vld [vmem:[%s2665_s22 + $0x8] sm:$0xff] }
 0x500   : > { %2243 = vmatprep.subr.bf16.mxu0 %v2282_v62 }
 0x501   : > { %v2408_v11 = vpop.eup %2407 }
 0x502   : > { %v2410_v27 = vpop.eup %2409  ;;  %v1699_v52 = vmul.f32 %v2408_v11, %v2394_v16  ;;  %v1698_v30 = vmul.f32 %v2408_v11, %v3231_v28 }
 0x503   : > { %v1697_v19 = vmul.f32 %v2410_v27, %v3229_v15  ;;  %v1696_v2 = vmul.f32 %v2410_v27, %v3227_v49  ;;  %2244 = vmatpush3.bf16.msra.mxu0 %v2282_v62 }
 0x505   : > { %v1707_v26 = vpack.c.bf16 %v1699_v52, %v1697_v19  ;;  %v1706_v13 = vpack.c.bf16 %v1698_v30, %v1696_v2  ;;  %v2417_v19 = vld [vmem:[%s2665_s22 + $0x38] sm:$0xff] }
 0x506   : > { %1813 = vmatmul.mubr.bf16.gmra.mrb[12].mxu0 %v1702_v34  ;;  %v2415_v34 = vld [vmem:[%s2665_s22 + $0x30] sm:$0xff] }
 0x507   : > { %1820 = vmatprep.mubr.bf16.mxu0 %v1705_v33 }
 0x50e   : > { %1821 = vmatmul.mubr.bf16.gmra.mrb[16].mxu0 %v1704_v5 }
 0x50f   : > { %1828 = vmatprep.mubr.bf16.mxu0 %v1707_v26  ;;  %v2418_v26 = vld [vmem:[%s2665_s22 + $0x28] sm:$0xff] }
 0x516   : > { %1829 = vmatmul.mubr.bf16.gmra.mrb[20].mxu0 %v1706_v13 }
 0x5d1   : > { %v2151_v48 = vpop.f32.mrb[8].mxu0 }
 0x5d2   : > { %v2152_v38 = vpop.f32.mrb[9].mxu0 }
 0x5d3   : > { %v2153_v43 = vadd.f32 %v2152_v38, %v2151_v48  ;;  %v2154_v1 = vpop.f32.mrb[10].mxu0 }
 0x5d4   : > { %v2155_v42 = vpop.f32.mrb[11].mxu0 }
 0x5d5   : > { %v2156_v14 = vadd.f32 %v2155_v42, %v2154_v1 }
 0x5d7   : > { %v1837_v6 = vpack.c.bf16 %v2156_v14, %v2153_v43 }
 0x5d9   : > { %v2157_v37 = vpop.f32.mrb[12].mxu0  ;;  %2245 = vmatprep.mubr.msk.bf16.mxu0 %vm1430_vm2, %v1837_v6 }
 0x5da   : > { %v2158_v40 = vpop.f32.mrb[13].mxu0 }
 0x5db   : > { %v2159_v60 = vadd.f32 %v2158_v40, %v2157_v37  ;;  %v2160_v25 = vpop.f32.mrb[14].mxu0 }
 0x5dc   : > { %v2161_v31 = vpop.f32.mrb[15].mxu0 }
 0x5dd   : > { %v2162_v51 = vadd.f32 %v2161_v31, %v2160_v25 }
 0x5df   : > { %v1838_v47 = vpack.c.bf16 %v2162_v51, %v2159_v60 }
 0x5e1   : > { %v2163_v49 = vpop.f32.mrb[16].mxu0  ;;  %2246 = vmatmul.mubr.msk.bf16.vlgmr.msra.gmra.mrb[24].mxu0 %vm1430_vm2, %v1838_v47 }
 0x5e2   : > { %v2164_v15 = vpop.f32.mrb[17].mxu0 }
 0x5e3   : > { %v2165_v28 = vadd.f32 %v2164_v15, %v2163_v49  ;;  %v2166_v55 = vpop.f32.mrb[18].mxu0 }
 0x5e4   : > { %v2167_v16 = vpop.f32.mrb[19].mxu0 }
 0x5e5   : > { %v2168_v61 = vadd.f32 %v2167_v16, %v2166_v55 }
 0x5e7   : > { %v1839_v17 = vpack.c.bf16 %v2168_v61, %v2165_v28 }
 0x5e9   : > { %v2169_v59 = vpop.f32.mrb[20].mxu0  ;;  %2249 = vmatprep.mubr.msk.bf16.mxu0 %vm1430_vm2, %v1839_v17 }
 0x5ea   : > { %v2170_v3 = vpop.f32.mrb[21].mxu0 }
 0x5eb   : > { %v2171_v44 = vadd.f32 %v2170_v3, %v2169_v59  ;;  %v2172_v0 = vpop.f32.mrb[22].mxu0 }
 0x5ec   : > { %v2173_v9 = vpop.f32.mrb[23].mxu0 }
 0x5ed   : > { %v2174_v50 = vadd.f32 %v2173_v9, %v2172_v0 }
 0x5ef   : > { %v1840_v32 = vpack.c.bf16 %v2174_v50, %v2171_v44 }
 0x5f1   : > { %2250 = vmatmul.mubr.msk.bf16.gmra.mrb[28].mxu0 %vm1430_vm2, %v1840_v32 }
 0x6b4   : > { %v2247_v23 = vpop.f32.mrb[24].mxu0 }
 0x6b5   : > { %v1919_v54 = vadd.f32 %v2247_v23, %v2069_v63  ;;  %v1910_v57 = vpop.f32.mrb[25].mxu0 }
 0x6b6   : > { %v1911_v4 = vadd.f32 %v2069_v63, %v1910_v57  ;;  %v2248_v41 = vpop.f32.mrb[26].mxu0 }
 0x6b7   : > { %v1943_v56 = vadd.f32 %v2411_v18, %v1919_v54  ;;  %v1922_v39 = vadd.f32 %v2248_v41, %v2069_v63  ;;  %v1913_v22 = vpop.f32.mrb[27].mxu0 }
 0x6b8   : > { %v1941_v8 = vadd.f32 %v2412_v53, %v1911_v4  ;;  %v1914_v29 = vadd.f32 %v2069_v63, %v1913_v22 }
 0x6b9   : > { %1951 = vst [vmem:[%s3271_s28 + $0x10] sm:$0xff] %v1943_v56  ;;  %v1944_v24 = vadd.f32 %v2413_v20, %v1922_v39 }
 0x6ba   : > { %1949 = vst [vmem:[%s3271_s28] sm:$0xff] %v1941_v8  ;;  %v1942_v21 = vadd.f32 %v2414_v35, %v1914_v29 }
 0x6bb   : > { %1952 = vst [vmem:[%s3271_s28 + $0x18] sm:$0xff] %v1944_v24 }
 0x6bc   : > { %1950 = vst [vmem:[%s3271_s28 + $0x8] sm:$0xff] %v1942_v21 }
 0x6c4   : > { %v2251_v45 = vpop.f32.mrb[28].mxu0 }
 0x6c5   : > { %v1935_v46 = vadd.f32 %v2251_v45, %v2069_v63  ;;  %v1926_v7 = vpop.f32.mrb[29].mxu0 }
 0x6c6   : > { %v1927_v10 = vadd.f32 %v2069_v63, %v1926_v7  ;;  %v2252_v58 = vpop.f32.mrb[30].mxu0 }
 0x6c7   : > { %v1947_v33 = vadd.f32 %v2415_v34, %v1935_v46  ;;  %v1938_v11 = vadd.f32 %v2252_v58, %v2069_v63  ;;  %v1929_v27 = vpop.f32.mrb[31].mxu0 }
 0x6c8   : > { %v1945_v52 = vadd.f32 %v2416_v36, %v1927_v10  ;;  %v1930_v12 = vadd.f32 %v2069_v63, %v1929_v27 }
 0x6c9   : > { %1955 = vst [vmem:[%s3271_s28 + $0x30] sm:$0xff] %v1947_v33  ;;  %v1948_v5 = vadd.f32 %v2417_v19, %v1938_v11 }
 0x6ca   : > { %1953 = vst [vmem:[%s3271_s28 + $0x20] sm:$0xff] %v1945_v52  ;;  %v1946_v30 = vadd.f32 %v2418_v26, %v1930_v12 }
 0x6cb   : > { %1956 = vst [vmem:[%s3271_s28 + $0x38] sm:$0xff] %v1948_v5 }
 0x6cc   : > { %1954 = vst [vmem:[%s3271_s28 + $0x28] sm:$0xff] %v1946_v30 }
 0x6cd PF: > { %s20_s13 = sadd.s32 1, %s2425_s13  }
 0x6ce   : > { %p17_p4 = scmp.ge.s32.totalorder %s20_s13, 4  }
 0x6d0   :  { %19 = sbr.rel (!%p17_p4) target bundleno = 1 (0x1), region = 93 }

// kernel: _lambda_.11
= control target key start
LH: loop header
LB: loop body
LE: loop exit
PB: predicated region body
PF: predicated region fallthrough
CT: control target
= control target key end

     0   :  { %s2891_s24 = smov 0   ;;  %s3640_s0 = inlined_call_operand.vmem [shape: f32[2,64,128], index: 0, kind: input, shape index: {}]   ;;  %s3641_s1 = inlined_call_operand.vmem [shape: f32[1,128], index: 1, kind: input, shape index: {}]   ;;  %s3642_s2 = inlined_call_operand.vmem [shape: f32[1,128], index: 2, kind: input, shape index: {}]   ;;  %s3643_s3 = inlined_call_operand.vmem [shape: bf16[128,128], index: 3, kind: input, shape index: {}]   ;;  %s3644_s4 = inlined_call_operand.vmem [shape: bf16[128,256], index: 4, kind: input, shape index: {}]   ;;  %s3645_s5 = inlined_call_operand.vmem [shape: bf16[128,128], index: 5, kind: input, shape index: {}]   ;;  %s3646_s6 = inlined_call_operand.vmem [shape: f32[1,128], index: 6, kind: input, shape index: {}]   ;;  %s3647_s7 = inlined_call_operand.vmem [shape: f32[2,64,128], index: 7, kind: output, shape index: {}]  }
   0x1 LB: > { %s2215_s25 = sadd.s32 4294967295, %s2845_s24   ;;  %p2219_p0 = scmp.ge.s32.totalorder %s2845_s24, 1  ;;  %s2845_s24 = sphi %s2891_s24, %s17_s24  }
   0x2   : > { %p237_p1 = scmp.lt.s32.totalorder %s2845_s24, 3 }
   0x4   : > { %p238_p2 = pnand %p2219_p0, %p237_p1 }
   0x5   : > { %p269_p3 = scmp.lt.s32.totalorder (!%p238_p2), %s2215_s25, 1  ;;  %v2647_v8 = vld [vmem:[%s3644_s4 + $0x4] ss:$8 sps:$4 sm:$0xff] (!%p238_p2)   ;;  %v2649_v9 = vld [vmem:[%s3644_s4] ss:$8 sps:$4 sm:$0xff] (!%p238_p2)   ;;  %v2658_v48 = vld [vmem:[%s3643_s3 + $0x10] sm:$0xff] (!%p238_p2)  }
   0x6   : > { %241 = sbr.rel (%p238_p2) target bundleno = 3085 (0xc0d), region = 48  ;;  %v2650_v10 = vld [vmem:[%s3643_s3] sm:$0xff] (!%p238_p2)   ;;  %v2651_v11 = vld [vmem:[%s3644_s4 + $0x14] ss:$8 sps:$4 sm:$0xff] (!%p238_p2)   ;;  %636 = vmatprep.subr.bf16.mxu1 (!%p238_p2), %v2647_v8  ;;  %v2653_v44 = vld [vmem:[%s3644_s4 + $0x10] ss:$8 sps:$4 sm:$0xff] (!%p238_p2)  }
   0x7   : > { %2383 = vmatprep.subr.bf16.mxu0 (!%p238_p2), %v2650_v10  ;;  %637 = vmatpush1.bf16.msra.mxu1 (!%p238_p2), %v2649_v9  ;;  %v2654_v45 = vld [vmem:[%s3643_s3 + $0x8] sm:$0xff] (!%p238_p2)   ;;  %v2659_v49 = vld [vmem:[%s3644_s4 + $0x34] ss:$8 sps:$4 sm:$0xff] (!%p238_p2)   ;;  %v2661_v50 = vld [vmem:[%s3644_s4 + $0x30] ss:$8 sps:$4 sm:$0xff] (!%p238_p2)   ;;  %vm721_vm0 = vcmask (!%p238_p2), 261120  }
   0x8   : > { %2384 = vmatpush3.bf16.msra.mxu0 (!%p238_p2), %v2650_v10  ;;  %638 = vmatprep.subr.bf16.mxu1 (!%p238_p2), %v2651_v11  ;;  %v2655_v46 = vld [vmem:[%s3644_s4 + $0x24] ss:$8 sps:$4 sm:$0xff] (!%p238_p2)   ;;  %v2657_v47 = vld [vmem:[%s3644_s4 + $0x20] ss:$8 sps:$4 sm:$0xff] (!%p238_p2)   ;;  %v2662_v51 = vld [vmem:[%s3643_s3 + $0x18] sm:$0xff] (!%p238_p2)   ;;  %s2848_s21 = smov (!%p238_p2), 96  }
   0x9   : > { %2385 = vmatprep.subr.bf16.mxu0 (!%p238_p2), %v2654_v45  ;;  %v2663_v52 = vld [vmem:[%s3644_s4 + $0x44] ss:$8 sps:$4 sm:$0xff] (!%p238_p2)   ;;  %v2665_v53 = vld [vmem:[%s3644_s4 + $0x40] ss:$8 sps:$4 sm:$0xff] (!%p238_p2)   ;;  %v2667_v55 = vld [vmem:[%s3644_s4 + $0x54] ss:$8 sps:$4 sm:$0xff] (!%p238_p2)  }
   0xa   : > { %v2666_v54 = vld [vmem:[%s3643_s3 + $0x20] sm:$0xff] (!%p238_p2)   ;;  %v2669_v56 = vld [vmem:[%s3644_s4 + $0x50] ss:$8 sps:$4 sm:$0xff] (!%p238_p2)   ;;  %v2670_v57 = vld [vmem:[%s3643_s3 + $0x28] sm:$0xff] (!%p238_p2)   ;;  %vm819_vm1 = vcmask (!%p238_p2), 523264   ;;  %s2849_s22 = smov (!%p238_p2), 64  }
   0xb   : > { %639 = vmatpush1.bf16.msra.mxu1 (!%p238_p2), %v2653_v44  ;;  %v2671_v58 = vld [vmem:[%s3644_s4 + $0x64] ss:$8 sps:$4 sm:$0xff] (!%p238_p2)   ;;  %v2673_v59 = vld [vmem:[%s3644_s4 + $0x60] ss:$8 sps:$4 sm:$0xff] (!%p238_p2)   ;;  %v2674_v60 = vld [vmem:[%s3643_s3 + $0x30] sm:$0xff] (!%p238_p2)   ;;  %s2850_s23 = smov (!%p238_p2), 32  }
   0xc   : > { %640 = vmatprep.subr.bf16.mxu1 (!%p238_p2), %v2655_v46  ;;  %2386 = vmatpush3.bf16.msra.mxu0 (!%p238_p2), %v2654_v45  ;;  %v2675_v61 = vld [vmem:[%s3644_s4 + $0x74] ss:$8 sps:$4 sm:$0xff] (!%p238_p2)   ;;  %v2677_v62 = vld [vmem:[%s3644_s4 + $0x70] ss:$8 sps:$4 sm:$0xff] (!%p238_p2)   ;;  %vm1995_vm2 = vcmask (!%p238_p2), 785408  }
   0xd   : > { %s3649_s25 = smov (!%p269_p3, %s2215_s25), 1  ;;  %2387 = vmatprep.subr.bf16.mxu0 %v2658_v48  ;;  %v2678_v63 = vld [vmem:[%s3643_s3 + $0x38] sm:$0xff]  }
   0xe   : > { %s2293_s26 = sshll.u32 %s3649_s25, 6 }
   0xf   : > { %s2907_s29 = scalar_lea.vmem %s3640_s0, %s2293_s26  ;;  %641 = vmatpush1.bf16.msra.mxu1 %v2657_v47  ;;  %s3619_s28 = scalar_lea.vmem %s3647_s7, %s2293_s26 }
  0x10   : > { %v280_v0 = vld [vmem:[%s2907_s29] sm:$0xff]  ;;  %v282_v1 = vld [vmem:[%s2907_s29 + $0x10] sm:$0xff]  ;;  %v281_v2 = vld [vmem:[%s2907_s29 + $0x8] sm:$0xff]  ;;  %642 = vmatprep.subr.bf16.mxu1 %v2659_v49  ;;  %2388 = vmatpush3.bf16.msra.mxu0 %v2658_v48 }
  0x11   : > { %290 = vadd.xlane.f32.xlu0 %v280_v0  ;;  %294 = vadd.xlane.f32.xlu1 %v282_v1  ;;  %v283_v3 = vld [vmem:[%s2907_s29 + $0x18] sm:$0xff]  ;;  %v284_v4 = vld [vmem:[%s2907_s29 + $0x20] sm:$0xff]  ;;  %v285_v5 = vld [vmem:[%s2907_s29 + $0x28] sm:$0xff] }
  0x12   : > { %v286_v6 = vld [vmem:[%s2907_s29 + $0x30] sm:$0xff]  ;;  %v287_v7 = vld [vmem:[%s2907_s29 + $0x38] sm:$0xff]  ;;  %2389 = vmatprep.subr.bf16.mxu0 %v2662_v51 }
  0x13   : > { %643 = vmatpush1.bf16.msra.mxu1 %v2661_v50 }
  0x14   : > { %644 = vmatprep.subr.bf16.mxu1 %v2663_v52  ;;  %2390 = vmatpush3.bf16.msra.mxu0 %v2662_v51 }
  0x15   : > { %292 = vadd.xlane.f32.xlu0 %v281_v2  ;;  %296 = vadd.xlane.f32.xlu1 %v283_v3 }
  0x16   : > { %2391 = vmatprep.subr.bf16.mxu0 %v2666_v54 }
  0x17   : > { %645 = vmatpush1.bf16.msra.mxu1 %v2665_v53 }
  0x18   : > { %646 = vmatprep.subr.bf16.mxu1 %v2667_v55  ;;  %2392 = vmatpush3.bf16.msra.mxu0 %v2666_v54 }
  0x19   : > { %298 = vadd.xlane.f32.xlu0 %v284_v4  ;;  %300 = vadd.xlane.f32.xlu1 %v285_v5 }
  0x1a   : > { %2393 = vmatprep.subr.bf16.mxu0 %v2670_v57 }
  0x1b   : > { %647 = vmatpush1.bf16.msra.mxu1 %v2669_v56 }
  0x1c   : > { %648 = vmatprep.subr.bf16.mxu1 %v2671_v58  ;;  %2394 = vmatpush3.bf16.msra.mxu0 %v2670_v57 }
  0x1d   : > { %302 = vadd.xlane.f32.xlu0 %v286_v6  ;;  %304 = vadd.xlane.f32.xlu1 %v287_v7 }
  0x1e   : > { %2395 = vmatprep.subr.bf16.mxu0 %v2674_v60 }
  0x1f   : > { %649 = vmatpush1.bf16.msra.mxu1 %v2673_v59 }
  0x20   : > { %650 = vmatprep.subr.bf16.mxu1 %v2675_v61  ;;  %2396 = vmatpush3.bf16.msra.mxu0 %v2674_v60 }
  0x21   : > { %2397 = vmatprep.subr.bf16.mxu0 %v2678_v63 }
  0x23   : > { %651 = vmatpush1.bf16.msra.mxu1 %v2677_v62 }
  0x24   : > { %2398 = vmatpush3.bf16.msra.mxu0 %v2678_v63 }
  0x9e   : > { %v291_v12 = vpop.xlane.xlu0 %290  ;;  %v295_v13 = vpop.xlane.xlu1 %294 }
  0x9f   : > { %v307_v14 = vmul.f32 0.0078125, %v291_v12  ;;  %v309_v15 = vmul.f32 0.0078125, %v295_v13 }
  0xa1   : > { %v2929_v16 = vsub.f32 %v280_v0, %v307_v14  ;;  %v2931_v17 = vsub.f32 %v282_v1, %v309_v15  ;;  %v2847_v0 = vmov 0  }
  0xa2   : > { %v293_v18 = vpop.xlane.xlu0 %292  ;;  %v297_v19 = vpop.xlane.xlu1 %296  ;;  %668 = vmatprep.mubr.bf16.mxu1 %v2847_v0 }
  0xa3   : > { %v308_v20 = vmul.f32 0.0078125, %v293_v18  ;;  %v323_v21 = vmul.f32 %v2929_v16, %v2929_v16  ;;  %v310_v22 = vmul.f32 0.0078125, %v297_v19  ;;  %v325_v23 = vmul.f32 %v2931_v17, %v2931_v17 }
  0xa5   : > { %331 = vadd.xlane.f32.xlu0 %v323_v21  ;;  %v2937_v24 = vsub.f32 %v281_v2, %v308_v20  ;;  %v2939_v25 = vsub.f32 %v283_v3, %v310_v22 }
  0xa6   : > { %v299_v26 = vpop.xlane.xlu0 %298  ;;  %v301_v27 = vpop.xlane.xlu1 %300 }
  0xa7   : > { %v311_v28 = vmul.f32 0.0078125, %v299_v26  ;;  %v324_v29 = vmul.f32 %v2937_v24, %v2937_v24  ;;  %v312_v30 = vmul.f32 0.0078125, %v301_v27  ;;  %v326_v31 = vmul.f32 %v2939_v25, %v2939_v25 }
  0xa9   : > { %335 = vadd.xlane.f32.xlu0 %v325_v23  ;;  %333 = vadd.xlane.f32.xlu1 %v324_v29  ;;  %v2945_v32 = vsub.f32 %v284_v4, %v311_v28  ;;  %v2947_v33 = vsub.f32 %v285_v5, %v312_v30  ;;  %v2224_v30 = vld [vmem:[%s3641_s1] ss:$0 sm:$0xff] }
  0xaa   : > { %v303_v34 = vpop.xlane.xlu0 %302  ;;  %v305_v35 = vpop.xlane.xlu1 %304 }
  0xab   : > { %v313_v36 = vmul.f32 0.0078125, %v303_v34  ;;  %v327_v37 = vmul.f32 %v2945_v32, %v2945_v32  ;;  %v314_v38 = vmul.f32 0.0078125, %v305_v35  ;;  %v328_v39 = vmul.f32 %v2947_v33, %v2947_v33 }
  0xad   : > { %337 = vadd.xlane.f32.xlu1 %v326_v31  ;;  %339 = vadd.xlane.f32.xlu0 %v327_v37  ;;  %v2953_v40 = vsub.f32 %v286_v6, %v313_v36  ;;  %v2955_v41 = vsub.f32 %v287_v7, %v314_v38  ;;  %v2225_v38 = vld [vmem:[%s3642_s2] ss:$0 sm:$0xff] }
  0xaf   : > { %v329_v42 = vmul.f32 %v2953_v40, %v2953_v40  ;;  %v330_v43 = vmul.f32 %v2955_v41, %v2955_v41 }
  0xb1   : > { %341 = vadd.xlane.f32.xlu1 %v328_v39  ;;  %343 = vadd.xlane.f32.xlu0 %v329_v42 }
  0xb5   : > { %345 = vadd.xlane.f32.xlu1 %v330_v43 }
 0x132   : > { %v332_v1 = vpop.xlane.xlu0 %331 }
 0x133   : > { %v347_v2 = vmul.f32 0.0078125, %v332_v1 }
 0x135   : > { %v355_v3 = vadd.f32 1e-05, %v347_v2 }
 0x136   : > { %v334_v4 = vpop.xlane.xlu1 %333  ;;  %v336_v5 = vpop.xlane.xlu0 %335 }
 0x137   : > { %2687 = vrsqrt.f32 %v355_v3  ;;  %v348_v6 = vmul.f32 0.0078125, %v334_v4  ;;  %v349_v7 = vmul.f32 0.0078125, %v336_v5 }
 0x139   : > { %v356_v8 = vadd.f32 1e-05, %v348_v6  ;;  %v357_v9 = vadd.f32 1e-05, %v349_v7 }
 0x13a   : > { %v338_v10 = vpop.xlane.xlu1 %337  ;;  %v340_v11 = vpop.xlane.xlu0 %339 }
 0x13b   : > { %2689 = vrsqrt.f32 %v356_v8  ;;  %v350_v12 = vmul.f32 0.0078125, %v338_v10  ;;  %v351_v13 = vmul.f32 0.0078125, %v340_v11 }
 0x13c   : > { %2691 = vrsqrt.f32 %v357_v9 }
 0x13d   : > { %v358_v14 = vadd.f32 1e-05, %v350_v12  ;;  %v359_v15 = vadd.f32 1e-05, %v351_v13 }
 0x13e   : > { %v342_v18 = vpop.xlane.xlu1 %341  ;;  %v344_v19 = vpop.xlane.xlu0 %343 }
 0x13f   : > { %2693 = vrsqrt.f32 %v358_v14  ;;  %v352_v20 = vmul.f32 0.0078125, %v342_v18  ;;  %v353_v21 = vmul.f32 0.0078125, %v344_v19 }
 0x140   : > { %2695 = vrsqrt.f32 %v359_v15 }
 0x141   : > { %v2688_v22 = vpop.eup %2687  ;;  %v360_v23 = vadd.f32 1e-05, %v352_v20  ;;  %v361_v26 = vadd.f32 1e-05, %v353_v21 }
 0x142   : > { %v346_v27 = vpop.xlane.xlu1 %345  ;;  %v371_v28 = vmul.f32 %v2688_v22, %v2929_v16 }
 0x143   : > { %2697 = vrsqrt.f32 %v360_v23  ;;  %v354_v29 = vmul.f32 0.0078125, %v346_v27 }
 0x144   : > { %2699 = vrsqrt.f32 %v361_v26  ;;  %v385_v37 = vmul.f32 %v2224_v30, %v371_v28 }
 0x145   : > { %v2690_v31 = vpop.eup %2689  ;;  %v362_v34 = vadd.f32 1e-05, %v354_v29 }
 0x146   : > { %v2692_v35 = vpop.eup %2691  ;;  %v372_v36 = vmul.f32 %v2690_v31, %v2937_v24  ;;  %v399_v45 = vadd.f32 %v2225_v38, %v385_v37 }
 0x147   : > { %2701 = vrsqrt.f32 %v362_v34  ;;  %v373_v16 = vmul.f32 %v2692_v35, %v2931_v17 }
 0x148   : > { %v386_v39 = vmul.f32 %v2224_v30, %v372_v36 }
 0x149   : > { %v2694_v42 = vpop.eup %2693  ;;  %v387_v43 = vmul.f32 %v2224_v30, %v373_v16 }
 0x14a   : > { %v2696_v44 = vpop.eup %2695  ;;  %v400_v46 = vadd.f32 %v2225_v38, %v386_v39  ;;  %v374_v47 = vmul.f32 %v2694_v42, %v2939_v25 }
 0x14b   : > { %v375_v48 = vmul.f32 %v2696_v44, %v2945_v32  ;;  %v401_v51 = vadd.f32 %v2225_v38, %v387_v43 }
 0x14c   : > { %v407_v49 = vpack.c.bf16 %v400_v46, %v399_v45  ;;  %v388_v24 = vmul.f32 %v2224_v30, %v374_v47 }
 0x14d   : > { %v2698_v50 = vpop.eup %2697  ;;  %v389_v54 = vmul.f32 %v2224_v30, %v375_v48 }
 0x14e   : > { %v2700_v52 = vpop.eup %2699  ;;  %2399 = vmatprep.mubr.bf16.mxu0 %v407_v49  ;;  %669 = vmatmul.mubr.bf16.vlgmr.msra.gmra.mrb[0].mxu1 %v407_v49  ;;  %v402_v53 = vadd.f32 %v2225_v38, %v388_v24  ;;  %v376_v17 = vmul.f32 %v2698_v50, %v2947_v33 }
 0x14f   : > { %678 = vmatprep.mubr.bf16.mxu1 %v2847_v0  ;;  %v377_v55 = vmul.f32 %v2700_v52, %v2953_v40  ;;  %v403_v32 = vadd.f32 %v2225_v38, %v389_v54 }
 0x150   : > { %v408_v56 = vpack.c.bf16 %v402_v53, %v401_v51  ;;  %v390_v57 = vmul.f32 %v2224_v30, %v376_v17 }
 0x151   : > { %v2702_v25 = vpop.eup %2701  ;;  %v391_v60 = vmul.f32 %v2224_v30, %v377_v55 }
 0x152   : > { %2400 = vmatmul.mubr.bf16.vlgmr.msra.gmra.mrb[0].mxu0 %v408_v56  ;;  %v404_v58 = vadd.f32 %v2225_v38, %v390_v57  ;;  %v378_v59 = vmul.f32 %v2702_v25, %v2955_v41 }
 0x153   : > { %v405_v63 = vadd.f32 %v2225_v38, %v391_v60 }
 0x154   : > { %v409_v61 = vpack.c.bf16 %v404_v58, %v403_v32  ;;  %v392_v62 = vmul.f32 %v2224_v30, %v378_v59 }
 0x156   : > { %2403 = vmatprep.mubr.bf16.mxu0 %v409_v61  ;;  %679 = vmatmul.mubr.bf16.gmra.mrb[4].mxu1 %v408_v56  ;;  %v406_v33 = vadd.f32 %v2225_v38, %v392_v62 }
 0x157   : > { %688 = vmatprep.mubr.bf16.mxu1 %v2847_v0 }
 0x158   : > { %v410_v1 = vpack.c.bf16 %v406_v33, %v405_v63 }
 0x15a   : > { %2404 = vmatmul.mubr.bf16.gmra.mrb[4].mxu0 %v410_v1 }
 0x15e   : > { %689 = vmatmul.mubr.bf16.gmra.mrb[8].mxu1 %v409_v61 }
 0x15f   : > { %698 = vmatprep.mubr.bf16.mxu1 %v2847_v0 }
 0x166   : > { %699 = vmatmul.mubr.bf16.gmra.mrb[12].mxu1 %v410_v1 }
 0x221   : > { %v670_v40 = vpop.f32.mrb[0].mxu1 }
 0x222   : > { %v672_v2 = vpop.f32.mrb[1].mxu1 }
 0x223   : > { %v674_v3 = vpop.f32.mrb[2].mxu1 }
 0x224   : > { %v3039_v41 = vpack.c.bf16 %v674_v3, %v670_v40  ;;  %v676_v4 = vpop.f32.mrb[3].mxu1 }
 0x225   : > { %v3041_v5 = vpack.c.bf16 %v676_v4, %v672_v2  ;;  %v2401_v6 = vpop.f32.mrb[0].mxu0 }
 0x226   : > { %1005 = vrot.lane.b32.xlu0 %v3039_v41, %s2848_s21  ;;  %v509_v7 = vpop.f32.mrb[1].mxu0  ;;  %2559 = vmatprep.subr.msk.bf16.mxu0 %vm721_vm0, %v3039_v41  ;;  %v735_v0 = vsel %vm721_vm0, %v3039_v41, 0 }
 0x227   : > { %v2402_v8 = vpop.f32.mrb[2].mxu0  ;;  %2408 = vmatpush3.bf16.xpose.msra.mxu0 %v735_v0  ;;  %2423 = vmatprep.subr.bf16.mxu1 %v3041_v5 }
 0x228   : > { %v3050_v9 = vpack.c.bf16 %v2402_v8, %v2401_v6  ;;  %v512_v10 = vpop.f32.mrb[3].mxu0  ;;  %2424 = vmatpush3.bf16.msra.mxu1 %v3041_v5 }
 0x229   : > { %v3053_v11 = vpack.c.bf16 %v512_v10, %v509_v7  ;;  %v680_v12 = vpop.f32.mrb[4].mxu1 }
 0x22a   : > { %v682_v13 = vpop.f32.mrb[5].mxu1 }
 0x22b   : > { %v684_v14 = vpop.f32.mrb[6].mxu1  ;;  %993 = vrot.lane.b32.xlu0 %v3053_v11, %s2848_s21  ;;  %2415 = vmatprep.mubr.msk.bf16.mxu0 %vm721_vm0, %v3053_v11 }
 0x22c   : > { %v3059_v15 = vpack.c.bf16 %v684_v14, %v680_v12  ;;  %v686_v18 = vpop.f32.mrb[7].mxu1 }
 0x22d   : > { %v3061_v19 = vpack.c.bf16 %v686_v18, %v682_v13  ;;  %v2405_v20 = vpop.f32.mrb[4].mxu0 }
 0x22e   : > { %1007 = vrot.lane.b32.xlu1 %v3059_v15, %s2848_s21  ;;  %v525_v21 = vpop.f32.mrb[5].mxu0  ;;  %2560 = vmatprep.subr.msk.bf16.mxu0 %vm721_vm0, %v3059_v15  ;;  %v738_v22 = vsel %vm721_vm0, %v3059_v15, 0 }
 0x22f   : > { %v2406_v23 = vpop.f32.mrb[6].mxu0  ;;  %2410 = vmatpush3.bf16.xpose.msra.mxu0 %v738_v22  ;;  %2425 = vmatprep.subr.bf16.mxu1 %v3061_v19 }
 0x230   : > { %v3070_v26 = vpack.c.bf16 %v2406_v23, %v2405_v20  ;;  %v528_v27 = vpop.f32.mrb[7].mxu0  ;;  %2426 = vmatpush3.bf16.msra.mxu1 %v3061_v19 }
 0x231   : > { %v3073_v28 = vpack.c.bf16 %v528_v27, %v525_v21  ;;  %v690_v29 = vpop.f32.mrb[8].mxu1 }
 0x232   : > { %v692_v30 = vpop.f32.mrb[9].mxu1 }
 0x233   : > { %v694_v31 = vpop.f32.mrb[10].mxu1  ;;  %997 = vrot.lane.b32.xlu0 %v3073_v28, %s2848_s21 }
 0x234   : > { %v3077_v34 = vpack.c.bf16 %v694_v31, %v690_v29  ;;  %v696_v35 = vpop.f32.mrb[11].mxu1 }
 0x235   : > { %v3079_v36 = vpack.c.bf16 %v696_v35, %v692_v30 }
 0x236   : > { %1009 = vrot.lane.b32.xlu1 %v3077_v34, %s2848_s21  ;;  %2561 = vmatprep.subr.msk.bf16.mxu0 %vm721_vm0, %v3077_v34  ;;  %v741_v37 = vsel %vm721_vm0, %v3077_v34, 0 }
 0x237   : > { %2412 = vmatpush3.bf16.xpose.msra.mxu0 %v741_v37  ;;  %2427 = vmatprep.subr.bf16.mxu1 %v3079_v36 }
 0x238   : > { %2428 = vmatpush3.bf16.msra.mxu1 %v3079_v36 }
 0x239   : > { %v700_v38 = vpop.f32.mrb[12].mxu1 }
 0x23a   : > { %v702_v16 = vpop.f32.mrb[13].mxu1 }
 0x23b   : > { %v704_v39 = vpop.f32.mrb[14].mxu1 }
 0x23c   : > { %v3089_v42 = vpack.c.bf16 %v704_v39, %v700_v38  ;;  %v706_v43 = vpop.f32.mrb[15].mxu1 }
 0x23d   : > { %v3091_v44 = vpack.c.bf16 %v706_v43, %v702_v16 }
 0x23e   : > { %1011 = vrot.lane.b32.xlu1 %v3089_v42, %s2848_s21  ;;  %2562 = vmatprep.subr.msk.bf16.mxu0 %vm721_vm0, %v3089_v42  ;;  %v744_v45 = vsel %vm721_vm0, %v3089_v42, 0 }
 0x23f   : > { %2414 = vmatpush3.bf16.xpose.msra.mxu0 %v744_v45  ;;  %2429 = vmatprep.subr.bf16.mxu1 %v3091_v44 }
 0x240   : > { %2430 = vmatpush3.bf16.msra.mxu1 %v3091_v44 }
 0x242   : > { %995 = vrot.lane.b32.xlu1 %v3050_v9, %s2848_s21 }
 0x246   : > { %2416 = vmatmul.mubr.msk.bf16.vlgmr.msra.gmra.mrb[8].mxu0 %vm721_vm0, %v3050_v9  ;;  %999 = vrot.lane.b32.xlu1 %v3070_v26, %s2848_s21 }
 0x247   : > { %2419 = vmatprep.mubr.msk.bf16.mxu0 %vm721_vm0, %v3073_v28 }
 0x24e   : > { %2420 = vmatmul.mubr.msk.bf16.gmra.mrb[12].mxu0 %vm721_vm0, %v3070_v26 }
 0x298   : > { %v1006_v46 = vpop.permute.xlu0 %1005 }
 0x299   : > { %2563 = vmatprep.subr.msk.bf16.mxu0 %vm721_vm0, %v1006_v46  ;;  %v1026_v47 = vsel %vm721_vm0, %v1006_v46, 0 }
 0x29a   : > { %2440 = vmatpush3.bf16.xpose.msra.mxu0 %v1026_v47 }
 0x29d   : > { %v994_v48 = vpop.permute.xlu0 %993 }
 0x29e   : > { %2447 = vmatprep.mubr.msk.bf16.mxu0 %vm721_vm0, %v994_v48 }
 0x2a0   : > { %v1008_v49 = vpop.permute.xlu1 %1007 }
 0x2a1   : > { %2564 = vmatprep.subr.msk.bf16.mxu0 %vm721_vm0, %v1008_v49  ;;  %v1029_v24 = vsel %vm721_vm0, %v1008_v49, 0 }
 0x2a2   : > { %2442 = vmatpush3.bf16.xpose.msra.mxu0 %v1029_v24 }
 0x2a5   : > { %v998_v54 = vpop.permute.xlu0 %997 }
 0x2a8   : > { %v1010_v50 = vpop.permute.xlu1 %1009 }
 0x2a9   : > { %2565 = vmatprep.subr.msk.bf16.mxu0 %vm721_vm0, %v1010_v50  ;;  %v1032_v51 = vsel %vm721_vm0, %v1010_v50, 0 }
 0x2aa   : > { %2444 = vmatpush3.bf16.xpose.msra.mxu0 %v1032_v51 }
 0x2b0   : > { %v1012_v52 = vpop.permute.xlu1 %1011 }
 0x2b1   : > { %2566 = vmatprep.subr.msk.bf16.mxu0 %vm721_vm0, %v1012_v52  ;;  %v1035_v53 = vsel %vm721_vm0, %v1012_v52, 0 }
 0x2b2   : > { %2446 = vmatpush3.bf16.xpose.msra.mxu0 %v1035_v53 }
 0x2b4   : > { %v996_v17 = vpop.permute.xlu1 %995 }
 0x2b8   : > { %v1000_v55 = vpop.permute.xlu1 %999 }
 0x2b9   : > { %2448 = vmatmul.mubr.msk.bf16.vlgmr.msra.gmra.mrb[16].mxu0 %vm721_vm0, %v996_v17 }
 0x2ba   : > { %2451 = vmatprep.mubr.msk.bf16.mxu0 %vm721_vm0, %v998_v54 }
 0x2c1   : > { %2452 = vmatmul.mubr.msk.bf16.gmra.mrb[20].mxu0 %vm721_vm0, %v1000_v55 }
 0x319   : > { %v2417_v56 = vpop.f32.mrb[8].mxu0 }
 0x31a   : > { %v3123_v57 = vmul.f32 0.17677669, %v2417_v56  ;;  %v780_v25 = vpop.f32.mrb[9].mxu0 }
 0x31b   : > { %v2418_v32 = vpop.f32.mrb[10].mxu0  ;;  %v3125_v58 = vmul.f32 0.17677669, %v780_v25 }
 0x31c   : > { %v783_v59 = vpop.f32.mrb[11].mxu0  ;;  %v826_v60 = vsel %vm819_vm1, %v3123_v57, -inf  ;;  %v3133_v63 = vmul.f32 0.17677669, %v2418_v32 }
 0x31d   : > { %v3129_v61 = vmul.f32 0.17677669, %v783_v59  ;;  %827 = vmax.xlane.f32.xlu0 %v826_v60  ;;  %v820_v33 = vsel %vm819_vm1, %v3125_v58, -inf }
 0x31e   : > { %v829_v7 = vsel %vm819_vm1, %v3133_v63, -inf }
 0x31f   : > { %v823_v62 = vsel %vm819_vm1, %v3129_v61, -inf }
 0x320   : > { %824 = vmax.xlane.f32.xlu1 %v823_v62 }
 0x321   : > { %821 = vmax.xlane.f32.xlu0 %v820_v33  ;;  %v2421_v1 = vpop.f32.mrb[12].mxu0 }
 0x322   : > { %v796_v40 = vpop.f32.mrb[13].mxu0  ;;  %v817_v3 = vmul.f32 0.17677669, %v2421_v1 }
 0x323   : > { %v2422_v2 = vpop.f32.mrb[14].mxu0  ;;  %v815_v10 = vmul.f32 0.17677669, %v796_v40 }
 0x324   : > { %v3137_v4 = vmul.f32 0.17677669, %v2422_v2  ;;  %v799_v6 = vpop.f32.mrb[15].mxu0  ;;  %v838_v12 = vsel %vm819_vm1, %v817_v3, -inf }
 0x325   : > { %830 = vmax.xlane.f32.xlu0 %v829_v7  ;;  %v3141_v0 = vmul.f32 0.17677669, %v799_v6  ;;  %v832_v14 = vsel %vm819_vm1, %v815_v10, -inf }
 0x326   : > { %v841_v8 = vsel %vm819_vm1, %v3137_v4, -inf }
 0x327   : > { %842 = vmax.xlane.f32.xlu1 %v841_v8  ;;  %v835_v13 = vsel %vm819_vm1, %v3141_v0, -inf }
 0x329   : > { %839 = vmax.xlane.f32.xlu0 %v838_v12 }
 0x32b   : > { %836 = vmax.xlane.f32.xlu1 %v835_v13 }
 0x32d   : > { %833 = vmax.xlane.f32.xlu0 %v832_v14 }
 0x38c   : > { %v2449_v18 = vpop.f32.mrb[16].mxu0 }
 0x38d   : > { %v3149_v20 = vmul.f32 0.17677669, %v2449_v18  ;;  %v1071_v21 = vpop.f32.mrb[17].mxu0 }
 0x38e   : > { %v2450_v22 = vpop.f32.mrb[18].mxu0  ;;  %v3151_v23 = vmul.f32 0.17677669, %v1071_v21 }
 0x38f   : > { %v3153_v27 = vmul.f32 0.17677669, %v2450_v22  ;;  %v1074_v29 = vpop.f32.mrb[19].mxu0  ;;  %v1116_v30 = vsel %vm819_vm1, %v3149_v20, -inf }
 0x390   : > { %1117 = vmax.xlane.f32.xlu0 %v1116_v30  ;;  %v3157_v31 = vmul.f32 0.17677669, %v1074_v29  ;;  %v1110_v37 = vsel %vm819_vm1, %v3151_v23, -inf }
 0x391   : > { %v1119_v35 = vsel %vm819_vm1, %v3153_v27, -inf }
 0x392   : > { %1120 = vmax.xlane.f32.xlu1 %v1119_v35  ;;  %v1113_v43 = vsel %vm819_vm1, %v3157_v31, -inf }
 0x394   : > { %1111 = vmax.xlane.f32.xlu0 %v1110_v37  ;;  %v2453_v38 = vpop.f32.mrb[20].mxu0 }
 0x395   : > { %v3163_v16 = vmul.f32 0.17677669, %v2453_v38  ;;  %v1087_v39 = vpop.f32.mrb[21].mxu0 }
 0x396   : > { %1114 = vmax.xlane.f32.xlu1 %v1113_v43  ;;  %v2454_v45 = vpop.f32.mrb[22].mxu0  ;;  %v3167_v46 = vmul.f32 0.17677669, %v1087_v39 }
 0x397   : > { %v1090_v47 = vpop.f32.mrb[23].mxu0  ;;  %v1128_v48 = vsel %vm819_vm1, %v3163_v16, -inf  ;;  %v3181_v60 = vmul.f32 0.17677669, %v2454_v45 }
 0x398   : > { %1129 = vmax.xlane.f32.xlu0 %v1128_v48  ;;  %v1122_v49 = vsel %vm819_vm1, %v3167_v46, -inf  ;;  %v3185_v1 = vmul.f32 0.17677669, %v1090_v47 }
 0x39a   : > { %v1125_v2 = vsel %vm819_vm1, %v3185_v1, -inf }
 0x39c   : > { %1123 = vmax.xlane.f32.xlu0 %v1122_v49 }
 0x3a7   : > { %1208 = vrot.lane.b32.xlu1 %v3061_v19, %s2848_s21 }
 0x3aa   : > { %v828_v24 = vpop.xlane.xlu0 %827 }
 0x3ab   : > { %1210 = vrot.lane.b32.xlu1 %v3079_v36, %s2848_s21  ;;  %v846_v52 = vsub.f32 %v3123_v57, %v828_v24  ;;  %v1131_v57 = vsel %vm819_vm1, %v3181_v60, -inf }
 0x3ad   : > { %v856_v17 = vmul.f32 1.442695, %v846_v52  ;;  %v825_v12 = vpop.xlane.xlu1 %824 }
 0x3ae   : > { %v822_v50 = vpop.xlane.xlu0 %821  ;;  %v845_v18 = vsub.f32 %v3129_v61, %v825_v12 }
 0x3af   : > { %v844_v54 = vsub.f32 %v3125_v58, %v822_v50  ;;  %2703 = vpow2.f32 %v856_v17 }
 0x3b0   : > { %v854_v22 = vmul.f32 1.442695, %v845_v18 }
 0x3b1   : > { %v852_v55 = vmul.f32 1.442695, %v844_v54 }
 0x3b2   : > { %1206 = vrot.lane.b32.xlu0 %v3041_v5, %s2848_s21  ;;  %v831_v51 = vpop.xlane.xlu0 %830 }
 0x3b3   : > { %2705 = vpow2.f32 %v852_v55  ;;  %v847_v13 = vsub.f32 %v3133_v63, %v831_v51 }
 0x3b4   : > { %v843_v14 = vpop.xlane.xlu1 %842 }
 0x3b5   : > { %v858_v21 = vmul.f32 1.442695, %v847_v13  ;;  %v851_v29 = vsub.f32 %v3137_v4, %v843_v14 }
 0x3b6   : > { %v840_v53 = vpop.xlane.xlu0 %839 }
 0x3b7   : > { %v850_v56 = vsub.f32 %v817_v3, %v840_v53  ;;  %v866_v35 = vmul.f32 1.442695, %v851_v29 }
 0x3b8   : > { %v837_v30 = vpop.xlane.xlu1 %836 }
 0x3b9   : > { %v864_v32 = vmul.f32 1.442695, %v850_v56  ;;  %v3183_v33 = vpop.eup %2703  ;;  %v849_v37 = vsub.f32 %v3141_v0, %v837_v30 }
 0x3ba   : > { %v834_v25 = vpop.xlane.xlu0 %833  ;;  %v874_v58 = vsel %vm819_vm1, %v3183_v33, 0.0 }
 0x3bb   : > { %v848_v59 = vsub.f32 %v815_v10, %v834_v25  ;;  %2707 = vpow2.f32 %v864_v32  ;;  %v862_v38 = vmul.f32 1.442695, %v849_v37 }
 0x3bd   : > { %v860_v62 = vmul.f32 1.442695, %v848_v59  ;;  %v3191_v40 = vpop.eup %2705 }
 0x3be   : > { %v868_v3 = vsel %vm819_vm1, %v3191_v40, 0.0 }
 0x3bf   : > { %2709 = vpow2.f32 %v860_v62 }
 0x3c0   : > { %2711 = vpow2.f32 %v858_v21 }
 0x3c1   : > { %2713 = vpow2.f32 %v854_v22 }
 0x3c2   : > { %2715 = vpow2.f32 %v866_v35 }
 0x3c3   : > { %2717 = vpow2.f32 %v862_v38 }
 0x3c5   : > { %v3197_v6 = vpop.eup %2707 }
 0x3c6   : > { %v886_v7 = vsel %vm819_vm1, %v3197_v6, 0.0 }
 0x3c9   : > { %v3201_v8 = vpop.eup %2709 }
 0x3ca   : > { %v880_v10 = vsel %vm819_vm1, %v3201_v8, 0.0  ;;  %v3211_v39 = vpop.eup %2711 }
 0x3cb   : > { %v877_v63 = vsel %vm819_vm1, %v3211_v39, 0.0  ;;  %v3215_v43 = vpop.eup %2713 }
 0x3cc   : > { %v871_v61 = vsel %vm819_vm1, %v3215_v43, 0.0  ;;  %v3219_v4 = vpop.eup %2715 }
 0x3cd   : > { %v889_v0 = vsel %vm819_vm1, %v3219_v4, 0.0  ;;  %v3223_v45 = vpop.eup %2717 }
 0x3ce   : > { %v883_v47 = vsel %vm819_vm1, %v3223_v45, 0.0 }
 0x3cf   : > { %1132 = vmax.xlane.f32.xlu1 %v1131_v57 }
 0x3d1   : > { %875 = vadd.xlane.f32.xlu0 %v874_v58 }
 0x3d3   : > { %1126 = vmax.xlane.f32.xlu1 %v1125_v2 }
 0x3d5   : > { %869 = vadd.xlane.f32.xlu0 %v868_v3 }
 0x3d9   : > { %887 = vadd.xlane.f32.xlu0 %v886_v7 }
 0x3dd   : > { %881 = vadd.xlane.f32.xlu0 %v880_v10 }
 0x3e4   : > { %1212 = vrot.lane.b32.xlu1 %v3091_v44, %s2848_s21 }
 0x408   : > { %878 = vadd.xlane.f32.xlu1 %v877_v63 }
 0x40c   : > { %872 = vadd.xlane.f32.xlu1 %v871_v61 }
 0x410   : > { %890 = vadd.xlane.f32.xlu1 %v889_v0 }
 0x414   : > { %884 = vadd.xlane.f32.xlu1 %v883_v47 }
 0x41d   : > { %v1118_v48 = vpop.xlane.xlu0 %1117 }
 0x41e   : > { %v1136_v49 = vsub.f32 %v3149_v20, %v1118_v48 }
 0x41f   : > { %v1121_v24 = vpop.xlane.xlu1 %1120 }
 0x420   : > { %v1146_v50 = vmul.f32 1.442695, %v1136_v49  ;;  %v1137_v51 = vsub.f32 %v3153_v27, %v1121_v24 }
 0x421   : > { %v1112_v52 = vpop.xlane.xlu0 %1111 }
 0x422   : > { %2719 = vpow2.f32 %v1146_v50  ;;  %v1148_v53 = vmul.f32 1.442695, %v1137_v51  ;;  %v1134_v17 = vsub.f32 %v3151_v23, %v1112_v52 }
 0x423   : > { %v1115_v54 = vpop.xlane.xlu1 %1114 }
 0x424   : > { %2721 = vpow2.f32 %v1148_v53  ;;  %v1142_v55 = vmul.f32 1.442695, %v1134_v17  ;;  %v1135_v56 = vsub.f32 %v3157_v31, %v1115_v54 }
 0x425   : > { %v1130_v25 = vpop.xlane.xlu0 %1129 }
 0x426   : > { %2723 = vpow2.f32 %v1142_v55  ;;  %v1144_v32 = vmul.f32 1.442695, %v1135_v56  ;;  %v1140_v59 = vsub.f32 %v3163_v16, %v1130_v25 }
 0x427   : > { %v1209_v21 = vpop.permute.xlu1 %1208 }
 0x428   : > { %2725 = vpow2.f32 %v1144_v32  ;;  %v1154_v20 = vmul.f32 1.442695, %v1140_v59 }
 0x429   : > { %v1124_v62 = vpop.xlane.xlu0 %1123 }
 0x42a   : > { %2727 = vpow2.f32 %v1154_v20  ;;  %v1138_v27 = vsub.f32 %v3167_v46, %v1124_v62 }
 0x42b   : > { %v3264_v22 = vpop.permute.xlu1 %1210 }
 0x42c   : > { %v3233_v57 = vpop.eup %2719  ;;  %v1150_v58 = vmul.f32 1.442695, %v1138_v27 }
 0x42d   : > { %v3235_v23 = vpop.permute.xlu0 %1206  ;;  %v1164_v2 = vsel %vm819_vm1, %v3233_v57, 0.0 }
 0x42e   : > { %v3239_v31 = vpop.eup %2721  ;;  %2729 = vpow2.f32 %v1150_v58  ;;  %1165 = vadd.xlane.f32.xlu0 %v1164_v2  ;;  %2455 = vmatprep.subr.bf16.mxu1 %v3235_v23 }
 0x42f   : > { %v1167_v16 = vsel %vm819_vm1, %v3239_v31, 0.0 }
 0x430   : > { %v3244_v3 = vpop.eup %2723  ;;  %1168 = vadd.xlane.f32.xlu1 %v1167_v16 }
 0x431   : > { %v1158_v46 = vsel %vm819_vm1, %v3244_v3, 0.0 }
 0x432   : > { %v3248_v7 = vpop.eup %2725  ;;  %1159 = vadd.xlane.f32.xlu0 %v1158_v46 }
 0x433   : > { %v1161_v10 = vsel %vm819_vm1, %v3248_v7, 0.0 }
 0x434   : > { %v3252_v12 = vpop.eup %2727  ;;  %1162 = vadd.xlane.f32.xlu1 %v1161_v10 }
 0x435   : > { %v1176_v13 = vsel %vm819_vm1, %v3252_v12, 0.0 }
 0x436   : > { %1177 = vadd.xlane.f32.xlu0 %v1176_v13 }
 0x438   : > { %v3256_v14 = vpop.eup %2729 }
 0x439   : > { %v1170_v18 = vsel %vm819_vm1, %v3256_v14, 0.0 }
 0x43a   : > { %1171 = vadd.xlane.f32.xlu0 %v1170_v18 }
 0x445   : > { %1305 = vrot.lane.b32.xlu1 %v3059_v15, %s2849_s22 }
 0x449   : > { %1307 = vrot.lane.b32.xlu1 %v3077_v34, %s2849_s22 }
 0x45c   : > { %v1133_v29 = vpop.xlane.xlu1 %1132 }
 0x45d   : > { %v1141_v30 = vsub.f32 %v3181_v60, %v1133_v29 }
 0x45e   : > { %v876_v60 = vpop.xlane.xlu0 %875 }
 0x45f   : > { %v1156_v35 = vmul.f32 1.442695, %v1141_v30 }
 0x460   : > { %v1127_v37 = vpop.xlane.xlu1 %1126 }
 0x461   : > { %2731 = vpow2.f32 %v1156_v35  ;;  %v1139_v38 = vsub.f32 %v3185_v1, %v1127_v37 }
 0x462   : > { %v870_v1 = vpop.xlane.xlu0 %869 }
 0x463   : > { %v1152_v63 = vmul.f32 1.442695, %v1139_v38 }
 0x464   : > { %v1213_v49 = vpop.permute.xlu1 %1212 }
 0x465   : > { %2733 = vpow2.f32 %v1152_v63 }
 0x466   : > { %v888_v50 = vpop.xlane.xlu0 %887 }
 0x46a   : > { %v882_v52 = vpop.xlane.xlu0 %881 }
 0x46b   : > { %v3268_v61 = vpop.eup %2731 }
 0x46c   : > { %v1179_v0 = vsel %vm819_vm1, %v3268_v61, 0.0 }
 0x46d   : > { %1180 = vadd.xlane.f32.xlu0 %v1179_v0 }
 0x46f   : > { %v3272_v47 = vpop.eup %2733 }
 0x470   : > { %v1173_v48 = vsel %vm819_vm1, %v3272_v47, 0.0 }
 0x471   : > { %1174 = vadd.xlane.f32.xlu1 %v1173_v48 }
 0x482   : > { %1309 = vrot.lane.b32.xlu1 %v3089_v42, %s2849_s22 }
 0x483   : > { %1303 = vrot.lane.b32.xlu0 %v3039_v41, %s2849_s22 }
 0x486   : > { %1297 = vrot.lane.b32.xlu1 %v3050_v9, %s2849_s22 }
 0x487   : > { %1295 = vrot.lane.b32.xlu0 %v3053_v11, %s2849_s22 }
 0x48a   : > { %1301 = vrot.lane.b32.xlu1 %v3070_v26, %s2849_s22 }
 0x48b   : > { %1299 = vrot.lane.b32.xlu0 %v3073_v28, %s2849_s22 }
 0x495   : > { %v879_v24 = vpop.xlane.xlu1 %878 }
 0x496   : > { %2735 = vrcp.f32 %v879_v24 }
 0x497   : > { %2737 = vrcp.f32 %v870_v1 }
 0x498   : > { %2739 = vrcp.f32 %v876_v60 }
 0x499   : > { %v873_v51 = vpop.xlane.xlu1 %872 }
 0x49a   : > { %2741 = vrcp.f32 %v873_v51 }
 0x49d   : > { %v891_v53 = vpop.xlane.xlu1 %890 }
 0x49e   : > { %2743 = vrcp.f32 %v891_v53 }
 0x49f   : > { %2745 = vrcp.f32 %v882_v52 }
 0x4a0   : > { %v2736_v17 = vpop.eup %2735  ;;  %2747 = vrcp.f32 %v888_v50 }
 0x4a1   : > { %v885_v54 = vpop.xlane.xlu1 %884  ;;  %v2738_v55 = vpop.eup %2737  ;;  %v903_v32 = vmul.f32 %v2736_v17, %v3211_v39 }
 0x4a2   : > { %2749 = vrcp.f32 %v885_v54  ;;  %v2740_v56 = vpop.eup %2739  ;;  %v900_v59 = vmul.f32 %v2738_v55, %v3191_v40 }
 0x4a3   : > { %v902_v62 = vmul.f32 %v2740_v56, %v3183_v33 }
 0x4a4   : > { %v2742_v25 = vpop.eup %2741 }
 0x4a5   : > { %v901_v20 = vmul.f32 %v2742_v25, %v3215_v43  ;;  %v909_v58 = vpack.c.bf16 %v903_v32, %v902_v62 }
 0x4a7   : > { %v908_v27 = vpack.c.bf16 %v901_v20, %v900_v59 }
 0x4a8   : > { %v2744_v2 = vpop.eup %2743 }
 0x4a9   : > { %2431 = vmatprep.mubr.msk.bf16.mxu1 %vm819_vm1, %v908_v27  ;;  %v2746_v16 = vpop.eup %2745  ;;  %v907_v39 = vmul.f32 %v2744_v2, %v3219_v4 }
 0x4aa   : > { %2432 = vmatmul.mubr.msk.bf16.vlgmr.msra.gmra.mrb[16].mxu1 %vm819_vm1, %v909_v58  ;;  %v2748_v46 = vpop.eup %2747  ;;  %v904_v40 = vmul.f32 %v2746_v16, %v3201_v8 }
 0x4ab   : > { %2456 = vmatpush3.bf16.msra.mxu1 %v3235_v23  ;;  %v906_v33 = vmul.f32 %v2748_v46, %v3197_v6 }
 0x4ac   : > { %v2750_v10 = vpop.eup %2749  ;;  %2457 = vmatprep.subr.bf16.mxu1 %v1209_v21 }
 0x4ad   : > { %v905_v43 = vmul.f32 %v2750_v10, %v3223_v45  ;;  %v911_v18 = vpack.c.bf16 %v907_v39, %v906_v33 }
 0x4af   : > { %2458 = vmatpush3.bf16.msra.mxu1 %v1209_v21  ;;  %v910_v13 = vpack.c.bf16 %v905_v43, %v904_v40 }
 0x4b0   : > { %2459 = vmatprep.subr.bf16.mxu1 %v3264_v22 }
 0x4b1   : > { %2435 = vmatprep.mubr.msk.bf16.mxu1 %vm819_vm1, %v910_v13 }
 0x4b2   : > { %2436 = vmatmul.mubr.msk.bf16.gmra.mrb[20].mxu1 %vm819_vm1, %v911_v18 }
 0x4b3   : > { %2460 = vmatpush3.bf16.msra.mxu1 %v3264_v22 }
 0x4b4   : > { %2461 = vmatprep.subr.bf16.mxu1 %v1213_v49 }
 0x4b7   : > { %2462 = vmatpush3.bf16.msra.mxu1 %v1213_v49 }
 0x4bb   : > { %v1166_v4 = vpop.xlane.xlu0 %1165 }
 0x4bd   : > { %v1169_v23 = vpop.xlane.xlu1 %1168 }
 0x4be   : > { %2751 = vrcp.f32 %v1169_v23 }
 0x4bf   : > { %v1160_v8 = vpop.xlane.xlu0 %1159 }
 0x4c0   : > { %2753 = vrcp.f32 %v1160_v8 }
 0x4c1   : > { %2755 = vrcp.f32 %v1166_v4  ;;  %v1163_v6 = vpop.xlane.xlu1 %1162 }
 0x4c2   : > { %2757 = vrcp.f32 %v1163_v6 }
 0x4c3   : > { %v1178_v48 = vpop.xlane.xlu0 %1177 }
 0x4c5   : > { %v1306_v60 = vpop.permute.xlu1 %1305 }
 0x4c6   : > { %v1327_v51 = vsel %vm721_vm0, %v1306_v60, 0 }
 0x4c7   : > { %v1172_v1 = vpop.xlane.xlu0 %1171 }
 0x4c8   : > { %v2752_v45 = vpop.eup %2751 }
 0x4c9   : > { %v1193_v35 = vmul.f32 %v2752_v45, %v3239_v31  ;;  %v1308_v49 = vpop.permute.xlu1 %1307 }
 0x4ca   : > { %v2754_v21 = vpop.eup %2753  ;;  %v1330_v59 = vsel %vm721_vm0, %v1308_v49, 0 }
 0x4cb   : > { %v2756_v29 = vpop.eup %2755  ;;  %v1190_v37 = vmul.f32 %v2754_v21, %v3244_v3 }
 0x4cc   : > { %v2758_v30 = vpop.eup %2757  ;;  %v1192_v38 = vmul.f32 %v2756_v29, %v3233_v57 }
 0x4cd   : > { %v1191_v22 = vmul.f32 %v2758_v30, %v3248_v7 }
 0x4ce   : > { %v1199_v0 = vpack.c.bf16 %v1193_v35, %v1192_v38 }
 0x4cf   : > { %v1198_v63 = vpack.c.bf16 %v1191_v22, %v1190_v37 }
 0x4d1   : > { %2463 = vmatprep.mubr.msk.bf16.mxu1 %vm819_vm1, %v1198_v63 }
 0x4d2   : > { %2464 = vmatmul.mubr.msk.bf16.vlgmr.msra.gmra.mrb[24].mxu1 %vm819_vm1, %v1199_v0 }
 0x4fa   : > { %v1181_v24 = vpop.xlane.xlu0 %1180 }
 0x4fb   : > { %2759 = vrcp.f32 %v1181_v24 }
 0x4fc   : > { %2761 = vrcp.f32 %v1172_v1 }
 0x4fd   : > { %2763 = vrcp.f32 %v1178_v48 }
 0x4fe   : > { %v1175_v31 = vpop.xlane.xlu1 %1174  ;;  %v1304_v3 = vpop.permute.xlu0 %1303 }
 0x4ff   : > { %2765 = vrcp.f32 %v1175_v31  ;;  %v1324_v7 = vsel %vm721_vm0, %v1304_v3, 0  ;;  %2567 = vmatprep.subr.msk.bf16.mxu1 %vm721_vm0, %v1304_v3 }
 0x500   : > { %2472 = vmatpush3.bf16.xpose.msra.mxu1 %v1324_v7 }
 0x501   : > { %2568 = vmatprep.subr.msk.bf16.mxu1 %vm721_vm0, %v1306_v60 }
 0x502   : > { %v1296_v20 = vpop.permute.xlu0 %1295  ;;  %v1310_v62 = vpop.permute.xlu1 %1309 }
 0x505   : > { %v2760_v57 = vpop.eup %2759 }
 0x506   : > { %v2762_v50 = vpop.eup %2761  ;;  %v1197_v17 = vmul.f32 %v2760_v57, %v3268_v61  ;;  %v1298_v61 = vpop.permute.xlu1 %1297 }
 0x507   : > { %v2764_v52 = vpop.eup %2763  ;;  %v1194_v54 = vmul.f32 %v2762_v50, %v3256_v14  ;;  %v1333_v14 = vsel %vm721_vm0, %v1310_v62, 0 }
 0x508   : > { %2474 = vmatpush3.bf16.xpose.msra.mxu1 %v1327_v51  ;;  %v1196_v56 = vmul.f32 %v2764_v52, %v3252_v12  ;;  %v1300_v12 = vpop.permute.xlu0 %1299 }
 0x509   : > { %v2766_v53 = vpop.eup %2765  ;;  %2569 = vmatprep.subr.msk.bf16.mxu1 %vm721_vm0, %v1308_v49 }
 0x50a   : > { %v1195_v55 = vmul.f32 %v2766_v53, %v3272_v47  ;;  %v1201_v32 = vpack.c.bf16 %v1197_v17, %v1196_v56  ;;  %v1302_v47 = vpop.permute.xlu1 %1301 }
 0x50c   : > { %v1200_v25 = vpack.c.bf16 %v1195_v55, %v1194_v54 }
 0x50e   : > { %2467 = vmatprep.mubr.msk.bf16.mxu1 %vm819_vm1, %v1200_v25 }
 0x50f   : > { %2468 = vmatmul.mubr.msk.bf16.gmra.mrb[28].mxu1 %vm819_vm1, %v1201_v32 }
 0x510   : > { %2476 = vmatpush3.bf16.xpose.msra.mxu1 %v1330_v59  ;;  %2479 = vmatprep.mubr.msk.bf16.mxu1 %vm721_vm0, %v1296_v20 }
 0x511   : > { %2570 = vmatprep.subr.msk.bf16.mxu1 %vm721_vm0, %v1310_v62 }
 0x518   : > { %2478 = vmatpush3.bf16.xpose.msra.mxu1 %v1333_v14 }
 0x51f   : > { %2480 = vmatmul.mubr.msk.bf16.vlgmr.msra.gmra.mrb[32].mxu1 %vm721_vm0, %v1298_v61 }
 0x520   : > { %2483 = vmatprep.mubr.msk.bf16.mxu1 %vm721_vm0, %v1300_v12 }
 0x527   : > { %2484 = vmatmul.mubr.msk.bf16.gmra.mrb[36].mxu1 %vm721_vm0, %v1302_v47 }
 0x57d   : > { %v3327_v27 = vpop.f32.mrb[16].mxu1 }
 0x57e   : > { %v3329_v58 = vpop.f32.mrb[17].mxu1 }
 0x57f   : > { %v3331_v2 = vpop.f32.mrb[18].mxu1 }
 0x580   : > { %v3333_v16 = vpop.f32.mrb[19].mxu1 }
 0x585   : > { %v3335_v46 = vpop.f32.mrb[20].mxu1 }
 0x586   : > { %v3337_v10 = vpop.f32.mrb[21].mxu1 }
 0x587   : > { %v3339_v39 = vpop.f32.mrb[22].mxu1 }
 0x588   : > { %v3341_v40 = vpop.f32.mrb[23].mxu1 }
 0x5a5   : > { %v3343_v43 = vpop.f32.mrb[24].mxu1 }
 0x5a6   : > { %v3345_v33 = vpop.f32.mrb[25].mxu1 }
 0x5a7   : > { %v3347_v13 = vpop.f32.mrb[26].mxu1 }
 0x5a8   : > { %v2592_v18 = vpack.i.bf16 %v3347_v13, %v3343_v43  ;;  %v3351_v4 = vpop.f32.mrb[27].mxu1 }
 0x5a9   : > { %v2587_v23 = vpack.i.bf16 %v3351_v4, %v3345_v33 }
 0x5e2   : > { %v3355_v8 = vpop.f32.mrb[28].mxu1 }
 0x5e3   : > { %v3357_v6 = vpop.f32.mrb[29].mxu1 }
 0x5e4   : > { %v3359_v45 = vpop.f32.mrb[30].mxu1 }
 0x5e5   : > { %v2612_v21 = vpack.i.bf16 %v3359_v45, %v3355_v8  ;;  %v3363_v29 = vpop.f32.mrb[31].mxu1 }
 0x5e6   : > { %v2607_v30 = vpack.i.bf16 %v3363_v29, %v3357_v6 }
 0x5f2   : > { %v2481_v35 = vpop.f32.mrb[32].mxu1 }
 0x5f3   : > { %v1402_v37 = vmul.f32 0.17677669, %v2481_v35  ;;  %v1369_v22 = vpop.f32.mrb[33].mxu1 }
 0x5f4   : > { %v2482_v38 = vpop.f32.mrb[34].mxu1  ;;  %v1400_v63 = vmul.f32 0.17677669, %v1369_v22 }
 0x5f5   : > { %v1372_v0 = vpop.f32.mrb[35].mxu1  ;;  %v1414_v48 = vsel %vm819_vm1, %v1402_v37, -inf  ;;  %v1403_v49 = vmul.f32 0.17677669, %v2482_v38 }
 0x5f6   : > { %v1401_v60 = vmul.f32 0.17677669, %v1372_v0  ;;  %1415 = vmax.xlane.f32.xlu0 %v1414_v48  ;;  %v1408_v24 = vsel %vm819_vm1, %v1400_v63, -inf }
 0x5f7   : > { %v1417_v51 = vsel %vm819_vm1, %v1403_v49, -inf }
 0x5f8   : > { %v1411_v1 = vsel %vm819_vm1, %v1401_v60, -inf }
 0x5f9   : > { %1412 = vmax.xlane.f32.xlu1 %v1411_v1 }
 0x5fa   : > { %1409 = vmax.xlane.f32.xlu0 %v1408_v24  ;;  %v2485_v31 = vpop.f32.mrb[36].mxu1 }
 0x5fb   : > { %v1385_v3 = vpop.f32.mrb[37].mxu1  ;;  %v1406_v57 = vmul.f32 0.17677669, %v2485_v31 }
 0x5fc   : > { %v2486_v7 = vpop.f32.mrb[38].mxu1  ;;  %v1404_v52 = vmul.f32 0.17677669, %v1385_v3 }
 0x5fd   : > { %v1388_v50 = vpop.f32.mrb[39].mxu1  ;;  %v1426_v53 = vsel %vm819_vm1, %v1406_v57, -inf  ;;  %v3379_v54 = vmul.f32 0.17677669, %v2486_v7 }
 0x5fe   : > { %1418 = vmax.xlane.f32.xlu0 %v1417_v51  ;;  %v1420_v17 = vsel %vm819_vm1, %v1404_v52, -inf  ;;  %v3381_v55 = vmul.f32 0.17677669, %v1388_v50 }
 0x5ff   : > { %v1429_v56 = vsel %vm819_vm1, %v3379_v54, -inf }
 0x600   : > { %v1423_v25 = vsel %vm819_vm1, %v3381_v55, -inf }
 0x602   : > { %1427 = vmax.xlane.f32.xlu0 %v1426_v53 }
 0x606   : > { %1421 = vmax.xlane.f32.xlu0 %v1420_v17 }
 0x60a   : > { %1502 = vrot.lane.b32.xlu1 %v3061_v19, %s2849_s22 }
 0x60e   : > { %1504 = vrot.lane.b32.xlu1 %v3079_v36, %s2849_s22 }
 0x61c   : > { %1500 = vrot.lane.b32.xlu0 %v3041_v5, %s2849_s22 }
 0x632   : > { %1430 = vmax.xlane.f32.xlu1 %v1429_v56 }
 0x636   : > { %1424 = vmax.xlane.f32.xlu1 %v1423_v25 }
 0x647   : > { %1506 = vrot.lane.b32.xlu1 %v3091_v44, %s2849_s22 }
 0x683   : > { %v1416_v32 = vpop.xlane.xlu0 %1415 }
 0x684   : > { %v1434_v59 = vsub.f32 %v1402_v37, %v1416_v32 }
 0x686   : > { %v1444_v20 = vmul.f32 1.442695, %v1434_v59  ;;  %v1413_v62 = vpop.xlane.xlu1 %1412 }
 0x687   : > { %v1410_v14 = vpop.xlane.xlu0 %1409  ;;  %v1433_v12 = vsub.f32 %v1401_v60, %v1413_v62 }
 0x688   : > { %2767 = vpow2.f32 %v1444_v20  ;;  %v1432_v61 = vsub.f32 %v1400_v63, %v1410_v14 }
 0x689   : > { %v1442_v38 = vmul.f32 1.442695, %v1433_v12 }
 0x68a   : > { %v1440_v47 = vmul.f32 1.442695, %v1432_v61 }
 0x68b   : > { %v1419_v35 = vpop.xlane.xlu0 %1418 }
 0x68c   : > { %2769 = vpow2.f32 %v1440_v47  ;;  %v1435_v22 = vsub.f32 %v1403_v49, %v1419_v35  ;;  %v1503_v49 = vpop.permute.xlu1 %1502 }
 0x68e   : > { %v1446_v0 = vmul.f32 1.442695, %v1435_v22 }
 0x68f   : > { %v1428_v48 = vpop.xlane.xlu0 %1427 }
 0x690   : > { %2771 = vpow2.f32 %v1446_v0  ;;  %v1438_v1 = vsub.f32 %v1406_v57, %v1428_v48 }
 0x691   : > { %2773 = vpow2.f32 %v1442_v38 }
 0x692   : > { %v3389_v24 = vpop.eup %2767  ;;  %v1452_v31 = vmul.f32 1.442695, %v1438_v1 }
 0x693   : > { %v1422_v37 = vpop.xlane.xlu0 %1421  ;;  %v1462_v3 = vsel %vm819_vm1, %v3389_v24, 0.0 }
 0x694   : > { %2775 = vpow2.f32 %v1452_v31  ;;  %v1436_v63 = vsub.f32 %v1404_v52, %v1422_v37  ;;  %1463 = vadd.xlane.f32.xlu0 %v1462_v3  ;;  %v1505_v52 = vpop.permute.xlu1 %1504 }
 0x696   : > { %v3393_v60 = vpop.eup %2769  ;;  %v1448_v7 = vmul.f32 1.442695, %v1436_v63 }
 0x697   : > { %v1501_v50 = vpop.permute.xlu0 %1500  ;;  %v1456_v51 = vsel %vm819_vm1, %v3393_v60, 0.0 }
 0x698   : > { %2777 = vpow2.f32 %v1448_v7  ;;  %1457 = vadd.xlane.f32.xlu0 %v1456_v51  ;;  %2487 = vmatprep.subr.bf16.mxu0 %v1501_v50 }
 0x699   : > { %2488 = vmatpush3.bf16.msra.mxu0 %v1501_v50 }
 0x69a   : > { %v2772_v57 = vpop.eup %2771  ;;  %2489 = vmatprep.subr.bf16.mxu0 %v1503_v49 }
 0x69b   : > { %v1465_v53 = vsel %vm819_vm1, %v2772_v57, 0.0  ;;  %v2774_v17 = vpop.eup %2773 }
 0x69c   : > { %1466 = vadd.xlane.f32.xlu1 %v1465_v53  ;;  %v1459_v25 = vsel %vm819_vm1, %v2774_v17, 0.0 }
 0x69d   : > { %2490 = vmatpush3.bf16.msra.mxu0 %v1503_v49 }
 0x69e   : > { %v3398_v56 = vpop.eup %2775  ;;  %2491 = vmatprep.subr.bf16.mxu0 %v1505_v52 }
 0x69f   : > { %v1474_v32 = vsel %vm819_vm1, %v3398_v56, 0.0 }
 0x6a0   : > { %1460 = vadd.xlane.f32.xlu1 %v1459_v25  ;;  %1475 = vadd.xlane.f32.xlu0 %v1474_v32 }
 0x6a1   : > { %2492 = vmatpush3.bf16.msra.mxu0 %v1505_v52 }
 0x6a2   : > { %v3403_v59 = vpop.eup %2777 }
 0x6a3   : > { %v1468_v20 = vsel %vm819_vm1, %v3403_v59, 0.0 }
 0x6a4   : > { %1469 = vadd.xlane.f32.xlu0 %v1468_v20 }
 0x6b1   : > { %1599 = vrot.lane.b32.xlu1 %v3059_v15, %s2850_s23 }
 0x6b5   : > { %1601 = vrot.lane.b32.xlu1 %v3077_v34, %s2850_s23 }
 0x6bf   : > { %v1431_v62 = vpop.xlane.xlu1 %1430 }
 0x6c0   : > { %v1439_v14 = vsub.f32 %v3379_v54, %v1431_v62 }
 0x6c2   : > { %v1454_v61 = vmul.f32 1.442695, %v1439_v14 }
 0x6c3   : > { %v1425_v12 = vpop.xlane.xlu1 %1424 }
 0x6c4   : > { %2779 = vpow2.f32 %v1454_v61  ;;  %v1437_v47 = vsub.f32 %v3381_v55, %v1425_v12 }
 0x6c6   : > { %v1450_v35 = vmul.f32 1.442695, %v1437_v47 }
 0x6c7   : > { %v1507_v22 = vpop.permute.xlu1 %1506 }
 0x6c8   : > { %2493 = vmatprep.subr.bf16.mxu0 %v1507_v22  ;;  %2781 = vpow2.f32 %v1450_v35 }
 0x6c9   : > { %2494 = vmatpush3.bf16.msra.mxu0 %v1507_v22 }
 0x6ce   : > { %v2780_v38 = vpop.eup %2779 }
 0x6cf   : > { %v1477_v0 = vsel %vm819_vm1, %v2780_v38, 0.0 }
 0x6d0   : > { %1478 = vadd.xlane.f32.xlu0 %v1477_v0 }
 0x6d2   : > { %v2782_v15 = vpop.eup %2781 }
 0x6d3   : > { %v1471_v34 = vsel %vm819_vm1, %v2782_v15, 0.0 }
 0x6d9   : > { %1472 = vadd.xlane.f32.xlu1 %v1471_v34 }
 0x6e6   : > { %1597 = vrot.lane.b32.xlu0 %v3039_v41, %s2850_s23 }
 0x6ea   : > { %1603 = vrot.lane.b32.xlu1 %v3089_v42, %s2850_s23  ;;  %1589 = vrot.lane.b32.xlu0 %v3053_v11, %s2850_s23 }
 0x6ee   : > { %1591 = vrot.lane.b32.xlu1 %v3050_v9, %s2850_s23  ;;  %1593 = vrot.lane.b32.xlu0 %v3073_v28, %s2850_s23 }
 0x6f2   : > { %1595 = vrot.lane.b32.xlu1 %v3070_v26, %s2850_s23 }
 0x721   : > { %v1464_v54 = vpop.xlane.xlu0 %1463 }
 0x725   : > { %v1458_v55 = vpop.xlane.xlu0 %1457 }
 0x729   : > { %v1467_v48 = vpop.xlane.xlu1 %1466 }
 0x72a   : > { %2783 = vrcp.f32 %v1467_v48 }
 0x72b   : > { %2785 = vrcp.f32 %v1458_v55 }
 0x72c   : > { %2787 = vrcp.f32 %v1464_v54 }
 0x72d   : > { %v1461_v41 = vpop.xlane.xlu1 %1460  ;;  %v1476_v7 = vpop.xlane.xlu0 %1475 }
 0x72e   : > { %2789 = vrcp.f32 %v1461_v41 }
 0x731   : > { %v1470_v49 = vpop.xlane.xlu0 %1469  ;;  %v1600_v50 = vpop.permute.xlu1 %1599 }
 0x734   : > { %v2784_v42 = vpop.eup %2783 }
 0x735   : > { %v2786_v1 = vpop.eup %2785  ;;  %v1491_v37 = vmul.f32 %v2784_v42, %v2772_v57  ;;  %v1602_v52 = vpop.permute.xlu1 %1601 }
 0x736   : > { %v2788_v11 = vpop.eup %2787  ;;  %v1488_v9 = vmul.f32 %v2786_v1, %v3393_v60  ;;  %v1621_v60 = vsel %vm721_vm0, %v1600_v50, 0  ;;  %v1624_v14 = vsel %vm721_vm0, %v1602_v52, 0 }
 0x737   : > { %v1490_v28 = vmul.f32 %v2788_v11, %v3389_v24 }
 0x738   : > { %v2790_v31 = vpop.eup %2789 }
 0x739   : > { %v1489_v3 = vmul.f32 %v2790_v31, %v2774_v17  ;;  %v1497_v26 = vpack.c.bf16 %v1491_v37, %v1490_v28 }
 0x73b   : > { %v1496_v63 = vpack.c.bf16 %v1489_v3, %v1488_v9 }
 0x73d   : > { %2495 = vmatprep.mubr.msk.bf16.mxu0 %vm819_vm1, %v1496_v63 }
 0x73e   : > { %2496 = vmatmul.mubr.msk.bf16.vlgmr.msra.gmra.mrb[24].mxu0 %vm819_vm1, %v1497_v26 }
 0x75d   : > { %v1479_v51 = vpop.xlane.xlu0 %1478 }
 0x75e   : > { %2791 = vrcp.f32 %v1479_v51 }
 0x75f   : > { %2793 = vrcp.f32 %v1470_v49 }
 0x760   : > { %2795 = vrcp.f32 %v1476_v7 }
 0x761   : > { %v1598_v53 = vpop.permute.xlu0 %1597 }
 0x762   : > { %v1618_v25 = vsel %vm721_vm0, %v1598_v53, 0  ;;  %2571 = vmatprep.subr.msk.bf16.mxu0 %vm721_vm0, %v1598_v53 }
 0x763   : > { %2504 = vmatpush3.bf16.xpose.msra.mxu0 %v1618_v25 }
 0x764   : > { %2572 = vmatprep.subr.msk.bf16.mxu0 %vm721_vm0, %v1600_v50 }
 0x765   : > { %v1590_v34 = vpop.permute.xlu0 %1589 }
 0x766   : > { %v1473_v24 = vpop.xlane.xlu1 %1472 }
 0x767   : > { %2797 = vrcp.f32 %v1473_v24 }
 0x768   : > { %v2792_v57 = vpop.eup %2791 }
 0x769   : > { %v2794_v17 = vpop.eup %2793  ;;  %v1495_v62 = vmul.f32 %v2792_v57, %v2780_v38 }
 0x76a   : > { %v2796_v32 = vpop.eup %2795  ;;  %v1492_v61 = vmul.f32 %v2794_v17, %v3403_v59  ;;  %v1604_v47 = vpop.permute.xlu1 %1603 }
 0x76b   : > { %2506 = vmatpush3.bf16.xpose.msra.mxu0 %v1621_v60  ;;  %v1494_v35 = vmul.f32 %v2796_v32, %v3398_v56  ;;  %v1627_v38 = vsel %vm721_vm0, %v1604_v47, 0 }
 0x76c   : > { %2573 = vmatprep.subr.msk.bf16.mxu0 %vm721_vm0, %v1602_v52 }
 0x76d   : > { %v1499_v0 = vpack.c.bf16 %v1495_v62, %v1494_v35 }
 0x76e   : > { %v1592_v59 = vpop.permute.xlu1 %1591 }
 0x771   : > { %v2798_v20 = vpop.eup %2797 }
 0x772   : > { %v1493_v12 = vmul.f32 %v2798_v20, %v2782_v15  ;;  %v1594_v15 = vpop.permute.xlu0 %1593  ;;  %v1596_v56 = vpop.permute.xlu1 %1595 }
 0x773   : > { %2508 = vmatpush3.bf16.xpose.msra.mxu0 %v1624_v14 }
 0x774   : > { %2574 = vmatprep.subr.msk.bf16.mxu0 %vm721_vm0, %v1604_v47  ;;  %v1498_v22 = vpack.c.bf16 %v1493_v12, %v1492_v61 }
 0x776   : > { %2499 = vmatprep.mubr.msk.bf16.mxu0 %vm819_vm1, %v1498_v22 }
 0x777   : > { %2500 = vmatmul.mubr.msk.bf16.gmra.mrb[28].mxu0 %vm819_vm1, %v1499_v0 }
 0x778   : > { %2511 = vmatprep.mubr.msk.bf16.mxu0 %vm721_vm0, %v1590_v34 }
 0x77b   : > { %2510 = vmatpush3.bf16.xpose.msra.mxu0 %v1627_v38 }
 0x782   : > { %2512 = vmatmul.mubr.msk.bf16.vlgmr.msra.gmra.mrb[32].mxu0 %vm721_vm0, %v1592_v59 }
 0x783   : > { %2515 = vmatprep.mubr.msk.bf16.mxu0 %vm721_vm0, %v1594_v15 }
 0x78a   : > { %2516 = vmatmul.mubr.msk.bf16.gmra.mrb[36].mxu0 %vm721_vm0, %v1596_v56 }
 0x811   : > { %v3447_v54 = vpop.f32.mrb[24].mxu0 }
 0x812   : > { %v3449_v55 = vpop.f32.mrb[25].mxu0 }
 0x813   : > { %v3451_v48 = vpop.f32.mrb[26].mxu0 }
 0x814   : > { %v2602_v41 = vpack.i.bf16 %v3451_v48, %v3447_v54  ;;  %v3455_v42 = vpop.f32.mrb[27].mxu0 }
 0x815   : > { %v2597_v1 = vpack.i.bf16 %v3455_v42, %v3449_v55 }
 0x84a   : > { %v3459_v11 = vpop.f32.mrb[28].mxu0 }
 0x84b   : > { %v3461_v31 = vpop.f32.mrb[29].mxu0 }
 0x84c   : > { %v3463_v37 = vpop.f32.mrb[30].mxu0 }
 0x84d   : > { %v2632_v9 = vpack.i.bf16 %v3463_v37, %v3459_v11  ;;  %v3467_v3 = vpop.f32.mrb[31].mxu0 }
 0x84e   : > { %v2627_v28 = vpack.i.bf16 %v3467_v3, %v3461_v31 }
 0x855   : > { %v2513_v63 = vpop.f32.mrb[32].mxu0 }
 0x856   : > { %v1663_v26 = vpop.f32.mrb[33].mxu0  ;;  %v1696_v51 = vmul.f32 0.17677669, %v2513_v63 }
 0x857   : > { %v1694_v7 = vmul.f32 0.17677669, %v1663_v26  ;;  %v2514_v49 = vpop.f32.mrb[34].mxu0 }
 0x858   : > { %v1666_v50 = vpop.f32.mrb[35].mxu0  ;;  %v1697_v24 = vmul.f32 0.17677669, %v2514_v49  ;;  %v1708_v57 = vsel %vm819_vm1, %v1696_v51, -inf }
 0x859   : > { %v1695_v53 = vmul.f32 0.17677669, %v1666_v50  ;;  %v1702_v52 = vsel %vm819_vm1, %v1694_v7, -inf }
 0x85a   : > { %1703 = vmax.xlane.f32.xlu0 %v1702_v52  ;;  %v1711_v61 = vsel %vm819_vm1, %v1697_v24, -inf }
 0x85b   : > { %v1705_v25 = vsel %vm819_vm1, %v1695_v53, -inf }
 0x85c   : > { %1706 = vmax.xlane.f32.xlu1 %v1705_v25 }
 0x85d   : > { %v2517_v60 = vpop.f32.mrb[36].mxu0 }
 0x85e   : > { %1709 = vmax.xlane.f32.xlu0 %v1708_v57  ;;  %v1679_v17 = vpop.f32.mrb[37].mxu0  ;;  %v1700_v35 = vmul.f32 0.17677669, %v2517_v60 }
 0x85f   : > { %v2518_v32 = vpop.f32.mrb[38].mxu0  ;;  %v1698_v62 = vmul.f32 0.17677669, %v1679_v17 }
 0x860   : > { %v1682_v20 = vpop.f32.mrb[39].mxu0  ;;  %v1701_v12 = vmul.f32 0.17677669, %v2518_v32  ;;  %v1720_v34 = vsel %vm819_vm1, %v1700_v35, -inf }
 0x861   : > { %v3474_v14 = vmul.f32 0.17677669, %v1682_v20  ;;  %v1714_v22 = vsel %vm819_vm1, %v1698_v62, -inf }
 0x862   : > { %1712 = vmax.xlane.f32.xlu0 %v1711_v61  ;;  %v1723_v0 = vsel %vm819_vm1, %v1701_v12, -inf }
 0x863   : > { %v1717_v47 = vsel %vm819_vm1, %v3474_v14, -inf }
 0x864   : > { %1718 = vmax.xlane.f32.xlu1 %v1717_v47 }
 0x866   : > { %1715 = vmax.xlane.f32.xlu0 %v1714_v22 }
 0x868   : > { %1724 = vmax.xlane.f32.xlu1 %v1723_v0 }
 0x86a   : > { %1721 = vmax.xlane.f32.xlu0 %v1720_v34 }
 0x8e7   : > { %v1704_v38 = vpop.xlane.xlu0 %1703 }
 0x8e8   : > { %v1726_v59 = vsub.f32 %v1694_v7, %v1704_v38 }
 0x8e9   : > { %v1707_v15 = vpop.xlane.xlu1 %1706 }
 0x8ea   : > { %v1734_v26 = vmul.f32 1.442695, %v1726_v59  ;;  %v1727_v49 = vsub.f32 %v1695_v53, %v1707_v15 }
 0x8eb   : > { %v1710_v56 = vpop.xlane.xlu0 %1709 }
 0x8ec   : > { %v1728_v63 = vsub.f32 %v1696_v51, %v1710_v56  ;;  %v1736_v60 = vmul.f32 1.442695, %v1727_v49 }
 0x8ee   : > { %v1738_v50 = vmul.f32 1.442695, %v1728_v63 }
 0x8ef   : > { %v1713_v52 = vpop.xlane.xlu0 %1712 }
 0x8f0   : > { %2799 = vpow2.f32 %v1738_v50  ;;  %v1729_v25 = vsub.f32 %v1697_v24, %v1713_v52 }
 0x8f1   : > { %2801 = vpow2.f32 %v1734_v26  ;;  %v1719_v63 = vpop.xlane.xlu1 %1718 }
 0x8f2   : > { %v1740_v57 = vmul.f32 1.442695, %v1729_v25 }
 0x8f3   : > { %v1716_v17 = vpop.xlane.xlu0 %1715 }
 0x8f4   : > { %2803 = vpow2.f32 %v1740_v57  ;;  %v1730_v32 = vsub.f32 %v1698_v62, %v1716_v17 }
 0x8f5   : > { %2805 = vpow2.f32 %v1736_v60  ;;  %v1725_v26 = vpop.xlane.xlu1 %1724 }
 0x8f6   : > { %v1742_v7 = vmul.f32 1.442695, %v1730_v32  ;;  %v1733_v49 = vsub.f32 %v1701_v12, %v1725_v26 }
 0x8f7   : > { %v1722_v20 = vpop.xlane.xlu0 %1721 }
 0x8f8   : > { %v1732_v61 = vsub.f32 %v1700_v35, %v1722_v20  ;;  %v1748_v50 = vmul.f32 1.442695, %v1733_v49 }
 0x8fa   : > { %v3482_v47 = vpop.eup %2799  ;;  %v1746_v22 = vmul.f32 1.442695, %v1732_v61 }
 0x8fb   : > { %v1756_v51 = vsel %vm819_vm1, %v3482_v47, 0.0  ;;  %v2802_v53 = vpop.eup %2801 }
 0x8fc   : > { %2807 = vpow2.f32 %v1746_v22  ;;  %1757 = vadd.xlane.f32.xlu0 %v1756_v51  ;;  %v1750_v0 = vsel %vm819_vm1, %v2802_v53, 0.0 }
 0x8fd   : > { %2809 = vpow2.f32 %v1742_v7 }
 0x8fe   : > { %v3486_v24 = vpop.eup %2803  ;;  %2811 = vpow2.f32 %v1748_v50 }
 0x8ff   : > { %v1759_v62 = vsel %vm819_vm1, %v3486_v24, 0.0  ;;  %v2806_v34 = vpop.eup %2805 }
 0x900   : > { %1751 = vadd.xlane.f32.xlu0 %v1750_v0  ;;  %1760 = vadd.xlane.f32.xlu1 %v1759_v62  ;;  %v1753_v35 = vsel %vm819_vm1, %v2806_v34, 0.0  ;;  %v2680_v62 = vld [vmem:[%s3645_s5 + $0x8] sm:$0xff]  }
 0x904   : > { %1754 = vadd.xlane.f32.xlu1 %v1753_v35  ;;  %v2682_v35 = vld [vmem:[%s3645_s5 + $0x18] sm:$0xff]  }
 0x906   : > { %v3492_v38 = vpop.eup %2807 }
 0x907   : > { %v1768_v59 = vsel %vm819_vm1, %v3492_v38, 0.0  ;;  %v3496_v15 = vpop.eup %2809 }
 0x908   : > { %1769 = vadd.xlane.f32.xlu0 %v1768_v59  ;;  %v1762_v56 = vsel %vm819_vm1, %v3496_v15, 0.0  ;;  %v2684_v59 = vld [vmem:[%s3645_s5 + $0x28] sm:$0xff]  }
 0x90c   : > { %1763 = vadd.xlane.f32.xlu0 %v1762_v56  ;;  %v2686_v56 = vld [vmem:[%s3645_s5 + $0x38] sm:$0xff]  }
 0x915   : > { %1796 = vrot.lane.b32.xlu1 %v3061_v19, %s2850_s23  ;;  %v1731_v19 = vsub.f32 %v3474_v14, %v1719_v63 }
 0x919   : > { %1798 = vrot.lane.b32.xlu1 %v3079_v36, %s2850_s23  ;;  %v2812_v36 = vpop.eup %2811 }
 0x91a   : > { %v1771_v33 = vsel %vm819_vm1, %v2812_v36, 0.0 }
 0x922   : > { %1794 = vrot.lane.b32.xlu0 %v3041_v5, %s2850_s23  ;;  %v1744_v5 = vmul.f32 1.442695, %v1731_v19 }
 0x924   : > { %2813 = vpow2.f32 %v1744_v5 }
 0x926   : > { %2588 = vrot.lane.b32.xlu0 %v2587_v23, %s2850_s23 }
 0x92a   : > { %2598 = vrot.lane.b32.xlu0 %v2597_v1, %s2849_s22 }
 0x92e   : > { %2608 = vrot.lane.b32.xlu0 %v2607_v30, %s2850_s23  ;;  %v2814_v4 = vpop.eup %2813 }
 0x92f   : > { %v1765_v23 = vsel %vm819_vm1, %v2814_v4, 0.0 }
 0x93d   : > { %1772 = vadd.xlane.f32.xlu1 %v1771_v33 }
 0x941   : > { %1766 = vadd.xlane.f32.xlu1 %v1765_v23 }
 0x952   : > { %1800 = vrot.lane.b32.xlu1 %v3091_v44, %s2850_s23 }
 0x956   : > { %2593 = vrot.lane.b32.xlu1 %v2592_v18, %s2850_s23 }
 0x95a   : > { %2603 = vrot.lane.b32.xlu1 %v2602_v41, %s2849_s22 }
 0x95e   : > { %2613 = vrot.lane.b32.xlu1 %v2612_v21, %s2850_s23 }
 0x989   : > { %v1758_v6 = vpop.xlane.xlu0 %1757 }
 0x98d   : > { %v1761_v29 = vpop.xlane.xlu1 %1760  ;;  %v1752_v30 = vpop.xlane.xlu0 %1751 }
 0x98e   : > { %2815 = vrcp.f32 %v1752_v30 }
 0x991   : > { %v1755_v44 = vpop.xlane.xlu1 %1754 }
 0x992   : > { %2817 = vrcp.f32 %v1755_v44 }
 0x993   : > { %2819 = vrcp.f32 %v1761_v29 }
 0x994   : > { %2821 = vrcp.f32 %v1758_v6 }
 0x995   : > { %v1770_v55 = vpop.xlane.xlu0 %1769  ;;  %v1797_v18 = vpop.permute.xlu1 %1796 }
 0x998   : > { %v2816_v43 = vpop.eup %2815 }
 0x999   : > { %v1764_v42 = vpop.xlane.xlu0 %1763  ;;  %v1782_v14 = vmul.f32 %v2816_v43, %v2802_v53  ;;  %v1799_v8 = vpop.permute.xlu1 %1798 }
 0x99c   : > { %v2818_v13 = vpop.eup %2817 }
 0x99d   : > { %v1795_v1 = vpop.permute.xlu0 %1794  ;;  %v1783_v54 = vmul.f32 %v2818_v13, %v2806_v34  ;;  %v2820_v21 = vpop.eup %2819  ;;  %v2681_v34 = vld [vmem:[%s3645_s5 + $0x10] sm:$0xff]  }
 0x99e   : > { %2519 = vmatprep.subr.bf16.mxu1 %v1795_v1  ;;  %v2822_v12 = vpop.eup %2821  ;;  %v1785_v52 = vmul.f32 %v2820_v21, %v3486_v24 }
 0x99f   : > { %2520 = vmatpush3.bf16.msra.mxu1 %v1795_v1  ;;  %v1790_v48 = vpack.c.bf16 %v1783_v54, %v1782_v14  ;;  %v1784_v60 = vmul.f32 %v2822_v12, %v3482_v47  ;;  %v2679_v47 = vld [vmem:[%s3645_s5] sm:$0xff]  }
 0x9a0   : > { %2521 = vmatprep.subr.bf16.mxu1 %v1797_v18 }
 0x9a1   : > { %2527 = vmatprep.mubr.msk.bf16.mxu1 %vm819_vm1, %v1790_v48  ;;  %v1791_v57 = vpack.c.bf16 %v1785_v52, %v1784_v60  ;;  %v2589_v44 = vpop.permute.xlu0 %2588 }
 0x9a2   : > { %v2590_v11 = vunpack.i.l.bf16 %v2589_v44  ;;  %v2591_v37 = vunpack.i.h.bf16 %v2589_v44 }
 0x9a3   : > { %2522 = vmatpush3.bf16.msra.mxu1 %v1797_v18 }
 0x9a4   : > { %2523 = vmatprep.subr.bf16.mxu1 %v1799_v8  ;;  %v1979_v1 = vsel %vm721_vm0, %v3329_v58, %v2590_v11  ;;  %v1980_v54 = vsel %vm721_vm0, %v3333_v16, %v2591_v37 }
 0x9a7   : > { %2524 = vmatpush3.bf16.msra.mxu1 %v1799_v8 }
 0x9ca   : > { %v1773_v45 = vpop.xlane.xlu1 %1772 }
 0x9cb   : > { %2823 = vrcp.f32 %v1773_v45 }
 0x9cc   : > { %2825 = vrcp.f32 %v1764_v42  ;;  %v2599_v42 = vpop.permute.xlu0 %2598 }
 0x9cd   : > { %2827 = vrcp.f32 %v1770_v55  ;;  %v2601_v14 = vunpack.i.h.bf16 %v2599_v42 }
 0x9ce   : > { %v1767_v41 = vpop.xlane.xlu1 %1766 }
 0x9cf   : > { %2829 = vrcp.f32 %v1767_v41  ;;  %v1988_v16 = vsel %vm819_vm1, %v1980_v54, %v2601_v14  ;;  %v2834_v54 = vld [vmem:[%s2907_s29 + $0x8] sm:$0xff] }
 0x9d0   : > { %v2609_v13 = vpop.permute.xlu0 %2608 }
 0x9d2   : > { %v1801_v25 = vpop.permute.xlu1 %1800 }
 0x9d3   : > { %2525 = vmatprep.subr.bf16.mxu1 %v1801_v25 }
 0x9d4   : > { %2526 = vmatpush3.bf16.msra.mxu1 %v1801_v25 }
 0x9d5   : > { %v2824_v17 = vpop.eup %2823  ;;  %2535 = vmatprep.subr.bf16.mxu1 %v2679_v47 }
 0x9d6   : > { %v2826_v32 = vpop.eup %2825  ;;  %v1789_v7 = vmul.f32 %v2824_v17, %v2812_v36  ;;  %v2594_v30 = vpop.permute.xlu1 %2593  ;;  %v2611_v17 = vunpack.i.h.bf16 %v2609_v13 }
 0x9d7   : > { %2528 = vmatmul.mubr.msk.bf16.vlgmr.msra.gmra.mrb[40].mxu1 %vm819_vm1, %v1791_v57  ;;  %v2828_v20 = vpop.eup %2827  ;;  %v1786_v22 = vmul.f32 %v2826_v32, %v3496_v15  ;;  %v2685_v15 = vld [vmem:[%s3645_s5 + $0x30] sm:$0xff]   ;;  %v2596_v18 = vunpack.i.h.bf16 %v2594_v30  ;;  %v2595_v31 = vunpack.i.l.bf16 %v2594_v30  ;;  %v2282_v30 = vld [vmem:[%s3646_s6] ss:$0 sm:$0xff] }
 0x9d8   : > { %v1788_v53 = vmul.f32 %v2828_v20, %v3492_v38  ;;  %2536 = vmatpush3.bf16.msra.mxu1 %v2679_v47  ;;  %v2683_v38 = vld [vmem:[%s3645_s5 + $0x20] sm:$0xff]  }
 0x9d9   : > { %v2830_v61 = vpop.eup %2829  ;;  %2537 = vmatprep.subr.bf16.mxu1 %v2680_v62  ;;  %v1982_v45 = vsel %vm721_vm0, %v3331_v2, %v2596_v18  ;;  %v1981_v21 = vsel %vm721_vm0, %v3327_v27, %v2595_v31  ;;  %v2610_v2 = vunpack.i.l.bf16 %v2609_v13  ;;  %v2832_v31 = vld [vmem:[%s2907_s29] sm:$0xff] }
 0x9da   : > { %v1787_v51 = vmul.f32 %v2830_v61, %v2814_v4  ;;  %v1793_v24 = vpack.c.bf16 %v1789_v7, %v1788_v53  ;;  %v2604_v55 = vpop.permute.xlu1 %2603 }
 0x9db   : > { %v2606_v3 = vunpack.i.h.bf16 %v2604_v55 }
 0x9dc   : > { %v1792_v0 = vpack.c.bf16 %v1787_v51, %v1786_v22  ;;  %2538 = vmatpush3.bf16.msra.mxu1 %v2680_v62 }
 0x9dd   : > { %2539 = vmatprep.subr.bf16.mxu1 %v2681_v34  ;;  %v1990_v58 = vsel %vm819_vm1, %v1982_v45, %v2606_v3 }
 0x9de   : > { %2531 = vmatprep.mubr.msk.bf16.mxu1 %vm819_vm1, %v1792_v0  ;;  %v2614_v43 = vpop.permute.xlu1 %2613 }
 0x9df   : > { %2532 = vmatmul.mubr.msk.bf16.gmra.mrb[44].mxu1 %vm819_vm1, %v1793_v24  ;;  %v2616_v51 = vunpack.i.h.bf16 %v2614_v43  ;;  %v2615_v53 = vunpack.i.l.bf16 %v2614_v43 }
 0x9e0   : > { %2540 = vmatpush3.bf16.msra.mxu1 %v2681_v34 }
 0x9e1   : > { %2541 = vmatprep.subr.bf16.mxu1 %v2682_v35 }
 0x9e4   : > { %2542 = vmatpush3.bf16.msra.mxu1 %v2682_v35 }
 0x9e5   : > { %2543 = vmatprep.subr.bf16.mxu1 %v2683_v38 }
 0x9e8   : > { %2544 = vmatpush3.bf16.msra.mxu1 %v2683_v38  ;;  %v1984_v38 = vsel %vm721_vm0, %v3341_v40, %v2611_v17 }
 0x9e9   : > { %2545 = vmatprep.subr.bf16.mxu1 %v2684_v59 }
 0x9ec   : > { %2546 = vmatpush3.bf16.msra.mxu1 %v2684_v59  ;;  %v1983_v59 = vsel %vm721_vm0, %v3337_v10, %v2610_v2  ;;  %v2838_v2 = vld [vmem:[%s2907_s29 + $0x28] sm:$0xff] }
 0x9ed   : > { %2547 = vmatprep.subr.bf16.mxu1 %v2685_v15 }
 0x9f0   : > { %2548 = vmatpush3.bf16.msra.mxu1 %v2685_v15 }
 0x9f1   : > { %2549 = vmatprep.subr.bf16.mxu1 %v2686_v56 }
 0x9f4   : > { %2550 = vmatpush3.bf16.msra.mxu1 %v2686_v56  ;;  %v1986_v56 = vsel %vm721_vm0, %v3339_v39, %v2616_v51 }
 0xaaa   : > { %v2529_v63 = vpop.f32.mrb[40].mxu1 }
 0xaab   : > { %v1852_v26 = vpop.f32.mrb[41].mxu1 }
 0xaac   : > { %v2530_v49 = vpop.f32.mrb[42].mxu1 }
 0xaad   : > { %v2617_v19 = vpack.i.bf16 %v2530_v49, %v2529_v63  ;;  %v1855_v50 = vpop.f32.mrb[43].mxu1  ;;  %v1985_v63 = vsel %vm721_vm0, %v3335_v46, %v2615_v53 }
 0xaae   : > { %v2622_v5 = vpack.i.bf16 %v1855_v50, %v1852_v26 }
 0xaaf   : > { %2618 = vrot.lane.b32.xlu1 %v2617_v19, %s2848_s21 }
 0xab0   : > { %2623 = vrot.lane.b32.xlu0 %v2622_v5, %s2848_s21 }
 0xab2   : > { %v2533_v36 = vpop.f32.mrb[44].mxu1 }
 0xab3   : > { %2633 = vrot.lane.b32.xlu1 %v2632_v9, %s2849_s22  ;;  %v1868_v33 = vpop.f32.mrb[45].mxu1  ;;  %v2600_v9 = vunpack.i.l.bf16 %v2599_v42 }
 0xab4   : > { %2628 = vrot.lane.b32.xlu0 %v2627_v28, %s2849_s22  ;;  %v2534_v4 = vpop.f32.mrb[46].mxu1  ;;  %v2605_v28 = vunpack.i.l.bf16 %v2604_v55 }
 0xab5   : > { %v2642_v23 = vpack.i.bf16 %v2534_v4, %v2533_v36  ;;  %v1871_v6 = vpop.f32.mrb[47].mxu1  ;;  %v1987_v48 = vsel %vm819_vm1, %v1979_v1, %v2600_v9  ;;  %v2831_v9 = vld [vmem:[%s2907_s29 + $0x10] sm:$0xff]  ;;  %v2833_v1 = vld [vmem:[%s2907_s29 + $0x18] sm:$0xff] }
 0xab6   : > { %v2637_v29 = vpack.i.bf16 %v1871_v6, %v1868_v33  ;;  %v1989_v25 = vsel %vm819_vm1, %v1981_v21, %v2605_v28 }
 0xab7   : > { %2643 = vrot.lane.b32.xlu1 %v2642_v23, %s2848_s21 }
 0xab8   : > { %2638 = vrot.lane.b32.xlu0 %v2637_v29, %s2848_s21 }
 0xb21   : > { %v2619_v8 = vpop.permute.xlu1 %2618 }
 0xb22   : > { %v2621_v41 = vunpack.i.h.bf16 %v2619_v8  ;;  %v2620_v12 = vunpack.i.l.bf16 %v2619_v8  ;;  %v2624_v52 = vpop.permute.xlu0 %2623 }
 0xb23   : > { %v2626_v60 = vunpack.i.h.bf16 %v2624_v52  ;;  %v2625_v57 = vunpack.i.l.bf16 %v2624_v52  ;;  %v2835_v52 = vld [vmem:[%s2907_s29 + $0x30] sm:$0xff] }
 0xb24   : > { %v1999_v32 = vsel %vm1995_vm2, %v1990_v58, %v2621_v41  ;;  %v1998_v20 = vsel %vm1995_vm2, %v1989_v25, %v2620_v12 }
 0xb25   : > { %v2005_v61 = vpack.c.bf16 %v1999_v32, %v1998_v20  ;;  %v2634_v7 = vpop.permute.xlu1 %2633  ;;  %v1996_v27 = vsel %vm1995_vm2, %v1987_v48, %v2625_v57  ;;  %v1997_v22 = vsel %vm1995_vm2, %v1988_v16, %v2626_v60  ;;  %v2836_v57 = vld [vmem:[%s2907_s29 + $0x20] sm:$0xff]  ;;  %v2837_v32 = vld [vmem:[%s2907_s29 + $0x38] sm:$0xff] }
 0xb26   : > { %v2629_v0 = vpop.permute.xlu0 %2628  ;;  %v2004_v24 = vpack.c.bf16 %v1997_v22, %v1996_v27  ;;  %v2636_v47 = vunpack.i.h.bf16 %v2634_v7  ;;  %v2635_v62 = vunpack.i.l.bf16 %v2634_v7 }
 0xb27   : > { %v2631_v34 = vunpack.i.h.bf16 %v2629_v0  ;;  %v2630_v35 = vunpack.i.l.bf16 %v2629_v0 }
 0xb28   : > { %2551 = vmatprep.mubr.bf16.mxu1 %v2004_v24  ;;  %v1994_v50 = vsel %vm819_vm1, %v1986_v56, %v2636_v47  ;;  %v1993_v5 = vsel %vm819_vm1, %v1985_v63, %v2635_v62 }
 0xb29   : > { %v2644_v15 = vpop.permute.xlu1 %2643  ;;  %2552 = vmatmul.mubr.bf16.vlgmr.msra.gmra.mrb[48].mxu1 %v2005_v61  ;;  %v1991_v10 = vsel %vm819_vm1, %v1983_v59, %v2630_v35  ;;  %v1992_v33 = vsel %vm819_vm1, %v1984_v38, %v2631_v34 }
 0xb2a   : > { %v2646_v26 = vunpack.i.h.bf16 %v2644_v15  ;;  %v2645_v49 = vunpack.i.l.bf16 %v2644_v15  ;;  %v2639_v19 = vpop.permute.xlu0 %2638 }
 0xb2b   : > { %v2641_v36 = vunpack.i.h.bf16 %v2639_v19  ;;  %v2640_v40 = vunpack.i.l.bf16 %v2639_v19 }
 0xb2c   : > { %v2002_v39 = vsel %vm1995_vm2, %v1993_v5, %v2645_v49  ;;  %v2003_v4 = vsel %vm1995_vm2, %v1994_v50, %v2646_v26 }
 0xb2d   : > { %v2000_v46 = vsel %vm1995_vm2, %v1991_v10, %v2640_v40  ;;  %v2001_v23 = vsel %vm1995_vm2, %v1992_v33, %v2641_v36  ;;  %v2007_v6 = vpack.c.bf16 %v2003_v4, %v2002_v39 }
 0xb2e   : > { %v2006_v29 = vpack.c.bf16 %v2001_v23, %v2000_v46 }
 0xb30   : > { %2555 = vmatprep.mubr.bf16.mxu1 %v2006_v29 }
 0xb31   : > { %2556 = vmatmul.mubr.bf16.gmra.mrb[52].mxu1 %v2007_v6 }
 0xbfc   : > { %v2553_v44 = vpop.f32.mrb[48].mxu1 }
 0xbfd   : > { %v2122_v55 = vadd.f32 %v2553_v44, %v2282_v30  ;;  %v2113_v42 = vpop.f32.mrb[49].mxu1 }
 0xbfe   : > { %v2114_v11 = vadd.f32 %v2282_v30, %v2113_v42  ;;  %v2554_v37 = vpop.f32.mrb[50].mxu1 }
 0xbff   : > { %v2146_v43 = vadd.f32 %v2831_v9, %v2122_v55  ;;  %v2125_v13 = vadd.f32 %v2554_v37, %v2282_v30  ;;  %v2116_v18 = vpop.f32.mrb[51].mxu1 }
 0xc00   : > { %v2144_v3 = vadd.f32 %v2832_v31, %v2114_v11  ;;  %v2117_v28 = vadd.f32 %v2282_v30, %v2116_v18 }
 0xc01   : > { %2154 = vst [vmem:[%s3619_s28 + $0x10] sm:$0xff] %v2146_v43  ;;  %v2147_v14 = vadd.f32 %v2833_v1, %v2125_v13 }
 0xc02   : > { %2152 = vst [vmem:[%s3619_s28] sm:$0xff] %v2144_v3  ;;  %v2145_v48 = vadd.f32 %v2834_v54, %v2117_v28 }
 0xc03   : > { %2155 = vst [vmem:[%s3619_s28 + $0x18] sm:$0xff] %v2147_v14 }
 0xc04   : > { %2153 = vst [vmem:[%s3619_s28 + $0x8] sm:$0xff] %v2145_v48  ;;  %v2557_v8 = vpop.f32.mrb[52].mxu1 }
 0xc05   : > { %v2138_v45 = vadd.f32 %v2557_v8, %v2282_v30  ;;  %v2129_v21 = vpop.f32.mrb[53].mxu1 }
 0xc06   : > { %v2130_v41 = vadd.f32 %v2282_v30, %v2129_v21  ;;  %v2558_v12 = vpop.f32.mrb[54].mxu1 }
 0xc07   : > { %v2150_v25 = vadd.f32 %v2835_v52, %v2138_v45  ;;  %v2141_v58 = vadd.f32 %v2558_v12, %v2282_v30  ;;  %v2132_v60 = vpop.f32.mrb[55].mxu1 }
 0xc08   : > { %v2148_v16 = vadd.f32 %v2836_v57, %v2130_v41  ;;  %v2133_v17 = vadd.f32 %v2282_v30, %v2132_v60 }
 0xc09   : > { %2158 = vst [vmem:[%s3619_s28 + $0x30] sm:$0xff] %v2150_v25  ;;  %v2151_v20 = vadd.f32 %v2837_v32, %v2141_v58 }
 0xc0a   : > { %2156 = vst [vmem:[%s3619_s28 + $0x20] sm:$0xff] %v2148_v16  ;;  %v2149_v61 = vadd.f32 %v2838_v2, %v2133_v17 }
 0xc0b   : > { %2159 = vst [vmem:[%s3619_s28 + $0x38] sm:$0xff] %v2151_v20 }
 0xc0c   : > { %2157 = vst [vmem:[%s3619_s28 + $0x28] sm:$0xff] %v2149_v61 }
 0xc0d PF: > { %s17_s24 = sadd.s32 1, %s2845_s24  }
 0xc0e   : > { %p14_p4 = scmp.ge.s32.totalorder %s17_s24, 4  }
 0xc10   :  { %16 = sbr.rel (!%p14_p4) target bundleno = 1 (0x1), region = 78 }

// kernel: _lambda_.10
= control target key start
LH: loop header
LB: loop body
LE: loop exit
PB: predicated region body
PF: predicated region fallthrough
CT: control target
= control target key end

     0   :  { %s6713_s0 = inlined_call_operand.vmem [shape: f32[128,128], index: 0, kind: input, shape index: {}]   ;;  %s6714_s3 = inlined_call_operand.vmem [shape: bf16[128,1024], index: 3, kind: input, shape index: {}]   ;;  %s6715_s1 = inlined_call_operand.vmem [shape: f32[1,128], index: 1, kind: input, shape index: {}]   ;;  %s6716_s2 = inlined_call_operand.vmem [shape: f32[1,128], index: 2, kind: input, shape index: {}]   ;;  %s6717_s5 = inlined_call_operand.vmem [shape: bf16[512,128], index: 5, kind: input, shape index: {}]   ;;  %s6718_s4 = inlined_call_operand.vmem [shape: f32[1,1024], index: 4, kind: input, shape index: {}]   ;;  %s6719_s6 = inlined_call_operand.vmem [shape: f32[1,128], index: 6, kind: input, shape index: {}]   ;;  %s6720_s7 = inlined_call_operand.vmem [shape: f32[128,128], index: 7, kind: output, shape index: {}]  }
   0x1   :  { %v27_v0 = vld [vmem:[%s6713_s0] sm:$0xff]  ;;  %v29_v1 = vld [vmem:[%s6713_s0 + $0x10] sm:$0xff]  ;;  %v28_v2 = vld [vmem:[%s6713_s0 + $0x8] sm:$0xff] }
   0x2   :  { %45 = vadd.xlane.f32.xlu0 %v27_v0  ;;  %49 = vadd.xlane.f32.xlu1 %v29_v1  ;;  %v4088_v3 = vld [vmem:[%s6713_s0 + $0x18] sm:$0xff]  ;;  %v4094_v4 = vld [vmem:[%s6713_s0 + $0x20] sm:$0xff]  ;;  %v4099_v5 = vld [vmem:[%s6713_s0 + $0x28] sm:$0xff] }
   0x3   :  { %v4106_v6 = vld [vmem:[%s6713_s0 + $0x30] sm:$0xff]  ;;  %v4111_v7 = vld [vmem:[%s6713_s0 + $0x38] sm:$0xff]  ;;  %v4118_v8 = vld [vmem:[%s6713_s0 + $0x40] sm:$0xff] }
   0x4   :  { %v4123_v9 = vld [vmem:[%s6713_s0 + $0x48] sm:$0xff]  ;;  %v4130_v10 = vld [vmem:[%s6713_s0 + $0x50] sm:$0xff]  ;;  %v4135_v11 = vld [vmem:[%s6713_s0 + $0x58] sm:$0xff] }
   0x5   :  { %v4142_v12 = vld [vmem:[%s6713_s0 + $0x60] sm:$0xff]  ;;  %v4147_v13 = vld [vmem:[%s6713_s0 + $0x68] sm:$0xff]  ;;  %v4154_v14 = vld [vmem:[%s6713_s0 + $0x70] sm:$0xff] }
   0x6   :  { %47 = vadd.xlane.f32.xlu0 %v28_v2  ;;  %51 = vadd.xlane.f32.xlu1 %v4088_v3  ;;  %v4159_v15 = vld [vmem:[%s6713_s0 + $0x78] sm:$0xff]  ;;  %v274_v16 = vld [vmem:[%s6714_s3] sm:$0xff]  ;;  %v275_v18 = vld [vmem:[%s6714_s3 + $0x8] sm:$0xff] }
   0x7   :  { %v278_v17 = vld [vmem:[%s6714_s3 + $0x20] sm:$0xff]  ;;  %v279_v21 = vld [vmem:[%s6714_s3 + $0x28] sm:$0xff] }
   0x8   :  { %v3472_v19 = vcombine.high %v274_v16, %v278_v17  ;;  %v3471_v20 = vcombine.low %v274_v16, %v278_v17  ;;  %v282_v22 = vld [vmem:[%s6714_s3 + $0x40] sm:$0xff]  ;;  %v3474_v24 = vcombine.high %v275_v18, %v279_v21  ;;  %v3473_v25 = vcombine.low %v275_v18, %v279_v21  ;;  %v283_v27 = vld [vmem:[%s6714_s3 + $0x48] sm:$0xff] }
   0x9   :  { %v286_v23 = vld [vmem:[%s6714_s3 + $0x60] sm:$0xff]  ;;  %v287_v28 = vld [vmem:[%s6714_s3 + $0x68] sm:$0xff] }
   0xa   :  { %53 = vadd.xlane.f32.xlu0 %v4094_v4  ;;  %55 = vadd.xlane.f32.xlu1 %v4099_v5  ;;  %v3480_v26 = vcombine.high %v282_v22, %v286_v23  ;;  %v3482_v29 = vcombine.high %v283_v27, %v287_v28  ;;  %v3479_v30 = vcombine.low %v282_v22, %v286_v23  ;;  %v295_v22 = vld [vmem:[%s6714_s3 + $0xa8] sm:$0xff] }
   0xb   :  { %700 = vmatprep.subr.bf16.mxu0 %v3472_v19  ;;  %813 = vmatprep.subr.bf16.mxu1 %v3474_v24  ;;  %v290_v19 = vld [vmem:[%s6714_s3 + $0x80] sm:$0xff] }
   0xc   :  { %701 = vmatpush1.bf16.msra.mxu0 %v3471_v20  ;;  %814 = vmatpush1.bf16.msra.mxu1 %v3473_v25 }
   0xd   :  { %702 = vmatprep.subr.bf16.mxu0 %v3480_v26  ;;  %815 = vmatprep.subr.bf16.mxu1 %v3482_v29 }
   0xe   :  { %57 = vadd.xlane.f32.xlu0 %v4106_v6  ;;  %59 = vadd.xlane.f32.xlu1 %v4111_v7 }
  0x10   :  { %703 = vmatpush1.bf16.msra.mxu0 %v3479_v30 }
  0x12   :  { %61 = vadd.xlane.f32.xlu0 %v4118_v8  ;;  %63 = vadd.xlane.f32.xlu1 %v4123_v9 }
  0x16   :  { %65 = vadd.xlane.f32.xlu0 %v4130_v10  ;;  %67 = vadd.xlane.f32.xlu1 %v4135_v11 }
  0x1a   :  { %69 = vadd.xlane.f32.xlu0 %v4142_v12  ;;  %71 = vadd.xlane.f32.xlu1 %v4147_v13 }
  0x1e   :  { %73 = vadd.xlane.f32.xlu0 %v4154_v14  ;;  %75 = vadd.xlane.f32.xlu1 %v4159_v15 }
  0x8f   :  { %v46_v31 = vpop.xlane.xlu0 %45  ;;  %v50_v32 = vpop.xlane.xlu1 %49 }
  0x90   :  { %v78_v33 = vmul.f32 0.0078125, %v46_v31  ;;  %v80_v34 = vmul.f32 0.0078125, %v50_v32 }
  0x92   :  { %v4187_v35 = vsub.f32 %v27_v0, %v78_v33  ;;  %v4189_v36 = vsub.f32 %v29_v1, %v80_v34  ;;  %v302_v33 = vld [vmem:[%s6714_s3 + $0xe0] sm:$0xff]  ;;  %v299_v34 = vld [vmem:[%s6714_s3 + $0xc8] sm:$0xff] }
  0x93   :  { %v48_v37 = vpop.xlane.xlu0 %47  ;;  %v52_v38 = vpop.xlane.xlu1 %51 }
  0x94   :  { %v79_v39 = vmul.f32 0.0078125, %v48_v37  ;;  %v110_v40 = vmul.f32 %v4187_v35, %v4187_v35  ;;  %v81_v41 = vmul.f32 0.0078125, %v52_v38  ;;  %v112_v44 = vmul.f32 %v4189_v36, %v4189_v36 }
  0x96   :  { %v4193_v42 = vsub.f32 %v28_v2, %v79_v39  ;;  %126 = vadd.xlane.f32.xlu0 %v110_v40  ;;  %v4196_v43 = vsub.f32 %v4088_v3, %v81_v41  ;;  %v303_v40 = vld [vmem:[%s6714_s3 + $0xe8] sm:$0xff] }
  0x97   :  { %v54_v45 = vpop.xlane.xlu0 %53  ;;  %v56_v46 = vpop.xlane.xlu1 %55 }
  0x98   :  { %v82_v47 = vmul.f32 0.0078125, %v54_v45  ;;  %v111_v48 = vmul.f32 %v4193_v42, %v4193_v42  ;;  %v83_v49 = vmul.f32 0.0078125, %v56_v46  ;;  %v113_v52 = vmul.f32 %v4196_v43, %v4196_v43 }
  0x99   :  { %v3498_v46 = vcombine.high %v299_v34, %v303_v40 }
  0x9a   :  { %v4203_v50 = vsub.f32 %v4094_v4, %v82_v47  ;;  %130 = vadd.xlane.f32.xlu0 %v112_v44  ;;  %128 = vadd.xlane.f32.xlu1 %v111_v48  ;;  %v4206_v51 = vsub.f32 %v4099_v5, %v83_v49  ;;  %v3481_v5 = vcombine.low %v283_v27, %v287_v28 }
  0x9b   :  { %v58_v53 = vpop.xlane.xlu0 %57  ;;  %v60_v54 = vpop.xlane.xlu1 %59  ;;  %v3497_v47 = vcombine.low %v299_v34, %v303_v40  ;;  %v4346_v34 = vld [vmem:[%s6714_s3 + $0x30] sm:$0xff] }
  0x9c   :  { %v84_v55 = vmul.f32 0.0078125, %v58_v53  ;;  %v114_v56 = vmul.f32 %v4203_v50, %v4203_v50  ;;  %v85_v57 = vmul.f32 0.0078125, %v60_v54  ;;  %v115_v60 = vmul.f32 %v4206_v51, %v4206_v51  ;;  %816 = vmatpush1.bf16.msra.mxu1 %v3481_v5  ;;  %v310_v53 = vld [vmem:[%s6714_s3 + $0x120] sm:$0xff]  ;;  %v307_v54 = vld [vmem:[%s6714_s3 + $0x108] sm:$0xff] }
  0x9e   :  { %v4213_v58 = vsub.f32 %v4106_v6, %v84_v55  ;;  %132 = vadd.xlane.f32.xlu1 %v113_v52  ;;  %134 = vadd.xlane.f32.xlu0 %v114_v56  ;;  %v4216_v59 = vsub.f32 %v4111_v7, %v85_v57  ;;  %v306_v52 = vld [vmem:[%s6714_s3 + $0x100] sm:$0xff] }
  0x9f   :  { %v62_v61 = vpop.xlane.xlu0 %61  ;;  %v64_v62 = vpop.xlane.xlu1 %63  ;;  %v3504_v57 = vcombine.high %v306_v52, %v310_v53 }
  0xa0   :  { %v86_v63 = vmul.f32 0.0078125, %v62_v61  ;;  %v116_v0 = vmul.f32 %v4213_v58, %v4213_v58  ;;  %v87_v1 = vmul.f32 0.0078125, %v64_v62  ;;  %v117_v2 = vmul.f32 %v4216_v59, %v4216_v59 }
  0xa1   :  { %v3503_v61 = vcombine.low %v306_v52, %v310_v53 }
  0xa2   :  { %v4225_v3 = vsub.f32 %v4118_v8, %v86_v63  ;;  %136 = vadd.xlane.f32.xlu1 %v115_v60  ;;  %138 = vadd.xlane.f32.xlu0 %v116_v0  ;;  %v4228_v4 = vsub.f32 %v4123_v9, %v87_v1  ;;  %v294_v8 = vld [vmem:[%s6714_s3 + $0xa0] sm:$0xff]  ;;  %v291_v9 = vld [vmem:[%s6714_s3 + $0x88] sm:$0xff] }
  0xa3   :  { %v66_v6 = vpop.xlane.xlu0 %65  ;;  %v68_v7 = vpop.xlane.xlu1 %67  ;;  %v3488_v21 = vcombine.high %v290_v19, %v294_v8  ;;  %v3487_v25 = vcombine.low %v290_v19, %v294_v8  ;;  %v3490_v28 = vcombine.high %v291_v9, %v295_v22  ;;  %v3489_v29 = vcombine.low %v291_v9, %v295_v22  ;;  %v311_v60 = vld [vmem:[%s6714_s3 + $0x128] sm:$0xff]  ;;  %v326_v19 = vld [vmem:[%s6714_s3 + $0x1a0] sm:$0xff] }
  0xa4   :  { %v88_v16 = vmul.f32 0.0078125, %v66_v6  ;;  %v118_v17 = vmul.f32 %v4225_v3, %v4225_v3  ;;  %v89_v18 = vmul.f32 0.0078125, %v68_v7  ;;  %v119_v20 = vmul.f32 %v4228_v4, %v4228_v4  ;;  %v315_v1 = vld [vmem:[%s6714_s3 + $0x148] sm:$0xff] }
  0xa5   :  { %704 = vmatprep.subr.bf16.mxu0 %v3488_v21  ;;  %817 = vmatprep.subr.bf16.mxu1 %v3490_v28  ;;  %v3506_v62 = vcombine.high %v307_v54, %v311_v60  ;;  %v3505_v63 = vcombine.low %v307_v54, %v311_v60  ;;  %v319_v6 = vld [vmem:[%s6714_s3 + $0x168] sm:$0xff] }
  0xa6   :  { %v4247_v23 = vsub.f32 %v4130_v10, %v88_v16  ;;  %140 = vadd.xlane.f32.xlu1 %v117_v2  ;;  %142 = vadd.xlane.f32.xlu0 %v118_v17  ;;  %v4250_v24 = vsub.f32 %v4135_v11, %v89_v18  ;;  %v298_v11 = vld [vmem:[%s6714_s3 + $0xc0] sm:$0xff]  ;;  %v3514_v16 = vcombine.high %v315_v1, %v319_v6  ;;  %v323_v8 = vld [vmem:[%s6714_s3 + $0x188] sm:$0xff] }
  0xa7   :  { %v70_v26 = vpop.xlane.xlu0 %69  ;;  %v72_v27 = vpop.xlane.xlu1 %71  ;;  %705 = vmatpush1.bf16.msra.mxu0 %v3487_v25  ;;  %v3496_v39 = vcombine.high %v298_v11, %v302_v33  ;;  %818 = vmatpush1.bf16.msra.mxu1 %v3489_v29  ;;  %v3495_v45 = vcombine.low %v298_v11, %v302_v33  ;;  %v3513_v17 = vcombine.low %v315_v1, %v319_v6  ;;  %v322_v18 = vld [vmem:[%s6714_s3 + $0x180] sm:$0xff]  ;;  %v331_v28 = vld [vmem:[%s6714_s3 + $0x1c8] sm:$0xff]  ;;  %v4034_v11 = vmov 0   ;;  %v4341_v33 = vld [vmem:[%s6714_s3 + $0x10] sm:$0xff] }
  0xa8   :  { %v90_v30 = vmul.f32 0.0078125, %v70_v26  ;;  %v120_v31 = vmul.f32 %v4247_v23, %v4247_v23  ;;  %v91_v32 = vmul.f32 0.0078125, %v72_v27  ;;  %v121_v10 = vmul.f32 %v4250_v24, %v4250_v24  ;;  %819 = vmatprep.subr.bf16.mxu1 %v3498_v46  ;;  %v330_v26 = vld [vmem:[%s6714_s3 + $0x1c0] sm:$0xff]  ;;  %732 = vmatprep.mubr.bf16.mxu0 %v4034_v11 }
  0xa9   :  { %706 = vmatprep.subr.bf16.mxu0 %v3496_v39  ;;  %v3520_v9 = vcombine.high %v322_v18, %v326_v19  ;;  %v3519_v21 = vcombine.low %v322_v18, %v326_v19  ;;  %v334_v27 = vld [vmem:[%s6714_s3 + $0x1e0] sm:$0xff]  ;;  %845 = vmatprep.mubr.bf16.mxu1 %v4034_v11  ;;  %v3475_v39 = vcombine.low %v4341_v33, %v4346_v34 }
  0xaa   :  { %v4266_v37 = vsub.f32 %v4142_v12, %v90_v30  ;;  %144 = vadd.xlane.f32.xlu1 %v119_v20  ;;  %146 = vadd.xlane.f32.xlu0 %v120_v31  ;;  %v4269_v38 = vsub.f32 %v4147_v13, %v91_v32  ;;  %v327_v20 = vld [vmem:[%s6714_s3 + $0x1a8] sm:$0xff]  ;;  %v3528_v29 = vcombine.high %v330_v26, %v334_v27  ;;  %v4370_v18 = vld [vmem:[%s6715_s1] ss:$0 sm:$0xff] }
  0xab   :  { %v74_v41 = vpop.xlane.xlu0 %73  ;;  %v76_v44 = vpop.xlane.xlu1 %75  ;;  %707 = vmatpush1.bf16.msra.mxu0 %v3495_v45  ;;  %820 = vmatpush1.bf16.msra.mxu1 %v3497_v47  ;;  %v3522_v22 = vcombine.high %v323_v8, %v327_v20  ;;  %v3521_v25 = vcombine.low %v323_v8, %v327_v20  ;;  %v335_v30 = vld [vmem:[%s6714_s3 + $0x1e8] sm:$0xff]  ;;  %v3527_v31 = vcombine.low %v330_v26, %v334_v27 }
  0xac   :  { %v92_v48 = vmul.f32 0.0078125, %v74_v41  ;;  %v122_v12 = vmul.f32 %v4266_v37, %v4266_v37  ;;  %v93_v49 = vmul.f32 0.0078125, %v76_v44  ;;  %v123_v13 = vmul.f32 %v4269_v38, %v4269_v38  ;;  %708 = vmatprep.subr.bf16.mxu0 %v3504_v57  ;;  %821 = vmatprep.subr.bf16.mxu1 %v3506_v62  ;;  %v4355_v41 = vld [vmem:[%s6714_s3 + $0x18] sm:$0xff] }
  0xad   :  { %v3530_v32 = vcombine.high %v331_v28, %v335_v30  ;;  %v3476_v40 = vcombine.high %v4341_v33, %v4346_v34  ;;  %v4360_v44 = vld [vmem:[%s6714_s3 + $0x38] sm:$0xff] }
  0xae   :  { %v4288_v55 = vsub.f32 %v4154_v14, %v92_v48  ;;  %148 = vadd.xlane.f32.xlu1 %v121_v10  ;;  %150 = vadd.xlane.f32.xlu0 %v122_v12  ;;  %v4291_v56 = vsub.f32 %v4159_v15, %v93_v49  ;;  %v314_v14 = vld [vmem:[%s6714_s3 + $0x140] sm:$0xff]  ;;  %v3529_v10 = vcombine.low %v331_v28, %v335_v30 }
  0xaf   :  { %709 = vmatpush1.bf16.msra.mxu0 %v3503_v61  ;;  %v318_v15 = vld [vmem:[%s6714_s3 + $0x160] sm:$0xff]  ;;  %822 = vmatpush1.bf16.msra.mxu1 %v3505_v63  ;;  %v3477_v45 = vcombine.low %v4355_v41, %v4360_v44  ;;  %v3478_v46 = vcombine.high %v4355_v41, %v4360_v44 }
  0xb0   :  { %v124_v0 = vmul.f32 %v4288_v55, %v4288_v55  ;;  %v125_v2 = vmul.f32 %v4291_v56, %v4291_v56  ;;  %v3512_v5 = vcombine.high %v314_v14, %v318_v15  ;;  %v3511_v7 = vcombine.low %v314_v14, %v318_v15  ;;  %823 = vmatprep.subr.bf16.mxu1 %v3514_v16 }
  0xb2   :  { %152 = vadd.xlane.f32.xlu1 %v123_v13  ;;  %154 = vadd.xlane.f32.xlu0 %v124_v0 }
  0xb3   :  { %710 = vmatprep.subr.bf16.mxu0 %v3512_v5  ;;  %824 = vmatpush1.bf16.msra.mxu1 %v3513_v17 }
  0xb4   :  { %711 = vmatpush1.bf16.msra.mxu0 %v3511_v7  ;;  %825 = vmatprep.subr.bf16.mxu1 %v3522_v22 }
  0xb5   :  { %712 = vmatprep.subr.bf16.mxu0 %v3520_v9 }
  0xb6   :  { %156 = vadd.xlane.f32.xlu1 %v125_v2 }
  0xb7   :  { %826 = vmatpush1.bf16.msra.mxu1 %v3521_v25 }
  0xb8   :  { %713 = vmatpush1.bf16.msra.mxu0 %v3519_v21  ;;  %827 = vmatprep.subr.bf16.mxu1 %v3530_v32 }
  0xb9   :  { %714 = vmatprep.subr.bf16.mxu0 %v3528_v29  ;;  %v284_v29 = vld [vmem:[%s6714_s3 + $0x50] sm:$0xff] }
  0xbb   :  { %828 = vmatpush1.bf16.msra.mxu1 %v3529_v10 }
  0xbc   :  { %715 = vmatpush1.bf16.msra.mxu0 %v3527_v31  ;;  %1039 = vmatprep.subr.bf16.mxu1 %v3478_v46  ;;  %v285_v46 = vld [vmem:[%s6714_s3 + $0x58] sm:$0xff] }
  0xbd   :  { %926 = vmatprep.subr.bf16.mxu0 %v3476_v40  ;;  %v288_v40 = vld [vmem:[%s6714_s3 + $0x70] sm:$0xff] }
 0x123   :  { %v127_v47 = vpop.xlane.xlu0 %126 }
 0x124   :  { %v158_v48 = vmul.f32 0.0078125, %v127_v47  ;;  %v289_v47 = vld [vmem:[%s6714_s3 + $0x78] sm:$0xff] }
 0x126   :  { %v174_v12 = vadd.f32 1e-05, %v158_v48 }
 0x127   :  { %v129_v49 = vpop.xlane.xlu1 %128  ;;  %v131_v13 = vpop.xlane.xlu0 %130 }
 0x128   :  { %3730 = vrsqrt.f32 %v174_v12  ;;  %v159_v52 = vmul.f32 0.0078125, %v129_v49  ;;  %v160_v53 = vmul.f32 0.0078125, %v131_v13  ;;  %v4402_v12 = vld [vmem:[%s6714_s3 + $0x90] sm:$0xff] }
 0x129   :  { %v4407_v49 = vld [vmem:[%s6714_s3 + $0xb0] sm:$0xff] }
 0x12a   :  { %v175_v54 = vadd.f32 1e-05, %v159_v52  ;;  %v176_v57 = vadd.f32 1e-05, %v160_v53  ;;  %v3484_v53 = vcombine.high %v284_v29, %v288_v40 }
 0x12b   :  { %v133_v60 = vpop.xlane.xlu1 %132  ;;  %v135_v61 = vpop.xlane.xlu0 %134 }
 0x12c   :  { %3732 = vrsqrt.f32 %v175_v54  ;;  %v161_v62 = vmul.f32 0.0078125, %v133_v60  ;;  %v162_v0 = vmul.f32 0.0078125, %v135_v61  ;;  %v3486_v54 = vcombine.high %v285_v46, %v289_v47  ;;  %v297_v60 = vld [vmem:[%s6714_s3 + $0xb8] sm:$0xff] }
 0x12d   :  { %3734 = vrsqrt.f32 %v176_v57  ;;  %v293_v57 = vld [vmem:[%s6714_s3 + $0x98] sm:$0xff] }
 0x12e   :  { %v177_v63 = vadd.f32 1e-05, %v161_v62  ;;  %v178_v2 = vadd.f32 1e-05, %v162_v0  ;;  %v3483_v0 = vcombine.low %v284_v29, %v288_v40  ;;  %v3494_v33 = vcombine.high %v293_v57, %v297_v60  ;;  %v313_v29 = vld [vmem:[%s6714_s3 + $0x138] sm:$0xff] }
 0x12f   :  { %v137_v14 = vpop.xlane.xlu1 %136  ;;  %v139_v7 = vpop.xlane.xlu0 %138 }
 0x130   :  { %3736 = vrsqrt.f32 %v177_v63  ;;  %v163_v15 = vmul.f32 0.0078125, %v137_v14  ;;  %v164_v8 = vmul.f32 0.0078125, %v139_v7  ;;  %v3485_v14 = vcombine.low %v285_v46, %v289_v47  ;;  %v305_v7 = vld [vmem:[%s6714_s3 + $0xf8] sm:$0xff] }
 0x132   :  { %v3731_v1 = vpop.eup %3730  ;;  %v179_v5 = vadd.f32 1e-05, %v163_v15  ;;  %v180_v28 = vadd.f32 1e-05, %v164_v8  ;;  %v3492_v15 = vcombine.high %v4402_v12, %v4407_v49  ;;  %v3493_v8 = vcombine.low %v293_v57, %v297_v60 }
 0x133   :  { %v206_v6 = vmul.f32 %v3731_v1, %v4187_v35  ;;  %v141_v16 = vpop.xlane.xlu1 %140  ;;  %v4377_v35 = vld [vmem:[%s6716_s2] ss:$0 sm:$0xff]  ;;  %v143_v31 = vpop.xlane.xlu0 %142 }
 0x134   :  { %3738 = vrsqrt.f32 %v179_v5  ;;  %v165_v17 = vmul.f32 0.0078125, %v141_v16  ;;  %v166_v52 = vmul.f32 0.0078125, %v143_v31 }
 0x135   :  { %3740 = vrsqrt.f32 %v178_v2  ;;  %v228_v20 = vmul.f32 %v4370_v18, %v206_v6  ;;  %v301_v6 = vld [vmem:[%s6714_s3 + $0xd8] sm:$0xff] }
 0x136   :  { %v3733_v19 = vpop.eup %3732  ;;  %v181_v22 = vadd.f32 1e-05, %v165_v17  ;;  %v182_v34 = vadd.f32 1e-05, %v166_v52  ;;  %v3501_v46 = vcombine.low %v301_v6, %v305_v7  ;;  %v320_v52 = vld [vmem:[%s6714_s3 + $0x170] sm:$0xff] }
 0x137   :  { %v207_v9 = vmul.f32 %v3733_v19, %v4193_v42  ;;  %v3735_v21 = vpop.eup %3734  ;;  %v145_v25 = vpop.xlane.xlu1 %144  ;;  %v250_v32 = vadd.f32 %v4377_v35, %v228_v20 }
 0x138   :  { %v208_v42 = vmul.f32 %v3735_v21, %v4189_v36  ;;  %3742 = vrsqrt.f32 %v181_v22  ;;  %v167_v36 = vmul.f32 0.0078125, %v145_v25  ;;  %v147_v44 = vpop.xlane.xlu0 %146  ;;  %v3502_v22 = vcombine.high %v301_v6, %v305_v7  ;;  %v308_v25 = vld [vmem:[%s6714_s3 + $0x110] sm:$0xff] }
 0x139   :  { %v229_v26 = vmul.f32 %v4370_v18, %v207_v9  ;;  %3744 = vrsqrt.f32 %v180_v28  ;;  %v168_v20 = vmul.f32 0.0078125, %v147_v44  ;;  %v309_v28 = vld [vmem:[%s6714_s3 + $0x118] sm:$0xff] }
 0x13a   :  { %v3737_v27 = vpop.eup %3736  ;;  %v230_v61 = vmul.f32 %v4370_v18, %v208_v42  ;;  %v183_v63 = vadd.f32 1e-05, %v167_v36 }
 0x13b   :  { %v209_v30 = vmul.f32 %v3737_v27, %v4196_v43  ;;  %v251_v10 = vadd.f32 %v4377_v35, %v229_v26  ;;  %v149_v2 = vpop.xlane.xlu1 %148  ;;  %v312_v27 = vld [vmem:[%s6714_s3 + $0x130] sm:$0xff]  ;;  %v184_v47 = vadd.f32 1e-05, %v168_v20 }
 0x13c   :  { %3746 = vrsqrt.f32 %v183_v63  ;;  %v169_v16 = vmul.f32 0.0078125, %v149_v2  ;;  %v3508_v36 = vcombine.high %v308_v25, %v312_v27  ;;  %v3507_v60 = vcombine.low %v308_v25, %v312_v27  ;;  %v337_v25 = vld [vmem:[%s6714_s3 + $0x1f8] sm:$0xff] }
 0x13d   :  { %v4396_v43 = vpack.c.bf16 %v251_v10, %v250_v32  ;;  %v231_v48 = vmul.f32 %v4370_v18, %v209_v30  ;;  %3748 = vrsqrt.f32 %v182_v34  ;;  %v329_v34 = vld [vmem:[%s6714_s3 + $0x1b8] sm:$0xff] }
 0x13e   :  { %v3739_v13 = vpop.eup %3738  ;;  %v185_v30 = vadd.f32 1e-05, %v169_v16 }
 0x13f   :  { %733 = vmatmul.mubr.bf16.vlgmr.msra.gmra.mrb[0].mxu0 %v4396_v43  ;;  %846 = vmatmul.mubr.bf16.vlgmr.msra.gmra.mrb[0].mxu1 %v4396_v43  ;;  %v3741_v62 = vpop.eup %3740  ;;  %v211_v1 = vmul.f32 %v3739_v13, %v4206_v51  ;;  %v253_v5 = vadd.f32 %v4377_v35, %v231_v48  ;;  %v252_v51 = vadd.f32 %v4377_v35, %v230_v61  ;;  %v153_v10 = vpop.xlane.xlu1 %152 }
 0x140   :  { %927 = vmatpush1.bf16.msra.mxu0 %v3475_v39  ;;  %1040 = vmatpush1.bf16.msra.mxu1 %v3477_v45  ;;  %v300_v39 = vld [vmem:[%s6714_s3 + $0xd0] sm:$0xff]  ;;  %v210_v41 = vmul.f32 %v3741_v62, %v4203_v50  ;;  %v3491_v50 = vcombine.low %v4402_v12, %v4407_v49  ;;  %v3510_v48 = vcombine.high %v309_v28, %v313_v29  ;;  %v151_v13 = vpop.xlane.xlu0 %150  ;;  %3750 = vrsqrt.f32 %v185_v30 }
 0x141   :  { %742 = vmatprep.mubr.bf16.mxu0 %v4034_v11  ;;  %855 = vmatprep.mubr.bf16.mxu1 %v4034_v11  ;;  %v304_v45 = vld [vmem:[%s6714_s3 + $0xf0] sm:$0xff]  ;;  %v4446_v17 = vpack.c.bf16 %v253_v5, %v252_v51  ;;  %v233_v19 = vmul.f32 %v4370_v18, %v211_v1  ;;  %v171_v57 = vmul.f32 0.0078125, %v153_v10  ;;  %v3509_v62 = vcombine.low %v309_v28, %v313_v29 }
 0x142   :  { %928 = vmatprep.subr.bf16.mxu0 %v3484_v53  ;;  %1041 = vmatprep.subr.bf16.mxu1 %v3486_v54  ;;  %v3743_v9 = vpop.eup %3742  ;;  %v3500_v21 = vcombine.high %v300_v39, %v304_v45  ;;  %v232_v26 = vmul.f32 %v4370_v18, %v210_v41  ;;  %v3499_v31 = vcombine.low %v300_v39, %v304_v45  ;;  %v316_v12 = vld [vmem:[%s6714_s3 + $0x150] sm:$0xff]  ;;  %v317_v53 = vld [vmem:[%s6714_s3 + $0x158] sm:$0xff]  ;;  %3752 = vrsqrt.f32 %v184_v47 }
 0x143   :  { %v3745_v42 = vpop.eup %3744  ;;  %v213_v32 = vmul.f32 %v3743_v9, %v4216_v59  ;;  %v255_v40 = vadd.f32 %v4377_v35, %v233_v19  ;;  %v321_v54 = vld [vmem:[%s6714_s3 + $0x178] sm:$0xff]  ;;  %v324_v1 = vld [vmem:[%s6714_s3 + $0x190] sm:$0xff]  ;;  %v187_v41 = vadd.f32 1e-05, %v171_v57  ;;  %v3515_v44 = vcombine.low %v316_v12, %v320_v52  ;;  %v157_v45 = vpop.xlane.xlu1 %156 }
 0x144   :  { %929 = vmatpush1.bf16.msra.mxu0 %v3483_v0  ;;  %1042 = vmatpush1.bf16.msra.mxu1 %v3485_v14  ;;  %v212_v49 = vmul.f32 %v3745_v42, %v4213_v58  ;;  %v254_v59 = vadd.f32 %v4377_v35, %v232_v26  ;;  %v170_v0 = vmul.f32 0.0078125, %v151_v13  ;;  %v3516_v14 = vcombine.high %v316_v12, %v320_v52  ;;  %v328_v5 = vld [vmem:[%s6714_s3 + $0x1b0] sm:$0xff]  ;;  %v155_v20 = vpop.xlane.xlu0 %154 }
 0x145   :  { %930 = vmatprep.subr.bf16.mxu0 %v3492_v15  ;;  %1043 = vmatprep.subr.bf16.mxu1 %v3494_v33  ;;  %v235_v58 = vmul.f32 %v4370_v18, %v213_v32  ;;  %v3518_v15 = vcombine.high %v317_v53, %v321_v54  ;;  %v325_v33 = vld [vmem:[%s6714_s3 + $0x198] sm:$0xff]  ;;  %v3517_v7 = vcombine.low %v317_v53, %v321_v54  ;;  %3754 = vrsqrt.f32 %v187_v41 }
 0x146   :  { %v4482_v61 = vpack.c.bf16 %v255_v40, %v254_v59  ;;  %v3747_v63 = vpop.eup %3746  ;;  %v234_v2 = vmul.f32 %v4370_v18, %v212_v49  ;;  %v186_v16 = vadd.f32 1e-05, %v170_v0  ;;  %v3526_v19 = vcombine.high %v325_v33, %v329_v34 }
 0x147   :  { %743 = vmatmul.mubr.bf16.gmra.mrb[4].mxu0 %v4446_v17  ;;  %856 = vmatmul.mubr.bf16.gmra.mrb[4].mxu1 %v4446_v17  ;;  %v3749_v39 = vpop.eup %3748  ;;  %v215_v51 = vmul.f32 %v3747_v63, %v4228_v4  ;;  %v257_v6 = vadd.f32 %v4377_v35, %v235_v58  ;;  %v173_v26 = vmul.f32 0.0078125, %v157_v45  ;;  %v3523_v27 = vcombine.low %v324_v1, %v328_v5 }
 0x148   :  { %752 = vmatprep.mubr.bf16.mxu0 %v4034_v11  ;;  %865 = vmatprep.mubr.bf16.mxu1 %v4034_v11  ;;  %v214_v9 = vmul.f32 %v3749_v39, %v4225_v3  ;;  %v256_v4 = vadd.f32 %v4377_v35, %v234_v2  ;;  %v3525_v29 = vcombine.low %v325_v33, %v329_v34  ;;  %3756 = vrsqrt.f32 %v186_v16 }
 0x149   :  { %931 = vmatpush1.bf16.msra.mxu0 %v3491_v50  ;;  %1044 = vmatpush1.bf16.msra.mxu1 %v3493_v8  ;;  %v3524_v50 = vcombine.high %v324_v1, %v328_v5  ;;  %v332_v8 = vld [vmem:[%s6714_s3 + $0x1d0] sm:$0xff]  ;;  %v237_v3 = vmul.f32 %v4370_v18, %v215_v51  ;;  %v172_v30 = vmul.f32 0.0078125, %v155_v20  ;;  %v3705_v51 = vld [vmem:[%s6717_s5 + $0x88] sm:$0xff]  }
 0x14a   :  { %932 = vmatprep.subr.bf16.mxu0 %v3500_v21  ;;  %1045 = vmatprep.subr.bf16.mxu1 %v3502_v22  ;;  %v336_v21 = vld [vmem:[%s6714_s3 + $0x1f0] sm:$0xff]  ;;  %v333_v22 = vld [vmem:[%s6714_s3 + $0x1d8] sm:$0xff]  ;;  %v4518_v28 = vpack.c.bf16 %v257_v6, %v256_v4  ;;  %v3751_v42 = vpop.eup %3750  ;;  %v236_v10 = vmul.f32 %v4370_v18, %v214_v9 }
 0x14b   :  { %v3534_v32 = vcombine.high %v333_v22, %v337_v25  ;;  %v3531_v47 = vcombine.low %v332_v8, %v336_v21  ;;  %v3533_v12 = vcombine.low %v333_v22, %v337_v25  ;;  %v188_v49 = vadd.f32 1e-05, %v172_v30 }
 0x14c   :  { %v3753_v40 = vpop.eup %3752  ;;  %v258_v59 = vadd.f32 %v4377_v35, %v236_v10 }
 0x14d   :  { %933 = vmatpush1.bf16.msra.mxu0 %v3499_v31  ;;  %1046 = vmatpush1.bf16.msra.mxu1 %v3501_v46  ;;  %v3532_v31 = vcombine.high %v332_v8, %v336_v21  ;;  %v189_v46 = vadd.f32 1e-05, %v173_v26  ;;  %v216_v13 = vmul.f32 %v3753_v40, %v4247_v23 }
 0x14e   :  { %934 = vmatprep.subr.bf16.mxu0 %v3508_v36  ;;  %1047 = vmatprep.subr.bf16.mxu1 %v3510_v48  ;;  %v217_v36 = vmul.f32 %v3751_v42, %v4250_v24  ;;  %v259_v48 = vadd.f32 %v4377_v35, %v237_v3 }
 0x14f   :  { %753 = vmatmul.mubr.bf16.gmra.mrb[8].mxu0 %v4482_v61  ;;  %866 = vmatmul.mubr.bf16.gmra.mrb[8].mxu1 %v4482_v61  ;;  %3758 = vrsqrt.f32 %v189_v46  ;;  %v3755_v54 = vpop.eup %3754  ;;  %v238_v24 = vmul.f32 %v4370_v18, %v216_v13  ;;  %v3706_v46 = vld [vmem:[%s6717_s5 + $0x50] sm:$0xff]  }
 0x150   :  { %762 = vmatprep.mubr.bf16.mxu0 %v4034_v11  ;;  %875 = vmatprep.mubr.bf16.mxu1 %v4034_v11  ;;  %v270_v52 = vpack.c.bf16 %v259_v48, %v258_v59  ;;  %v239_v53 = vmul.f32 %v4370_v18, %v217_v36  ;;  %3760 = vrsqrt.f32 %v188_v49  ;;  %v219_v23 = vmul.f32 %v3755_v54, %v4269_v38  ;;  %v3707_v54 = vld [vmem:[%s6717_s5 + $0x10] sm:$0xff]  }
 0x151   :  { %935 = vmatpush1.bf16.msra.mxu0 %v3507_v60  ;;  %1048 = vmatpush1.bf16.msra.mxu1 %v3509_v62  ;;  %v260_v62 = vadd.f32 %v4377_v35, %v238_v24  ;;  %v340_v59 = vlaneseq }
 0x152   :  { %936 = vmatprep.subr.bf16.mxu0 %v3516_v14  ;;  %1049 = vmatprep.subr.bf16.mxu1 %v3518_v15  ;;  %v3757_v57 = vpop.eup %3756  ;;  %v261_v60 = vadd.f32 %v4377_v35, %v239_v53  ;;  %v241_v0 = vmul.f32 %v4370_v18, %v219_v23 }
 0x153   :  { %v218_v58 = vmul.f32 %v3757_v57, %v4266_v37  ;;  %v341_v24 = vshrl.u32 %v340_v59, 7 }
 0x154   :  { %v271_v63 = vpack.c.bf16 %v261_v60, %v260_v62  ;;  %v263_v2 = vadd.f32 %v4377_v35, %v241_v0 }
 0x155   :  { %937 = vmatpush1.bf16.msra.mxu0 %v3515_v44  ;;  %1050 = vmatpush1.bf16.msra.mxu1 %v3517_v7  ;;  %v240_v15 = vmul.f32 %v4370_v18, %v218_v58  ;;  %v342_v0 = vsub.s32 0, %v341_v24  ;;  %v358_v59 = vsub.s32 4, %v341_v24 }
 0x156   :  { %938 = vmatprep.subr.bf16.mxu0 %v3524_v50  ;;  %1051 = vmatprep.subr.bf16.mxu1 %v3526_v19 }
 0x157   :  { %763 = vmatmul.mubr.bf16.gmra.mrb[12].mxu0 %v4518_v28  ;;  %876 = vmatmul.mubr.bf16.gmra.mrb[12].mxu1 %v4518_v28  ;;  %v262_v5 = vadd.f32 %v4377_v35, %v240_v15 }
 0x158   :  { %772 = vmatprep.mubr.bf16.mxu0 %v4034_v11  ;;  %885 = vmatprep.mubr.bf16.mxu1 %v4034_v11 }
 0x159   :  { %939 = vmatpush1.bf16.msra.mxu0 %v3523_v27  ;;  %1052 = vmatpush1.bf16.msra.mxu1 %v3525_v29  ;;  %v3759_v14 = vpop.eup %3758  ;;  %v272_v33 = vpack.c.bf16 %v263_v2, %v262_v5 }
 0x15a   :  { %940 = vmatprep.subr.bf16.mxu0 %v3532_v31  ;;  %1053 = vmatprep.subr.bf16.mxu1 %v3534_v32  ;;  %v3761_v1 = vpop.eup %3760  ;;  %v221_v38 = vmul.f32 %v3759_v14, %v4291_v56  ;;  %v350_v14 = vsub.s32 2, %v341_v24 }
 0x15b   :  { %v220_v37 = vmul.f32 %v3761_v1, %v4288_v55  ;;  %v3698_v55 = vld [vmem:[%s6717_s5 + $0x40] sm:$0xff]  }
 0x15c   :  { %v243_v34 = vmul.f32 %v4370_v18, %v221_v38  ;;  %v338_v38 = vld [vmem:[%s6718_s4] sm:$0xff] }
 0x15d   :  { %941 = vmatpush1.bf16.msra.mxu0 %v3531_v47  ;;  %1054 = vmatpush1.bf16.msra.mxu1 %v3533_v12  ;;  %v242_v39 = vmul.f32 %v4370_v18, %v220_v37  ;;  %v3699_v18 = vld [vmem:[%s6717_s5] sm:$0xff]   ;;  %v4689_v2 = vrot.slane %v338_v38, %v342_v0  ;;  %v4691_v37 = vrot.slane %v338_v38, %v350_v14 }
 0x15e   :  { %v265_v41 = vadd.f32 %v4377_v35, %v243_v34  ;;  %3568 = vmatprep.subr.bf16.mxu0 %v3698_v55  ;;  %v3708_v34 = vld [vmem:[%s6717_s5 + $0xd0] sm:$0xff]  }
 0x15f   :  { %773 = vmatmul.mubr.bf16.gmra.mrb[16].mxu0 %v270_v52  ;;  %886 = vmatmul.mubr.bf16.gmra.mrb[16].mxu1 %v270_v52  ;;  %v264_v56 = vadd.f32 %v4377_v35, %v242_v39  ;;  %v3700_v35 = vld [vmem:[%s6717_s5 + $0xc0] sm:$0xff]   ;;  %v3709_v55 = vld [vmem:[%s6717_s5 + $0x90] sm:$0xff]  }
 0x160   :  { %782 = vmatprep.mubr.bf16.mxu0 %v4034_v11  ;;  %895 = vmatprep.mubr.bf16.mxu1 %v4034_v11 }
 0x161   :  { %v273_v44 = vpack.c.bf16 %v265_v41, %v264_v56  ;;  %3632 = vmatprep.subr.bf16.mxu1 %v3700_v35 }
 0x167   :  { %783 = vmatmul.mubr.bf16.gmra.mrb[20].mxu0 %v271_v63  ;;  %896 = vmatmul.mubr.bf16.gmra.mrb[20].mxu1 %v271_v63 }
 0x168   :  { %792 = vmatprep.mubr.bf16.mxu0 %v4034_v11  ;;  %905 = vmatprep.mubr.bf16.mxu1 %v4034_v11 }
 0x16f   :  { %793 = vmatmul.mubr.bf16.gmra.mrb[24].mxu0 %v272_v33  ;;  %906 = vmatmul.mubr.bf16.gmra.mrb[24].mxu1 %v272_v33 }
 0x170   :  { %802 = vmatprep.mubr.bf16.mxu0 %v4034_v11  ;;  %915 = vmatprep.mubr.bf16.mxu1 %v4034_v11 }
 0x177   :  { %803 = vmatmul.mubr.bf16.gmra.mrb[28].mxu0 %v273_v44  ;;  %916 = vmatmul.mubr.bf16.gmra.mrb[28].mxu1 %v273_v44 }
 0x178   :  { %958 = vmatprep.mubr.bf16.mxu0 %v4034_v11  ;;  %1071 = vmatprep.mubr.bf16.mxu1 %v4034_v11 }
 0x17f   :  { %959 = vmatmul.mubr.bf16.vlgmr.msra.gmra.mrb[32].mxu0 %v4396_v43  ;;  %1072 = vmatmul.mubr.bf16.vlgmr.msra.gmra.mrb[32].mxu1 %v4396_v43  ;;  %v3702_v43 = vld [vmem:[%s6717_s5 + $0x48] sm:$0xff]  }
 0x180   :  { %968 = vmatprep.mubr.bf16.mxu0 %v4034_v11  ;;  %1081 = vmatprep.mubr.bf16.mxu1 %v4034_v11 }
 0x181   :  { %3569 = vmatpush3.bf16.msra.mxu0 %v3699_v18 }
 0x182   :  { %3570 = vmatprep.subr.bf16.mxu0 %v3702_v43 }
 0x187   :  { %969 = vmatmul.mubr.bf16.gmra.mrb[36].mxu0 %v4446_v17  ;;  %1082 = vmatmul.mubr.bf16.gmra.mrb[36].mxu1 %v4446_v17  ;;  %v3703_v17 = vld [vmem:[%s6717_s5 + $0x8] sm:$0xff]  }
 0x188   :  { %978 = vmatprep.mubr.bf16.mxu0 %v4034_v11  ;;  %1091 = vmatprep.mubr.bf16.mxu1 %v4034_v11 }
 0x189   :  { %3571 = vmatpush3.bf16.msra.mxu0 %v3703_v17 }
 0x18a   :  { %3572 = vmatprep.subr.bf16.mxu0 %v3706_v46  ;;  %v354_v46 = vsub.s32 3, %v341_v24 }
 0x18c   :  { %v4721_v14 = vrot.slane %v338_v38, %v354_v46 }
 0x18d   :  { %3573 = vmatpush3.bf16.msra.mxu0 %v3707_v54  ;;  %v366_v54 = vsub.s32 6, %v341_v24 }
 0x18f   :  { %979 = vmatmul.mubr.bf16.gmra.mrb[40].mxu0 %v4482_v61  ;;  %1092 = vmatmul.mubr.bf16.gmra.mrb[40].mxu1 %v4482_v61  ;;  %v3704_v61 = vld [vmem:[%s6717_s5 + $0xc8] sm:$0xff]  }
 0x190   :  { %988 = vmatprep.mubr.bf16.mxu0 %v4034_v11  ;;  %1101 = vmatprep.mubr.bf16.mxu1 %v4034_v11 }
 0x197   :  { %989 = vmatmul.mubr.bf16.gmra.mrb[44].mxu0 %v4518_v28  ;;  %1102 = vmatmul.mubr.bf16.gmra.mrb[44].mxu1 %v4518_v28 }
 0x198   :  { %998 = vmatprep.mubr.bf16.mxu0 %v4034_v11  ;;  %1111 = vmatprep.mubr.bf16.mxu1 %v4034_v11 }
 0x19f   :  { %999 = vmatmul.mubr.bf16.gmra.mrb[48].mxu0 %v270_v52  ;;  %1112 = vmatmul.mubr.bf16.gmra.mrb[48].mxu1 %v270_v52 }
 0x1a0   :  { %1008 = vmatprep.mubr.bf16.mxu0 %v4034_v11  ;;  %1121 = vmatprep.mubr.bf16.mxu1 %v4034_v11 }
 0x1a7   :  { %1009 = vmatmul.mubr.bf16.gmra.mrb[52].mxu0 %v271_v63  ;;  %1122 = vmatmul.mubr.bf16.gmra.mrb[52].mxu1 %v271_v63 }
 0x1a8   :  { %1018 = vmatprep.mubr.bf16.mxu0 %v4034_v11  ;;  %1131 = vmatprep.mubr.bf16.mxu1 %v4034_v11 }
 0x1af   :  { %1019 = vmatmul.mubr.bf16.gmra.mrb[56].mxu0 %v272_v33  ;;  %1132 = vmatmul.mubr.bf16.gmra.mrb[56].mxu1 %v272_v33 }
 0x1b0   :  { %1028 = vmatprep.mubr.bf16.mxu0 %v4034_v11  ;;  %1141 = vmatprep.mubr.bf16.mxu1 %v4034_v11  ;;  %v3701_v11 = vld [vmem:[%s6717_s5 + $0x80] sm:$0xff]  }
 0x1b1   :  { %3633 = vmatpush3.bf16.msra.mxu1 %v3701_v11 }
 0x1b2   :  { %3634 = vmatprep.subr.bf16.mxu1 %v3704_v61 }
 0x1b5   :  { %3635 = vmatpush3.bf16.msra.mxu1 %v3705_v51  ;;  %v346_v51 = vsub.s32 1, %v341_v24 }
 0x1b6   :  { %3636 = vmatprep.subr.bf16.mxu1 %v3708_v34  ;;  %v362_v34 = vsub.s32 5, %v341_v24 }
 0x1b7   :  { %1029 = vmatmul.mubr.bf16.gmra.mrb[60].mxu0 %v273_v44  ;;  %1142 = vmatmul.mubr.bf16.gmra.mrb[60].mxu1 %v273_v44  ;;  %v4719_v0 = vrot.slane %v338_v38, %v346_v51 }
 0x1b9   :  { %3637 = vmatpush3.bf16.msra.mxu1 %v3709_v55 }
 0x212   :  { %v4600_v45 = vpop.f32.mrb[0].mxu0  ;;  %v4602_v6 = vpop.f32.mrb[0].mxu1 }
 0x213   :  { %v4604_v7 = vpop.f32.mrb[1].mxu0  ;;  %v4606_v16 = vpop.f32.mrb[1].mxu1 }
 0x214   :  { %v4608_v50 = vpop.f32.mrb[2].mxu0  ;;  %v4610_v19 = vpop.f32.mrb[2].mxu1 }
 0x215   :  { %v4612_v8 = vpop.f32.mrb[3].mxu0  ;;  %v4614_v9 = vpop.f32.mrb[3].mxu1 }
 0x21a   :  { %v4616_v20 = vpop.f32.mrb[4].mxu0  ;;  %v4618_v4 = vpop.f32.mrb[4].mxu1 }
 0x21b   :  { %v4620_v21 = vpop.f32.mrb[5].mxu0  ;;  %v4622_v22 = vpop.f32.mrb[5].mxu1 }
 0x21c   :  { %v4624_v25 = vpop.f32.mrb[6].mxu0  ;;  %v4626_v26 = vpop.f32.mrb[6].mxu1 }
 0x21d   :  { %v4628_v27 = vpop.f32.mrb[7].mxu0  ;;  %v4630_v28 = vpop.f32.mrb[7].mxu1 }
 0x222   :  { %v4632_v3 = vpop.f32.mrb[8].mxu0  ;;  %v4634_v29 = vpop.f32.mrb[8].mxu1 }
 0x223   :  { %v4636_v42 = vpop.f32.mrb[9].mxu0  ;;  %v4638_v30 = vpop.f32.mrb[9].mxu1 }
 0x224   :  { %v4640_v31 = vpop.f32.mrb[10].mxu0  ;;  %v4642_v32 = vpop.f32.mrb[10].mxu1 }
 0x225   :  { %v4644_v10 = vpop.f32.mrb[11].mxu0  ;;  %v4646_v40 = vpop.f32.mrb[11].mxu1 }
 0x22a   :  { %v4651_v47 = vpop.f32.mrb[12].mxu0  ;;  %v4653_v36 = vpop.f32.mrb[12].mxu1 }
 0x22b   :  { %v4655_v48 = vpop.f32.mrb[13].mxu0  ;;  %v4657_v12 = vpop.f32.mrb[13].mxu1 }
 0x22c   :  { %v4659_v49 = vpop.f32.mrb[14].mxu0  ;;  %v4661_v13 = vpop.f32.mrb[14].mxu1 }
 0x22d   :  { %v4663_v52 = vpop.f32.mrb[15].mxu0  ;;  %v4665_v53 = vpop.f32.mrb[15].mxu1 }
 0x232   :  { %v4670_v57 = vpop.f32.mrb[16].mxu0  ;;  %v4672_v23 = vpop.f32.mrb[16].mxu1 }
 0x233   :  { %v4674_v60 = vpop.f32.mrb[17].mxu0  ;;  %v4676_v58 = vpop.f32.mrb[17].mxu1 }
 0x234   :  { %v4678_v62 = vpop.f32.mrb[18].mxu0  ;;  %v4680_v63 = vpop.f32.mrb[18].mxu1 }
 0x235   :  { %v4682_v15 = vpop.f32.mrb[19].mxu0  ;;  %v4684_v1 = vpop.f32.mrb[19].mxu1 }
 0x23a   :  { %v784_v5 = vpop.f32.mrb[20].mxu0  ;;  %v897_v33 = vpop.f32.mrb[20].mxu1 }
 0x23b   :  { %v4697_v39 = vadd.f32 %v784_v5, %v4689_v2  ;;  %v4700_v41 = vadd.f32 %v897_v33, %v4691_v37  ;;  %v4702_v56 = vpop.f32.mrb[21].mxu0  ;;  %v4704_v44 = vpop.f32.mrb[21].mxu1 }
 0x23c   :  { %v788_v18 = vpop.f32.mrb[22].mxu0  ;;  %v901_v35 = vpop.f32.mrb[22].mxu1 }
 0x23d   :  { %6727 = vst [vmem:[#allocation2_spill] sm:$0xff] %v4697_v39  ;;  %6728 = vst [vmem:[#allocation3_spill] sm:$0xff] %v4700_v41  ;;  %v4710_v11 = vadd.f32 %v788_v18, %v4689_v2  ;;  %v4713_v43 = vadd.f32 %v901_v35, %v4691_v37  ;;  %v4715_v17 = vpop.f32.mrb[23].mxu0  ;;  %v4717_v61 = vpop.f32.mrb[23].mxu1  ;;  %v370_v18 = vsub.s32 7, %v341_v24 }
 0x23e   :  { %6731 = vst [vmem:[#allocation6_spill] sm:$0xff] %v4717_v61 }
 0x23f   :  { %6729 = vst [vmem:[#allocation4_spill] sm:$0xff] %v4710_v11  ;;  %6730 = vst [vmem:[#allocation5_spill] sm:$0xff] %v4713_v43 }
 0x242   :  { %v794_v5 = vpop.f32.mrb[24].mxu0  ;;  %v907_v33 = vpop.f32.mrb[24].mxu1 }
 0x243   :  { %v4724_v35 = vadd.f32 %v794_v5, %v4689_v2  ;;  %v4727_v43 = vadd.f32 %v907_v33, %v4691_v37  ;;  %v796_v41 = vpop.f32.mrb[25].mxu0  ;;  %v909_v55 = vpop.f32.mrb[25].mxu1  ;;  %v4741_v33 = vrot.slane %v338_v38, %v358_v59  ;;  %v4761_v59 = vadd.f32 %v4602_v6, %v4691_v37 }
 0x244   :  { %v4730_v11 = vadd.f32 %v796_v41, %v4719_v0  ;;  %v4733_v51 = vadd.f32 %v909_v55, %v4721_v14  ;;  %v798_v46 = vpop.f32.mrb[26].mxu0  ;;  %v911_v39 = vpop.f32.mrb[26].mxu1  ;;  %v4781_v6 = vadd.f32 %v4612_v8, %v4719_v0  ;;  %v4801_v8 = vadd.f32 %v4622_v22, %v4721_v14 }
 0x245   :  { %6732 = vst [vmem:[#allocation7_spill] sm:$0xff] %v4724_v35  ;;  %6733 = vst [vmem:[#allocation8_spill] sm:$0xff] %v4727_v43  ;;  %v4736_v61 = vadd.f32 %v798_v46, %v4689_v2  ;;  %v4739_v24 = vadd.f32 %v911_v39, %v4691_v37  ;;  %v800_v5 = vpop.f32.mrb[27].mxu0  ;;  %v913_v35 = vpop.f32.mrb[27].mxu1  ;;  %v4743_v43 = vrot.slane %v338_v38, %v366_v54 }
 0x246   :  { %6734 = vst [vmem:[#allocation9_spill] sm:$0xff] %v4730_v11  ;;  %6735 = vst [vmem:[#allocation10_spill] sm:$0xff] %v4733_v51  ;;  %v4746_v41 = vadd.f32 %v800_v5, %v4719_v0  ;;  %v4749_v55 = vadd.f32 %v913_v35, %v4721_v14  ;;  %v4751_v51 = vrot.slane %v338_v38, %v362_v34 }
 0x247   :  { %6736 = vst [vmem:[#allocation11_spill] sm:$0xff] %v4736_v61  ;;  %6737 = vst [vmem:[#allocation12_spill] sm:$0xff] %v4739_v24  ;;  %v4753_v11 = vrot.slane %v338_v38, %v370_v18  ;;  %v4757_v39 = vadd.f32 %v4600_v45, %v4689_v2  ;;  %v4765_v54 = vadd.f32 %v4604_v7, %v4719_v0 }
 0x248   :  { %6738 = vst [vmem:[#allocation13_spill] sm:$0xff] %v4746_v41  ;;  %6739 = vst [vmem:[#allocation14_spill] sm:$0xff] %v4749_v55  ;;  %v4769_v35 = vadd.f32 %v4606_v16, %v4721_v14  ;;  %v4773_v38 = vadd.f32 %v4608_v50, %v4689_v2  ;;  %v4777_v45 = vadd.f32 %v4610_v19, %v4691_v37 }
 0x249   :  { %6740 = vst [vmem:[#allocation15_spill] sm:$0xff] %v4765_v54  ;;  %6742 = vst [vmem:[#allocation17_spill] sm:$0xff] %v4781_v6  ;;  %v4785_v7 = vadd.f32 %v4614_v9, %v4721_v14  ;;  %v4789_v16 = vadd.f32 %v4616_v20, %v4689_v2  ;;  %v4793_v50 = vadd.f32 %v4618_v4, %v4691_v37 }
 0x24a   :  { %6741 = vst [vmem:[#allocation16_spill] sm:$0xff] %v4769_v35  ;;  %v4797_v19 = vadd.f32 %v4620_v21, %v4719_v0  ;;  %6747 = vst [vmem:[#allocation22_spill] sm:$0xff] %v4801_v8  ;;  %v4805_v9 = vadd.f32 %v4624_v25, %v4689_v2  ;;  %v4809_v20 = vadd.f32 %v4626_v26, %v4691_v37  ;;  %v804_v34 = vpop.f32.mrb[28].mxu0  ;;  %v917_v18 = vpop.f32.mrb[28].mxu1 }
 0x24b   :  { %6743 = vst [vmem:[#allocation18_spill] sm:$0xff] %v4785_v7  ;;  %6744 = vst [vmem:[#allocation19_spill] sm:$0xff] %v4789_v16  ;;  %v4813_v4 = vadd.f32 %v4628_v27, %v4719_v0  ;;  %v4817_v21 = vadd.f32 %v4630_v28, %v4721_v14  ;;  %v4821_v22 = vadd.f32 %v4632_v3, %v4689_v2  ;;  %v806_v46 = vpop.f32.mrb[29].mxu0  ;;  %v919_v5 = vpop.f32.mrb[29].mxu1 }
 0x24c   :  { %6745 = vst [vmem:[#allocation20_spill] sm:$0xff] %v4793_v50  ;;  %6746 = vst [vmem:[#allocation21_spill] sm:$0xff] %v4797_v19  ;;  %v4824_v25 = vadd.f32 %v804_v34, %v4689_v2  ;;  %v4827_v26 = vadd.f32 %v917_v18, %v4691_v37  ;;  %v4831_v27 = vadd.f32 %v4634_v29, %v4691_v37  ;;  %v808_v34 = vpop.f32.mrb[30].mxu0 }
 0x24d   :  { %6748 = vst [vmem:[#allocation23_spill] sm:$0xff] %v4805_v9  ;;  %6749 = vst [vmem:[#allocation24_spill] sm:$0xff] %v4809_v20  ;;  %v4835_v28 = vadd.f32 %v4636_v42, %v4719_v0  ;;  %v4838_v24 = vadd.f32 %v806_v46, %v4719_v0  ;;  %v4841_v3 = vadd.f32 %v919_v5, %v4721_v14  ;;  %v810_v46 = vpop.f32.mrb[31].mxu0 }
 0x24e   :  { %6750 = vst [vmem:[#allocation25_spill] sm:$0xff] %v4813_v4  ;;  %6751 = vst [vmem:[#allocation26_spill] sm:$0xff] %v4817_v21  ;;  %v4845_v18 = vadd.f32 %v4638_v30, %v4721_v14  ;;  %v4849_v29 = vadd.f32 %v4640_v31, %v4689_v2  ;;  %v4859_v5 = vadd.f32 %v4642_v32, %v4691_v37 }
 0x24f   :  { %6752 = vst [vmem:[#allocation27_spill] sm:$0xff] %v4821_v22  ;;  %6753 = vst [vmem:[#allocation28_spill] sm:$0xff] %v4824_v25  ;;  %v921_v25 = vpop.f32.mrb[30].mxu1  ;;  %v4863_v30 = vadd.f32 %v4644_v10, %v4719_v0  ;;  %v4881_v32 = vadd.f32 %v4653_v36, %v4691_v37  ;;  %v4885_v10 = vadd.f32 %v4655_v48, %v4719_v0 }
 0x250   :  { %6754 = vst [vmem:[#allocation29_spill] sm:$0xff] %v4827_v26  ;;  %6755 = vst [vmem:[#allocation30_spill] sm:$0xff] %v4831_v27  ;;  %v4852_v26 = vadd.f32 %v808_v34, %v4689_v2  ;;  %v4855_v42 = vadd.f32 %v921_v25, %v4691_v37  ;;  %v4873_v25 = vadd.f32 %v4646_v40, %v4721_v14 }
 0x251   :  { %6756 = vst [vmem:[#allocation31_spill] sm:$0xff] %v4835_v28  ;;  %6757 = vst [vmem:[#allocation32_spill] sm:$0xff] %v4838_v24  ;;  %v923_v24 = vpop.f32.mrb[31].mxu1  ;;  %v4877_v34 = vadd.f32 %v4651_v47, %v4689_v2  ;;  %v4893_v40 = vadd.f32 %v4659_v49, %v4689_v2  ;;  %v4897_v47 = vadd.f32 %v4661_v13, %v4691_v37 }
 0x252   :  { %6758 = vst [vmem:[#allocation33_spill] sm:$0xff] %v4841_v3  ;;  %6759 = vst [vmem:[#allocation34_spill] sm:$0xff] %v4845_v18  ;;  %v4866_v3 = vadd.f32 %v810_v46, %v4719_v0  ;;  %v4869_v31 = vadd.f32 %v923_v24, %v4721_v14  ;;  %v4889_v24 = vadd.f32 %v4657_v12, %v4721_v14  ;;  %v960_v46 = vpop.f32.mrb[32].mxu0 }
 0x253   :  { %6760 = vst [vmem:[#allocation35_spill] sm:$0xff] %v4849_v29  ;;  %6761 = vst [vmem:[#allocation36_spill] sm:$0xff] %v4852_v26  ;;  %v4901_v36 = vadd.f32 %v4663_v52, %v4719_v0  ;;  %v4905_v48 = vadd.f32 %v4665_v53, %v4721_v14  ;;  %v4909_v12 = vadd.f32 %v4670_v57, %v4689_v2 }
 0x254   :  { %6762 = vst [vmem:[#allocation37_spill] sm:$0xff] %v4855_v42  ;;  %6763 = vst [vmem:[#allocation38_spill] sm:$0xff] %v4859_v5  ;;  %v4913_v49 = vadd.f32 %v4672_v23, %v4691_v37  ;;  %v4917_v13 = vadd.f32 %v4674_v60, %v4719_v0  ;;  %v4921_v52 = vadd.f32 %v4676_v58, %v4721_v14 }
 0x255   :  { %6764 = vst [vmem:[#allocation39_spill] sm:$0xff] %v4863_v30  ;;  %6765 = vst [vmem:[#allocation40_spill] sm:$0xff] %v4866_v3  ;;  %v4925_v53 = vadd.f32 %v4678_v62, %v4689_v2  ;;  %v4929_v57 = vadd.f32 %v4680_v63, %v4691_v37  ;;  %v4933_v23 = vadd.f32 %v4682_v15, %v4719_v0  ;;  %v962_v63 = vpop.f32.mrb[33].mxu0 }
 0x256   :  { %6766 = vst [vmem:[#allocation41_spill] sm:$0xff] %v4869_v31  ;;  %6767 = vst [vmem:[#allocation42_spill] sm:$0xff] %v4873_v25  ;;  %v1073_v31 = vpop.f32.mrb[32].mxu1  ;;  %v4937_v60 = vadd.f32 %v4684_v1, %v4721_v14  ;;  %v4941_v58 = vadd.f32 %v4702_v56, %v4719_v0  ;;  %v961_v62 = vadd.f32 %v960_v46, %v4741_v33  ;;  %v964_v56 = vpop.f32.mrb[34].mxu0  ;;  %v6787_v46 = vld [vmem:[#allocation6_spill] sm:$0xff]  ;;  %v3711_v25 = vld [vmem:[%s6717_s5 + $0x18] sm:$0xff]  }
 0x257   :  { %6768 = vst [vmem:[#allocation43_spill] sm:$0xff] %v4877_v34  ;;  %6769 = vst [vmem:[#allocation44_spill] sm:$0xff] %v4881_v32  ;;  %v1074_v2 = vadd.f32 %v1073_v31, %v4743_v43  ;;  %v1075_v37 = vpop.f32.mrb[33].mxu1  ;;  %v4947_v15 = vadd.f32 %v4704_v44, %v4721_v14  ;;  %v4951_v3 = vadd.f32 %v4715_v17, %v4719_v0 }
 0x258   :  { %6770 = vst [vmem:[#allocation45_spill] sm:$0xff] %v4885_v10  ;;  %6771 = vst [vmem:[#allocation46_spill] sm:$0xff] %v4889_v24  ;;  %v963_v1 = vadd.f32 %v962_v63, %v4751_v51  ;;  %v1076_v42 = vadd.f32 %v1075_v37, %v4753_v11  ;;  %v1077_v26 = vpop.f32.mrb[34].mxu1  ;;  %v4957_v61 = vadd.f32 %v6787_v46, %v4721_v14  ;;  %v4959_v31 = vmul.f32 0.5, %v961_v62 }
 0x259   :  { %6772 = vst [vmem:[#allocation47_spill] sm:$0xff] %v4893_v40  ;;  %6773 = vst [vmem:[#allocation48_spill] sm:$0xff] %v4897_v47  ;;  %v1216_v55 = vmul.f32 0.70710677, %v961_v62  ;;  %v1218_v41 = vmul.f32 0.70710677, %v1074_v2 }
 0x25a   :  { %6774 = vst [vmem:[#allocation49_spill] sm:$0xff] %v4901_v36  ;;  %6775 = vst [vmem:[#allocation50_spill] sm:$0xff] %v4905_v48  ;;  %v4961_v44 = vmul.f32 0.5, %v1074_v2  ;;  %v1217_v17 = vmul.f32 0.70710677, %v963_v1  ;;  %v4968_v46 = vmul.f32 0.5, %v1076_v42 }
 0x25b   :  { %6776 = vst [vmem:[#allocation51_spill] sm:$0xff] %v4909_v12  ;;  %6777 = vst [vmem:[#allocation52_spill] sm:$0xff] %v4913_v49  ;;  %v1219_v0 = vmul.f32 0.70710677, %v1076_v42  ;;  %vm1280_vm0 = vcmp.ge.f32.partialorder %v1216_v55, 0.0  ;;  %vm1282_vm1 = vcmp.ge.f32.partialorder %v1218_v41, 0.0 }
 0x25c   :  { %6778 = vst [vmem:[#allocation53_spill] sm:$0xff] %v4917_v13  ;;  %6779 = vst [vmem:[#allocation54_spill] sm:$0xff] %v4921_v52  ;;  %v1408_v63 = vand.u32 2147483647, %v1216_v55  ;;  %v1410_v37 = vand.u32 2147483647, %v1218_v41 }
 0x25d   :  { %6780 = vst [vmem:[#allocation55_spill] sm:$0xff] %v4925_v53  ;;  %6781 = vst [vmem:[#allocation56_spill] sm:$0xff] %v4929_v57  ;;  %vm1281_vm2 = vcmp.ge.f32.partialorder %v1217_v17, 0.0  ;;  %v1409_v14 = vand.u32 2147483647, %v1217_v17  ;;  %v966_v62 = vpop.f32.mrb[35].mxu0 }
 0x25e   :  { %6782 = vst [vmem:[#allocation57_spill] sm:$0xff] %v4933_v23  ;;  %6783 = vst [vmem:[#allocation58_spill] sm:$0xff] %v4937_v60  ;;  %v2304_v2 = vsub.f32 0.0, %v1408_v63  ;;  %v1474_v57 = vmul.f32 0.3275911, %v1410_v37  ;;  %v2306_v49 = vsub.f32 0.0, %v1410_v37  ;;  %v967_v5 = vadd.f32 %v966_v62, %v4751_v51 }
 0x25f   :  { %6784 = vst [vmem:[#allocation59_spill] sm:$0xff] %v4941_v58  ;;  %6785 = vst [vmem:[#allocation60_spill] sm:$0xff] %v4947_v15  ;;  %v4963_v15 = vmul.f32 0.5, %v963_v1  ;;  %v1473_v53 = vmul.f32 0.3275911, %v1409_v14  ;;  %v2305_v55 = vsub.f32 0.0, %v1409_v14 }
 0x260   :  { %6786 = vst [vmem:[#allocation61_spill] sm:$0xff] %v4951_v3  ;;  %6788 = vst [vmem:[#allocation6_spill] sm:$0xff] %v4957_v61  ;;  %v6721_v3 = vmov -1.0   ;;  %v1472_v61 = vmul.f32 0.3275911, %v1408_v63  ;;  %vm1283_vm3 = vcmp.ge.f32.partialorder %v1219_v0, 0.0  ;;  %v2368_v60 = vmul.f32 %v2304_v2, %v1408_v63 }
 0x261   :  { %v4966_v58 = vsel %vm1280_vm0, 1.0, %v6721_v3  ;;  %v4971_v1 = vsel %vm1282_vm1, 1.0, %v6721_v3  ;;  %v1079_v41 = vpop.f32.mrb[35].mxu1  ;;  %v1538_v52 = vadd.f32 1.0, %v1474_v57  ;;  %v2370_v23 = vmul.f32 %v2306_v49, %v1410_v37  ;;  %v4973_v13 = vpop.f32.mrb[36].mxu0  ;;  %v3710_v47 = vld [vmem:[%s6717_s5 + $0x58] sm:$0xff]  }
 0x262   :  { %v1536_v12 = vadd.f32 1.0, %v1472_v61  ;;  %v4975_v42 = vpop.f32.mrb[36].mxu1  ;;  %v4982_v32 = vsel %vm1281_vm2, 1.0, %v6721_v3  ;;  %v1537_v40 = vadd.f32 1.0, %v1473_v53  ;;  %v2369_v34 = vmul.f32 %v2305_v55, %v1409_v14  ;;  %v4984_v24 = vpop.f32.mrb[37].mxu0  ;;  %3574 = vmatprep.subr.bf16.mxu0 %v3710_v47 }
 0x263   :  { %v1411_v48 = vand.u32 2147483647, %v1219_v0  ;;  %v4986_v61 = vpop.f32.mrb[37].mxu1  ;;  %v2432_v49 = vmul.f32 1.442695, %v2368_v60  ;;  %v4990_v57 = vsel %vm1283_vm3, 1.0, %v6721_v3  ;;  %v965_v63 = vadd.f32 %v964_v56, %v4741_v33  ;;  %3575 = vmatpush3.bf16.msra.mxu0 %v3711_v25 }
 0x264   :  { %3762 = vrcp.f32 %v1536_v12  ;;  %v4993_v37 = vpop.f32.mrb[38].mxu0  ;;  %v4995_v17 = vpop.f32.mrb[38].mxu1  ;;  %v2436_v53 = vmul.f32 1.442695, %v2370_v23  ;;  %v2434_v12 = vmul.f32 1.442695, %v2369_v34  ;;  %v1078_v0 = vadd.f32 %v1077_v26, %v4743_v43 }
 0x265   :  { %3764 = vrcp.f32 %v1538_v52  ;;  %v1475_v14 = vmul.f32 0.3275911, %v1411_v48  ;;  %v2307_v2 = vsub.f32 0.0, %v1411_v48  ;;  %v4997_v55 = vpop.f32.mrb[39].mxu0  ;;  %v1220_v60 = vmul.f32 0.70710677, %v965_v63 }
 0x266   :  { %6789 = vst [vmem:[#allocation62_spill] sm:$0xff] %v4997_v55  ;;  %3766 = vpow2.f32 %v2432_v49  ;;  %v5000_v3 = vpop.f32.mrb[39].mxu1  ;;  %v5002_v10 = vmul.f32 0.5, %v965_v63  ;;  %v5005_v52 = vmul.f32 0.5, %v1078_v0  ;;  %v6791_v49 = vmov -1.0   ;;  %v5010_v26 = vpop.f32.mrb[40].mxu0 }
 0x267   :  { %6790 = vst [vmem:[#allocation63_spill] sm:$0xff] %v5000_v3  ;;  %v1539_v36 = vadd.f32 1.0, %v1475_v14  ;;  %v2371_v56 = vmul.f32 %v2307_v2, %v1411_v48  ;;  %3768 = vrcp.f32 %v1537_v40  ;;  %vm1284_vm4 = vcmp.ge.f32.partialorder %v1220_v60, 0.0  ;;  %6792 = vst [vmem:[#allocation64_spill] sm:$0xff] %v5010_v26  ;;  %v5014_v2 = vpop.f32.mrb[40].mxu1  ;;  %v5016_v40 = vpop.f32.mrb[41].mxu0 }
 0x268   :  { %v1412_v47 = vand.u32 2147483647, %v1220_v60  ;;  %3770 = vpow2.f32 %v2436_v53  ;;  %v5008_v34 = vsel %vm1284_vm4, 1.0, %v6791_v49  ;;  %v1222_v27 = vmul.f32 0.70710677, %v1078_v0  ;;  %6793 = vst [vmem:[#allocation65_spill] sm:$0xff] %v5014_v2 }
 0x269   :  { %v2438_v23 = vmul.f32 1.442695, %v2371_v56  ;;  %3772 = vrcp.f32 %v1539_v36  ;;  %v5012_v63 = vmul.f32 0.5, %v967_v5  ;;  %6794 = vst [vmem:[#allocation66_spill] sm:$0xff] %v5016_v40  ;;  %v1221_v53 = vmul.f32 0.70710677, %v967_v5 }
 0x26a   :  { %v1476_v14 = vmul.f32 0.3275911, %v1412_v47  ;;  %v2308_v48 = vsub.f32 0.0, %v1412_v47  ;;  %3774 = vpow2.f32 %v2434_v12  ;;  %vm1286_vm5 = vcmp.ge.f32.partialorder %v1222_v27, 0.0  ;;  %v5018_v60 = vpop.f32.mrb[41].mxu1  ;;  %v5021_v36 = vpop.f32.mrb[42].mxu0 }
 0x26b   :  { %v1414_v62 = vand.u32 2147483647, %v1222_v27  ;;  %6795 = vst [vmem:[#allocation67_spill] sm:$0xff] %v5018_v60  ;;  %3776 = vpow2.f32 %v2438_v23  ;;  %v1080_v29 = vadd.f32 %v1079_v41, %v4753_v11  ;;  %6796 = vst [vmem:[#allocation68_spill] sm:$0xff] %v5021_v36  ;;  %v5023_v22 = vpop.f32.mrb[42].mxu1  ;;  %vm1285_vm6 = vcmp.ge.f32.partialorder %v1221_v53, 0.0 }
 0x26c   :  { %v1540_v56 = vadd.f32 1.0, %v1476_v14  ;;  %v2372_v0 = vmul.f32 %v2308_v48, %v1412_v47  ;;  %6797 = vst [vmem:[#allocation69_spill] sm:$0xff] %v5023_v22  ;;  %v1413_v30 = vand.u32 2147483647, %v1221_v53  ;;  %v5032_v47 = vsel %vm1286_vm5, 1.0, %v6791_v49  ;;  %v5037_v14 = vpop.f32.mrb[43].mxu0 }
 0x26d   :  { %v1478_v18 = vmul.f32 0.3275911, %v1414_v62  ;;  %v2310_v12 = vsub.f32 0.0, %v1414_v62  ;;  %v5035_v41 = vsel %vm1285_vm6, 1.0, %v6791_v49  ;;  %6798 = vst [vmem:[#allocation70_spill] sm:$0xff] %v5037_v14  ;;  %v5039_v48 = vpop.f32.mrb[43].mxu1 }
 0x26e   :  { %v5028_v5 = vpop.eup %3762  ;;  %3778 = vrcp.f32 %v1540_v56  ;;  %v2440_v23 = vmul.f32 1.442695, %v2372_v0  ;;  %6799 = vst [vmem:[#allocation71_spill] sm:$0xff] %v5039_v48  ;;  %v1477_v56 = vmul.f32 0.3275911, %v1413_v30  ;;  %v2309_v9 = vsub.f32 0.0, %v1413_v30 }
 0x26f   :  { %v5041_v28 = vpop.eup %3764  ;;  %v1728_v53 = vmul.f32 1.0614054, %v5028_v5  ;;  %v1542_v20 = vadd.f32 1.0, %v1478_v18  ;;  %v2374_v50 = vmul.f32 %v2310_v12, %v1414_v62  ;;  %v5047_v16 = vmul.f32 0.5, %v1080_v29  ;;  %v5049_v19 = vpop.f32.mrb[44].mxu0 }
 0x270   :  { %v5044_v0 = vpop.eup %3766  ;;  %v1730_v27 = vmul.f32 1.0614054, %v5041_v28  ;;  %v1223_v21 = vmul.f32 0.70710677, %v1080_v29  ;;  %v1541_v4 = vadd.f32 1.0, %v1477_v56  ;;  %6801 = vst [vmem:[#allocation73_spill] sm:$0xff] %v5049_v19  ;;  %v2373_v18 = vmul.f32 %v2309_v9, %v1413_v30 }
 0x271   :  { %6800 = vst [vmem:[#allocation72_spill] sm:$0xff] %v5047_v16  ;;  %v1792_v25 = vadd.f32 -1.4531521, %v1728_v53  ;;  %3780 = vrcp.f32 %v1542_v20  ;;  %v2444_v8 = vmul.f32 1.442695, %v2374_v50  ;;  %v5051_v7 = vpop.eup %3768  ;;  %v5053_v12 = vpop.f32.mrb[44].mxu1 }
 0x272   :  { %v1794_v35 = vadd.f32 -1.4531521, %v1730_v27  ;;  %3782 = vpow2.f32 %v2440_v23  ;;  %v1415_v62 = vand.u32 2147483647, %v1223_v21  ;;  %6802 = vst [vmem:[#allocation74_spill] sm:$0xff] %v5053_v12  ;;  %v5055_v6 = vpop.eup %3770  ;;  %vm1287_vm7 = vcmp.ge.f32.partialorder %v1223_v21, 0.0 }
 0x273   :  { %v1856_v54 = vmul.f32 %v5028_v5, %v1792_v25  ;;  %v1729_v29 = vmul.f32 1.0614054, %v5051_v7  ;;  %3784 = vpow2.f32 %v2444_v8  ;;  %v5059_v50 = vpop.eup %3772  ;;  %v2442_v53 = vmul.f32 1.442695, %v2373_v18  ;;  %v5062_v23 = vpop.f32.mrb[45].mxu0  ;;  %v3712_v18 = vld [vmem:[%s6717_s5 + $0xd8] sm:$0xff]  }
 0x274   :  { %v1858_v20 = vmul.f32 %v5041_v28, %v1794_v35  ;;  %3786 = vrcp.f32 %v1541_v4  ;;  %v1479_v56 = vmul.f32 0.3275911, %v1415_v62  ;;  %6803 = vst [vmem:[#allocation75_spill] sm:$0xff] %v5062_v23  ;;  %v5064_v9 = vpop.eup %3774  ;;  %v1731_v12 = vmul.f32 1.0614054, %v5059_v50  ;;  %3638 = vmatprep.subr.bf16.mxu1 %v3712_v18  ;;  %v5093_v18 = vpop.f32.mrb[45].mxu1 }
 0x275   :  { %v1920_v30 = vadd.f32 1.4214138, %v1856_v54  ;;  %v1793_v27 = vadd.f32 -1.4531521, %v1729_v29  ;;  %v971_v25 = vadd.f32 %v4973_v13, %v4741_v33  ;;  %v5069_v8 = vpop.eup %3776  ;;  %v5072_v19 = vsel %vm1287_vm7, 1.0, %v6791_v49  ;;  %v3713_v13 = vld [vmem:[%s6717_s5 + $0x98] sm:$0xff]  }
 0x276   :  { %v1922_v21 = vadd.f32 1.4214138, %v1858_v20  ;;  %v1543_v35 = vadd.f32 1.0, %v1479_v56  ;;  %v2311_v4 = vsub.f32 0.0, %v1415_v62  ;;  %v1795_v23 = vadd.f32 -1.4531521, %v1731_v12  ;;  %3639 = vmatpush3.bf16.msra.mxu1 %v3713_v13 }
 0x277   :  { %v1984_v54 = vmul.f32 %v5028_v5, %v1920_v30  ;;  %v1857_v29 = vmul.f32 %v5051_v7, %v1793_v27  ;;  %3788 = vpow2.f32 %v2442_v53  ;;  %v1224_v14 = vmul.f32 0.70710677, %v971_v25  ;;  %6805 = vst [vmem:[#allocation77_spill] sm:$0xff] %v5093_v18 }
 0x278   :  { %v5082_v20 = vpop.eup %3778  ;;  %v1986_v48 = vmul.f32 %v5041_v28, %v1922_v21  ;;  %3790 = vrcp.f32 %v1543_v35  ;;  %v2375_v56 = vmul.f32 %v2311_v4, %v1415_v62  ;;  %v1859_v30 = vmul.f32 %v5059_v50, %v1795_v23 }
 0x279   :  { %v2048_v22 = vadd.f32 -0.28449672, %v1984_v54  ;;  %v1921_v36 = vadd.f32 1.4214138, %v1857_v29  ;;  %v1732_v27 = vmul.f32 1.0614054, %v5082_v20  ;;  %v5104_v29 = vadd.f32 %v4975_v42, %v4743_v43 }
 0x27a   :  { %v2050_v12 = vadd.f32 -0.28449672, %v1986_v48  ;;  %v2446_v53 = vmul.f32 1.442695, %v2375_v56  ;;  %v5087_v60 = vmul.f32 0.5, %v971_v25  ;;  %vm1288_vm8 = vcmp.ge.f32.partialorder %v1224_v14, 0.0 }
 0x27b   :  { %v5089_v40 = vpop.eup %3780  ;;  %v2112_v21 = vmul.f32 %v5028_v5, %v2048_v22  ;;  %v1985_v62 = vmul.f32 %v5051_v7, %v1921_v36  ;;  %v1923_v35 = vadd.f32 1.4214138, %v1859_v30  ;;  %v1796_v4 = vadd.f32 -1.4531521, %v1732_v27 }
 0x27c   :  { %6804 = vst [vmem:[#allocation76_spill] sm:$0xff] %v5087_v60  ;;  %v5095_v54 = vpop.eup %3782  ;;  %v2114_v23 = vmul.f32 %v5041_v28, %v2050_v12  ;;  %v1734_v48 = vmul.f32 1.0614054, %v5089_v40  ;;  %v5100_v25 = vsel %vm1288_vm8, 1.0, %v6791_v49  ;;  %3792 = vpow2.f32 %v2446_v53 }
 0x27d   :  { %6806 = vst [vmem:[#allocation78_spill] sm:$0xff] %v5100_v25  ;;  %v5106_v22 = vpop.eup %3784  ;;  %v2176_v36 = vadd.f32 0.2548296, %v2112_v21  ;;  %v2049_v13 = vadd.f32 -0.28449672, %v1985_v62  ;;  %v1987_v56 = vmul.f32 %v5059_v50, %v1923_v35  ;;  %v1860_v30 = vmul.f32 %v5082_v20, %v1796_v4 }
 0x27e   :  { %v5110_v27 = vpop.eup %3786  ;;  %v2178_v12 = vadd.f32 0.2548296, %v2114_v23  ;;  %v1798_v18 = vadd.f32 -1.4531521, %v1734_v48  ;;  %v5112_v60 = vand.u32 2147483647, %v1224_v14 }
 0x27f   :  { %v2240_v2 = vmul.f32 %v5028_v5, %v2176_v36  ;;  %v2113_v42 = vmul.f32 %v5051_v7, %v2049_v13  ;;  %v2051_v25 = vadd.f32 -0.28449672, %v1987_v56  ;;  %v1924_v26 = vadd.f32 1.4214138, %v1860_v30 }
 0x280   :  { %v2242_v21 = vmul.f32 %v5041_v28, %v2178_v12  ;;  %v1862_v62 = vmul.f32 %v5089_v40, %v1798_v18  ;;  %v1733_v35 = vmul.f32 1.0614054, %v5110_v27  ;;  %v1480_v4 = vmul.f32 0.3275911, %v5112_v60 }
 0x281   :  { %v5120_v3 = vpop.eup %3788  ;;  %v2560_v53 = vmul.f32 %v5044_v0, %v2240_v2  ;;  %v2177_v14 = vadd.f32 0.2548296, %v2113_v42  ;;  %v2115_v23 = vmul.f32 %v5059_v50, %v2051_v25  ;;  %v1988_v5 = vmul.f32 %v5082_v20, %v1924_v26 }
 0x282   :  { %v5125_v48 = vpop.eup %3790  ;;  %v2562_v36 = vmul.f32 %v5055_v6, %v2242_v21  ;;  %v1926_v28 = vadd.f32 1.4214138, %v1862_v62  ;;  %v1797_v13 = vadd.f32 -1.4531521, %v1733_v35  ;;  %v1544_v18 = vadd.f32 1.0, %v1480_v4  ;;  %v5136_v62 = vpop.f32.mrb[46].mxu0 }
 0x283   :  { %v2624_v56 = vsub.f32 1.0, %v2560_v53  ;;  %v2241_v30 = vmul.f32 %v5051_v7, %v2177_v14  ;;  %v2179_v12 = vadd.f32 0.2548296, %v2115_v23  ;;  %v2052_v55 = vadd.f32 -0.28449672, %v1988_v5 }
 0x284   :  { %v2626_v16 = vsub.f32 1.0, %v2562_v36  ;;  %v1990_v2 = vmul.f32 %v5089_v40, %v1926_v28  ;;  %v1861_v0 = vmul.f32 %v5110_v27, %v1797_v13  ;;  %v1735_v25 = vmul.f32 1.0614054, %v5125_v48 }
 0x285   :  { %v2688_v26 = vmul.f32 %v2624_v56, %v4966_v58  ;;  %v2561_v42 = vmul.f32 %v5064_v9, %v2241_v30  ;;  %v2243_v6 = vmul.f32 %v5059_v50, %v2179_v12  ;;  %v2116_v21 = vmul.f32 %v5082_v20, %v2052_v55 }
 0x286   :  { %v2690_v7 = vmul.f32 %v2626_v16, %v4971_v1  ;;  %v2054_v35 = vadd.f32 -0.28449672, %v1990_v2  ;;  %v1925_v4 = vadd.f32 1.4214138, %v1861_v0  ;;  %v1799_v53 = vadd.f32 -1.4531521, %v1735_v25  ;;  %v5140_v28 = vpop.eup %3792 }
 0x287   :  { %v2752_v14 = vadd.f32 1.0, %v2688_v26  ;;  %v2625_v23 = vsub.f32 1.0, %v2561_v42  ;;  %v2563_v5 = vmul.f32 %v5069_v8, %v2243_v6  ;;  %v2180_v36 = vadd.f32 0.2548296, %v2116_v21  ;;  %v5154_v6 = vpop.f32.mrb[46].mxu1 }
 0x288   :  { %v2754_v58 = vadd.f32 1.0, %v2690_v7  ;;  %v2118_v9 = vmul.f32 %v5089_v40, %v2054_v35  ;;  %v1989_v50 = vmul.f32 %v5110_v27, %v1925_v4  ;;  %v1863_v55 = vmul.f32 %v5125_v48, %v1799_v53 }
 0x289   :  { %v2816_v13 = vmul.f32 %v2752_v14, %v4959_v31  ;;  %v2689_v16 = vmul.f32 %v2625_v23, %v4982_v32  ;;  %v2627_v1 = vsub.f32 1.0, %v2563_v5  ;;  %v2244_v56 = vmul.f32 %v5082_v20, %v2180_v36 }
 0x28a   :  { %v2818_v30 = vmul.f32 %v2754_v58, %v4961_v44  ;;  %v2182_v8 = vadd.f32 0.2548296, %v2118_v9  ;;  %v2053_v12 = vadd.f32 -0.28449672, %v1989_v50  ;;  %v1927_v2 = vadd.f32 1.4214138, %v1863_v55 }
 0x28b   :  { %v5150_v0 = vmul.f32 %v2816_v13, %v4757_v39  ;;  %v2753_v25 = vadd.f32 1.0, %v2689_v16  ;;  %v2691_v26 = vmul.f32 %v2627_v1, %v4990_v57  ;;  %v2564_v42 = vmul.f32 %v5095_v54, %v2244_v56 }
 0x28c   :  { %v5157_v32 = vmul.f32 %v2818_v30, %v4761_v59  ;;  %v2246_v31 = vmul.f32 %v5089_v40, %v2182_v8  ;;  %v2117_v44 = vmul.f32 %v5110_v27, %v2053_v12  ;;  %v1991_v20 = vmul.f32 %v5125_v48, %v1927_v2 }
 0x28d   :  { %6807 = vst [vmem:[#allocation79_spill] sm:$0xff] %v5150_v0  ;;  %v2755_v21 = vadd.f32 1.0, %v2691_v26  ;;  %v2628_v7 = vsub.f32 1.0, %v2564_v42  ;;  %3794 = vrcp.f32 %v1544_v18  ;;  %v973_v39 = vadd.f32 %v4984_v24, %v4751_v51  ;;  %v5174_v18 = vpop.f32.mrb[47].mxu0  ;;  %v5199_v26 = vpop.f32.mrb[47].mxu1 }
 0x28e   :  { %6808 = vst [vmem:[#allocation80_spill] sm:$0xff] %v5157_v32  ;;  %v2566_v57 = vmul.f32 %v5106_v22, %v2246_v31  ;;  %v2181_v54 = vadd.f32 0.2548296, %v2117_v44  ;;  %v2055_v35 = vadd.f32 -0.28449672, %v1991_v20  ;;  %v2312_v4 = vsub.f32 0.0, %v5112_v60 }
 0x28f   :  { %v5167_v59 = vmul.f32 %v2753_v25, %v4963_v15  ;;  %v5170_v40 = vmul.f32 %v2755_v21, %v4968_v46  ;;  %v2692_v53 = vmul.f32 %v2628_v7, %v5008_v34  ;;  %v1226_v14 = vmul.f32 0.70710677, %v5104_v29 }
 0x290   :  { %v2630_v23 = vsub.f32 1.0, %v2566_v57  ;;  %v2245_v24 = vmul.f32 %v5110_v27, %v2181_v54  ;;  %v2119_v22 = vmul.f32 %v5125_v48, %v2055_v35  ;;  %v2376_v5 = vmul.f32 %v2312_v4, %v5112_v60  ;;  %v3714_v60 = vld [vmem:[%s6717_s5 + $0x60] sm:$0xff]  }
 0x291   :  { %6809 = vst [vmem:[#allocation81_spill] sm:$0xff] %v5167_v59  ;;  %6810 = vst [vmem:[#allocation82_spill] sm:$0xff] %v5170_v40  ;;  %v2756_v36 = vadd.f32 1.0, %v2692_v53  ;;  %v5180_v15 = vmul.f32 0.5, %v5104_v29  ;;  %vm1290_vm9 = vcmp.ge.f32.partialorder %v1226_v14, 0.0  ;;  %v5185_v16 = vmul.f32 0.5, %v973_v39  ;;  %3576 = vmatprep.subr.bf16.mxu0 %v3714_v60 }
 0x292   :  { %v1418_v46 = vand.u32 2147483647, %v1226_v14  ;;  %v2694_v58 = vmul.f32 %v2630_v23, %v5032_v47  ;;  %v2565_v34 = vmul.f32 %v5120_v3, %v2245_v24  ;;  %v2183_v9 = vadd.f32 0.2548296, %v2119_v22  ;;  %v6841_v59 = vld [vmem:[#allocation74_spill] sm:$0xff] }
 0x293   :  { %v2448_v50 = vmul.f32 1.442695, %v2376_v5  ;;  %v2820_v55 = vmul.f32 %v2756_v36, %v5002_v10  ;;  %v1225_v8 = vmul.f32 0.70710677, %v973_v39  ;;  %v1086_v25 = vadd.f32 %v4986_v61, %v4753_v11 }
 0x294   :  { %v1482_v13 = vmul.f32 0.3275911, %v1418_v46  ;;  %v2314_v27 = vsub.f32 0.0, %v1418_v46  ;;  %v2758_v29 = vadd.f32 1.0, %v2694_v58  ;;  %v2629_v1 = vsub.f32 1.0, %v2565_v34 }
 0x295   :  { %v2247_v56 = vmul.f32 %v5125_v48, %v2183_v9  ;;  %3796 = vpow2.f32 %v2448_v50  ;;  %v5192_v47 = vmul.f32 %v2820_v55, %v4773_v38  ;;  %vm1289_vm10 = vcmp.ge.f32.partialorder %v1225_v8, 0.0 }
 0x296   :  { %v1546_v3 = vadd.f32 1.0, %v1482_v13  ;;  %v2378_v30 = vmul.f32 %v2314_v27, %v1418_v46  ;;  %v2822_v10 = vmul.f32 %v2758_v29, %v5005_v52  ;;  %v2693_v12 = vmul.f32 %v2629_v1, %v5035_v41  ;;  %v6814_v46 = vld [vmem:[#allocation72_spill] sm:$0xff] }
 0x297   :  { %6811 = vst [vmem:[#allocation83_spill] sm:$0xff] %v5192_v47  ;;  %v2567_v2 = vmul.f32 %v5140_v28, %v2247_v56  ;;  %v5201_v48 = vpop.eup %3794  ;;  %v5211_v61 = vsel %vm1290_vm9, 1.0, %v6791_v49  ;;  %v5214_v44 = vsel %vm1289_vm10, 1.0, %v6791_v49  ;;  %v1417_v20 = vand.u32 2147483647, %v1225_v8 }
 0x298   :  { %3798 = vrcp.f32 %v1546_v3  ;;  %v2452_v42 = vmul.f32 1.442695, %v2378_v30  ;;  %v5206_v31 = vmul.f32 %v2822_v10, %v4777_v45  ;;  %v2757_v52 = vadd.f32 1.0, %v2693_v12  ;;  %v5247_v10 = vpop.f32.mrb[48].mxu0  ;;  %v5249_v12 = vpop.f32.mrb[48].mxu1 }
 0x299   :  { %v2631_v41 = vsub.f32 1.0, %v2567_v2  ;;  %v1736_v28 = vmul.f32 1.0614054, %v5201_v48  ;;  %v5219_v39 = vmul.f32 0.5, %v1086_v25  ;;  %v1481_v54 = vmul.f32 0.3275911, %v1417_v20 }
 0x29a   :  { %6812 = vst [vmem:[#allocation84_spill] sm:$0xff] %v5206_v31  ;;  %3800 = vpow2.f32 %v2452_v42  ;;  %v5222_v57 = vmul.f32 %v2757_v52, %v5012_v63  ;;  %v2313_v35 = vsub.f32 0.0, %v1417_v20  ;;  %v1227_v4 = vmul.f32 0.70710677, %v1086_v25  ;;  %v3715_v63 = vld [vmem:[%s6717_s5 + $0x20] sm:$0xff]  }
 0x29b   :  { %v2695_v7 = vmul.f32 %v2631_v41, %v5072_v19  ;;  %v1800_v45 = vadd.f32 -1.4531521, %v1736_v28  ;;  %v975_v23 = vadd.f32 %v4993_v37, %v4741_v33  ;;  %v1088_v24 = vadd.f32 %v4995_v17, %v4743_v43  ;;  %v6816_v37 = vld [vmem:[#allocation62_spill] sm:$0xff]  ;;  %3577 = vmatpush3.bf16.msra.mxu0 %v3715_v63 }
 0x29c   :  { %6813 = vst [vmem:[#allocation85_spill] sm:$0xff] %v5222_v57  ;;  %v1545_v22 = vadd.f32 1.0, %v1481_v54  ;;  %v2377_v19 = vmul.f32 %v2313_v35, %v1417_v20  ;;  %vm1291_vm11 = vcmp.ge.f32.partialorder %v1227_v4, 0.0  ;;  %v1419_v5 = vand.u32 2147483647, %v1227_v4 }
 0x29d   :  { %v2759_v53 = vadd.f32 1.0, %v2695_v7  ;;  %v1864_v14 = vmul.f32 %v5201_v48, %v1800_v45  ;;  %v5236_v9 = vsel %vm1291_vm11, 1.0, %v6791_v49  ;;  %v977_v50 = vadd.f32 %v6816_v37, %v4751_v51 }
 0x29e   :  { %3802 = vrcp.f32 %v1545_v22  ;;  %v2450_v17 = vmul.f32 1.442695, %v2377_v19  ;;  %v1483_v55 = vmul.f32 0.3275911, %v1419_v5  ;;  %v2315_v13 = vsub.f32 0.0, %v1419_v5 }
 0x29f   :  { %v3797_v36 = vpop.eup %3796  ;;  %v5233_v58 = vmul.f32 %v2759_v53, %v6814_v46  ;;  %v1928_v34 = vadd.f32 1.4214138, %v1864_v14  ;;  %v5241_v60 = vmul.f32 0.5, %v975_v23  ;;  %v1228_v29 = vmul.f32 0.70710677, %v975_v23 }
 0x2a0   :  { %v1230_v1 = vmul.f32 0.70710677, %v1088_v24  ;;  %3804 = vpow2.f32 %v2450_v17  ;;  %v1547_v3 = vadd.f32 1.0, %v1483_v55  ;;  %v2379_v30 = vmul.f32 %v2315_v13, %v1419_v5 }
 0x2a1   :  { %6815 = vst [vmem:[#allocation72_spill] sm:$0xff] %v5233_v58  ;;  %v1992_v27 = vmul.f32 %v5201_v48, %v1928_v34  ;;  %v5245_v8 = vmul.f32 0.5, %v1088_v24  ;;  %vm1292_vm12 = vcmp.ge.f32.partialorder %v1228_v29, 0.0  ;;  %v1420_v41 = vand.u32 2147483647, %v1228_v29  ;;  %v3716_v29 = vld [vmem:[%s6717_s5 + $0xe0] sm:$0xff]  }
 0x2a2   :  { %v5243_v56 = vpop.eup %3798  ;;  %vm1294_vm13 = vcmp.ge.f32.partialorder %v1230_v1, 0.0  ;;  %3806 = vrcp.f32 %v1547_v3  ;;  %v2454_v52 = vmul.f32 1.442695, %v2379_v30  ;;  %v5254_v28 = vmul.f32 0.5, %v977_v50  ;;  %3640 = vmatprep.subr.bf16.mxu1 %v3716_v29 }
 0x2a3   :  { %v2056_v2 = vadd.f32 -0.28449672, %v1992_v27  ;;  %v1738_v25 = vmul.f32 1.0614054, %v5243_v56  ;;  %v5258_v45 = vsel %vm1292_vm12, 1.0, %v6791_v49  ;;  %v2316_v4 = vsub.f32 0.0, %v1420_v41 }
 0x2a4   :  { %v5252_v42 = vpop.eup %3800  ;;  %v1422_v54 = vand.u32 2147483647, %v1230_v1  ;;  %v1484_v35 = vmul.f32 0.3275911, %v1420_v41  ;;  %v5261_v53 = vsel %vm1294_vm13, 1.0, %v6791_v49  ;;  %3808 = vpow2.f32 %v2454_v52 }
 0x2a5   :  { %v2120_v20 = vmul.f32 %v5201_v48, %v2056_v2  ;;  %v1802_v7 = vadd.f32 -1.4531521, %v1738_v25  ;;  %v1229_v14 = vmul.f32 0.70710677, %v977_v50  ;;  %v2380_v63 = vmul.f32 %v2316_v4, %v1420_v41  ;;  %v5275_v2 = vpop.f32.mrb[49].mxu0 }
 0x2a6   :  { %v1486_v22 = vmul.f32 0.3275911, %v1422_v54  ;;  %v2318_v19 = vsub.f32 0.0, %v1422_v54  ;;  %v1548_v5 = vadd.f32 1.0, %v1484_v35  ;;  %v6817_v35 = vld [vmem:[#allocation63_spill] sm:$0xff] }
 0x2a7   :  { %v2184_v23 = vadd.f32 0.2548296, %v2120_v20  ;;  %v1866_v24 = vmul.f32 %v5243_v56, %v1802_v7  ;;  %v1421_v46 = vand.u32 2147483647, %v1229_v14  ;;  %v2456_v27 = vmul.f32 1.442695, %v2380_v63 }
 0x2a8   :  { %v1550_v17 = vadd.f32 1.0, %v1486_v22  ;;  %v2382_v55 = vmul.f32 %v2318_v19, %v1422_v54  ;;  %v5265_v13 = vpop.eup %3802  ;;  %3810 = vrcp.f32 %v1548_v5  ;;  %vm1293_vm14 = vcmp.ge.f32.partialorder %v1229_v14, 0.0  ;;  %v6818_v19 = vld [vmem:[#allocation64_spill] sm:$0xff]  ;;  %v6819_v63 = vld [vmem:[#allocation78_spill] sm:$0xff] }
 0x2a9   :  { %v2248_v34 = vmul.f32 %v5201_v48, %v2184_v23  ;;  %v1930_v37 = vadd.f32 1.4214138, %v1866_v24  ;;  %v1485_v50 = vmul.f32 0.3275911, %v1421_v46  ;;  %v1737_v30 = vmul.f32 1.0614054, %v5265_v13 }
 0x2aa   :  { %3812 = vrcp.f32 %v1550_v17  ;;  %v3717_v48 = vld [vmem:[%s6717_s5 + $0xa0] sm:$0xff]   ;;  %v5277_v25 = vpop.eup %3804  ;;  %v2460_v52 = vmul.f32 1.442695, %v2382_v55  ;;  %v2317_v20 = vsub.f32 0.0, %v1421_v46  ;;  %v1090_v4 = vadd.f32 %v6817_v35, %v4753_v11 }
 0x2ab   :  { %v2568_v1 = vmul.f32 %v3797_v36, %v2248_v34  ;;  %v1994_v3 = vmul.f32 %v5243_v56, %v1930_v37  ;;  %3814 = vpow2.f32 %v2456_v27  ;;  %v1549_v41 = vadd.f32 1.0, %v1485_v50  ;;  %3641 = vmatpush3.bf16.msra.mxu1 %v3717_v48 }
 0x2ac   :  { %v1801_v54 = vadd.f32 -1.4531521, %v1737_v30  ;;  %v5281_v23 = vpop.eup %3806  ;;  %3816 = vpow2.f32 %v2460_v52  ;;  %v5285_v24 = vsel %vm1293_vm14, 1.0, %v6791_v49  ;;  %v2381_v22 = vmul.f32 %v2317_v20, %v1421_v46  ;;  %v6820_v20 = vld [vmem:[#allocation65_spill] sm:$0xff] }
 0x2ad   :  { %v2632_v7 = vsub.f32 1.0, %v2568_v1  ;;  %v2058_v36 = vadd.f32 -0.28449672, %v1994_v3  ;;  %v981_v5 = vadd.f32 %v6818_v19, %v4741_v33  ;;  %v1739_v55 = vmul.f32 1.0614054, %v5281_v23 }
 0x2ae   :  { %v1865_v17 = vmul.f32 %v5265_v13, %v1801_v54  ;;  %3818 = vrcp.f32 %v1549_v41  ;;  %v2458_v27 = vmul.f32 1.442695, %v2381_v22  ;;  %v5293_v50 = vmul.f32 0.5, %v1090_v4  ;;  %v5297_v30 = vpop.eup %3808  ;;  %v6821_v41 = vld [vmem:[#allocation76_spill] sm:$0xff] }
 0x2af   :  { %v2696_v34 = vmul.f32 %v2632_v7, %v6819_v63  ;;  %v2122_v37 = vmul.f32 %v5243_v56, %v2058_v36  ;;  %v1231_v29 = vmul.f32 0.70710677, %v1090_v4  ;;  %v5295_v46 = vmul.f32 0.5, %v981_v5  ;;  %v5301_v36 = vpop.f32.mrb[49].mxu1 }
 0x2b0   :  { %v1929_v3 = vadd.f32 1.4214138, %v1865_v17  ;;  %v1803_v48 = vadd.f32 -1.4531521, %v1739_v55  ;;  %v1094_v7 = vadd.f32 %v6820_v20, %v4743_v43  ;;  %3820 = vpow2.f32 %v2458_v27 }
 0x2b1   :  { %v2760_v14 = vadd.f32 1.0, %v2696_v34  ;;  %v2186_v1 = vadd.f32 0.2548296, %v2122_v37  ;;  %vm1295_vm15 = vcmp.ge.f32.partialorder %v1231_v29, 0.0  ;;  %v1423_v52 = vand.u32 2147483647, %v1231_v29 }
 0x2b2   :  { %v1993_v4 = vmul.f32 %v5265_v13, %v1929_v3  ;;  %v5308_v22 = vpop.eup %3810  ;;  %v1867_v19 = vmul.f32 %v5281_v23, %v1803_v48  ;;  %v1232_v37 = vmul.f32 0.70710677, %v981_v5  ;;  %v5328_v31 = vmul.f32 0.5, %v1094_v7 }
 0x2b3   :  { %v5304_v54 = vmul.f32 %v2760_v14, %v6821_v41  ;;  %v2250_v35 = vmul.f32 %v5243_v56, %v2186_v1  ;;  %v1487_v63 = vmul.f32 0.3275911, %v1423_v52  ;;  %v2319_v34 = vsub.f32 0.0, %v1423_v52 }
 0x2b4   :  { %v5311_v17 = vpop.eup %3812  ;;  %v2057_v20 = vadd.f32 -0.28449672, %v1993_v4  ;;  %v1740_v14 = vmul.f32 1.0614054, %v5308_v22  ;;  %v5317_v56 = vsel %vm1295_vm15, 1.0, %v6791_v49  ;;  %vm1296_vm0 = vcmp.ge.f32.partialorder %v1232_v37, 0.0 }
 0x2b5   :  { %6822 = vst [vmem:[#allocation62_spill] sm:$0xff] %v5304_v54  ;;  %v2570_v55 = vmul.f32 %v5252_v42, %v2250_v35  ;;  %v5319_v1 = vpop.eup %3814  ;;  %v1931_v27 = vadd.f32 1.4214138, %v1867_v19  ;;  %v1742_v3 = vmul.f32 1.0614054, %v5311_v17  ;;  %v1551_v48 = vadd.f32 1.0, %v1487_v63 }
 0x2b6   :  { %v2383_v41 = vmul.f32 %v2319_v34, %v1423_v52  ;;  %v2121_v5 = vmul.f32 %v5265_v13, %v2057_v20  ;;  %v1804_v38 = vadd.f32 -1.4531521, %v1740_v14  ;;  %v5323_v42 = vpop.eup %3816  ;;  %v1424_v20 = vand.u32 2147483647, %v1232_v37  ;;  %v5336_v14 = vpop.f32.mrb[50].mxu0 }
 0x2b7   :  { %v2634_v21 = vsub.f32 1.0, %v2570_v55  ;;  %v1995_v35 = vmul.f32 %v5281_v23, %v1931_v27  ;;  %v1806_v4 = vadd.f32 -1.4531521, %v1742_v3  ;;  %3822 = vrcp.f32 %v1551_v48 }
 0x2b8   :  { %v2462_v29 = vmul.f32 1.442695, %v2383_v41  ;;  %v2185_v32 = vadd.f32 0.2548296, %v2121_v5  ;;  %v1868_v19 = vmul.f32 %v5308_v22, %v1804_v38  ;;  %v5330_v52 = vpop.eup %3818  ;;  %v5334_v55 = vsel %vm1296_vm0, 1.0, %v6791_v49 }
 0x2b9   :  { %v2698_v54 = vmul.f32 %v2634_v21, %v5211_v61  ;;  %v2059_v63 = vadd.f32 -0.28449672, %v1995_v35  ;;  %v1870_v34 = vmul.f32 %v5311_v17, %v1806_v4  ;;  %v1741_v61 = vmul.f32 1.0614054, %v5330_v52 }
 0x2ba   :  { %v2249_v27 = vmul.f32 %v5265_v13, %v2185_v32  ;;  %v1932_v3 = vadd.f32 1.4214138, %v1868_v19  ;;  %3824 = vpow2.f32 %v2462_v29  ;;  %v1488_v48 = vmul.f32 0.3275911, %v1424_v20  ;;  %v5341_v5 = vpop.eup %3820 }
 0x2bb   :  { %v2123_v38 = vmul.f32 %v5281_v23, %v2059_v63  ;;  %v1934_v21 = vadd.f32 1.4214138, %v1870_v34  ;;  %v2320_v41 = vsub.f32 0.0, %v1424_v20  ;;  %v2762_v35 = vadd.f32 1.0, %v2698_v54 }
 0x2bc   :  { %v2569_v4 = vmul.f32 %v5277_v25, %v2249_v27  ;;  %v1996_v37 = vmul.f32 %v5308_v22, %v1932_v3  ;;  %v1805_v0 = vadd.f32 -1.4531521, %v1741_v61  ;;  %v1552_v13 = vadd.f32 1.0, %v1488_v48  ;;  %v5350_v61 = vpop.f32.mrb[50].mxu1 }
 0x2bd   :  { %v2187_v47 = vadd.f32 0.2548296, %v2123_v38  ;;  %v1998_v32 = vmul.f32 %v5311_v17, %v1934_v21  ;;  %v2384_v19 = vmul.f32 %v2320_v41, %v1424_v20  ;;  %v1234_v34 = vmul.f32 0.70710677, %v1094_v7 }
 0x2be   :  { %v2633_v58 = vsub.f32 1.0, %v2569_v4  ;;  %v2060_v29 = vadd.f32 -0.28449672, %v1996_v37  ;;  %v1869_v63 = vmul.f32 %v5330_v52, %v1805_v0  ;;  %3826 = vrcp.f32 %v1552_v13  ;;  %v6824_v37 = vld [vmem:[#allocation66_spill] sm:$0xff] }
 0x2bf   :  { %v2251_v40 = vmul.f32 %v5281_v23, %v2187_v47  ;;  %v2062_v57 = vadd.f32 -0.28449672, %v1998_v32  ;;  %v2464_v54 = vmul.f32 1.442695, %v2384_v19  ;;  %vm1298_vm1 = vcmp.ge.f32.partialorder %v1234_v34, 0.0 }
 0x2c0   :  { %v2697_v25 = vmul.f32 %v2633_v58, %v5214_v44  ;;  %v2124_v27 = vmul.f32 %v5308_v22, %v2060_v29  ;;  %v1933_v3 = vadd.f32 1.4214138, %v1869_v63  ;;  %v5355_v20 = vmul.f32 %v2762_v35, %v5180_v15  ;;  %v3718_v15 = vld [vmem:[%s6717_s5 + $0x68] sm:$0xff]  }
 0x2c1   :  { %v5352_v38 = vpop.eup %3822  ;;  %v2571_v0 = vmul.f32 %v5297_v30, %v2251_v40  ;;  %v2126_v47 = vmul.f32 %v5311_v17, %v2062_v57  ;;  %v5360_v23 = vsel %vm1298_vm1, 1.0, %v6791_v49  ;;  %3828 = vpow2.f32 %v2464_v54  ;;  %3578 = vmatprep.subr.bf16.mxu0 %v3718_v15 }
 0x2c2   :  { %6823 = vst [vmem:[#allocation63_spill] sm:$0xff] %v5355_v20  ;;  %v2761_v7 = vadd.f32 1.0, %v2697_v25  ;;  %v2188_v44 = vadd.f32 0.2548296, %v2124_v27  ;;  %v1997_v58 = vmul.f32 %v5330_v52, %v1933_v3  ;;  %v1743_v21 = vmul.f32 1.0614054, %v5352_v38 }
 0x2c3   :  { %v2635_v48 = vsub.f32 1.0, %v2571_v0  ;;  %v2190_v41 = vadd.f32 0.2548296, %v2126_v47  ;;  %v1426_v4 = vand.u32 2147483647, %v1234_v34  ;;  %v983_v32 = vadd.f32 %v6824_v37, %v4751_v51  ;;  %v5374_v34 = vpop.f32.mrb[51].mxu0 }
 0x2c4   :  { %v5367_v40 = vpop.eup %3824  ;;  %v2252_v57 = vmul.f32 %v5308_v22, %v2188_v44  ;;  %v2061_v30 = vadd.f32 -0.28449672, %v1997_v58  ;;  %v1807_v35 = vadd.f32 -1.4531521, %v1743_v21  ;;  %v5377_v54 = vmul.f32 %v2761_v7, %v5185_v16 }
 0x2c5   :  { %v2699_v13 = vmul.f32 %v2635_v48, %v5236_v9  ;;  %v2254_v19 = vmul.f32 %v5311_v17, %v2190_v41  ;;  %v1490_v29 = vmul.f32 0.3275911, %v1426_v4  ;;  %v2322_v63 = vsub.f32 0.0, %v1426_v4 }
 0x2c6   :  { %6825 = vst [vmem:[#allocation64_spill] sm:$0xff] %v5377_v54  ;;  %v2572_v25 = vmul.f32 %v5319_v1, %v2252_v57  ;;  %v2125_v22 = vmul.f32 %v5330_v52, %v2061_v30  ;;  %v1871_v27 = vmul.f32 %v5352_v38, %v1807_v35  ;;  %v5383_v21 = vmul.f32 0.5, %v983_v32  ;;  %v6826_v1 = vld [vmem:[#allocation67_spill] sm:$0xff] }
 0x2c7   :  { %v2763_v3 = vadd.f32 1.0, %v2699_v13  ;;  %v2574_v0 = vmul.f32 %v5323_v42, %v2254_v19  ;;  %v1554_v9 = vadd.f32 1.0, %v1490_v29  ;;  %v2386_v47 = vmul.f32 %v2322_v63, %v1426_v4  ;;  %v5397_v13 = vpop.f32.mrb[51].mxu1 }
 0x2c8   :  { %v2636_v17 = vsub.f32 1.0, %v2572_v25  ;;  %v2189_v44 = vadd.f32 0.2548296, %v2125_v22  ;;  %v1935_v58 = vadd.f32 1.4214138, %v1871_v27  ;;  %v5385_v48 = vpop.eup %3826  ;;  %v1096_v41 = vadd.f32 %v6826_v1, %v4753_v11 }
 0x2c9   :  { %v2638_v16 = vsub.f32 1.0, %v2574_v0  ;;  %3830 = vrcp.f32 %v1554_v9  ;;  %v2468_v7 = vmul.f32 1.442695, %v2386_v47  ;;  %v1744_v4 = vmul.f32 1.0614054, %v5385_v48 }
 0x2ca   :  { %v2700_v15 = vmul.f32 %v2636_v17, %v5258_v45  ;;  %v2253_v57 = vmul.f32 %v5330_v52, %v2189_v44  ;;  %v1999_v42 = vmul.f32 %v5352_v38, %v1935_v58  ;;  %v5394_v30 = vmul.f32 %v2763_v3, %v5219_v39  ;;  %v3719_v17 = vld [vmem:[%s6717_s5 + $0x28] sm:$0xff]  }
 0x2cb   :  { %v2702_v35 = vmul.f32 %v2638_v16, %v5261_v53  ;;  %3832 = vpow2.f32 %v2468_v7  ;;  %v1233_v37 = vmul.f32 0.70710677, %v983_v32  ;;  %v1808_v45 = vadd.f32 -1.4531521, %v1744_v4  ;;  %v5400_v25 = vpop.eup %3828  ;;  %3579 = vmatpush3.bf16.msra.mxu0 %v3719_v17  ;;  %v6832_v17 = vld [vmem:[#allocation69_spill] sm:$0xff] }
 0x2cc   :  { %6827 = vst [vmem:[#allocation78_spill] sm:$0xff] %v5394_v30  ;;  %v2764_v19 = vadd.f32 1.0, %v2700_v15  ;;  %v2573_v29 = vmul.f32 %v5341_v5, %v2253_v57  ;;  %v2063_v63 = vadd.f32 -0.28449672, %v1999_v42  ;;  %v1235_v27 = vmul.f32 0.70710677, %v1096_v41 }
 0x2cd   :  { %v2766_v52 = vadd.f32 1.0, %v2702_v35  ;;  %vm1297_vm2 = vcmp.ge.f32.partialorder %v1233_v37, 0.0  ;;  %v1425_v22 = vand.u32 2147483647, %v1233_v37  ;;  %v1872_v53 = vmul.f32 %v5385_v48, %v1808_v45  ;;  %v6830_v42 = vld [vmem:[#allocation68_spill] sm:$0xff] }
 0x2ce   :  { %v2637_v0 = vsub.f32 1.0, %v2573_v29  ;;  %v2127_v39 = vmul.f32 %v5352_v38, %v2063_v63  ;;  %v5404_v3 = vmul.f32 0.5, %v1096_v41  ;;  %v5407_v32 = vmul.f32 %v2764_v19, %v5241_v60 }
 0x2cf   :  { %v5410_v5 = vmul.f32 %v2766_v52, %v5245_v8  ;;  %v1489_v9 = vmul.f32 0.3275911, %v1425_v22  ;;  %v2321_v47 = vsub.f32 0.0, %v1425_v22  ;;  %v1936_v16 = vadd.f32 1.4214138, %v1872_v53 }
 0x2d0   :  { %6828 = vst [vmem:[#allocation65_spill] sm:$0xff] %v5407_v32  ;;  %v2701_v44 = vmul.f32 %v2637_v0, %v5285_v24  ;;  %v2191_v58 = vadd.f32 0.2548296, %v2127_v39  ;;  %v5417_v7 = vsel %vm1297_vm2, 1.0, %v6791_v49  ;;  %vm1299_vm3 = vcmp.ge.f32.partialorder %v1235_v27, 0.0 }
 0x2d1   :  { %6829 = vst [vmem:[#allocation76_spill] sm:$0xff] %v5410_v5  ;;  %v1553_v1 = vadd.f32 1.0, %v1489_v9  ;;  %v2385_v41 = vmul.f32 %v2321_v47, %v1425_v22  ;;  %v1427_v60 = vand.u32 2147483647, %v1235_v27  ;;  %v2000_v57 = vmul.f32 %v5385_v48, %v1936_v16 }
 0x2d2   :  { %v2765_v8 = vadd.f32 1.0, %v2701_v44  ;;  %v2255_v15 = vmul.f32 %v5352_v38, %v2191_v58  ;;  %v985_v4 = vadd.f32 %v6830_v42, %v4741_v33  ;;  %v5428_v52 = vsel %vm1299_vm3, 1.0, %v6791_v49  ;;  %v6833_v58 = vld [vmem:[#allocation70_spill] sm:$0xff] }
 0x2d3   :  { %v5423_v35 = vpop.eup %3830  ;;  %3834 = vrcp.f32 %v1553_v1  ;;  %v2466_v24 = vmul.f32 1.442695, %v2385_v41  ;;  %v1491_v37 = vmul.f32 0.3275911, %v1427_v60  ;;  %v2323_v19 = vsub.f32 0.0, %v1427_v60 }
 0x2d4   :  { %v2575_v29 = vmul.f32 %v5367_v40, %v2255_v15  ;;  %v2064_v63 = vadd.f32 -0.28449672, %v2000_v57  ;;  %v1746_v45 = vmul.f32 1.0614054, %v5423_v35  ;;  %v5433_v22 = vmul.f32 %v2765_v8, %v5254_v28  ;;  %v5444_v8 = vpop.f32.mrb[52].mxu1 }
 0x2d5   :  { %v5430_v38 = vpop.eup %3832  ;;  %3836 = vpow2.f32 %v2466_v24  ;;  %v1555_v27 = vadd.f32 1.0, %v1491_v37  ;;  %v2387_v0 = vmul.f32 %v2323_v19, %v1427_v60  ;;  %v1236_v47 = vmul.f32 0.70710677, %v985_v4  ;;  %v5442_v60 = vpop.f32.mrb[52].mxu0 }
 0x2d6   :  { %6831 = vst [vmem:[#allocation66_spill] sm:$0xff] %v5433_v22  ;;  %v2639_v39 = vsub.f32 1.0, %v2575_v29  ;;  %v2128_v53 = vmul.f32 %v5385_v48, %v2064_v63  ;;  %v1810_v9 = vadd.f32 -1.4531521, %v1746_v45  ;;  %v1098_v44 = vadd.f32 %v6832_v17, %v4743_v43  ;;  %v5498_v30 = vpop.f32.mrb[53].mxu1 }
 0x2d7   :  { %3838 = vrcp.f32 %v1555_v27  ;;  %v2470_v40 = vmul.f32 1.442695, %v2387_v0  ;;  %v987_v16 = vadd.f32 %v6833_v58, %v4751_v51  ;;  %vm1300_vm4 = vcmp.ge.f32.partialorder %v1236_v47, 0.0  ;;  %6837 = vst [vmem:[#allocation68_spill] sm:$0xff] %v5498_v30 }
 0x2d8   :  { %v2703_v1 = vmul.f32 %v2639_v39, %v5317_v56  ;;  %v2192_v28 = vadd.f32 0.2548296, %v2128_v53  ;;  %v1874_v41 = vmul.f32 %v5423_v35, %v1810_v9  ;;  %v5446_v15 = vmul.f32 0.5, %v985_v4  ;;  %v3720_v53 = vld [vmem:[%s6717_s5 + $0xe8] sm:$0xff]  }
 0x2d9   :  { %3840 = vpow2.f32 %v2470_v40  ;;  %v5449_v57 = vsel %vm1300_vm4, 1.0, %v6791_v49  ;;  %v1428_v42 = vand.u32 2147483647, %v1236_v47  ;;  %v1238_v56 = vmul.f32 0.70710677, %v1098_v44  ;;  %3642 = vmatprep.subr.bf16.mxu1 %v3720_v53 }
 0x2da   :  { %v2767_v24 = vadd.f32 1.0, %v2703_v1  ;;  %v2256_v37 = vmul.f32 %v5385_v48, %v2192_v28  ;;  %v1938_v19 = vadd.f32 1.4214138, %v1874_v41  ;;  %v5452_v45 = vmul.f32 0.5, %v1098_v44 }
 0x2db   :  { %v1492_v29 = vmul.f32 0.3275911, %v1428_v42  ;;  %v2324_v63 = vsub.f32 0.0, %v1428_v42  ;;  %v1237_v27 = vmul.f32 0.70710677, %v987_v16  ;;  %vm1302_vm5 = vcmp.ge.f32.partialorder %v1238_v56, 0.0 }
 0x2dc   :  { %v2576_v0 = vmul.f32 %v5400_v25, %v2256_v37  ;;  %v2002_v39 = vmul.f32 %v5423_v35, %v1938_v19  ;;  %v5456_v4 = vmul.f32 0.5, %v987_v16  ;;  %v5464_v48 = vmul.f32 %v2767_v24, %v5293_v50  ;;  %v3721_v25 = vld [vmem:[%s6717_s5 + $0xa8] sm:$0xff]  }
 0x2dd   :  { %v5461_v9 = vpop.eup %3834  ;;  %v1556_v47 = vadd.f32 1.0, %v1492_v29  ;;  %v2388_v40 = vmul.f32 %v2324_v63, %v1428_v42  ;;  %v1430_v17 = vand.u32 2147483647, %v1238_v56  ;;  %vm1301_vm6 = vcmp.ge.f32.partialorder %v1237_v27, 0.0  ;;  %3643 = vmatpush3.bf16.msra.mxu1 %v3721_v25  ;;  %v5476_v42 = vpop.f32.mrb[53].mxu0 }
 0x2de   :  { %6834 = vst [vmem:[#allocation67_spill] sm:$0xff] %v5464_v48  ;;  %v2640_v44 = vsub.f32 1.0, %v2576_v0  ;;  %v2066_v58 = vadd.f32 -0.28449672, %v2002_v39  ;;  %v1745_v16 = vmul.f32 1.0614054, %v5461_v9 }
 0x2df   :  { %v5470_v1 = vpop.eup %3836  ;;  %3842 = vrcp.f32 %v1556_v47  ;;  %v5474_v50 = vsel %vm1302_vm5, 1.0, %v6791_v49  ;;  %v1494_v28 = vmul.f32 0.3275911, %v1430_v17  ;;  %v2326_v41 = vsub.f32 0.0, %v1430_v17 }
 0x2e0   :  { %v2704_v24 = vmul.f32 %v2640_v44, %v5334_v55  ;;  %v2130_v37 = vmul.f32 %v5423_v35, %v2066_v58  ;;  %v1809_v19 = vadd.f32 -1.4531521, %v1745_v16  ;;  %v2472_v29 = vmul.f32 1.442695, %v2388_v40 }
 0x2e1   :  { %v5480_v63 = vpop.eup %3838  ;;  %v1558_v0 = vadd.f32 1.0, %v1494_v28  ;;  %v2390_v39 = vmul.f32 %v2326_v41, %v1430_v17  ;;  %v5484_v56 = vsel %vm1301_vm6, 1.0, %v6791_v49  ;;  %v1429_v53 = vand.u32 2147483647, %v1237_v27 }
 0x2e2   :  { %v2768_v47 = vadd.f32 1.0, %v2704_v24  ;;  %v2194_v5 = vadd.f32 0.2548296, %v2130_v37  ;;  %v1873_v25 = vmul.f32 %v5461_v9, %v1809_v19  ;;  %v1747_v20 = vmul.f32 1.0614054, %v5480_v63  ;;  %v6835_v24 = vld [vmem:[#allocation71_spill] sm:$0xff] }
 0x2e3   :  { %v5488_v55 = vpop.eup %3840  ;;  %3844 = vrcp.f32 %v1558_v0  ;;  %v2476_v44 = vmul.f32 1.442695, %v2390_v39  ;;  %v1493_v40 = vmul.f32 0.3275911, %v1429_v53  ;;  %v2325_v58 = vsub.f32 0.0, %v1429_v53  ;;  %v6836_v39 = vld [vmem:[#allocation73_spill] sm:$0xff] }
 0x2e4   :  { %v2258_v16 = vmul.f32 %v5423_v35, %v2194_v5  ;;  %v1937_v17 = vadd.f32 1.4214138, %v1873_v25  ;;  %v1811_v28 = vadd.f32 -1.4531521, %v1747_v20  ;;  %3846 = vpow2.f32 %v2472_v29 }
 0x2e5   :  { %3848 = vpow2.f32 %v2476_v44  ;;  %v1557_v41 = vadd.f32 1.0, %v1493_v40  ;;  %v2389_v27 = vmul.f32 %v2325_v58, %v1429_v53  ;;  %v1100_v37 = vadd.f32 %v6835_v24, %v4753_v11 }
 0x2e6   :  { %v2578_v19 = vmul.f32 %v5430_v38, %v2258_v16  ;;  %v2001_v32 = vmul.f32 %v5461_v9, %v1937_v17  ;;  %v1875_v0 = vmul.f32 %v5480_v63, %v1811_v28  ;;  %v991_v48 = vadd.f32 %v6836_v39, %v4741_v33 }
 0x2e7   :  { %v5501_v20 = vmul.f32 %v2768_v47, %v5295_v46  ;;  %3850 = vrcp.f32 %v1557_v41  ;;  %v2474_v5 = vmul.f32 1.442695, %v2389_v27  ;;  %v1239_v35 = vmul.f32 0.70710677, %v1100_v37 }
 0x2e8   :  { %v2642_v29 = vsub.f32 1.0, %v2578_v19  ;;  %v2065_v53 = vadd.f32 -0.28449672, %v2001_v32  ;;  %v1939_v25 = vadd.f32 1.4214138, %v1875_v0  ;;  %v5503_v44 = vmul.f32 0.5, %v1100_v37 }
 0x2e9   :  { %6838 = vst [vmem:[#allocation69_spill] sm:$0xff] %v5501_v20  ;;  %v5505_v38 = vpop.eup %3842  ;;  %vm1303_vm7 = vcmp.ge.f32.partialorder %v1239_v35, 0.0  ;;  %v1431_v40 = vand.u32 2147483647, %v1239_v35  ;;  %v5507_v58 = vmul.f32 0.5, %v991_v48  ;;  %3852 = vpow2.f32 %v2474_v5 }
 0x2ea   :  { %v1240_v16 = vmul.f32 0.70710677, %v991_v48  ;;  %v2706_v17 = vmul.f32 %v2642_v29, %v5360_v23  ;;  %v2129_v46 = vmul.f32 %v5461_v9, %v2065_v53  ;;  %v2003_v47 = vmul.f32 %v5480_v63, %v1939_v25 }
 0x2eb   :  { %v1748_v28 = vmul.f32 1.0614054, %v5505_v38  ;;  %v1495_v32 = vmul.f32 0.3275911, %v1431_v40  ;;  %v2327_v41 = vsub.f32 0.0, %v1431_v40  ;;  %v5514_v19 = vsel %vm1303_vm7, 1.0, %v6791_v49 }
 0x2ec   :  { %vm1304_vm8 = vcmp.ge.f32.partialorder %v1240_v16, 0.0  ;;  %v2770_v27 = vadd.f32 1.0, %v2706_v17  ;;  %v2193_v24 = vadd.f32 0.2548296, %v2129_v46  ;;  %v2067_v37 = vadd.f32 -0.28449672, %v2003_v47 }
 0x2ed   :  { %v5516_v0 = vpop.eup %3844  ;;  %v1812_v48 = vadd.f32 -1.4531521, %v1748_v28  ;;  %v1559_v23 = vadd.f32 1.0, %v1495_v32  ;;  %v2391_v39 = vmul.f32 %v2327_v41, %v1431_v40  ;;  %v1432_v35 = vand.u32 2147483647, %v1240_v16  ;;  %v5532_v16 = vpop.f32.mrb[54].mxu0 }
 0x2ee   :  { %v5518_v29 = vpop.eup %3846  ;;  %v2257_v53 = vmul.f32 %v5461_v9, %v2193_v24  ;;  %v2131_v5 = vmul.f32 %v5480_v63, %v2067_v37  ;;  %v1750_v25 = vmul.f32 1.0614054, %v5516_v0  ;;  %v5524_v17 = vsel %vm1304_vm8, 1.0, %v6791_v49  ;;  %6840 = vst [vmem:[#allocation71_spill] sm:$0xff] %v5532_v16 }
 0x2ef   :  { %v5526_v46 = vpop.eup %3848  ;;  %v5529_v47 = vmul.f32 %v2770_v27, %v5328_v31  ;;  %v1876_v28 = vmul.f32 %v5505_v38, %v1812_v48  ;;  %3854 = vrcp.f32 %v1559_v23  ;;  %v1496_v40 = vmul.f32 0.3275911, %v1432_v35 }
 0x2f0   :  { %v2577_v9 = vmul.f32 %v5470_v1, %v2257_v53  ;;  %v2195_v32 = vadd.f32 0.2548296, %v2131_v5  ;;  %v1814_v41 = vadd.f32 -1.4531521, %v1750_v25  ;;  %v2328_v24 = vsub.f32 0.0, %v1432_v35 }
 0x2f1   :  { %6839 = vst [vmem:[#allocation70_spill] sm:$0xff] %v5529_v47  ;;  %v5535_v37 = vpop.eup %3850  ;;  %v1940_v20 = vadd.f32 1.4214138, %v1876_v28  ;;  %v2478_v22 = vmul.f32 1.442695, %v2391_v39  ;;  %v1560_v54 = vadd.f32 1.0, %v1496_v40  ;;  %v1104_v31 = vadd.f32 %v6841_v59, %v4743_v43 }
 0x2f2   :  { %v2641_v27 = vsub.f32 1.0, %v2577_v9  ;;  %v2259_v48 = vmul.f32 %v5480_v63, %v2195_v32  ;;  %v1878_v23 = vmul.f32 %v5516_v0, %v1814_v41  ;;  %v1749_v47 = vmul.f32 1.0614054, %v5535_v37 }
 0x2f3   :  { %v2004_v1 = vmul.f32 %v5505_v38, %v1940_v20  ;;  %3856 = vrcp.f32 %v1560_v54  ;;  %v2392_v53 = vmul.f32 %v2328_v24, %v1432_v35  ;;  %v5543_v5 = vmul.f32 0.5, %v1104_v31  ;;  %v5547_v59 = vpop.eup %3852  ;;  %v6842_v20 = vld [vmem:[#allocation75_spill] sm:$0xff] }
 0x2f4   :  { %v2705_v25 = vmul.f32 %v2641_v27, %v5417_v7  ;;  %v2579_v39 = vmul.f32 %v5488_v55, %v2259_v48  ;;  %v1942_v28 = vadd.f32 1.4214138, %v1878_v23  ;;  %v1813_v40 = vadd.f32 -1.4531521, %v1749_v47  ;;  %v3722_v7 = vld [vmem:[%s6717_s5 + $0x70] sm:$0xff]   ;;  %v5556_v55 = vpop.f32.mrb[54].mxu1 }
 0x2f5   :  { %v2068_v9 = vadd.f32 -0.28449672, %v2004_v1  ;;  %3858 = vpow2.f32 %v2478_v22  ;;  %v2480_v63 = vmul.f32 1.442695, %v2392_v53  ;;  %v1242_v32 = vmul.f32 0.70710677, %v1104_v31  ;;  %3580 = vmatprep.subr.bf16.mxu0 %v3722_v7 }
 0x2f6   :  { %v2643_v41 = vsub.f32 1.0, %v2579_v39  ;;  %v2006_v16 = vmul.f32 %v5516_v0, %v1942_v28  ;;  %v1877_v54 = vmul.f32 %v5535_v37, %v1813_v40  ;;  %v993_v35 = vadd.f32 %v6842_v20, %v4751_v51  ;;  %6843 = vst [vmem:[#allocation73_spill] sm:$0xff] %v5556_v55 }
 0x2f7   :  { %v2769_v47 = vadd.f32 1.0, %v2705_v25  ;;  %v2132_v24 = vmul.f32 %v5505_v38, %v2068_v9  ;;  %vm1306_vm9 = vcmp.ge.f32.partialorder %v1242_v32, 0.0  ;;  %v1434_v22 = vand.u32 2147483647, %v1242_v32 }
 0x2f8   :  { %v2707_v31 = vmul.f32 %v2643_v41, %v5428_v52  ;;  %v2070_v27 = vadd.f32 -0.28449672, %v2006_v16  ;;  %v1941_v48 = vadd.f32 1.4214138, %v1877_v54  ;;  %3860 = vpow2.f32 %v2480_v63  ;;  %v5571_v54 = vpop.f32.mrb[55].mxu0 }
 0x2f9   :  { %v5560_v23 = vpop.eup %3854  ;;  %v2196_v1 = vadd.f32 0.2548296, %v2132_v24  ;;  %v5563_v53 = vsel %vm1306_vm9, 1.0, %v6791_v49  ;;  %v1498_v39 = vmul.f32 0.3275911, %v1434_v22  ;;  %v2330_v28 = vsub.f32 0.0, %v1434_v22 }
 0x2fa   :  { %v2771_v40 = vadd.f32 1.0, %v2707_v31  ;;  %v2134_v25 = vmul.f32 %v5516_v0, %v2070_v27  ;;  %v2005_v9 = vmul.f32 %v5535_v37, %v1941_v48  ;;  %v1751_v32 = vmul.f32 1.0614054, %v5560_v23 }
 0x2fb   :  { %v2260_v52 = vmul.f32 %v5505_v38, %v2196_v1  ;;  %v1562_v16 = vadd.f32 1.0, %v1498_v39  ;;  %v2394_v63 = vmul.f32 %v2330_v28, %v1434_v22  ;;  %v5569_v41 = vmul.f32 0.5, %v993_v35 }
 0x2fc   :  { %v5574_v20 = vmul.f32 %v2769_v47, %v5383_v21  ;;  %v2198_v7 = vadd.f32 0.2548296, %v2134_v25  ;;  %v2069_v24 = vadd.f32 -0.28449672, %v2005_v9  ;;  %v1815_v31 = vadd.f32 -1.4531521, %v1751_v32 }
 0x2fd   :  { %v5576_v55 = vpop.eup %3856  ;;  %v2580_v27 = vmul.f32 %v5518_v29, %v2260_v52  ;;  %3862 = vrcp.f32 %v1562_v16  ;;  %v2484_v48 = vmul.f32 1.442695, %v2394_v63  ;;  %v1241_v30 = vmul.f32 0.70710677, %v993_v35  ;;  %v3723_v63 = vld [vmem:[%s6717_s5 + $0x30] sm:$0xff]  }
 0x2fe   :  { %6844 = vst [vmem:[#allocation74_spill] sm:$0xff] %v5574_v20  ;;  %v2262_v38 = vmul.f32 %v5516_v0, %v2198_v7  ;;  %v2133_v22 = vmul.f32 %v5535_v37, %v2069_v24  ;;  %v1879_v1 = vmul.f32 %v5560_v23, %v1815_v31  ;;  %v1752_v39 = vmul.f32 1.0614054, %v5576_v55  ;;  %v5591_v7 = vpop.f32.mrb[55].mxu1  ;;  %3581 = vmatpush3.bf16.msra.mxu0 %v3723_v63 }
 0x2ff   :  { %v3859_v21 = vpop.eup %3858  ;;  %v5584_v47 = vmul.f32 %v2771_v40, %v5404_v3  ;;  %v2644_v28 = vsub.f32 1.0, %v2580_v27  ;;  %3864 = vpow2.f32 %v2484_v48  ;;  %v1433_v25 = vand.u32 2147483647, %v1241_v30 }
 0x300   :  { %v2582_v29 = vmul.f32 %v5526_v46, %v2262_v38  ;;  %v2197_v9 = vadd.f32 0.2548296, %v2133_v22  ;;  %v1943_v32 = vadd.f32 1.4214138, %v1879_v1  ;;  %v1816_v35 = vadd.f32 -1.4531521, %v1752_v39 }
 0x301   :  { %6845 = vst [vmem:[#allocation75_spill] sm:$0xff] %v5584_v47  ;;  %v2708_v0 = vmul.f32 %v2644_v28, %v5449_v57  ;;  %vm1305_vm10 = vcmp.ge.f32.partialorder %v1241_v30, 0.0  ;;  %v1497_v52 = vmul.f32 0.3275911, %v1433_v25  ;;  %v2329_v16 = vsub.f32 0.0, %v1433_v25  ;;  %v6846_v38 = vld [vmem:[#allocation77_spill] sm:$0xff] }
 0x302   :  { %v5593_v3 = vpop.eup %3860  ;;  %v2646_v40 = vsub.f32 1.0, %v2582_v29  ;;  %v2261_v24 = vmul.f32 %v5535_v37, %v2197_v9  ;;  %v2007_v46 = vmul.f32 %v5560_v23, %v1943_v32  ;;  %v1880_v31 = vmul.f32 %v5576_v55, %v1816_v35 }
 0x303   :  { %v2772_v27 = vadd.f32 1.0, %v2708_v0  ;;  %v1561_v57 = vadd.f32 1.0, %v1497_v52  ;;  %v2393_v48 = vmul.f32 %v2329_v16, %v1433_v25  ;;  %v1106_v22 = vadd.f32 %v6846_v38, %v4753_v11 }
 0x304   :  { %v2710_v1 = vmul.f32 %v2646_v40, %v5474_v50  ;;  %v2581_v39 = vmul.f32 %v5547_v59, %v2261_v24  ;;  %v2071_v28 = vadd.f32 -0.28449672, %v2007_v46  ;;  %v1944_v47 = vadd.f32 1.4214138, %v1880_v31 }
 0x305   :  { %v5603_v29 = vmul.f32 %v2772_v27, %v5446_v15  ;;  %v5607_v37 = vsel %vm1305_vm10, 1.0, %v6791_v49  ;;  %3866 = vrcp.f32 %v1561_v57  ;;  %v2482_v9 = vmul.f32 1.442695, %v2393_v48 }
 0x306   :  { %v2774_v25 = vadd.f32 1.0, %v2710_v1  ;;  %v2645_v32 = vsub.f32 1.0, %v2581_v39  ;;  %v2135_v35 = vmul.f32 %v5560_v23, %v2071_v28  ;;  %v2008_v0 = vmul.f32 %v5576_v55, %v1944_v47 }
 0x307   :  { %6847 = vst [vmem:[#allocation77_spill] sm:$0xff] %v5603_v29  ;;  %v5611_v50 = vpop.eup %3862  ;;  %3868 = vpow2.f32 %v2482_v9  ;;  %v5613_v59 = vmul.f32 0.5, %v1106_v22  ;;  %v1243_v52 = vmul.f32 0.70710677, %v1106_v22  ;;  %v995_v15 = vadd.f32 %v5136_v62, %v4741_v33 }
 0x308   :  { %v2709_v30 = vmul.f32 %v2645_v32, %v5484_v56  ;;  %v2199_v16 = vadd.f32 0.2548296, %v2135_v35  ;;  %v2072_v63 = vadd.f32 -0.28449672, %v2008_v0  ;;  %v1108_v40 = vadd.f32 %v5154_v6, %v4743_v43 }
 0x309   :  { %v5620_v24 = vpop.eup %3864  ;;  %v5623_v47 = vmul.f32 %v2774_v25, %v5452_v45  ;;  %v1754_v46 = vmul.f32 1.0614054, %v5611_v50  ;;  %vm1307_vm11 = vcmp.ge.f32.partialorder %v1243_v52, 0.0  ;;  %v1435_v31 = vand.u32 2147483647, %v1243_v52 }
 0x30a   :  { %v2773_v27 = vadd.f32 1.0, %v2709_v30  ;;  %v2263_v57 = vmul.f32 %v5560_v23, %v2199_v16  ;;  %v2136_v62 = vmul.f32 %v5576_v55, %v2072_v63  ;;  %v5628_v56 = vmul.f32 0.5, %v995_v15  ;;  %v3724_v30 = vld [vmem:[%s6717_s5 + $0xf0] sm:$0xff]   ;;  %v5640_v16 = vpop.f32.mrb[56].mxu0 }
 0x30b   :  { %6848 = vst [vmem:[#allocation86_spill] sm:$0xff] %v5623_v47  ;;  %v1818_v48 = vadd.f32 -1.4531521, %v1754_v46  ;;  %v5631_v38 = vsel %vm1307_vm11, 1.0, %v6791_v49  ;;  %v1499_v6 = vmul.f32 0.3275911, %v1435_v31  ;;  %3644 = vmatprep.subr.bf16.mxu1 %v3724_v30 }
 0x30c   :  { %v2331_v22 = vsub.f32 0.0, %v1435_v31  ;;  %v2583_v1 = vmul.f32 %v3859_v21, %v2263_v57  ;;  %v2200_v45 = vadd.f32 0.2548296, %v2136_v62  ;;  %v1244_v39 = vmul.f32 0.70710677, %v995_v15 }
 0x30d   :  { %v5633_v28 = vmul.f32 0.5, %v1108_v40  ;;  %v1882_v9 = vmul.f32 %v5611_v50, %v1818_v48  ;;  %v1563_v25 = vadd.f32 1.0, %v1499_v6  ;;  %v1246_v23 = vmul.f32 0.70710677, %v1108_v40  ;;  %v5653_v48 = vpop.f32.mrb[56].mxu1 }
 0x30e   :  { %v2395_v32 = vmul.f32 %v2331_v22, %v1435_v31  ;;  %v2647_v35 = vsub.f32 1.0, %v2583_v1  ;;  %v2264_v0 = vmul.f32 %v5576_v55, %v2200_v45  ;;  %vm1308_vm12 = vcmp.ge.f32.partialorder %v1244_v39, 0.0  ;;  %v3725_v55 = vld [vmem:[%s6717_s5 + $0xb0] sm:$0xff]  }
 0x30f   :  { %v1436_v52 = vand.u32 2147483647, %v1244_v39  ;;  %v5642_v21 = vpop.eup %3866  ;;  %v5645_v15 = vmul.f32 %v2773_v27, %v5456_v4  ;;  %v1946_v63 = vadd.f32 1.4214138, %v1882_v9  ;;  %3870 = vrcp.f32 %v1563_v25  ;;  %3645 = vmatpush3.bf16.msra.mxu1 %v3725_v55 }
 0x310   :  { %v2486_v46 = vmul.f32 1.442695, %v2395_v32  ;;  %v2711_v40 = vmul.f32 %v2647_v35, %v5514_v19  ;;  %v2584_v31 = vmul.f32 %v5593_v3, %v2264_v0  ;;  %v1753_v57 = vmul.f32 1.0614054, %v5642_v21 }
 0x311   :  { %6849 = vst [vmem:[#allocation87_spill] sm:$0xff] %v5645_v15  ;;  %v1500_v62 = vmul.f32 0.3275911, %v1436_v52  ;;  %v5655_v6 = vpop.eup %3868  ;;  %v2010_v4 = vmul.f32 %v5611_v50, %v1946_v63  ;;  %v5660_v27 = vsel %vm1308_vm12, 1.0, %v6791_v49  ;;  %v2332_v22 = vsub.f32 0.0, %v1436_v52 }
 0x312   :  { %vm1310_vm13 = vcmp.ge.f32.partialorder %v1246_v23, 0.0  ;;  %v2775_v19 = vadd.f32 1.0, %v2711_v40  ;;  %v2648_v1 = vsub.f32 1.0, %v2584_v31  ;;  %v1817_v3 = vadd.f32 -1.4531521, %v1753_v57  ;;  %v5668_v31 = vpop.f32.mrb[57].mxu0 }
 0x313   :  { %v1564_v45 = vadd.f32 1.0, %v1500_v62  ;;  %v2074_v9 = vadd.f32 -0.28449672, %v2010_v4  ;;  %3872 = vpow2.f32 %v2486_v46  ;;  %v2396_v25 = vmul.f32 %v2332_v22, %v1436_v52 }
 0x314   :  { %v1438_v32 = vand.u32 2147483647, %v1246_v23  ;;  %v2712_v35 = vmul.f32 %v2648_v1, %v5524_v17  ;;  %v1881_v0 = vmul.f32 %v5642_v21, %v1817_v3  ;;  %v5665_v39 = vsel %vm1310_vm13, 1.0, %v6791_v49 }
 0x315   :  { %3874 = vrcp.f32 %v1564_v45  ;;  %v2138_v30 = vmul.f32 %v5611_v50, %v2074_v9  ;;  %v2488_v63 = vmul.f32 1.442695, %v2396_v25  ;;  %v5671_v57 = vmul.f32 %v2775_v19, %v5503_v44 }
 0x316   :  { %v1502_v55 = vmul.f32 0.3275911, %v1438_v32  ;;  %v2334_v40 = vsub.f32 0.0, %v1438_v32  ;;  %v2776_v52 = vadd.f32 1.0, %v2712_v35  ;;  %v1945_v23 = vadd.f32 1.4214138, %v1881_v0 }
 0x317   :  { %6850 = vst [vmem:[#allocation88_spill] sm:$0xff] %v5671_v57  ;;  %v997_v17 = vadd.f32 %v5174_v18, %v4751_v51  ;;  %v2202_v46 = vadd.f32 0.2548296, %v2138_v30  ;;  %v1110_v22 = vadd.f32 %v5199_v26, %v4753_v11  ;;  %3876 = vpow2.f32 %v2488_v63 }
 0x318   :  { %v1566_v62 = vadd.f32 1.0, %v1502_v55  ;;  %v2398_v4 = vmul.f32 %v2334_v40, %v1438_v32  ;;  %v5678_v1 = vmul.f32 %v2776_v52, %v5507_v58  ;;  %v2009_v3 = vmul.f32 %v5642_v21, %v1945_v23  ;;  %v5696_v40 = vpop.f32.mrb[57].mxu1 }
 0x319   :  { %v1245_v45 = vmul.f32 0.70710677, %v997_v17  ;;  %v5681_v44 = vpop.eup %3870  ;;  %v2266_v19 = vmul.f32 %v5611_v50, %v2202_v46  ;;  %v5684_v18 = vmul.f32 0.5, %v997_v17  ;;  %v1001_v26 = vadd.f32 %v5247_v10, %v4741_v33 }
 0x31a   :  { %6851 = vst [vmem:[#allocation89_spill] sm:$0xff] %v5678_v1  ;;  %3878 = vrcp.f32 %v1566_v62  ;;  %v2492_v9 = vmul.f32 1.442695, %v2398_v4  ;;  %v2073_v25 = vadd.f32 -0.28449672, %v2009_v3  ;;  %v5690_v0 = vmul.f32 0.5, %v1110_v22 }
 0x31b   :  { %v1755_v32 = vmul.f32 1.0614054, %v5681_v44  ;;  %vm1309_vm14 = vcmp.ge.f32.partialorder %v1245_v45, 0.0  ;;  %v2586_v58 = vmul.f32 %v5620_v24, %v2266_v19  ;;  %v1437_v35 = vand.u32 2147483647, %v1245_v45 }
 0x31c   :  { %3880 = vpow2.f32 %v2492_v9  ;;  %v2137_v30 = vmul.f32 %v5642_v21, %v2073_v25  ;;  %v5694_v63 = vsel %vm1309_vm14, 1.0, %v6791_v49  ;;  %v1247_v55 = vmul.f32 0.70710677, %v1110_v22 }
 0x31d   :  { %v1819_v50 = vadd.f32 -1.4531521, %v1755_v32  ;;  %v5698_v52 = vpop.eup %3872  ;;  %v2650_v23 = vsub.f32 1.0, %v2586_v58  ;;  %v1501_v17 = vmul.f32 0.3275911, %v1437_v35  ;;  %v2333_v10 = vsub.f32 0.0, %v1437_v35 }
 0x31e   :  { %v5700_v46 = vmul.f32 0.5, %v1001_v26  ;;  %v2201_v62 = vadd.f32 0.2548296, %v2137_v30  ;;  %v1439_v3 = vand.u32 2147483647, %v1247_v55  ;;  %vm1311_vm15 = vcmp.ge.f32.partialorder %v1247_v55, 0.0 }
 0x31f   :  { %v5702_v24 = vpop.eup %3874  ;;  %v1883_v4 = vmul.f32 %v5681_v44, %v1819_v50  ;;  %v1248_v45 = vmul.f32 0.70710677, %v1001_v26  ;;  %v2714_v19 = vmul.f32 %v2650_v23, %v5563_v53  ;;  %v1565_v9 = vadd.f32 1.0, %v1501_v17 }
 0x320   :  { %v1756_v22 = vmul.f32 1.0614054, %v5702_v24  ;;  %v2397_v25 = vmul.f32 %v2333_v10, %v1437_v35  ;;  %v2265_v32 = vmul.f32 %v5642_v21, %v2201_v62  ;;  %v1503_v1 = vmul.f32 0.3275911, %v1439_v3 }
 0x321   :  { %v1947_v58 = vadd.f32 1.4214138, %v1883_v4  ;;  %v2778_v47 = vadd.f32 1.0, %v2714_v19  ;;  %3882 = vrcp.f32 %v1565_v9  ;;  %v5708_v30 = vpop.eup %3876  ;;  %v2335_v23 = vsub.f32 0.0, %v1439_v3 }
 0x322   :  { %v1820_v29 = vadd.f32 -1.4531521, %v1756_v22  ;;  %v2490_v57 = vmul.f32 1.442695, %v2397_v25  ;;  %v2585_v50 = vmul.f32 %v5655_v6, %v2265_v32  ;;  %v1567_v53 = vadd.f32 1.0, %v1503_v1  ;;  %v5724_v22 = vpop.f32.mrb[58].mxu0 }
 0x323   :  { %v2011_v26 = vmul.f32 %v5681_v44, %v1947_v58  ;;  %v5715_v35 = vmul.f32 %v2778_v47, %v5543_v5  ;;  %v5719_v55 = vsel %vm1311_vm15, 1.0, %v6791_v49  ;;  %v2399_v4 = vmul.f32 %v2335_v23, %v1439_v3  ;;  %v3726_v3 = vld [vmem:[%s6717_s5 + $0x78] sm:$0xff]  }
 0x324   :  { %v5712_v15 = vpop.eup %3878  ;;  %v1884_v21 = vmul.f32 %v5702_v24, %v1820_v29  ;;  %3884 = vpow2.f32 %v2490_v57  ;;  %v2649_v17 = vsub.f32 1.0, %v2585_v50  ;;  %vm1312_vm0 = vcmp.ge.f32.partialorder %v1248_v45, 0.0  ;;  %3582 = vmatprep.subr.bf16.mxu0 %v3726_v3 }
 0x325   :  { %6852 = vst [vmem:[#allocation90_spill] sm:$0xff] %v5715_v35  ;;  %v2075_v10 = vadd.f32 -0.28449672, %v2011_v26  ;;  %v1758_v62 = vmul.f32 1.0614054, %v5712_v15  ;;  %3886 = vrcp.f32 %v1567_v53  ;;  %v1114_v57 = vadd.f32 %v5249_v12, %v4743_v43 }
 0x326   :  { %v5722_v6 = vpop.eup %3880  ;;  %v1948_v1 = vadd.f32 1.4214138, %v1884_v21  ;;  %v1440_v19 = vand.u32 2147483647, %v1248_v45  ;;  %v2713_v5 = vmul.f32 %v2649_v17, %v5607_v37  ;;  %v2494_v25 = vmul.f32 1.442695, %v2399_v4 }
 0x327   :  { %v2139_v29 = vmul.f32 %v5681_v44, %v2075_v10  ;;  %v1822_v47 = vadd.f32 -1.4531521, %v1758_v62  ;;  %v5736_v37 = vsel %vm1312_vm0, 1.0, %v6791_v49  ;;  %v5738_v12 = vmul.f32 0.5, %v1114_v57 }
 0x328   :  { %v2012_v9 = vmul.f32 %v5702_v24, %v1948_v1  ;;  %v1504_v32 = vmul.f32 0.3275911, %v1440_v19  ;;  %v2336_v58 = vsub.f32 0.0, %v1440_v19  ;;  %v2777_v45 = vadd.f32 1.0, %v2713_v5 }
 0x329   :  { %v2203_v50 = vadd.f32 0.2548296, %v2139_v29  ;;  %v1886_v26 = vmul.f32 %v5712_v15, %v1822_v47  ;;  %3888 = vpow2.f32 %v2494_v25  ;;  %v1250_v62 = vmul.f32 0.70710677, %v1114_v57 }
 0x32a   :  { %v2076_v53 = vadd.f32 -0.28449672, %v2012_v9  ;;  %v1568_v23 = vadd.f32 1.0, %v1504_v32  ;;  %v2400_v21 = vmul.f32 %v2336_v58, %v1440_v19  ;;  %v1003_v29 = vadd.f32 %v5275_v2, %v4751_v51 }
 0x32b   :  { %v2267_v17 = vmul.f32 %v5681_v44, %v2203_v50  ;;  %v1950_v10 = vadd.f32 1.4214138, %v1886_v26  ;;  %v5741_v1 = vpop.eup %3882  ;;  %vm1314_vm1 = vcmp.ge.f32.partialorder %v1250_v62, 0.0  ;;  %v5749_v44 = vpop.f32.mrb[58].mxu1  ;;  %v5754_v57 = vmul.f32 %v2777_v45, %v5569_v41 }
 0x32c   :  { %v2140_v4 = vmul.f32 %v5702_v24, %v2076_v53  ;;  %3890 = vrcp.f32 %v1568_v23  ;;  %v2496_v5 = vmul.f32 1.442695, %v2400_v21  ;;  %v1757_v9 = vmul.f32 1.0614054, %v5741_v1 }
 0x32d   :  { %v2587_v47 = vmul.f32 %v5698_v52, %v2267_v17  ;;  %v2014_v19 = vmul.f32 %v5712_v15, %v1950_v10  ;;  %6853 = vst [vmem:[#allocation91_spill] sm:$0xff] %v5754_v57  ;;  %v1442_v58 = vand.u32 2147483647, %v1250_v62  ;;  %v5759_v26 = vsel %vm1314_vm1, 1.0, %v6791_v49 }
 0x32e   :  { %v5751_v25 = vpop.eup %3884  ;;  %v2204_v32 = vadd.f32 0.2548296, %v2140_v4  ;;  %3892 = vpow2.f32 %v2496_v5  ;;  %v1821_v52 = vadd.f32 -1.4531521, %v1757_v9  ;;  %v1249_v62 = vmul.f32 0.70710677, %v1003_v29 }
 0x32f   :  { %v5756_v3 = vpop.eup %3886  ;;  %v2651_v2 = vsub.f32 1.0, %v2587_v47  ;;  %v2078_v50 = vadd.f32 -0.28449672, %v2014_v19  ;;  %v1506_v21 = vmul.f32 0.3275911, %v1442_v58  ;;  %v2338_v17 = vsub.f32 0.0, %v1442_v58 }
 0x330   :  { %v2268_v53 = vmul.f32 %v5702_v24, %v2204_v32  ;;  %v1759_v23 = vmul.f32 1.0614054, %v5756_v3  ;;  %v1885_v10 = vmul.f32 %v5741_v1, %v1821_v52  ;;  %v5767_v9 = vpop.f32.mrb[59].mxu0  ;;  %vm1313_vm2 = vcmp.ge.f32.partialorder %v1249_v62, 0.0 }
 0x331   :  { %v2715_v41 = vmul.f32 %v2651_v2, %v5631_v38  ;;  %v2142_v45 = vmul.f32 %v5712_v15, %v2078_v50  ;;  %v1570_v47 = vadd.f32 1.0, %v1506_v21  ;;  %v2402_v19 = vmul.f32 %v2338_v17, %v1442_v58  ;;  %v3727_v2 = vld [vmem:[%s6717_s5 + $0x38] sm:$0xff]  }
 0x332   :  { %v2588_v4 = vmul.f32 %v5708_v30, %v2268_v53  ;;  %v1823_v5 = vadd.f32 -1.4531521, %v1759_v23  ;;  %v1949_v32 = vadd.f32 1.4214138, %v1885_v10  ;;  %v5778_v53 = vmul.f32 0.5, %v1003_v29  ;;  %3583 = vmatpush3.bf16.msra.mxu0 %v3727_v2 }
 0x333   :  { %v2779_v35 = vadd.f32 1.0, %v2715_v41  ;;  %v2206_v24 = vadd.f32 0.2548296, %v2142_v45  ;;  %3894 = vrcp.f32 %v1570_v47  ;;  %v2500_v38 = vmul.f32 1.442695, %v2402_v19  ;;  %v3889_v50 = vpop.eup %3888 }
 0x334   :  { %v2652_v57 = vsub.f32 1.0, %v2588_v4  ;;  %v1887_v20 = vmul.f32 %v5756_v3, %v1823_v5  ;;  %v2013_v52 = vmul.f32 %v5741_v1, %v1949_v32  ;;  %v5784_v41 = vsel %vm1313_vm2, 1.0, %v6791_v49 }
 0x335   :  { %v5774_v30 = vmul.f32 %v2779_v35, %v5613_v59  ;;  %v2270_v58 = vmul.f32 %v5712_v15, %v2206_v24  ;;  %v1441_v45 = vand.u32 2147483647, %v1249_v62  ;;  %v1116_v15 = vadd.f32 %v5301_v36, %v4753_v11 }
 0x336   :  { %v5780_v23 = vpop.eup %3890  ;;  %v2716_v21 = vmul.f32 %v2652_v57, %v5660_v27  ;;  %v1951_v17 = vadd.f32 1.4214138, %v1887_v20  ;;  %v2077_v59 = vadd.f32 -0.28449672, %v2013_v52  ;;  %3896 = vpow2.f32 %v2500_v38  ;;  %v5793_v57 = vpop.f32.mrb[59].mxu1 }
 0x337   :  { %6854 = vst [vmem:[#allocation92_spill] sm:$0xff] %v5774_v30  ;;  %v2590_v10 = vmul.f32 %v5722_v6, %v2270_v58  ;;  %v1760_v35 = vmul.f32 1.0614054, %v5780_v23  ;;  %v1505_v27 = vmul.f32 0.3275911, %v1441_v45  ;;  %v2337_v20 = vsub.f32 0.0, %v1441_v45 }
 0x338   :  { %v5790_v29 = vpop.eup %3892  ;;  %v2015_v4 = vmul.f32 %v5756_v3, %v1951_v17  ;;  %v2780_v5 = vadd.f32 1.0, %v2716_v21  ;;  %v2141_v47 = vmul.f32 %v5741_v1, %v2077_v59  ;;  %v5796_v2 = vmul.f32 0.5, %v1116_v15 }
 0x339   :  { %v2654_v62 = vsub.f32 1.0, %v2590_v10  ;;  %v1824_v6 = vadd.f32 -1.4531521, %v1760_v35  ;;  %v1569_v24 = vadd.f32 1.0, %v1505_v27  ;;  %v2401_v32 = vmul.f32 %v2337_v20, %v1441_v45 }
 0x33a   :  { %v2079_v19 = vadd.f32 -0.28449672, %v2015_v4  ;;  %v2205_v58 = vadd.f32 0.2548296, %v2141_v47  ;;  %v1251_v38 = vmul.f32 0.70710677, %v1116_v15  ;;  %v1005_v21 = vadd.f32 %v5336_v14, %v4741_v33 }
 0x33b   :  { %v2718_v36 = vmul.f32 %v2654_v62, %v5665_v39  ;;  %v1888_v52 = vmul.f32 %v5780_v23, %v1824_v6  ;;  %3898 = vrcp.f32 %v1569_v24  ;;  %v2498_v30 = vmul.f32 1.442695, %v2401_v32 }
 0x33c   :  { %v2143_v17 = vmul.f32 %v5756_v3, %v2079_v19  ;;  %v5804_v10 = vmul.f32 %v2780_v5, %v5628_v56  ;;  %v2269_v45 = vmul.f32 %v5741_v1, %v2205_v58  ;;  %vm1315_vm3 = vcmp.ge.f32.partialorder %v1251_v38, 0.0 }
 0x33d   :  { %v1952_v59 = vadd.f32 1.4214138, %v1888_v52  ;;  %v5807_v35 = vpop.eup %3894  ;;  %v2782_v39 = vadd.f32 1.0, %v2718_v36  ;;  %3900 = vpow2.f32 %v2498_v30  ;;  %v1443_v15 = vand.u32 2147483647, %v1251_v38  ;;  %v3729_v38 = vld [vmem:[%s6717_s5 + $0xb8] sm:$0xff]  }
 0x33e   :  { %6855 = vst [vmem:[#allocation93_spill] sm:$0xff] %v5804_v10  ;;  %v2207_v4 = vadd.f32 0.2548296, %v2143_v17  ;;  %v2589_v27 = vmul.f32 %v5751_v25, %v2269_v45  ;;  %v1762_v62 = vmul.f32 1.0614054, %v5807_v35  ;;  %v5813_v14 = vsel %vm1315_vm3, 1.0, %v6791_v49 }
 0x33f   :  { %v2016_v20 = vmul.f32 %v5780_v23, %v1952_v59  ;;  %v1507_v1 = vmul.f32 0.3275911, %v1443_v15  ;;  %v2339_v5 = vsub.f32 0.0, %v1443_v15  ;;  %v5816_v47 = vmul.f32 0.5, %v1005_v21  ;;  %v3728_v25 = vld [vmem:[%s6717_s5 + $0xf8] sm:$0xff]  }
 0x340   :  { %v2271_v56 = vmul.f32 %v5756_v3, %v2207_v4  ;;  %v2653_v6 = vsub.f32 1.0, %v2589_v27  ;;  %v1826_v24 = vadd.f32 -1.4531521, %v1762_v62  ;;  %v1118_v30 = vadd.f32 %v5350_v61, %v4743_v43  ;;  %v5823_v32 = vpop.eup %3896  ;;  %3646 = vmatprep.subr.bf16.mxu1 %v3728_v25 }
 0x341   :  { %v2080_v19 = vadd.f32 -0.28449672, %v2016_v20  ;;  %v1571_v58 = vadd.f32 1.0, %v1507_v1  ;;  %v2403_v52 = vmul.f32 %v2339_v5, %v1443_v15  ;;  %v1252_v3 = vmul.f32 0.70710677, %v1005_v21  ;;  %3647 = vmatpush3.bf16.msra.mxu1 %v3729_v38 }
 0x342   :  { %v2591_v36 = vmul.f32 %v3889_v50, %v2271_v56  ;;  %v2717_v17 = vmul.f32 %v2653_v6, %v5694_v63  ;;  %v1890_v61 = vmul.f32 %v5807_v35, %v1826_v24  ;;  %v5831_v59 = vmul.f32 0.5, %v1118_v30  ;;  %v5842_v6 = vpop.f32.mrb[60].mxu0 }
 0x343   :  { %v2144_v45 = vmul.f32 %v5780_v23, %v2080_v19  ;;  %3902 = vrcp.f32 %v1571_v58  ;;  %v2502_v27 = vmul.f32 1.442695, %v2403_v52  ;;  %vm1316_vm4 = vcmp.ge.f32.partialorder %v1252_v3, 0.0  ;;  %v5844_v19 = vpop.f32.mrb[60].mxu1 }
 0x344   :  { %v2655_v4 = vsub.f32 1.0, %v2591_v36  ;;  %v2781_v50 = vadd.f32 1.0, %v2717_v17  ;;  %v1954_v15 = vadd.f32 1.4214138, %v1890_v61  ;;  %v5834_v20 = vsel %vm1316_vm4, 1.0, %v6791_v49 }
 0x345   :  { %v2208_v21 = vadd.f32 0.2548296, %v2144_v45  ;;  %v5836_v62 = vpop.eup %3898  ;;  %v5839_v63 = vmul.f32 %v2782_v39, %v5633_v28  ;;  %v1444_v1 = vand.u32 2147483647, %v1252_v3  ;;  %v1254_v5 = vmul.f32 0.70710677, %v1118_v30 }
 0x346   :  { %v2719_v56 = vmul.f32 %v2655_v4, %v5719_v55  ;;  %v2018_v25 = vmul.f32 %v5807_v35, %v1954_v15  ;;  %v1761_v36 = vmul.f32 1.0614054, %v5836_v62  ;;  %3904 = vpow2.f32 %v2502_v27 }
 0x347   :  { %6856 = vst [vmem:[#allocation94_spill] sm:$0xff] %v5839_v63  ;;  %v2272_v24 = vmul.f32 %v5780_v23, %v2208_v21  ;;  %v5849_v58 = vpop.eup %3900  ;;  %v5852_v28 = vmul.f32 %v2781_v50, %v5684_v18  ;;  %v1508_v39 = vmul.f32 0.3275911, %v1444_v1  ;;  %v2340_v55 = vsub.f32 0.0, %v1444_v1 }
 0x348   :  { %vm1318_vm5 = vcmp.ge.f32.partialorder %v1254_v5, 0.0  ;;  %v2783_v30 = vadd.f32 1.0, %v2719_v56  ;;  %v2082_v3 = vadd.f32 -0.28449672, %v2018_v25  ;;  %v1825_v38 = vadd.f32 -1.4531521, %v1761_v36 }
 0x349   :  { %6857 = vst [vmem:[#allocation95_spill] sm:$0xff] %v5852_v28  ;;  %v2592_v52 = vmul.f32 %v5790_v29, %v2272_v24  ;;  %v1572_v17 = vadd.f32 1.0, %v1508_v39  ;;  %v2404_v23 = vmul.f32 %v2340_v55, %v1444_v1  ;;  %v5856_v45 = vsel %vm1318_vm5, 1.0, %v6791_v49  ;;  %v5862_v56 = vpop.f32.mrb[61].mxu0 }
 0x34a   :  { %v1446_v61 = vand.u32 2147483647, %v1254_v5  ;;  %v2146_v27 = vmul.f32 %v5807_v35, %v2082_v3  ;;  %v1889_v18 = vmul.f32 %v5836_v62, %v1825_v38  ;;  %v1007_v50 = vadd.f32 %v5374_v34, %v4751_v51 }
 0x34b   :  { %v2656_v4 = vsub.f32 1.0, %v2592_v52  ;;  %3906 = vrcp.f32 %v1572_v17  ;;  %v2504_v21 = vmul.f32 1.442695, %v2404_v23  ;;  %v5865_v1 = vmul.f32 %v2783_v30, %v5690_v0 }
 0x34c   :  { %v1510_v15 = vmul.f32 0.3275911, %v1446_v61  ;;  %v2342_v29 = vsub.f32 0.0, %v1446_v61  ;;  %v2210_v5 = vadd.f32 0.2548296, %v2146_v27  ;;  %v5873_v30 = vmul.f32 0.5, %v1007_v50 }
 0x34d   :  { %6858 = vst [vmem:[#allocation96_spill] sm:$0xff] %v5865_v1  ;;  %v2720_v24 = vmul.f32 %v2656_v4, %v5736_v37  ;;  %v1953_v25 = vadd.f32 1.4214138, %v1889_v18  ;;  %v5868_v36 = vpop.eup %3902  ;;  %3908 = vpow2.f32 %v2504_v21  ;;  %v1253_v52 = vmul.f32 0.70710677, %v1007_v50 }
 0x34e   :  { %v1574_v39 = vadd.f32 1.0, %v1510_v15  ;;  %v2406_v55 = vmul.f32 %v2342_v29, %v1446_v61  ;;  %v2274_v3 = vmul.f32 %v5807_v35, %v2210_v5  ;;  %v1763_v17 = vmul.f32 1.0614054, %v5868_v36  ;;  %v5885_v5 = vpop.f32.mrb[61].mxu1 }
 0x34f   :  { %v2784_v34 = vadd.f32 1.0, %v2720_v24  ;;  %v2017_v38 = vmul.f32 %v5836_v62, %v1953_v25  ;;  %v1445_v37 = vand.u32 2147483647, %v1253_v52  ;;  %vm1317_vm6 = vcmp.ge.f32.partialorder %v1253_v52, 0.0 }
 0x350   :  { %3910 = vrcp.f32 %v1574_v39  ;;  %v2508_v0 = vmul.f32 1.442695, %v2406_v55  ;;  %v5875_v23 = vpop.eup %3904  ;;  %v2594_v4 = vmul.f32 %v5823_v32, %v2274_v3  ;;  %v1827_v18 = vadd.f32 -1.4531521, %v1763_v17 }
 0x351   :  { %v2081_v27 = vadd.f32 -0.28449672, %v2017_v38  ;;  %v5879_v61 = vmul.f32 %v2784_v34, %v5700_v46  ;;  %v1509_v35 = vmul.f32 0.3275911, %v1445_v37  ;;  %v2341_v21 = vsub.f32 0.0, %v1445_v37 }
 0x352   :  { %3912 = vpow2.f32 %v2508_v0  ;;  %v2658_v15 = vsub.f32 1.0, %v2594_v4  ;;  %v1891_v50 = vmul.f32 %v5868_v36, %v1827_v18  ;;  %v1120_v24 = vadd.f32 %v5397_v13, %v4753_v11 }
 0x353   :  { %6859 = vst [vmem:[#allocation97_spill] sm:$0xff] %v5879_v61  ;;  %v2145_v29 = vmul.f32 %v5836_v62, %v2081_v27  ;;  %v5888_v32 = vsel %vm1317_vm6, 1.0, %v6791_v49  ;;  %v1573_v25 = vadd.f32 1.0, %v1509_v35  ;;  %v2405_v39 = vmul.f32 %v2341_v21, %v1445_v37 }
 0x354   :  { %v1011_v46 = vadd.f32 %v5442_v60, %v4741_v33  ;;  %v2722_v55 = vmul.f32 %v2658_v15, %v5759_v26  ;;  %v1955_v34 = vadd.f32 1.4214138, %v1891_v50  ;;  %v1124_v3 = vadd.f32 %v5444_v8, %v4743_v43 }
 0x355   :  { %v2209_v52 = vadd.f32 0.2548296, %v2145_v29  ;;  %v5895_v38 = vpop.eup %3906  ;;  %3914 = vrcp.f32 %v1573_v25  ;;  %v2506_v13 = vmul.f32 1.442695, %v2405_v39  ;;  %v5897_v17 = vmul.f32 0.5, %v1120_v24 }
 0x356   :  { %v1255_v0 = vmul.f32 0.70710677, %v1120_v24  ;;  %v2786_v4 = vadd.f32 1.0, %v2722_v55  ;;  %v2019_v27 = vmul.f32 %v5868_v36, %v1955_v34  ;;  %v1764_v60 = vmul.f32 1.0614054, %v5895_v38 }
 0x357   :  { %v2273_v37 = vmul.f32 %v5836_v62, %v2209_v52  ;;  %v5902_v26 = vpop.eup %3908  ;;  %v5904_v35 = vmul.f32 0.5, %v1011_v46  ;;  %v1256_v8 = vmul.f32 0.70710677, %v1011_v46  ;;  %3916 = vpow2.f32 %v2506_v13 }
 0x358   :  { %vm1319_vm7 = vcmp.ge.f32.partialorder %v1255_v0, 0.0  ;;  %v1447_v18 = vand.u32 2147483647, %v1255_v0  ;;  %v2083_v15 = vadd.f32 -0.28449672, %v2019_v27  ;;  %v5910_v62 = vmul.f32 %v2786_v4, %v5738_v12 }
 0x359   :  { %v2593_v21 = vmul.f32 %v5849_v58, %v2273_v37  ;;  %v1828_v29 = vadd.f32 -1.4531521, %v1764_v60  ;;  %v5913_v24 = vsel %vm1319_vm7, 1.0, %v6791_v49  ;;  %vm1320_vm8 = vcmp.ge.f32.partialorder %v1256_v8, 0.0 }
 0x35a   :  { %v5907_v50 = vpop.eup %3910  ;;  %6860 = vst [vmem:[#allocation98_spill] sm:$0xff] %v5910_v62  ;;  %v1511_v25 = vmul.f32 0.3275911, %v1447_v18  ;;  %v2343_v39 = vsub.f32 0.0, %v1447_v18  ;;  %v2147_v52 = vmul.f32 %v5868_v36, %v2083_v15  ;;  %v1448_v37 = vand.u32 2147483647, %v1256_v8 }
 0x35b   :  { %v2657_v55 = vsub.f32 1.0, %v2593_v21  ;;  %v1892_v46 = vmul.f32 %v5895_v38, %v1828_v29  ;;  %v1766_v58 = vmul.f32 1.0614054, %v5907_v50 }
 0x35c   :  { %v5918_v34 = vpop.eup %3912  ;;  %v1575_v13 = vadd.f32 1.0, %v1511_v25  ;;  %v2407_v0 = vmul.f32 %v2343_v39, %v1447_v18  ;;  %v2211_v4 = vadd.f32 0.2548296, %v2147_v52  ;;  %v1512_v21 = vmul.f32 0.3275911, %v1448_v37 }
 0x35d   :  { %v2721_v12 = vmul.f32 %v2657_v55, %v5784_v41  ;;  %v1956_v27 = vadd.f32 1.4214138, %v1892_v46  ;;  %v1830_v60 = vadd.f32 -1.4531521, %v1766_v58  ;;  %v2344_v61 = vsub.f32 0.0, %v1448_v37 }
 0x35e   :  { %3918 = vrcp.f32 %v1575_v13  ;;  %v2510_v62 = vmul.f32 1.442695, %v2407_v0  ;;  %v2275_v15 = vmul.f32 %v5868_v36, %v2211_v4  ;;  %v5925_v25 = vsel %vm1320_vm8, 1.0, %v6791_v49 }
 0x35f   :  { %v2020_v29 = vmul.f32 %v5895_v38, %v1956_v27  ;;  %v1894_v63 = vmul.f32 %v5907_v50, %v1830_v60  ;;  %v5927_v18 = vpop.eup %3914  ;;  %v2785_v8 = vadd.f32 1.0, %v2721_v12  ;;  %v1576_v41 = vadd.f32 1.0, %v1512_v21 }
 0x360   :  { %3920 = vpow2.f32 %v2510_v62  ;;  %v2408_v39 = vmul.f32 %v2344_v61, %v1448_v37  ;;  %v2595_v55 = vmul.f32 %v5875_v23, %v2275_v15  ;;  %v5930_v58 = vmul.f32 0.5, %v1124_v3 }
 0x361   :  { %v2084_v52 = vadd.f32 -0.28449672, %v2020_v29  ;;  %v1958_v46 = vadd.f32 1.4214138, %v1894_v63  ;;  %v1765_v36 = vmul.f32 1.0614054, %v5927_v18  ;;  %3922 = vrcp.f32 %v1576_v41  ;;  %v5933_v4 = vpop.eup %3916 }
 0x362   :  { %v2512_v13 = vmul.f32 1.442695, %v2408_v39  ;;  %v1258_v0 = vmul.f32 0.70710677, %v1124_v3  ;;  %v2659_v27 = vsub.f32 1.0, %v2595_v55  ;;  %v1013_v61 = vadd.f32 %v5476_v42, %v4751_v51 }
 0x363   :  { %v2148_v60 = vmul.f32 %v5895_v38, %v2084_v52  ;;  %v2022_v62 = vmul.f32 %v5907_v50, %v1958_v46  ;;  %v5940_v23 = vmul.f32 %v2785_v8, %v5778_v53  ;;  %v1829_v63 = vadd.f32 -1.4531521, %v1765_v36 }
 0x364   :  { %vm1322_vm9 = vcmp.ge.f32.partialorder %v1258_v0, 0.0  ;;  %v1450_v37 = vand.u32 2147483647, %v1258_v0  ;;  %v2723_v12 = vmul.f32 %v2659_v27, %v5813_v14  ;;  %3924 = vpow2.f32 %v2512_v13 }
 0x365   :  { %6861 = vst [vmem:[#allocation99_spill] sm:$0xff] %v5940_v23  ;;  %v2212_v21 = vadd.f32 0.2548296, %v2148_v60  ;;  %v2086_v3 = vadd.f32 -0.28449672, %v2022_v62  ;;  %v1893_v15 = vmul.f32 %v5927_v18, %v1829_v63  ;;  %v5945_v29 = vsel %vm1322_vm9, 1.0, %v6791_v49 }
 0x366   :  { %v1514_v41 = vmul.f32 0.3275911, %v1450_v37  ;;  %v2346_v39 = vsub.f32 0.0, %v1450_v37  ;;  %v2787_v55 = vadd.f32 1.0, %v2723_v12  ;;  %v1257_v8 = vmul.f32 0.70710677, %v1013_v61 }
 0x367   :  { %v2276_v42 = vmul.f32 %v5895_v38, %v2212_v21  ;;  %v2150_v53 = vmul.f32 %v5907_v50, %v2086_v3  ;;  %v1957_v46 = vadd.f32 1.4214138, %v1893_v15  ;;  %v5951_v0 = vmul.f32 0.5, %v1013_v61  ;;  %v6862_v62 = vld [vmem:[#allocation68_spill] sm:$0xff]  ;;  %v5960_v3 = vpop.f32.mrb[62].mxu0 }
 0x368   :  { %v5949_v52 = vpop.eup %3918  ;;  %v1578_v14 = vadd.f32 1.0, %v1514_v41  ;;  %v2410_v36 = vmul.f32 %v2346_v39, %v1450_v37  ;;  %v1126_v63 = vadd.f32 %v6862_v62, %v4753_v11  ;;  %vm1321_vm10 = vcmp.ge.f32.partialorder %v1257_v8, 0.0  ;;  %v5962_v37 = vpop.f32.mrb[62].mxu1 }
 0x369   :  { %v2596_v13 = vmul.f32 %v5902_v26, %v2276_v42  ;;  %v2214_v27 = vadd.f32 0.2548296, %v2150_v53  ;;  %v1767_v60 = vmul.f32 1.0614054, %v5949_v52  ;;  %v2021_v38 = vmul.f32 %v5927_v18, %v1957_v46  ;;  %v5968_v39 = vpop.f32.mrb[63].mxu0 }
 0x36a   :  { %v5957_v12 = vpop.eup %3920  ;;  %3926 = vrcp.f32 %v1578_v14  ;;  %v2516_v21 = vmul.f32 1.442695, %v2410_v36  ;;  %v5965_v61 = vmul.f32 %v2787_v55, %v5796_v2  ;;  %6864 = vst [vmem:[#allocation100_spill] sm:$0xff] %v5968_v39  ;;  %v5973_v46 = vsel %vm1321_vm10, 1.0, %v6791_v49 }
 0x36b   :  { %v2660_v26 = vsub.f32 1.0, %v2596_v13  ;;  %v2278_v15 = vmul.f32 %v5907_v50, %v2214_v27  ;;  %v1831_v41 = vadd.f32 -1.4531521, %v1767_v60  ;;  %v5970_v42 = vpop.eup %3922  ;;  %v2085_v53 = vadd.f32 -0.28449672, %v2021_v38 }
 0x36c   :  { %6863 = vst [vmem:[#allocation68_spill] sm:$0xff] %v5965_v61  ;;  %3928 = vpow2.f32 %v2516_v21  ;;  %v1449_v14 = vand.u32 2147483647, %v1257_v8  ;;  %v1768_v55 = vmul.f32 1.0614054, %v5970_v42 }
 0x36d   :  { %v2724_v36 = vmul.f32 %v2660_v26, %v5834_v20  ;;  %v2598_v62 = vmul.f32 %v5918_v34, %v2278_v15  ;;  %v1895_v2 = vmul.f32 %v5949_v52, %v1831_v41  ;;  %v2149_v50 = vmul.f32 %v5927_v18, %v2085_v53 }
 0x36e   :  { %v1513_v13 = vmul.f32 0.3275911, %v1449_v14  ;;  %v2345_v27 = vsub.f32 0.0, %v1449_v14  ;;  %v1259_v60 = vmul.f32 0.70710677, %v1126_v63  ;;  %v5980_v61 = vpop.eup %3924  ;;  %v5982_v26 = vmul.f32 0.5, %v1126_v63 }
 0x36f   :  { %v2788_v38 = vadd.f32 1.0, %v2724_v36  ;;  %v2662_v21 = vsub.f32 1.0, %v2598_v62  ;;  %v1959_v23 = vadd.f32 1.4214138, %v1895_v2  ;;  %v1832_v10 = vadd.f32 -1.4531521, %v1768_v55 }
 0x370   :  { %v2213_v8 = vadd.f32 0.2548296, %v2149_v50  ;;  %v1577_v1 = vadd.f32 1.0, %v1513_v13  ;;  %v2409_v20 = vmul.f32 %v2345_v27, %v1449_v14  ;;  %vm1323_vm11 = vcmp.ge.f32.partialorder %v1259_v60, 0.0  ;;  %v5991_v2 = vpop.f32.mrb[63].mxu1  ;;  %v6867_v50 = vld [vmem:[#allocation71_spill] sm:$0xff] }
 0x371   :  { %v2726_v34 = vmul.f32 %v2662_v21, %v5856_v45  ;;  %v2023_v15 = vmul.f32 %v5949_v52, %v1959_v23  ;;  %v1896_v41 = vmul.f32 %v5970_v42, %v1832_v10  ;;  %v5988_v53 = vmul.f32 %v2788_v38, %v5816_v47  ;;  %6866 = vst [vmem:[#allocation102_spill] sm:$0xff] %v5991_v2  ;;  %v6868_v38 = vld [vmem:[#allocation73_spill] sm:$0xff] }
 0x372   :  { %v2277_v36 = vmul.f32 %v5927_v18, %v2213_v8  ;;  %3930 = vrcp.f32 %v1577_v1  ;;  %v2514_v62 = vmul.f32 1.442695, %v2409_v20  ;;  %v1015_v45 = vadd.f32 %v6867_v50, %v4741_v33 }
 0x373   :  { %6865 = vst [vmem:[#allocation101_spill] sm:$0xff] %v5988_v53  ;;  %v2790_v55 = vadd.f32 1.0, %v2726_v34  ;;  %v2087_v14 = vadd.f32 -0.28449672, %v2023_v15  ;;  %v1960_v63 = vadd.f32 1.4214138, %v1896_v41  ;;  %v1128_v21 = vadd.f32 %v6868_v38, %v4743_v43 }
 0x374   :  { %v5995_v13 = vpop.eup %3926  ;;  %v2597_v10 = vmul.f32 %v5933_v4, %v2277_v36  ;;  %3932 = vpow2.f32 %v2514_v62  ;;  %v5999_v47 = vsel %vm1323_vm11, 1.0, %v6791_v49  ;;  %v1451_v23 = vand.u32 2147483647, %v1259_v60 }
 0x375   :  { %v2151_v1 = vmul.f32 %v5949_v52, %v2087_v14  ;;  %v2024_v18 = vmul.f32 %v5970_v42, %v1960_v63  ;;  %v1770_v27 = vmul.f32 1.0614054, %v5995_v13  ;;  %v6008_v4 = vmul.f32 0.5, %v1015_v45 }
 0x376   :  { %v6006_v8 = vpop.eup %3928  ;;  %v2661_v20 = vsub.f32 1.0, %v2597_v10  ;;  %v1515_v34 = vmul.f32 0.3275911, %v1451_v23  ;;  %v2347_v15 = vsub.f32 0.0, %v1451_v23  ;;  %v6011_v41 = vmul.f32 %v2790_v55, %v5831_v59 }
 0x377   :  { %v2215_v60 = vadd.f32 0.2548296, %v2151_v1  ;;  %v2088_v36 = vadd.f32 -0.28449672, %v2024_v18  ;;  %v1834_v62 = vadd.f32 -1.4531521, %v1770_v27  ;;  %v1017_v2 = vadd.f32 %v5571_v54, %v4751_v51 }
 0x378   :  { %v2725_v14 = vmul.f32 %v2661_v20, %v5888_v32  ;;  %v1579_v63 = vadd.f32 1.0, %v1515_v34  ;;  %v2411_v50 = vmul.f32 %v2347_v15, %v1451_v23  ;;  %v1260_v53 = vmul.f32 0.70710677, %v1015_v45 }
 0x379   :  { %v2279_v38 = vmul.f32 %v5949_v52, %v2215_v60  ;;  %v2152_v28 = vmul.f32 %v5970_v42, %v2088_v36  ;;  %v1898_v10 = vmul.f32 %v5995_v13, %v1834_v62  ;;  %v6020_v18 = vmul.f32 0.5, %v1128_v21 }
 0x37a   :  { %v2789_v39 = vadd.f32 1.0, %v2725_v14  ;;  %3934 = vrcp.f32 %v1579_v63  ;;  %v2518_v59 = vmul.f32 1.442695, %v2411_v50  ;;  %vm1324_vm12 = vcmp.ge.f32.partialorder %v1260_v53, 0.0 }
 0x37b   :  { %v2599_v55 = vmul.f32 %v5957_v12, %v2279_v38  ;;  %v2216_v1 = vadd.f32 0.2548296, %v2152_v28  ;;  %v1962_v32 = vadd.f32 1.4214138, %v1898_v10  ;;  %v6028_v23 = vsel %vm1324_vm12, 1.0, %v6791_v49 }
 0x37c   :  { %v6022_v45 = vpop.eup %3930  ;;  %v6025_v52 = vmul.f32 %v2789_v39, %v5873_v30  ;;  %v1452_v27 = vand.u32 2147483647, %v1260_v53  ;;  %v1262_v54 = vmul.f32 0.70710677, %v1128_v21  ;;  %3936 = vpow2.f32 %v2518_v59 }
 0x37d   :  { %v2663_v20 = vsub.f32 1.0, %v2599_v55  ;;  %v2280_v34 = vmul.f32 %v5970_v42, %v2216_v1  ;;  %v2026_v15 = vmul.f32 %v5995_v13, %v1962_v32  ;;  %v1769_v28 = vmul.f32 1.0614054, %v6022_v45 }
 0x37e   :  { %v6033_v12 = vpop.eup %3932  ;;  %v1516_v60 = vmul.f32 0.3275911, %v1452_v27  ;;  %v2348_v36 = vsub.f32 0.0, %v1452_v27  ;;  %v1454_v62 = vand.u32 2147483647, %v1262_v54  ;;  %vm1326_vm13 = vcmp.ge.f32.partialorder %v1262_v54, 0.0 }
 0x37f   :  { %v2727_v30 = vmul.f32 %v2663_v20, %v5913_v24  ;;  %v2600_v39 = vmul.f32 %v5980_v61, %v2280_v34  ;;  %v2090_v14 = vadd.f32 -0.28449672, %v2026_v15  ;;  %v1833_v53 = vadd.f32 -1.4531521, %v1769_v28 }
 0x380   :  { %v1580_v21 = vadd.f32 1.0, %v1516_v60  ;;  %v2412_v63 = vmul.f32 %v2348_v36, %v1452_v27  ;;  %v1518_v42 = vmul.f32 0.3275911, %v1454_v62  ;;  %v2350_v32 = vsub.f32 0.0, %v1454_v62 }
 0x381   :  { %v2791_v50 = vadd.f32 1.0, %v2727_v30  ;;  %v2664_v38 = vsub.f32 1.0, %v2600_v39  ;;  %v2154_v10 = vmul.f32 %v5995_v13, %v2090_v14  ;;  %v1897_v55 = vmul.f32 %v6022_v45, %v1833_v53 }
 0x382   :  { %3938 = vrcp.f32 %v1580_v21  ;;  %v2520_v59 = vmul.f32 1.442695, %v2412_v63  ;;  %v1582_v1 = vadd.f32 1.0, %v1518_v42  ;;  %v6041_v34 = vsel %vm1326_vm13, 1.0, %v6791_v49 }
 0x383   :  { %v2728_v24 = vmul.f32 %v2664_v38, %v5925_v25  ;;  %v2218_v20 = vadd.f32 0.2548296, %v2154_v10  ;;  %v1961_v61 = vadd.f32 1.4214138, %v1897_v55  ;;  %v6046_v54 = vmul.f32 %v2791_v50, %v5897_v17 }
 0x384   :  { %v6043_v27 = vpop.eup %3934  ;;  %3940 = vpow2.f32 %v2520_v59  ;;  %v2414_v15 = vmul.f32 %v2350_v32, %v1454_v62  ;;  %v1261_v28 = vmul.f32 0.70710677, %v1017_v2  ;;  %v6051_v14 = vmul.f32 0.5, %v1017_v2 }
 0x385   :  { %v2792_v60 = vadd.f32 1.0, %v2728_v24  ;;  %v2282_v36 = vmul.f32 %v5995_v13, %v2218_v20  ;;  %v2025_v30 = vmul.f32 %v6022_v45, %v1961_v61  ;;  %v1771_v25 = vmul.f32 1.0614054, %v6043_v27 }
 0x386   :  { %3942 = vrcp.f32 %v1582_v1  ;;  %v2524_v39 = vmul.f32 1.442695, %v2414_v15  ;;  %v1453_v53 = vand.u32 2147483647, %v1261_v28  ;;  %vm1325_vm14 = vcmp.ge.f32.partialorder %v1261_v28, 0.0  ;;  %v6054_v42 = vpop.eup %3936 }
 0x387   :  { %v2602_v21 = vmul.f32 %v6006_v8, %v2282_v36  ;;  %v2089_v63 = vadd.f32 -0.28449672, %v2025_v30  ;;  %v1835_v17 = vadd.f32 -1.4531521, %v1771_v25  ;;  %v6057_v62 = vmul.f32 %v2792_v60, %v5904_v35 }
 0x388   :  { %3944 = vpow2.f32 %v2524_v39  ;;  %v1517_v13 = vmul.f32 0.3275911, %v1453_v53  ;;  %v2349_v50 = vsub.f32 0.0, %v1453_v53  ;;  %v1130_v55 = vadd.f32 %v5591_v7, %v4753_v11 }
 0x389   :  { %v2666_v38 = vsub.f32 1.0, %v2602_v21  ;;  %v2153_v10 = vmul.f32 %v6022_v45, %v2089_v63  ;;  %v1899_v2 = vmul.f32 %v6043_v27, %v1835_v17  ;;  %v6064_v8 = vsel %vm1325_vm14, 1.0, %v6791_v49 }
 0x38a   :  { %v1581_v59 = vadd.f32 1.0, %v1517_v13  ;;  %v2413_v1 = vmul.f32 %v2349_v50, %v1453_v53  ;;  %v1021_v35 = vadd.f32 %v5640_v16, %v4741_v33  ;;  %v1134_v61 = vadd.f32 %v5653_v48, %v4743_v43 }
 0x38b   :  { %v2730_v32 = vmul.f32 %v2666_v38, %v5945_v29  ;;  %v2217_v24 = vadd.f32 0.2548296, %v2153_v10  ;;  %v1963_v20 = vadd.f32 1.4214138, %v1899_v2  ;;  %v6073_v7 = vmul.f32 0.5, %v1130_v55 }
 0x38c   :  { %v6071_v15 = vpop.eup %3938  ;;  %3946 = vrcp.f32 %v1581_v59  ;;  %v2522_v28 = vmul.f32 1.442695, %v2413_v1  ;;  %v1263_v60 = vmul.f32 0.70710677, %v1130_v55  ;;  %v6080_v53 = vmul.f32 0.5, %v1021_v35 }
 0x38d   :  { %v2794_v36 = vadd.f32 1.0, %v2730_v32  ;;  %v2281_v30 = vmul.f32 %v6022_v45, %v2217_v24  ;;  %v2027_v25 = vmul.f32 %v6043_v27, %v1963_v20  ;;  %v1772_v16 = vmul.f32 1.0614054, %v6071_v15 }
 0x38e   :  { %v6078_v29 = vpop.eup %3940  ;;  %vm1327_vm15 = vcmp.ge.f32.partialorder %v1263_v60, 0.0  ;;  %v1455_v39 = vand.u32 2147483647, %v1263_v60  ;;  %v1264_v48 = vmul.f32 0.70710677, %v1021_v35  ;;  %3948 = vpow2.f32 %v2522_v28 }
 0x38f   :  { %v2601_v21 = vmul.f32 %v6033_v12, %v2281_v30  ;;  %v2091_v63 = vadd.f32 -0.28449672, %v2027_v25  ;;  %v1836_v17 = vadd.f32 -1.4531521, %v1772_v16  ;;  %v6086_v45 = vmul.f32 %v2794_v36, %v5930_v58 }
 0x390   :  { %v6083_v13 = vpop.eup %3942  ;;  %v6089_v50 = vsel %vm1327_vm15, 1.0, %v6791_v49  ;;  %v1519_v38 = vmul.f32 0.3275911, %v1455_v39  ;;  %v2351_v10 = vsub.f32 0.0, %v1455_v39  ;;  %vm1328_vm0 = vcmp.ge.f32.partialorder %v1264_v48, 0.0 }
 0x391   :  { %v2665_v2 = vsub.f32 1.0, %v2601_v21  ;;  %v2155_v55 = vmul.f32 %v6043_v27, %v2091_v63  ;;  %v1900_v59 = vmul.f32 %v6071_v15, %v1836_v17  ;;  %v1774_v12 = vmul.f32 1.0614054, %v6083_v13 }
 0x392   :  { %v6094_v1 = vpop.eup %3944  ;;  %v1583_v35 = vadd.f32 1.0, %v1519_v38  ;;  %v2415_v32 = vmul.f32 %v2351_v10, %v1455_v39  ;;  %v1456_v24 = vand.u32 2147483647, %v1264_v48  ;;  %v6101_v17 = vsel %vm1328_vm0, 1.0, %v6791_v49 }
 0x393   :  { %v2729_v58 = vmul.f32 %v2665_v2, %v5973_v46  ;;  %v2219_v20 = vadd.f32 0.2548296, %v2155_v55  ;;  %v1964_v28 = vadd.f32 1.4214138, %v1900_v59  ;;  %v1838_v60 = vadd.f32 -1.4531521, %v1774_v12 }
 0x394   :  { %3950 = vrcp.f32 %v1583_v35  ;;  %v2526_v36 = vmul.f32 1.442695, %v2415_v32  ;;  %v1520_v30 = vmul.f32 0.3275911, %v1456_v24  ;;  %v2352_v25 = vsub.f32 0.0, %v1456_v24 }
 0x395   :  { %v2283_v16 = vmul.f32 %v6043_v27, %v2219_v20  ;;  %v2028_v21 = vmul.f32 %v6071_v15, %v1964_v28  ;;  %v1902_v63 = vmul.f32 %v6083_v13, %v1838_v60  ;;  %v2793_v48 = vadd.f32 1.0, %v2729_v58 }
 0x396   :  { %v6103_v39 = vpop.eup %3946  ;;  %3952 = vpow2.f32 %v2526_v36  ;;  %v1584_v46 = vadd.f32 1.0, %v1520_v30  ;;  %v2416_v38 = vmul.f32 %v2352_v25, %v1456_v24  ;;  %v6106_v59 = vmul.f32 0.5, %v1134_v61 }
 0x397   :  { %v2603_v10 = vmul.f32 %v6054_v42, %v2283_v16  ;;  %v2092_v2 = vadd.f32 -0.28449672, %v2028_v21  ;;  %v1966_v55 = vadd.f32 1.4214138, %v1902_v63  ;;  %v1773_v27 = vmul.f32 1.0614054, %v6103_v39 }
 0x398   :  { %3954 = vrcp.f32 %v1584_v46  ;;  %v2528_v12 = vmul.f32 1.442695, %v2416_v38  ;;  %v1266_v35 = vmul.f32 0.70710677, %v1134_v61  ;;  %v6109_v32 = vpop.eup %3948  ;;  %v1023_v24 = vadd.f32 %v5668_v31, %v4751_v51 }
 0x399   :  { %v2667_v20 = vsub.f32 1.0, %v2603_v10  ;;  %v2156_v28 = vmul.f32 %v6071_v15, %v2092_v2  ;;  %v2030_v58 = vmul.f32 %v6083_v13, %v1966_v55  ;;  %v6116_v42 = vmul.f32 %v2793_v48, %v5951_v0 }
 0x39a   :  { %v1837_v60 = vadd.f32 -1.4531521, %v1773_v27  ;;  %vm1330_vm1 = vcmp.ge.f32.partialorder %v1266_v35, 0.0  ;;  %v1458_v36 = vand.u32 2147483647, %v1266_v35  ;;  %3956 = vpow2.f32 %v2528_v12 }
 0x39b   :  { %v2731_v30 = vmul.f32 %v2667_v20, %v5999_v47  ;;  %v2220_v25 = vadd.f32 0.2548296, %v2156_v28  ;;  %v2094_v61 = vadd.f32 -0.28449672, %v2030_v58  ;;  %v6121_v21 = vsel %vm1330_vm1, 1.0, %v6791_v49 }
 0x39c   :  { %v1901_v16 = vmul.f32 %v6103_v39, %v1837_v60  ;;  %v1522_v63 = vmul.f32 0.3275911, %v1458_v36  ;;  %v2354_v46 = vsub.f32 0.0, %v1458_v36  ;;  %v1265_v48 = vmul.f32 0.70710677, %v1023_v24 }
 0x39d   :  { %v2795_v38 = vadd.f32 1.0, %v2731_v30  ;;  %v2284_v31 = vmul.f32 %v6071_v15, %v2220_v25  ;;  %v2158_v0 = vmul.f32 %v6083_v13, %v2094_v61  ;;  %v6127_v27 = vmul.f32 0.5, %v1023_v24 }
 0x39e   :  { %v6125_v10 = vpop.eup %3950  ;;  %v1965_v2 = vadd.f32 1.4214138, %v1901_v16  ;;  %v1586_v47 = vadd.f32 1.0, %v1522_v63  ;;  %v2418_v55 = vmul.f32 %v2354_v46, %v1458_v36  ;;  %v1136_v28 = vadd.f32 %v5696_v40, %v4753_v11 }
 0x39f   :  { %v2604_v12 = vmul.f32 %v6078_v29, %v2284_v31  ;;  %v2222_v35 = vadd.f32 0.2548296, %v2158_v0  ;;  %v1775_v20 = vmul.f32 1.0614054, %v6125_v10  ;;  %vm1329_vm2 = vcmp.ge.f32.partialorder %v1265_v48, 0.0 }
 0x3a0   :  { %v6133_v58 = vpop.eup %3952  ;;  %v2029_v15 = vmul.f32 %v6103_v39, %v1965_v2  ;;  %3958 = vrcp.f32 %v1586_v47  ;;  %v2532_v60 = vmul.f32 1.442695, %v2418_v55  ;;  %v6137_v30 = vmul.f32 %v2795_v38, %v5982_v26 }
 0x3a1   :  { %v2668_v24 = vsub.f32 1.0, %v2604_v12  ;;  %v2286_v36 = vmul.f32 %v6083_v13, %v2222_v35  ;;  %v1839_v29 = vadd.f32 -1.4531521, %v1775_v20  ;;  %v6143_v40 = vsel %vm1329_vm2, 1.0, %v6791_v49 }
 0x3a2   :  { %v6140_v25 = vpop.eup %3954  ;;  %v2093_v61 = vadd.f32 -0.28449672, %v2029_v15  ;;  %3960 = vpow2.f32 %v2532_v60  ;;  %v1457_v16 = vand.u32 2147483647, %v1265_v48  ;;  %v1267_v2 = vmul.f32 0.70710677, %v1136_v28 }
 0x3a3   :  { %v2732_v63 = vmul.f32 %v2668_v24, %v6028_v23  ;;  %v2606_v46 = vmul.f32 %v6094_v1, %v2286_v36  ;;  %v1903_v31 = vmul.f32 %v6125_v10, %v1839_v29  ;;  %v1776_v26 = vmul.f32 1.0614054, %v6140_v25 }
 0x3a4   :  { %v2157_v38 = vmul.f32 %v6103_v39, %v2093_v61  ;;  %v1521_v13 = vmul.f32 0.3275911, %v1457_v16  ;;  %v2353_v0 = vsub.f32 0.0, %v1457_v16  ;;  %v6150_v47 = vpop.eup %3956  ;;  %v6152_v60 = vmul.f32 0.5, %v1136_v28 }
 0x3a5   :  { %v2796_v55 = vadd.f32 1.0, %v2732_v63  ;;  %v2670_v12 = vsub.f32 1.0, %v2606_v46  ;;  %v1967_v35 = vadd.f32 1.4214138, %v1903_v31  ;;  %v1840_v20 = vadd.f32 -1.4531521, %v1776_v26 }
 0x3a6   :  { %v2221_v48 = vadd.f32 0.2548296, %v2157_v38  ;;  %v1585_v15 = vadd.f32 1.0, %v1521_v13  ;;  %v2417_v23 = vmul.f32 %v2353_v0, %v1457_v16  ;;  %vm1331_vm3 = vcmp.ge.f32.partialorder %v1267_v2, 0.0 }
 0x3a7   :  { %v2734_v1 = vmul.f32 %v2670_v12, %v6041_v34  ;;  %v2031_v24 = vmul.f32 %v6125_v10, %v1967_v35  ;;  %v1904_v36 = vmul.f32 %v6140_v25, %v1840_v20  ;;  %v6158_v29 = vmul.f32 %v2796_v55, %v6008_v4 }
 0x3a8   :  { %v2285_v61 = vmul.f32 %v6103_v39, %v2221_v48  ;;  %3962 = vrcp.f32 %v1585_v15  ;;  %v2530_v63 = vmul.f32 1.442695, %v2417_v23  ;;  %v1025_v28 = vadd.f32 %v5724_v22, %v4741_v33 }
 0x3a9   :  { %v2798_v46 = vadd.f32 1.0, %v2734_v1  ;;  %v2095_v31 = vadd.f32 -0.28449672, %v2031_v24  ;;  %v1968_v26 = vadd.f32 1.4214138, %v1904_v36  ;;  %v6167_v38 = vsel %vm1331_vm3, 1.0, %v6791_v49 }
 0x3aa   :  { %v6163_v16 = vpop.eup %3958  ;;  %v2605_v34 = vmul.f32 %v6109_v32, %v2285_v61  ;;  %3964 = vpow2.f32 %v2530_v63  ;;  %v1459_v4 = vand.u32 2147483647, %v1267_v2  ;;  %v1138_v55 = vadd.f32 %v5749_v44, %v4743_v43 }
 0x3ab   :  { %v2159_v13 = vmul.f32 %v6125_v10, %v2095_v31  ;;  %v2032_v39 = vmul.f32 %v6140_v25, %v1968_v26  ;;  %v1778_v0 = vmul.f32 1.0614054, %v6163_v16  ;;  %v6176_v32 = vmul.f32 0.5, %v1025_v28 }
 0x3ac   :  { %v6174_v12 = vpop.eup %3960  ;;  %v2669_v22 = vsub.f32 1.0, %v2605_v34  ;;  %v1523_v35 = vmul.f32 0.3275911, %v1459_v4  ;;  %v2355_v20 = vsub.f32 0.0, %v1459_v4  ;;  %v6179_v48 = vmul.f32 %v2798_v46, %v6020_v18 }
 0x3ad   :  { %v2223_v2 = vadd.f32 0.2548296, %v2159_v13  ;;  %v2096_v15 = vadd.f32 -0.28449672, %v2032_v39  ;;  %v1842_v23 = vadd.f32 -1.4531521, %v1778_v0  ;;  %v1027_v26 = vadd.f32 %v5767_v9, %v4751_v51 }
 0x3ae   :  { %v2733_v1 = vmul.f32 %v2669_v22, %v6064_v8  ;;  %v1587_v24 = vadd.f32 1.0, %v1523_v35  ;;  %v2419_v36 = vmul.f32 %v2355_v20, %v1459_v4  ;;  %v1268_v61 = vmul.f32 0.70710677, %v1025_v28 }
 0x3af   :  { %v2287_v44 = vmul.f32 %v6125_v10, %v2223_v2  ;;  %v2160_v63 = vmul.f32 %v6140_v25, %v2096_v15  ;;  %v1906_v31 = vmul.f32 %v6163_v16, %v1842_v23  ;;  %v6188_v39 = vmul.f32 0.5, %v1138_v55 }
 0x3b0   :  { %v2797_v34 = vadd.f32 1.0, %v2733_v1  ;;  %3966 = vrcp.f32 %v1587_v24  ;;  %v2534_v18 = vmul.f32 1.442695, %v2419_v36  ;;  %vm1332_vm4 = vcmp.ge.f32.partialorder %v1268_v61, 0.0 }
 0x3b1   :  { %v2607_v46 = vmul.f32 %v6133_v58, %v2287_v44  ;;  %v2224_v13 = vadd.f32 0.2548296, %v2160_v63  ;;  %v1970_v8 = vadd.f32 1.4214138, %v1906_v31  ;;  %v6196_v4 = vsel %vm1332_vm4, 1.0, %v6791_v49 }
 0x3b2   :  { %v6190_v28 = vpop.eup %3962  ;;  %v6193_v10 = vmul.f32 %v2797_v34, %v6051_v14  ;;  %v1460_v0 = vand.u32 2147483647, %v1268_v61  ;;  %v1270_v9 = vmul.f32 0.70710677, %v1138_v55  ;;  %3968 = vpow2.f32 %v2534_v18 }
 0x3b3   :  { %v2671_v22 = vsub.f32 1.0, %v2607_v46  ;;  %v2288_v35 = vmul.f32 %v6140_v25, %v2224_v13  ;;  %v2034_v20 = vmul.f32 %v6163_v16, %v1970_v8  ;;  %v1777_v58 = vmul.f32 1.0614054, %v6190_v28 }
 0x3b4   :  { %v6201_v2 = vpop.eup %3964  ;;  %v1524_v15 = vmul.f32 0.3275911, %v1460_v0  ;;  %v2356_v23 = vsub.f32 0.0, %v1460_v0  ;;  %v1462_v1 = vand.u32 2147483647, %v1270_v9  ;;  %vm1334_vm5 = vcmp.ge.f32.partialorder %v1270_v9, 0.0 }
 0x3b5   :  { %v2735_v14 = vmul.f32 %v2671_v22, %v6089_v50  ;;  %v2608_v24 = vmul.f32 %v6150_v47, %v2288_v35  ;;  %v2098_v36 = vadd.f32 -0.28449672, %v2034_v20  ;;  %v1841_v61 = vadd.f32 -1.4531521, %v1777_v58 }
 0x3b6   :  { %v1588_v55 = vadd.f32 1.0, %v1524_v15  ;;  %v2420_v44 = vmul.f32 %v2356_v23, %v1460_v0  ;;  %v1526_v25 = vmul.f32 0.3275911, %v1462_v1  ;;  %v2358_v8 = vsub.f32 0.0, %v1462_v1 }
 0x3b7   :  { %v2799_v63 = vadd.f32 1.0, %v2735_v14  ;;  %v2672_v31 = vsub.f32 1.0, %v2608_v24  ;;  %v2162_v34 = vmul.f32 %v6163_v16, %v2098_v36  ;;  %v1905_v46 = vmul.f32 %v6190_v28, %v1841_v61 }
 0x3b8   :  { %3970 = vrcp.f32 %v1588_v55  ;;  %v2536_v18 = vmul.f32 1.442695, %v2420_v44  ;;  %v1590_v13 = vadd.f32 1.0, %v1526_v25  ;;  %v6209_v35 = vsel %vm1334_vm5, 1.0, %v6791_v49 }
 0x3b9   :  { %v2736_v50 = vmul.f32 %v2672_v31, %v6101_v17  ;;  %v2226_v22 = vadd.f32 0.2548296, %v2162_v34  ;;  %v1969_v47 = vadd.f32 1.4214138, %v1905_v46  ;;  %v6214_v9 = vmul.f32 %v2799_v63, %v6073_v7 }
 0x3ba   :  { %v6211_v0 = vpop.eup %3966  ;;  %3972 = vpow2.f32 %v2536_v18  ;;  %v2422_v20 = vmul.f32 %v2358_v8, %v1462_v1  ;;  %v1269_v58 = vmul.f32 0.70710677, %v1027_v26  ;;  %v6219_v36 = vmul.f32 0.5, %v1027_v26 }
 0x3bb   :  { %v2800_v15 = vadd.f32 1.0, %v2736_v50  ;;  %v2290_v23 = vmul.f32 %v6163_v16, %v2226_v22  ;;  %v2033_v14 = vmul.f32 %v6190_v28, %v1969_v47  ;;  %v1779_v17 = vmul.f32 1.0614054, %v6211_v0 }
 0x3bc   :  { %3974 = vrcp.f32 %v1590_v13  ;;  %v2540_v24 = vmul.f32 1.442695, %v2422_v20  ;;  %v1461_v61 = vand.u32 2147483647, %v1269_v58  ;;  %vm1333_vm6 = vcmp.ge.f32.partialorder %v1269_v58, 0.0  ;;  %v6222_v25 = vpop.eup %3968 }
 0x3bd   :  { %v2610_v55 = vmul.f32 %v6174_v12, %v2290_v23  ;;  %v2097_v44 = vadd.f32 -0.28449672, %v2033_v14  ;;  %v1843_v7 = vadd.f32 -1.4531521, %v1779_v17  ;;  %v6225_v1 = vmul.f32 %v2800_v15, %v6080_v53 }
 0x3be   :  { %3976 = vpow2.f32 %v2540_v24  ;;  %v1525_v16 = vmul.f32 0.3275911, %v1461_v61  ;;  %v2357_v63 = vsub.f32 0.0, %v1461_v61  ;;  %v1140_v46 = vadd.f32 %v5793_v57, %v4753_v11 }
 0x3bf   :  { %6869 = vst [vmem:[#allocation71_spill] sm:$0xff] %v6225_v1  ;;  %v2674_v31 = vsub.f32 1.0, %v2610_v55  ;;  %v2161_v34 = vmul.f32 %v6190_v28, %v2097_v44  ;;  %v1907_v26 = vmul.f32 %v6211_v0, %v1843_v7  ;;  %v6232_v12 = vsel %vm1333_vm6, 1.0, %v6791_v49 }
 0x3c0   :  { %v1589_v18 = vadd.f32 1.0, %v1525_v16  ;;  %v2421_v13 = vmul.f32 %v2357_v63, %v1461_v61  ;;  %v1031_v53 = vadd.f32 %v5842_v6, %v4741_v33  ;;  %v1144_v47 = vadd.f32 %v5844_v19, %v4743_v43 }
 0x3c1   :  { %v2738_v8 = vmul.f32 %v2674_v31, %v6121_v21  ;;  %v2225_v50 = vadd.f32 0.2548296, %v2161_v34  ;;  %v1971_v22 = vadd.f32 1.4214138, %v1907_v26  ;;  %v6241_v57 = vmul.f32 0.5, %v1140_v46 }
 0x3c2   :  { %v6239_v20 = vpop.eup %3970  ;;  %3978 = vrcp.f32 %v1589_v18  ;;  %v2538_v58 = vmul.f32 1.442695, %v2421_v13  ;;  %v1271_v15 = vmul.f32 0.70710677, %v1140_v46  ;;  %v6248_v61 = vmul.f32 0.5, %v1031_v53 }
 0x3c3   :  { %v2802_v23 = vadd.f32 1.0, %v2738_v8  ;;  %v2289_v14 = vmul.f32 %v6190_v28, %v2225_v50  ;;  %v2035_v17 = vmul.f32 %v6211_v0, %v1971_v22  ;;  %v1780_v6 = vmul.f32 1.0614054, %v6239_v20 }
 0x3c4   :  { %v6246_v21 = vpop.eup %3972  ;;  %vm1335_vm7 = vcmp.ge.f32.partialorder %v1271_v15, 0.0  ;;  %v1463_v24 = vand.u32 2147483647, %v1271_v15  ;;  %v1272_v19 = vmul.f32 0.70710677, %v1031_v53  ;;  %3980 = vpow2.f32 %v2538_v58 }
 0x3c5   :  { %v2609_v55 = vmul.f32 %v6201_v2, %v2289_v14  ;;  %v2099_v44 = vadd.f32 -0.28449672, %v2035_v17  ;;  %v1844_v7 = vadd.f32 -1.4531521, %v1780_v6  ;;  %v6254_v28 = vmul.f32 %v2802_v23, %v6106_v59 }
 0x3c6   :  { %v6251_v16 = vpop.eup %3974  ;;  %v6257_v63 = vsel %vm1335_vm7, 1.0, %v6791_v49  ;;  %v1527_v31 = vmul.f32 0.3275911, %v1463_v24  ;;  %v2359_v34 = vsub.f32 0.0, %v1463_v24  ;;  %vm1336_vm8 = vcmp.ge.f32.partialorder %v1272_v19, 0.0 }
 0x3c7   :  { %6870 = vst [vmem:[#allocation73_spill] sm:$0xff] %v6254_v28  ;;  %v2673_v26 = vsub.f32 1.0, %v2609_v55  ;;  %v2163_v46 = vmul.f32 %v6211_v0, %v2099_v44  ;;  %v1908_v18 = vmul.f32 %v6239_v20, %v1844_v7  ;;  %v1782_v2 = vmul.f32 1.0614054, %v6251_v16 }
 0x3c8   :  { %v6262_v13 = vpop.eup %3976  ;;  %v1591_v53 = vadd.f32 1.0, %v1527_v31  ;;  %v2423_v8 = vmul.f32 %v2359_v34, %v1463_v24  ;;  %v1464_v50 = vand.u32 2147483647, %v1272_v19  ;;  %v6269_v7 = vsel %vm1336_vm8, 1.0, %v6791_v49 }
 0x3c9   :  { %v2737_v59 = vmul.f32 %v2673_v26, %v6143_v40  ;;  %v2227_v22 = vadd.f32 0.2548296, %v2163_v46  ;;  %v1972_v58 = vadd.f32 1.4214138, %v1908_v18  ;;  %v1846_v15 = vadd.f32 -1.4531521, %v1782_v2 }
 0x3ca   :  { %3982 = vrcp.f32 %v1591_v53  ;;  %v2542_v23 = vmul.f32 1.442695, %v2423_v8  ;;  %v1528_v14 = vmul.f32 0.3275911, %v1464_v50  ;;  %v2360_v17 = vsub.f32 0.0, %v1464_v50 }
 0x3cb   :  { %v2291_v6 = vmul.f32 %v6211_v0, %v2227_v22  ;;  %v2036_v55 = vmul.f32 %v6239_v20, %v1972_v58  ;;  %v1910_v44 = vmul.f32 %v6251_v16, %v1846_v15  ;;  %v2801_v19 = vadd.f32 1.0, %v2737_v59 }
 0x3cc   :  { %v6271_v24 = vpop.eup %3978  ;;  %3984 = vpow2.f32 %v2542_v23  ;;  %v1592_v40 = vadd.f32 1.0, %v1528_v14  ;;  %v2424_v31 = vmul.f32 %v2360_v17, %v1464_v50  ;;  %v6274_v18 = vmul.f32 0.5, %v1144_v47 }
 0x3cd   :  { %v2611_v34 = vmul.f32 %v6222_v25, %v2291_v6  ;;  %v2100_v26 = vadd.f32 -0.28449672, %v2036_v55  ;;  %v1974_v46 = vadd.f32 1.4214138, %v1910_v44  ;;  %v1781_v0 = vmul.f32 1.0614054, %v6271_v24 }
 0x3ce   :  { %3986 = vrcp.f32 %v1592_v40  ;;  %v2544_v2 = vmul.f32 1.442695, %v2424_v31  ;;  %v1274_v53 = vmul.f32 0.70710677, %v1144_v47  ;;  %v6277_v8 = vpop.eup %3980  ;;  %v1033_v50 = vadd.f32 %v5862_v56, %v4751_v51 }
 0x3cf   :  { %v2675_v22 = vsub.f32 1.0, %v2611_v34  ;;  %v2164_v58 = vmul.f32 %v6239_v20, %v2100_v26  ;;  %v2038_v59 = vmul.f32 %v6251_v16, %v1974_v46  ;;  %v6284_v25 = vmul.f32 %v2801_v19, %v6127_v27 }
 0x3d0   :  { %v1845_v15 = vadd.f32 -1.4531521, %v1781_v0  ;;  %vm1338_vm9 = vcmp.ge.f32.partialorder %v1274_v53, 0.0  ;;  %v1466_v23 = vand.u32 2147483647, %v1274_v53  ;;  %3988 = vpow2.f32 %v2544_v2 }
 0x3d1   :  { %v2739_v14 = vmul.f32 %v2675_v22, %v6167_v38  ;;  %v2228_v17 = vadd.f32 0.2548296, %v2164_v58  ;;  %v2102_v47 = vadd.f32 -0.28449672, %v2038_v59  ;;  %v6289_v55 = vsel %vm1338_vm9, 1.0, %v6791_v49 }
 0x3d2   :  { %v1909_v6 = vmul.f32 %v6271_v24, %v1845_v15  ;;  %v1530_v44 = vmul.f32 0.3275911, %v1466_v23  ;;  %v2362_v40 = vsub.f32 0.0, %v1466_v23  ;;  %v1273_v19 = vmul.f32 0.70710677, %v1033_v50 }
 0x3d3   :  { %v2803_v31 = vadd.f32 1.0, %v2739_v14  ;;  %v2292_v56 = vmul.f32 %v6239_v20, %v2228_v17  ;;  %v2166_v27 = vmul.f32 %v6251_v16, %v2102_v47  ;;  %v6295_v0 = vmul.f32 0.5, %v1033_v50 }
 0x3d4   :  { %v6293_v34 = vpop.eup %3982  ;;  %v1973_v26 = vadd.f32 1.4214138, %v1909_v6  ;;  %v1594_v38 = vadd.f32 1.0, %v1530_v44  ;;  %v2426_v46 = vmul.f32 %v2362_v40, %v1466_v23  ;;  %v1146_v58 = vadd.f32 %v5885_v5, %v4753_v11 }
 0x3d5   :  { %v2612_v2 = vmul.f32 %v6246_v21, %v2292_v56  ;;  %v2230_v53 = vadd.f32 0.2548296, %v2166_v27  ;;  %v1783_v22 = vmul.f32 1.0614054, %v6293_v34  ;;  %vm1337_vm10 = vcmp.ge.f32.partialorder %v1273_v19, 0.0 }
 0x3d6   :  { %v6301_v59 = vpop.eup %3984  ;;  %v2037_v20 = vmul.f32 %v6271_v24, %v1973_v26  ;;  %3990 = vrcp.f32 %v1594_v38  ;;  %v2548_v15 = vmul.f32 1.442695, %v2426_v46  ;;  %v6305_v14 = vmul.f32 %v2803_v31, %v6152_v60 }
 0x3d7   :  { %v2676_v50 = vsub.f32 1.0, %v2612_v2  ;;  %v2294_v23 = vmul.f32 %v6251_v16, %v2230_v53  ;;  %v1847_v21 = vadd.f32 -1.4531521, %v1783_v22  ;;  %v6311_v5 = vsel %vm1337_vm10, 1.0, %v6791_v49 }
 0x3d8   :  { %v6308_v17 = vpop.eup %3986  ;;  %v2101_v47 = vadd.f32 -0.28449672, %v2037_v20  ;;  %3992 = vpow2.f32 %v2548_v15  ;;  %v1465_v6 = vand.u32 2147483647, %v1273_v19  ;;  %v1275_v26 = vmul.f32 0.70710677, %v1146_v58 }
 0x3d9   :  { %v2740_v44 = vmul.f32 %v2676_v50, %v6196_v4  ;;  %v2614_v40 = vmul.f32 %v6262_v13, %v2294_v23  ;;  %v1911_v56 = vmul.f32 %v6293_v34, %v1847_v21  ;;  %v1784_v60 = vmul.f32 1.0614054, %v6308_v17 }
 0x3da   :  { %v2165_v31 = vmul.f32 %v6271_v24, %v2101_v47  ;;  %v1529_v16 = vmul.f32 0.3275911, %v1465_v6  ;;  %v2361_v27 = vsub.f32 0.0, %v1465_v6  ;;  %v6318_v38 = vpop.eup %3988  ;;  %vm1339_vm11 = vcmp.ge.f32.partialorder %v1275_v26, 0.0 }
 0x3db   :  { %v2804_v46 = vadd.f32 1.0, %v2740_v44  ;;  %v2678_v2 = vsub.f32 1.0, %v2614_v40  ;;  %v1975_v53 = vadd.f32 1.4214138, %v1911_v56  ;;  %v1848_v22 = vadd.f32 -1.4531521, %v1784_v60 }
 0x3dc   :  { %v2229_v19 = vadd.f32 0.2548296, %v2165_v31  ;;  %v1593_v20 = vadd.f32 1.0, %v1529_v16  ;;  %v2425_v4 = vmul.f32 %v2361_v27, %v1465_v6  ;;  %v6323_v23 = vmul.f32 0.5, %v1146_v58  ;;  %v6872_v60 = vld [vmem:[#allocation15_spill] sm:$0xff] }
 0x3dd   :  { %v2742_v13 = vmul.f32 %v2678_v2, %v6209_v35  ;;  %v2039_v15 = vmul.f32 %v6293_v34, %v1975_v53  ;;  %v1912_v50 = vmul.f32 %v6308_v17, %v1848_v22  ;;  %v6326_v21 = vmul.f32 %v2804_v46, %v6176_v32  ;;  %v6873_v35 = vld [vmem:[#allocation81_spill] sm:$0xff] }
 0x3de   :  { %v2293_v47 = vmul.f32 %v6271_v24, %v2229_v19  ;;  %3994 = vrcp.f32 %v1593_v20  ;;  %v2546_v44 = vmul.f32 1.442695, %v2425_v4  ;;  %v6330_v6 = vsel %vm1339_vm11, 1.0, %v6791_v49  ;;  %v6874_v32 = vld [vmem:[#allocation17_spill] sm:$0xff] }
 0x3df   :  { %6871 = vst [vmem:[#allocation103_spill] sm:$0xff] %v6326_v21  ;;  %v2103_v40 = vadd.f32 -0.28449672, %v2039_v15  ;;  %v1976_v56 = vadd.f32 1.4214138, %v1912_v50  ;;  %v2881_v31 = vmul.f32 %v6873_v35, %v6872_v60  ;;  %v2806_v27 = vadd.f32 1.0, %v2742_v13 }
 0x3e0   :  { %v6334_v16 = vpop.eup %3990  ;;  %v2613_v58 = vmul.f32 %v6277_v8, %v2293_v47  ;;  %v1467_v2 = vand.u32 2147483647, %v1275_v26  ;;  %v6875_v46 = vld [vmem:[#allocation85_spill] sm:$0xff]  ;;  %3996 = vpow2.f32 %v2546_v44  ;;  %v6876_v26 = vld [vmem:[#allocation16_spill] sm:$0xff]  ;;  %v6877_v47 = vld [vmem:[#allocation82_spill] sm:$0xff] }
 0x3e1   :  { %v2885_v53 = vmul.f32 %v6875_v46, %v6874_v32  ;;  %v2167_v24 = vmul.f32 %v6293_v34, %v2103_v40  ;;  %v2040_v22 = vmul.f32 %v6308_v17, %v1976_v56  ;;  %v1786_v19 = vmul.f32 1.0614054, %v6334_v16  ;;  %v6878_v56 = vld [vmem:[#allocation18_spill] sm:$0xff]  ;;  %v6879_v21 = vld [vmem:[#allocation72_spill] sm:$0xff] }
 0x3e2   :  { %v6342_v20 = vpop.eup %3992  ;;  %v2677_v4 = vsub.f32 1.0, %v2613_v58  ;;  %v1531_v15 = vmul.f32 0.3275911, %v1467_v2  ;;  %v2363_v50 = vsub.f32 0.0, %v1467_v2  ;;  %v2883_v28 = vmul.f32 %v6877_v47, %v6876_v26 }
 0x3e3   :  { %v2945_v60 = vpack.c.bf16 %v2885_v53, %v2881_v31  ;;  %v2231_v13 = vadd.f32 0.2548296, %v2167_v24  ;;  %v2104_v35 = vadd.f32 -0.28449672, %v2040_v22  ;;  %v1850_v8 = vadd.f32 -1.4531521, %v1786_v19 }
 0x3e4   :  { %v2741_v32 = vmul.f32 %v2677_v4, %v6232_v12  ;;  %v1595_v40 = vadd.f32 1.0, %v1531_v15  ;;  %v2427_v46 = vmul.f32 %v2363_v50, %v1467_v2  ;;  %v2887_v44 = vmul.f32 %v6879_v21, %v6878_v56  ;;  %v6880_v24 = vld [vmem:[#allocation83_spill] sm:$0xff] }
 0x3e5   :  { %3271 = vmatprep.mubr.bf16.mxu0 %v2945_v60  ;;  %v2295_v1 = vmul.f32 %v6293_v34, %v2231_v13  ;;  %v2168_v58 = vmul.f32 %v6308_v17, %v2104_v35  ;;  %v1914_v31 = vmul.f32 %v6334_v16, %v1850_v8  ;;  %v1035_v53 = vadd.f32 %v5960_v3, %v4741_v33  ;;  %v6881_v22 = vld [vmem:[#allocation79_spill] sm:$0xff]  ;;  %v6884_v8 = vld [vmem:[#allocation80_spill] sm:$0xff] }
 0x3e6   :  { %v6882_v19 = vpack.c.bf16 %v6880_v24, %v6881_v22  ;;  %v2805_v12 = vadd.f32 1.0, %v2741_v32  ;;  %3998 = vrcp.f32 %v1595_v40  ;;  %v2550_v2 = vmul.f32 1.442695, %v2427_v46 }
 0x3e7   :  { %v2947_v4 = vpack.c.bf16 %v2887_v44, %v2883_v28  ;;  %v6358_v15 = vmul.f32 %v2806_v27, %v6188_v39  ;;  %v2615_v34 = vmul.f32 %v6301_v59, %v2295_v1  ;;  %v2232_v21 = vadd.f32 0.2548296, %v2168_v58  ;;  %v6883_v59 = vld [vmem:[#allocation84_spill] sm:$0xff] }
 0x3e8   :  { %3272 = vmatmul.mubr.bf16.vlgmr.msra.gmra.mrb[64].mxu0 %v6882_v19  ;;  %v1978_v50 = vadd.f32 1.4214138, %v1914_v31  ;;  %v6361_v60 = vpop.eup %3994  ;;  %v6364_v13 = vmul.f32 %v2805_v12, %v6219_v36  ;;  %v6366_v33 = vmul.f32 0.5, %v1035_v53  ;;  %v1276_v3 = vmul.f32 0.70710677, %v1035_v53 }
 0x3e9   :  { %3368 = vmatprep.mubr.bf16.mxu1 %v2947_v4  ;;  %v1148_v35 = vadd.f32 %v5962_v37, %v4743_v43  ;;  %v2679_v28 = vsub.f32 1.0, %v2615_v34  ;;  %v2296_v39 = vmul.f32 %v6308_v17, %v2232_v21  ;;  %v1785_v1 = vmul.f32 1.0614054, %v6361_v60 }
 0x3ea   :  { %v2042_v27 = vmul.f32 %v6334_v16, %v1978_v50  ;;  %v6885_v26 = vpack.c.bf16 %v6883_v59, %v6884_v8  ;;  %4000 = vpow2.f32 %v2550_v2  ;;  %vm1340_vm12 = vcmp.ge.f32.partialorder %v1276_v3, 0.0  ;;  %v6376_v32 = vpop.eup %3996 }
 0x3eb   :  { %v1468_v36 = vand.u32 2147483647, %v1276_v3  ;;  %v1278_v47 = vmul.f32 0.70710677, %v1148_v35  ;;  %v2743_v40 = vmul.f32 %v2679_v28, %v6257_v63  ;;  %v2616_v43 = vmul.f32 %v6318_v38, %v2296_v39 }
 0x3ec   :  { %3369 = vmatmul.mubr.bf16.vlgmr.msra.gmra.mrb[64].mxu1 %v6885_v26  ;;  %v2106_v37 = vadd.f32 -0.28449672, %v2042_v27  ;;  %v1849_v17 = vadd.f32 -1.4531521, %v1785_v1  ;;  %v6380_v44 = vmul.f32 0.5, %v1148_v35  ;;  %v6385_v24 = vsel %vm1340_vm12, 1.0, %v6791_v49 }
 0x3ed   :  { %v1532_v46 = vmul.f32 0.3275911, %v1468_v36  ;;  %v2364_v56 = vsub.f32 0.0, %v1468_v36  ;;  %vm1342_vm13 = vcmp.ge.f32.partialorder %v1278_v47, 0.0  ;;  %v2680_v58 = vsub.f32 1.0, %v2616_v43  ;;  %v6886_v26 = vld [vmem:[#allocation100_spill] sm:$0xff] }
 0x3ee   :  { %v2170_v31 = vmul.f32 %v6334_v16, %v2106_v37  ;;  %v1913_v53 = vmul.f32 %v6361_v60, %v1849_v17  ;;  %v2807_v22 = vadd.f32 1.0, %v2743_v40  ;;  %v1470_v12 = vand.u32 2147483647, %v1278_v47 }
 0x3ef   :  { %v1596_v19 = vadd.f32 1.0, %v1532_v46  ;;  %v2428_v63 = vmul.f32 %v2364_v56, %v1468_v36  ;;  %v2744_v38 = vmul.f32 %v2680_v58, %v6269_v7  ;;  %v6389_v34 = vsel %vm1342_vm13, 1.0, %v6791_v49 }
 0x3f0   :  { %v2234_v2 = vadd.f32 0.2548296, %v2170_v31  ;;  %v1977_v4 = vadd.f32 1.4214138, %v1913_v53  ;;  %v6391_v21 = vpop.eup %3998  ;;  %v1534_v3 = vmul.f32 0.3275911, %v1470_v12  ;;  %v6397_v7 = vmul.f32 %v2807_v22, %v6241_v57 }
 0x3f1   :  { %4002 = vrcp.f32 %v1596_v19  ;;  %v2552_v50 = vmul.f32 1.442695, %v2428_v63  ;;  %v2366_v35 = vsub.f32 0.0, %v1470_v12  ;;  %v2808_v28 = vadd.f32 1.0, %v2744_v38  ;;  %v6888_v22 = vld [vmem:[#allocation21_spill] sm:$0xff]  ;;  %v6889_v19 = vld [vmem:[#allocation64_spill] sm:$0xff] }
 0x3f2   :  { %v2298_v39 = vmul.f32 %v6334_v16, %v2234_v2  ;;  %v2041_v27 = vmul.f32 %v6361_v60, %v1977_v4  ;;  %v1787_v1 = vmul.f32 1.0614054, %v6391_v21  ;;  %v1598_v59 = vadd.f32 1.0, %v1534_v3 }
 0x3f3   :  { %v2430_v8 = vmul.f32 %v2366_v35, %v1470_v12  ;;  %v1037_v36 = vadd.f32 %v6886_v26, %v4751_v51  ;;  %4004 = vpow2.f32 %v2552_v50  ;;  %v6405_v16 = vmul.f32 %v2808_v28, %v6248_v61  ;;  %v6887_v51 = vld [vmem:[#allocation102_spill] sm:$0xff] }
 0x3f4   :  { %v2618_v47 = vmul.f32 %v6342_v20, %v2298_v39  ;;  %v2105_v40 = vadd.f32 -0.28449672, %v2041_v27  ;;  %v1851_v43 = vadd.f32 -1.4531521, %v1787_v1  ;;  %v6402_v37 = vpop.eup %4000  ;;  %4006 = vrcp.f32 %v1598_v59  ;;  %v6890_v39 = vld [vmem:[#allocation25_spill] sm:$0xff]  ;;  %v6891_v27 = vld [vmem:[#allocation66_spill] sm:$0xff] }
 0x3f5   :  { %v2556_v17 = vmul.f32 1.442695, %v2430_v8  ;;  %v1277_v46 = vmul.f32 0.70710677, %v1037_v36  ;;  %v6411_v31 = vadd.f32 %v6887_v51, %v4753_v11  ;;  %v6413_v20 = vmul.f32 0.5, %v1037_v36 }
 0x3f6   :  { %v2682_v57 = vsub.f32 1.0, %v2618_v47  ;;  %v2169_v56 = vmul.f32 %v6361_v60, %v2105_v40  ;;  %v1915_v58 = vmul.f32 %v6391_v21, %v1851_v43  ;;  %v2889_v61 = vmul.f32 %v6889_v19, %v6888_v22  ;;  %v6892_v19 = vld [vmem:[#allocation22_spill] sm:$0xff] }
 0x3f7   :  { %vm1341_vm14 = vcmp.ge.f32.partialorder %v1277_v46, 0.0  ;;  %v1469_v53 = vand.u32 2147483647, %v1277_v46  ;;  %4008 = vpow2.f32 %v2556_v17  ;;  %v1279_v11 = vmul.f32 0.70710677, %v6411_v31 }
 0x3f8   :  { %v2746_v63 = vmul.f32 %v2682_v57, %v6289_v55  ;;  %v2233_v12 = vadd.f32 0.2548296, %v2169_v56  ;;  %v1979_v38 = vadd.f32 1.4214138, %v1915_v58  ;;  %v6419_v2 = vsel %vm1341_vm14, 1.0, %v6791_v49 }
 0x3f9   :  { %v1533_v4 = vmul.f32 0.3275911, %v1469_v53  ;;  %v2365_v50 = vsub.f32 0.0, %v1469_v53  ;;  %v2893_v1 = vmul.f32 %v6891_v27, %v6890_v39  ;;  %vm1343_vm15 = vcmp.ge.f32.partialorder %v1279_v11, 0.0  ;;  %v6896_v39 = vld [vmem:[#allocation19_spill] sm:$0xff]  ;;  %v6897_v27 = vld [vmem:[#allocation62_spill] sm:$0xff] }
 0x3fa   :  { %v2810_v3 = vadd.f32 1.0, %v2746_v63  ;;  %v2297_v35 = vmul.f32 %v6361_v60, %v2233_v12  ;;  %v2043_v28 = vmul.f32 %v6391_v21, %v1979_v38  ;;  %v1471_v26 = vand.u32 2147483647, %v1279_v11  ;;  %v6893_v63 = vld [vmem:[#allocation78_spill] sm:$0xff] }
 0x3fb   :  { %v6426_v59 = vpop.eup %4002  ;;  %v1597_v55 = vadd.f32 1.0, %v1533_v4  ;;  %v2429_v8 = vmul.f32 %v2365_v50, %v1469_v53  ;;  %v6434_v17 = vsel %vm1343_vm15, 1.0, %v6791_v49  ;;  %v2949_v22 = vpack.c.bf16 %v2893_v1, %v2889_v61 }
 0x3fc   :  { %v6429_v36 = vmul.f32 %v2810_v3, %v6274_v18  ;;  %v2617_v47 = vmul.f32 %v6376_v32, %v2297_v35  ;;  %v2107_v40 = vadd.f32 -0.28449672, %v2043_v28  ;;  %v1788_v43 = vmul.f32 1.0614054, %v6426_v59  ;;  %v6894_v3 = vld [vmem:[#allocation26_spill] sm:$0xff]  ;;  %v6895_v35 = vld [vmem:[#allocation67_spill] sm:$0xff] }
 0x3fd   :  { %4010 = vrcp.f32 %v1597_v55  ;;  %v2554_v60 = vmul.f32 1.442695, %v2429_v8  ;;  %v1535_v46 = vmul.f32 0.3275911, %v1471_v26  ;;  %v6436_v57 = vpop.eup %4004  ;;  %v2367_v53 = vsub.f32 0.0, %v1471_v26  ;;  %3279 = vmatprep.mubr.bf16.mxu0 %v2949_v22 }
 0x3fe   :  { %v2681_v56 = vsub.f32 1.0, %v2617_v47  ;;  %v2171_v58 = vmul.f32 %v6391_v21, %v2107_v40  ;;  %v1852_v51 = vadd.f32 -1.4531521, %v1788_v43  ;;  %v6439_v18 = vpop.eup %4006  ;;  %v2891_v12 = vmul.f32 %v6893_v63, %v6892_v19  ;;  %v6902_v63 = vld [vmem:[#allocation24_spill] sm:$0xff] }
 0x3ff   :  { %4012 = vpow2.f32 %v2554_v60  ;;  %v1599_v32 = vadd.f32 1.0, %v1535_v46  ;;  %v1790_v50 = vmul.f32 1.0614054, %v6439_v18  ;;  %v2431_v11 = vmul.f32 %v2367_v53, %v1471_v26  ;;  %v6898_v60 = vld [vmem:[#allocation23_spill] sm:$0xff]  ;;  %v6899_v46 = vld [vmem:[#allocation65_spill] sm:$0xff]  ;;  %v6900_v26 = vld [vmem:[#allocation20_spill] sm:$0xff] }
 0x400   :  { %v2745_v38 = vmul.f32 %v2681_v56, %v6311_v5  ;;  %v2235_v49 = vadd.f32 0.2548296, %v2171_v58  ;;  %v1916_v4 = vmul.f32 %v6426_v59, %v1852_v51  ;;  %v2895_v28 = vmul.f32 %v6895_v35, %v6894_v3  ;;  %v6901_v58 = vld [vmem:[#allocation63_spill] sm:$0xff] }
 0x401   :  { %4014 = vrcp.f32 %v1599_v32  ;;  %v2888_v55 = vmul.f32 %v6897_v27, %v6896_v39  ;;  %v6450_v61 = vpop.eup %4008  ;;  %v1854_v47 = vadd.f32 -1.4531521, %v1790_v50  ;;  %v2558_v40 = vmul.f32 1.442695, %v2431_v11 }
 0x402   :  { %v2809_v1 = vadd.f32 1.0, %v2745_v38  ;;  %v2299_v8 = vmul.f32 %v6391_v21, %v2235_v49  ;;  %v1980_v5 = vadd.f32 1.4214138, %v1916_v4  ;;  %v2951_v43 = vpack.c.bf16 %v2895_v28, %v2891_v12  ;;  %v6903_v12 = vld [vmem:[#allocation76_spill] sm:$0xff]  ;;  %v6904_v49 = vld [vmem:[#allocation31_spill] sm:$0xff]  ;;  %v6905_v4 = vld [vmem:[#allocation74_spill] sm:$0xff] }
 0x403   :  { %v2892_v56 = vmul.f32 %v6899_v46, %v6898_v60  ;;  %v2890_v51 = vmul.f32 %v6901_v58, %v6900_v26  ;;  %v1918_v19 = vmul.f32 %v6439_v18, %v1854_v47  ;;  %4016 = vpow2.f32 %v2558_v40  ;;  %v6907_v28 = vld [vmem:[#allocation87_spill] sm:$0xff]  ;;  %v6911_v47 = vld [vmem:[#allocation88_spill] sm:$0xff]  ;;  %v6913_v60 = vld [vmem:[#allocation69_spill] sm:$0xff] }
 0x404   :  { %v6458_v53 = vmul.f32 %v2809_v1, %v6295_v0  ;;  %v2619_v32 = vmul.f32 %v6402_v37, %v2299_v8  ;;  %v2044_v22 = vmul.f32 %v6426_v59, %v1980_v5  ;;  %3376 = vmatprep.mubr.bf16.mxu1 %v2951_v43  ;;  %v2894_v38 = vmul.f32 %v6903_v12, %v6902_v63  ;;  %v6906_v0 = vld [vmem:[#allocation39_spill] sm:$0xff]  ;;  %v6908_v1 = vld [vmem:[#allocation34_spill] sm:$0xff]  ;;  %v6915_v63 = vld [vmem:[#allocation77_spill] sm:$0xff] }
 0x405   :  { %v2948_v21 = vpack.c.bf16 %v2892_v56, %v2888_v55  ;;  %v2897_v50 = vmul.f32 %v6905_v4, %v6904_v49  ;;  %v1982_v35 = vadd.f32 1.4214138, %v1918_v19  ;;  %v2901_v39 = vmul.f32 %v6907_v28, %v6906_v0  ;;  %v6909_v8 = vld [vmem:[#allocation75_spill] sm:$0xff]  ;;  %v6910_v55 = vld [vmem:[#allocation42_spill] sm:$0xff] }
 0x406   :  { %v2683_v11 = vsub.f32 1.0, %v2619_v32  ;;  %v2108_v3 = vadd.f32 -0.28449672, %v2044_v22  ;;  %v2950_v27 = vpack.c.bf16 %v2894_v38, %v2890_v51  ;;  %v2899_v5 = vmul.f32 %v6909_v8, %v6908_v1  ;;  %v6912_v43 = vld [vmem:[#allocation27_spill] sm:$0xff]  ;;  %v6916_v38 = vld [vmem:[#allocation30_spill] sm:$0xff] }
 0x407   :  { %v6469_v37 = vpop.eup %4010  ;;  %3280 = vmatmul.mubr.bf16.gmra.mrb[68].mxu0 %v2948_v21  ;;  %v2903_v40 = vmul.f32 %v6911_v47, %v6910_v55  ;;  %v2896_v46 = vmul.f32 %v6913_v60, %v6912_v43  ;;  %v2046_v58 = vmul.f32 %v6439_v18, %v1982_v35  ;;  %v2953_v51 = vpack.c.bf16 %v2901_v39, %v2897_v50  ;;  %v6914_v21 = vld [vmem:[#allocation35_spill] sm:$0xff]  ;;  %v6917_v49 = vld [vmem:[#allocation70_spill] sm:$0xff]  ;;  %v6920_v50 = vld [vmem:[#allocation45_spill] sm:$0xff] }
 0x408   :  { %v2747_v56 = vmul.f32 %v2683_v11, %v6330_v6  ;;  %v2172_v26 = vmul.f32 %v6426_v59, %v2108_v3  ;;  %v1789_v32 = vmul.f32 1.0614054, %v6469_v37  ;;  %3377 = vmatmul.mubr.bf16.gmra.mrb[68].mxu1 %v2950_v27  ;;  %v2900_v12 = vmul.f32 %v6915_v63, %v6914_v21  ;;  %v6918_v11 = vld [vmem:[#allocation38_spill] sm:$0xff]  ;;  %v6921_v39 = vld [vmem:[#allocation91_spill] sm:$0xff]  ;;  %v6922_v55 = vld [vmem:[#allocation49_spill] sm:$0xff] }
 0x409   :  { %v6481_v22 = vpop.eup %4012  ;;  %v2955_v19 = vpack.c.bf16 %v2903_v40, %v2899_v5  ;;  %v2898_v4 = vmul.f32 %v6917_v49, %v6916_v38  ;;  %v2110_v6 = vadd.f32 -0.28449672, %v2046_v58  ;;  %v6919_v3 = vld [vmem:[#allocation86_spill] sm:$0xff]  ;;  %3287 = vmatprep.mubr.bf16.mxu0 %v2953_v51  ;;  %v2905_v5 = vmul.f32 %v6921_v39, %v6920_v50  ;;  %v6923_v47 = vld [vmem:[#allocation95_spill] sm:$0xff]  ;;  %v6932_v50 = vld [vmem:[#allocation44_spill] sm:$0xff] }
 0x40a   :  { %v2811_v0 = vadd.f32 1.0, %v2747_v56  ;;  %v2236_v28 = vadd.f32 0.2548296, %v2172_v26  ;;  %v2902_v1 = vmul.f32 %v6919_v3, %v6918_v11  ;;  %v1853_v8 = vadd.f32 -1.4531521, %v1789_v32  ;;  %v6926_v49 = vld [vmem:[#allocation50_spill] sm:$0xff] }
 0x40b   :  { %v6489_v35 = vpop.eup %4014  ;;  %3384 = vmatprep.mubr.bf16.mxu1 %v2955_v19  ;;  %v2952_v27 = vpack.c.bf16 %v2900_v12, %v2896_v46  ;;  %v2909_v40 = vmul.f32 %v6923_v47, %v6922_v55  ;;  %v2174_v56 = vmul.f32 %v6439_v18, %v2110_v6  ;;  %v6924_v46 = vld [vmem:[#allocation46_spill] sm:$0xff]  ;;  %v6925_v19 = vld [vmem:[#allocation92_spill] sm:$0xff]  ;;  %v6929_v6 = vld [vmem:[#allocation89_spill] sm:$0xff] }
 0x40c   :  { %v6496_v43 = vmul.f32 %v2811_v0, %v6323_v23  ;;  %v2300_v60 = vmul.f32 %v6426_v59, %v2236_v28  ;;  %v1791_v26 = vmul.f32 1.0614054, %v6489_v35  ;;  %v1917_v58 = vmul.f32 %v6469_v37, %v1853_v8  ;;  %v6927_v23 = vld [vmem:[#allocation96_spill] sm:$0xff]  ;;  %v6928_v28 = vld [vmem:[#allocation43_spill] sm:$0xff]  ;;  %v6933_v39 = vld [vmem:[#allocation90_spill] sm:$0xff] }
 0x40d   :  { %v2954_v32 = vpack.c.bf16 %v2902_v1, %v2898_v4  ;;  %v2957_v51 = vpack.c.bf16 %v2909_v40, %v2905_v5  ;;  %v2907_v21 = vmul.f32 %v6925_v19, %v6924_v46  ;;  %v2238_v12 = vadd.f32 0.2548296, %v2174_v56  ;;  %v6507_v11 = vpop.eup %4016  ;;  %v6930_v8 = vld [vmem:[#allocation47_spill] sm:$0xff]  ;;  %v6931_v4 = vld [vmem:[#allocation93_spill] sm:$0xff]  ;;  %v6934_v56 = vld [vmem:[#allocation48_spill] sm:$0xff] }
 0x40e   :  { %v2620_v63 = vmul.f32 %v6436_v57, %v2300_v60  ;;  %v1855_v38 = vadd.f32 -1.4531521, %v1791_v26  ;;  %v2911_v0 = vmul.f32 %v6927_v23, %v6926_v49  ;;  %v1981_v59 = vadd.f32 1.4214138, %v1917_v58  ;;  %v6935_v26 = vld [vmem:[#allocation94_spill] sm:$0xff]  ;;  %v6936_v46 = vld [vmem:[#allocation53_spill] sm:$0xff] }
 0x40f   :  { %3288 = vmatmul.mubr.bf16.gmra.mrb[72].mxu0 %v2952_v27  ;;  %v2904_v3 = vmul.f32 %v6929_v6, %v6928_v28  ;;  %v2908_v1 = vmul.f32 %v6931_v4, %v6930_v8  ;;  %v2906_v5 = vmul.f32 %v6933_v39, %v6932_v50  ;;  %v2302_v57 = vmul.f32 %v6439_v18, %v2238_v12  ;;  %v6937_v19 = vld [vmem:[#allocation99_spill] sm:$0xff]  ;;  %v6938_v18 = vld [vmem:[#allocation57_spill] sm:$0xff] }
 0x410   :  { %v2684_v55 = vsub.f32 1.0, %v2620_v63  ;;  %v1919_v47 = vmul.f32 %v6489_v35, %v1855_v38  ;;  %3295 = vmatprep.mubr.bf16.mxu0 %v2957_v51  ;;  %v2959_v40 = vpack.c.bf16 %v2911_v0, %v2907_v21  ;;  %v2045_v60 = vmul.f32 %v6469_v37, %v1981_v59  ;;  %3385 = vmatmul.mubr.bf16.gmra.mrb[72].mxu1 %v2954_v32  ;;  %v6939_v38 = vld [vmem:[#allocation54_spill] sm:$0xff]  ;;  %v6940_v32 = vld [vmem:[#allocation68_spill] sm:$0xff]  ;;  %v6942_v50 = vld [vmem:[#allocation51_spill] sm:$0xff] }
 0x411   :  { %v2956_v27 = vpack.c.bf16 %v2908_v1, %v2904_v3  ;;  %v2910_v58 = vmul.f32 %v6935_v26, %v6934_v56  ;;  %v2913_v49 = vmul.f32 %v6937_v19, %v6936_v46  ;;  %v2622_v63 = vmul.f32 %v6450_v61, %v2302_v57  ;;  %v6941_v59 = vld [vmem:[#allocation58_spill] sm:$0xff]  ;;  %v6943_v39 = vld [vmem:[#allocation97_spill] sm:$0xff]  ;;  %v6948_v19 = vld [vmem:[#allocation56_spill] sm:$0xff] }
 0x412   :  { %v2748_v23 = vmul.f32 %v2684_v55, %v6385_v24  ;;  %v1983_v28 = vadd.f32 1.4214138, %v1919_v47  ;;  %3392 = vmatprep.mubr.bf16.mxu1 %v2959_v40  ;;  %v2917_v51 = vmul.f32 %v6025_v52, %v6938_v18  ;;  %v2109_v21 = vadd.f32 -0.28449672, %v2045_v60  ;;  %v6944_v52 = vld [vmem:[#allocation55_spill] sm:$0xff]  ;;  %v6945_v57 = vld [vmem:[#allocation101_spill] sm:$0xff] }
 0x413   :  { %v2958_v12 = vpack.c.bf16 %v2910_v58, %v2906_v5  ;;  %v2915_v0 = vmul.f32 %v6940_v32, %v6939_v38  ;;  %v2919_v6 = vmul.f32 %v6046_v54, %v6941_v59  ;;  %v2686_v8 = vsub.f32 1.0, %v2622_v63  ;;  %v6946_v54 = vld [vmem:[#allocation52_spill] sm:$0xff]  ;;  %v6947_v56 = vld [vmem:[#allocation98_spill] sm:$0xff] }
 0x414   :  { %v2812_v3 = vadd.f32 1.0, %v2748_v23  ;;  %v2047_v4 = vmul.f32 %v6489_v35, %v1983_v28  ;;  %v2961_v24 = vpack.c.bf16 %v2917_v51, %v2913_v49  ;;  %v2173_v61 = vmul.f32 %v6469_v37, %v2109_v21  ;;  %v6949_v23 = vld [vmem:[#allocation59_spill] sm:$0xff]  ;;  %v6951_v51 = vld [vmem:[#allocation60_spill] sm:$0xff]  ;;  %v6952_v32 = vld [vmem:[#allocation6_spill] sm:$0xff] }
 0x415   :  { %v2963_v1 = vpack.c.bf16 %v2919_v6, %v2915_v0  ;;  %v2912_v55 = vmul.f32 %v6943_v39, %v6942_v50  ;;  %v2916_v5 = vmul.f32 %v6945_v57, %v6944_v52  ;;  %v2750_v40 = vmul.f32 %v2686_v8, %v6389_v34  ;;  %v6953_v0 = vld [vmem:[#allocation2_spill] sm:$0xff]  ;;  %v6954_v8 = vld [vmem:[#allocation4_spill] sm:$0xff]  ;;  %v6957_v50 = vld [vmem:[#allocation9_spill] sm:$0xff] }
 0x416   :  { %v2876_v47 = vmul.f32 %v2812_v3, %v6366_v33  ;;  %v2111_v60 = vadd.f32 -0.28449672, %v2047_v4  ;;  %v2914_v26 = vmul.f32 %v6947_v56, %v6946_v54  ;;  %v2237_v58 = vadd.f32 0.2548296, %v2173_v61  ;;  %v6950_v33 = vld [vmem:[#allocation61_spill] sm:$0xff]  ;;  %v6959_v52 = vld [vmem:[#allocation10_spill] sm:$0xff] }
 0x417   :  { %3296 = vmatmul.mubr.bf16.gmra.mrb[76].mxu0 %v2956_v27  ;;  %v2960_v46 = vpack.c.bf16 %v2916_v5, %v2912_v55  ;;  %v2918_v49 = vmul.f32 %v6011_v41, %v6948_v19  ;;  %v2921_v63 = vmul.f32 %v6116_v42, %v6949_v23  ;;  %v2814_v28 = vadd.f32 1.0, %v2750_v40  ;;  %v6960_v57 = vld [vmem:[#allocation14_spill] sm:$0xff]  ;;  %v6961_v40 = vld [vmem:[#allocation7_spill] sm:$0xff]  ;;  %v6966_v19 = vld [vmem:[#allocation73_spill] sm:$0xff] }
 0x418   :  { %v2175_v18 = vmul.f32 %v6489_v35, %v2111_v60  ;;  %3303 = vmatprep.mubr.bf16.mxu0 %v2961_v24  ;;  %v2925_v34 = vmul.f32 %v6193_v10, %v6950_v33  ;;  %v2923_v21 = vmul.f32 %v6137_v30, %v6951_v51  ;;  %v2301_v38 = vmul.f32 %v6469_v37, %v2237_v58  ;;  %v6955_v37 = vld [vmem:[#allocation3_spill] sm:$0xff]  ;;  %v6956_v24 = vld [vmem:[#allocation5_spill] sm:$0xff]  ;;  %v6965_v58 = vld [vmem:[#allocation8_spill] sm:$0xff] }
 0x419   :  { %3393 = vmatmul.mubr.bf16.gmra.mrb[76].mxu1 %v2958_v12  ;;  %v2962_v27 = vpack.c.bf16 %v2918_v49, %v2914_v26  ;;  %v2927_v41 = vmul.f32 %v6214_v9, %v6952_v32  ;;  %v2920_v42 = vmul.f32 %v6057_v62, %v6953_v0  ;;  %v2878_v59 = vmul.f32 %v2814_v28, %v6380_v44  ;;  %v6963_v54 = vld [vmem:[#allocation11_spill] sm:$0xff]  ;;  %v6973_v0 = vld [vmem:[#allocation37_spill] sm:$0xff] }
 0x41a   :  { %v2239_v6 = vadd.f32 0.2548296, %v2175_v18  ;;  %3400 = vmatprep.mubr.bf16.mxu1 %v2963_v1  ;;  %v2965_v3 = vpack.c.bf16 %v2925_v34, %v2921_v63  ;;  %v2924_v10 = vmul.f32 %v6158_v29, %v6954_v8  ;;  %v2621_v30 = vmul.f32 %v6481_v22, %v2301_v38  ;;  %v6958_v1 = vld [vmem:[#allocation13_spill] sm:$0xff]  ;;  %v6964_v56 = vld [vmem:[#allocation103_spill] sm:$0xff]  ;;  %v6968_v63 = vld [vmem:[#allocation32_spill] sm:$0xff] }
 0x41b   :  { %v2967_v4 = vpack.c.bf16 %v2927_v41, %v2923_v21  ;;  %v2922_v12 = vmul.f32 %v6086_v45, %v6955_v37  ;;  %v2926_v9 = vmul.f32 %v6179_v48, %v6956_v24  ;;  %v2929_v44 = vmul.f32 %v6284_v25, %v6957_v50  ;;  %v6969_v18 = vld [vmem:[#allocation33_spill] sm:$0xff]  ;;  %v6971_v21 = vld [vmem:[#allocation36_spill] sm:$0xff] }
 0x41c   :  { %v2303_v61 = vmul.f32 %v6489_v35, %v2239_v6  ;;  %v2964_v62 = vpack.c.bf16 %v2924_v10, %v2920_v42  ;;  %v2933_v39 = vmul.f32 %v6364_v13, %v6958_v1  ;;  %v2685_v55 = vsub.f32 1.0, %v2621_v30  ;;  %v6962_v35 = vld [vmem:[#allocation71_spill] sm:$0xff]  ;;  %v6974_v8 = vld [vmem:[#allocation40_spill] sm:$0xff] }
 0x41d   :  { %v2966_v29 = vpack.c.bf16 %v2926_v9, %v2922_v12  ;;  %v2931_v22 = vmul.f32 %v6305_v14, %v6959_v52  ;;  %v2935_v45 = vmul.f32 %v6397_v7, %v6960_v57  ;;  %v2928_v60 = vmul.f32 %v6962_v35, %v6961_v40  ;;  %v6967_v14 = vld [vmem:[#allocation12_spill] sm:$0xff]  ;;  %v4018_v52 = vld [vmem:[%s6713_s0] sm:$0xff] }
 0x41e   :  { %v2623_v5 = vmul.f32 %v6507_v11, %v2303_v61  ;;  %v2969_v48 = vpack.c.bf16 %v2933_v39, %v2929_v44  ;;  %v2932_v25 = vmul.f32 %v6964_v56, %v6963_v54  ;;  %v2749_v26 = vmul.f32 %v2685_v55, %v6419_v2 }
 0x41f   :  { %3304 = vmatmul.mubr.bf16.gmra.mrb[80].mxu0 %v2960_v46  ;;  %v2971_v13 = vpack.c.bf16 %v2935_v45, %v2931_v22  ;;  %v2930_v49 = vmul.f32 %v6966_v19, %v6965_v58  ;;  %v2934_v23 = vmul.f32 %v6358_v15, %v6967_v14  ;;  %v2937_v28 = vmul.f32 %v6458_v53, %v6968_v63  ;;  %v6970_v46 = vld [vmem:[#allocation28_spill] sm:$0xff]  ;;  %v6972_v15 = vld [vmem:[#allocation29_spill] sm:$0xff]  ;;  %v4019_v45 = vld [vmem:[%s6713_s0 + $0x8] sm:$0xff] }
 0x420   :  { %v2687_v7 = vsub.f32 1.0, %v2623_v5  ;;  %3311 = vmatprep.mubr.bf16.mxu0 %v2965_v3  ;;  %v2968_v11 = vpack.c.bf16 %v2932_v25, %v2928_v60  ;;  %v2939_v33 = vmul.f32 %v6496_v43, %v6969_v18  ;;  %v2813_v34 = vadd.f32 1.0, %v2749_v26 }
 0x421   :  { %3401 = vmatmul.mubr.bf16.gmra.mrb[80].mxu1 %v2962_v27  ;;  %v2970_v2 = vpack.c.bf16 %v2934_v23, %v2930_v49  ;;  %v2936_v51 = vmul.f32 %v6405_v16, %v6970_v46  ;;  %v2940_v38 = vmul.f32 %v2876_v47, %v6971_v21  ;;  %v2938_v41 = vmul.f32 %v6429_v36, %v6972_v15 }
 0x422   :  { %v2751_v32 = vmul.f32 %v2687_v7, %v6434_v17  ;;  %3408 = vmatprep.mubr.bf16.mxu1 %v2967_v4  ;;  %v2942_v42 = vmul.f32 %v2878_v59, %v6973_v0  ;;  %v2877_v53 = vmul.f32 %v2813_v34, %v6413_v20  ;;  %v1215_v43 = vmul.f32 0.5, %v6411_v31  ;;  %v6975_v17 = vld [vmem:[#allocation41_spill] sm:$0xff]  ;;  %v6599_v20 = vld [vmem:[%s6719_s6] ss:$0 sm:$0xff] }
 0x423   :  { %v2972_v6 = vpack.c.bf16 %v2940_v38, %v2936_v51  ;;  %v4021_v34 = vld [vmem:[%s6713_s0 + $0x18] sm:$0xff] }
 0x424   :  { %v2815_v27 = vadd.f32 1.0, %v2751_v32  ;;  %v2974_v3 = vpack.c.bf16 %v2942_v42, %v2938_v41  ;;  %v2941_v10 = vmul.f32 %v2877_v53, %v6974_v8 }
 0x426   :  { %v2879_v16 = vmul.f32 %v2815_v27, %v1215_v43  ;;  %v2973_v47 = vpack.c.bf16 %v2941_v10, %v2937_v28 }
 0x427   :  { %3312 = vmatmul.mubr.bf16.gmra.mrb[84].mxu0 %v2964_v62 }
 0x428   :  { %3319 = vmatprep.mubr.bf16.mxu0 %v2969_v48  ;;  %v2943_v30 = vmul.f32 %v2879_v16, %v6975_v17  ;;  %v4023_v17 = vld [vmem:[%s6713_s0 + $0x28] sm:$0xff] }
 0x429   :  { %3409 = vmatmul.mubr.bf16.gmra.mrb[84].mxu1 %v2966_v29 }
 0x42a   :  { %3416 = vmatprep.mubr.bf16.mxu1 %v2971_v13  ;;  %v2975_v36 = vpack.c.bf16 %v2943_v30, %v2939_v33 }
 0x42f   :  { %3320 = vmatmul.mubr.bf16.gmra.mrb[88].mxu0 %v2968_v11  ;;  %v4020_v11 = vld [vmem:[%s6713_s0 + $0x10] sm:$0xff] }
 0x430   :  { %3327 = vmatprep.mubr.bf16.mxu0 %v2973_v47 }
 0x431   :  { %3417 = vmatmul.mubr.bf16.gmra.mrb[88].mxu1 %v2970_v2 }
 0x432   :  { %3424 = vmatprep.mubr.bf16.mxu1 %v2975_v36 }
 0x437   :  { %3328 = vmatmul.mubr.bf16.gmra.mrb[92].mxu0 %v2972_v6 }
 0x439   :  { %3425 = vmatmul.mubr.bf16.gmra.mrb[92].mxu1 %v2974_v3  ;;  %v4022_v3 = vld [vmem:[%s6713_s0 + $0x20] sm:$0xff] }
 0x4bb   :  { %v3584_v31 = vpop.f32.mrb[64].mxu0 }
 0x4bc   :  { %v3585_v59 = vpop.f32.mrb[65].mxu0 }
 0x4bd   :  { %v3586_v4 = vadd.f32 %v3585_v59, %v3584_v31  ;;  %v3587_v37 = vpop.f32.mrb[66].mxu0 }
 0x4be   :  { %v3588_v12 = vpop.f32.mrb[67].mxu0 }
 0x4bf   :  { %v3648_v24 = vpop.f32.mrb[64].mxu1  ;;  %v3274_v9 = vadd.f32 %v3586_v4, %v6599_v20  ;;  %v3589_v61 = vadd.f32 %v3588_v12, %v3587_v37 }
 0x4c0   :  { %v3649_v62 = vpop.f32.mrb[65].mxu1 }
 0x4c1   :  { %v3650_v50 = vadd.f32 %v3649_v62, %v3648_v24  ;;  %v3651_v44 = vpop.f32.mrb[66].mxu1  ;;  %v3277_v1 = vadd.f32 %v3589_v61, %v6599_v20 }
 0x4c2   :  { %v3652_v39 = vpop.f32.mrb[67].mxu1 }
 0x4c3   :  { %v3371_v55 = vadd.f32 %v3650_v50, %v3274_v9  ;;  %v3653_v29 = vadd.f32 %v3652_v39, %v3651_v44  ;;  %v4024_v39 = vld [vmem:[%s6713_s0 + $0x30] sm:$0xff] }
 0x4c5   :  { %v3433_v22 = vadd.f32 %v4018_v52, %v3371_v55  ;;  %v3374_v57 = vadd.f32 %v3653_v29, %v3277_v1 }
 0x4c7   :  { %3449 = vst [vmem:[%s6720_s7] sm:$0xff] %v3433_v22  ;;  %v3434_v5 = vadd.f32 %v4019_v45, %v3374_v57  ;;  %v4025_v57 = vld [vmem:[%s6713_s0 + $0x38] sm:$0xff] }
 0x4c9   :  { %3450 = vst [vmem:[%s6720_s7 + $0x8] sm:$0xff] %v3434_v5 }
 0x4da   :  { %v3590_v48 = vpop.f32.mrb[68].mxu0 }
 0x4db   :  { %v3591_v40 = vpop.f32.mrb[69].mxu0  ;;  %v3654_v35 = vpop.f32.mrb[68].mxu1 }
 0x4dc   :  { %v3592_v60 = vadd.f32 %v3591_v40, %v3590_v48  ;;  %v3593_v54 = vpop.f32.mrb[70].mxu0  ;;  %v3655_v56 = vpop.f32.mrb[69].mxu1 }
 0x4dd   :  { %v3594_v25 = vpop.f32.mrb[71].mxu0  ;;  %v3656_v13 = vadd.f32 %v3655_v56, %v3654_v35  ;;  %v3657_v58 = vpop.f32.mrb[70].mxu1 }
 0x4de   :  { %v3282_v26 = vadd.f32 %v3592_v60, %v6599_v20  ;;  %v3595_v19 = vadd.f32 %v3594_v25, %v3593_v54  ;;  %v3658_v49 = vpop.f32.mrb[71].mxu1 }
 0x4df   :  { %v3659_v7 = vadd.f32 %v3658_v49, %v3657_v58 }
 0x4e0   :  { %v3379_v14 = vadd.f32 %v3656_v13, %v3282_v26  ;;  %v3285_v23 = vadd.f32 %v3595_v19, %v6599_v20 }
 0x4e2   :  { %v3435_v63 = vadd.f32 %v4020_v11, %v3379_v14  ;;  %v3382_v28 = vadd.f32 %v3659_v7, %v3285_v23  ;;  %v3596_v18 = vpop.f32.mrb[72].mxu0  ;;  %v4026_v14 = vld [vmem:[%s6713_s0 + $0x40] sm:$0xff] }
 0x4e3   :  { %v3597_v33 = vpop.f32.mrb[73].mxu0  ;;  %v3660_v46 = vpop.f32.mrb[72].mxu1 }
 0x4e4   :  { %3451 = vst [vmem:[%s6720_s7 + $0x10] sm:$0xff] %v3435_v63  ;;  %v3436_v2 = vadd.f32 %v4021_v34, %v3382_v28  ;;  %v3598_v51 = vadd.f32 %v3597_v33, %v3596_v18  ;;  %v3599_v21 = vpop.f32.mrb[74].mxu0  ;;  %v3661_v38 = vpop.f32.mrb[73].mxu1  ;;  %v4027_v28 = vld [vmem:[%s6713_s0 + $0x48] sm:$0xff] }
 0x4e5   :  { %v3600_v32 = vpop.f32.mrb[75].mxu0  ;;  %v3662_v41 = vadd.f32 %v3661_v38, %v3660_v46  ;;  %v3663_v0 = vpop.f32.mrb[74].mxu1 }
 0x4e6   :  { %3452 = vst [vmem:[%s6720_s7 + $0x18] sm:$0xff] %v3436_v2  ;;  %v3290_v15 = vadd.f32 %v3598_v51, %v6599_v20  ;;  %v3601_v42 = vadd.f32 %v3600_v32, %v3599_v21  ;;  %v3664_v53 = vpop.f32.mrb[75].mxu1 }
 0x4e7   :  { %v3665_v27 = vadd.f32 %v3664_v53, %v3663_v0 }
 0x4e8   :  { %v3387_v6 = vadd.f32 %v3662_v41, %v3290_v15  ;;  %v3293_v43 = vadd.f32 %v3601_v42, %v6599_v20 }
 0x4ea   :  { %v3437_v8 = vadd.f32 %v4022_v3, %v3387_v6  ;;  %v3390_v10 = vadd.f32 %v3665_v27, %v3293_v43  ;;  %v3602_v16 = vpop.f32.mrb[76].mxu0  ;;  %v4028_v6 = vld [vmem:[%s6713_s0 + $0x50] sm:$0xff] }
 0x4eb   :  { %v3603_v47 = vpop.f32.mrb[77].mxu0 }
 0x4ec   :  { %3453 = vst [vmem:[%s6720_s7 + $0x20] sm:$0xff] %v3437_v8  ;;  %v3438_v30 = vadd.f32 %v4023_v17, %v3390_v10  ;;  %v3666_v36 = vpop.f32.mrb[76].mxu1  ;;  %v3604_v31 = vadd.f32 %v3603_v47, %v3602_v16  ;;  %v3605_v59 = vpop.f32.mrb[78].mxu0  ;;  %v4029_v10 = vld [vmem:[%s6713_s0 + $0x58] sm:$0xff] }
 0x4ed   :  { %v3667_v4 = vpop.f32.mrb[77].mxu1  ;;  %v3606_v37 = vpop.f32.mrb[79].mxu0 }
 0x4ee   :  { %3454 = vst [vmem:[%s6720_s7 + $0x28] sm:$0xff] %v3438_v30  ;;  %v3298_v12 = vadd.f32 %v3604_v31, %v6599_v20  ;;  %v3668_v24 = vadd.f32 %v3667_v4, %v3666_v36  ;;  %v3669_v9 = vpop.f32.mrb[78].mxu1  ;;  %v3607_v61 = vadd.f32 %v3606_v37, %v3605_v59 }
 0x4ef   :  { %v3670_v62 = vpop.f32.mrb[79].mxu1 }
 0x4f0   :  { %v3395_v50 = vadd.f32 %v3668_v24, %v3298_v12  ;;  %v3301_v44 = vadd.f32 %v3607_v61, %v6599_v20  ;;  %v3671_v1 = vadd.f32 %v3670_v62, %v3669_v9 }
 0x4f2   :  { %v3439_v55 = vadd.f32 %v4024_v39, %v3395_v50  ;;  %v3398_v29 = vadd.f32 %v3671_v1, %v3301_v44  ;;  %v3608_v52 = vpop.f32.mrb[80].mxu0  ;;  %v4030_v50 = vld [vmem:[%s6713_s0 + $0x60] sm:$0xff] }
 0x4f3   :  { %v3609_v22 = vpop.f32.mrb[81].mxu0 }
 0x4f4   :  { %3455 = vst [vmem:[%s6720_s7 + $0x30] sm:$0xff] %v3439_v55  ;;  %v3440_v45 = vadd.f32 %v4025_v57, %v3398_v29  ;;  %v3672_v5 = vpop.f32.mrb[80].mxu1  ;;  %v3610_v48 = vadd.f32 %v3609_v22, %v3608_v52  ;;  %v3611_v40 = vpop.f32.mrb[82].mxu0  ;;  %v4031_v29 = vld [vmem:[%s6713_s0 + $0x68] sm:$0xff] }
 0x4f5   :  { %v3673_v35 = vpop.f32.mrb[81].mxu1  ;;  %v3612_v60 = vpop.f32.mrb[83].mxu0 }
 0x4f6   :  { %3456 = vst [vmem:[%s6720_s7 + $0x38] sm:$0xff] %v3440_v45  ;;  %v3306_v54 = vadd.f32 %v3610_v48, %v6599_v20  ;;  %v3674_v56 = vadd.f32 %v3673_v35, %v3672_v5  ;;  %v3675_v25 = vpop.f32.mrb[82].mxu1  ;;  %v3613_v26 = vadd.f32 %v3612_v60, %v3611_v40 }
 0x4f7   :  { %v3676_v13 = vpop.f32.mrb[83].mxu1 }
 0x4f8   :  { %v3403_v58 = vadd.f32 %v3674_v56, %v3306_v54  ;;  %v3309_v19 = vadd.f32 %v3613_v26, %v6599_v20  ;;  %v3677_v49 = vadd.f32 %v3676_v13, %v3675_v25 }
 0x4fa   :  { %v3441_v23 = vadd.f32 %v4026_v14, %v3403_v58  ;;  %v3406_v7 = vadd.f32 %v3677_v49, %v3309_v19  ;;  %v3614_v11 = vpop.f32.mrb[84].mxu0  ;;  %v4032_v58 = vld [vmem:[%s6713_s0 + $0x70] sm:$0xff]  ;;  %v4033_v14 = vld [vmem:[%s6713_s0 + $0x78] sm:$0xff] }
 0x4fb   :  { %v3615_v63 = vpop.f32.mrb[85].mxu0 }
 0x4fc   :  { %3457 = vst [vmem:[%s6720_s7 + $0x40] sm:$0xff] %v3441_v23  ;;  %v3442_v18 = vadd.f32 %v4027_v28, %v3406_v7  ;;  %v3678_v33 = vpop.f32.mrb[84].mxu1  ;;  %v3616_v34 = vadd.f32 %v3615_v63, %v3614_v11  ;;  %v3617_v2 = vpop.f32.mrb[86].mxu0 }
 0x4fd   :  { %v3679_v46 = vpop.f32.mrb[85].mxu1  ;;  %v3618_v51 = vpop.f32.mrb[87].mxu0 }
 0x4fe   :  { %3458 = vst [vmem:[%s6720_s7 + $0x48] sm:$0xff] %v3442_v18  ;;  %v3314_v21 = vadd.f32 %v3616_v34, %v6599_v20  ;;  %v3680_v38 = vadd.f32 %v3679_v46, %v3678_v33  ;;  %v3681_v32 = vpop.f32.mrb[86].mxu1  ;;  %v3619_v15 = vadd.f32 %v3618_v51, %v3617_v2 }
 0x4ff   :  { %v3682_v41 = vpop.f32.mrb[87].mxu1 }
 0x500   :  { %v3411_v0 = vadd.f32 %v3680_v38, %v3314_v21  ;;  %v3317_v42 = vadd.f32 %v3619_v15, %v6599_v20  ;;  %v3683_v53 = vadd.f32 %v3682_v41, %v3681_v32 }
 0x502   :  { %v3443_v43 = vadd.f32 %v4028_v6, %v3411_v0  ;;  %v3414_v27 = vadd.f32 %v3683_v53, %v3317_v42  ;;  %v3620_v3 = vpop.f32.mrb[88].mxu0 }
 0x503   :  { %v3621_v8 = vpop.f32.mrb[89].mxu0 }
 0x504   :  { %3459 = vst [vmem:[%s6720_s7 + $0x50] sm:$0xff] %v3443_v43  ;;  %v3444_v16 = vadd.f32 %v4029_v10, %v3414_v27  ;;  %v3684_v47 = vpop.f32.mrb[88].mxu1  ;;  %v3622_v17 = vadd.f32 %v3621_v8, %v3620_v3  ;;  %v3623_v30 = vpop.f32.mrb[90].mxu0 }
 0x505   :  { %v3685_v36 = vpop.f32.mrb[89].mxu1  ;;  %v3624_v31 = vpop.f32.mrb[91].mxu0 }
 0x506   :  { %3460 = vst [vmem:[%s6720_s7 + $0x58] sm:$0xff] %v3444_v16  ;;  %v3322_v59 = vadd.f32 %v3622_v17, %v6599_v20  ;;  %v3686_v4 = vadd.f32 %v3685_v36, %v3684_v47  ;;  %v3687_v37 = vpop.f32.mrb[90].mxu1  ;;  %v3625_v12 = vadd.f32 %v3624_v31, %v3623_v30 }
 0x507   :  { %v3688_v24 = vpop.f32.mrb[91].mxu1 }
 0x508   :  { %v3419_v9 = vadd.f32 %v3686_v4, %v3322_v59  ;;  %v3325_v61 = vadd.f32 %v3625_v12, %v6599_v20  ;;  %v3689_v62 = vadd.f32 %v3688_v24, %v3687_v37 }
 0x50a   :  { %v3445_v44 = vadd.f32 %v4030_v50, %v3419_v9  ;;  %v3422_v1 = vadd.f32 %v3689_v62, %v3325_v61  ;;  %v3626_v39 = vpop.f32.mrb[92].mxu0 }
 0x50b   :  { %v3627_v55 = vpop.f32.mrb[93].mxu0 }
 0x50c   :  { %3461 = vst [vmem:[%s6720_s7 + $0x60] sm:$0xff] %v3445_v44  ;;  %v3446_v52 = vadd.f32 %v4031_v29, %v3422_v1  ;;  %v3690_v22 = vpop.f32.mrb[92].mxu1  ;;  %v3628_v57 = vadd.f32 %v3627_v55, %v3626_v39  ;;  %v3629_v45 = vpop.f32.mrb[94].mxu0 }
 0x50d   :  { %v3691_v5 = vpop.f32.mrb[93].mxu1  ;;  %v3630_v48 = vpop.f32.mrb[95].mxu0 }
 0x50e   :  { %3462 = vst [vmem:[%s6720_s7 + $0x68] sm:$0xff] %v3446_v52  ;;  %v3330_v40 = vadd.f32 %v3628_v57, %v6599_v20  ;;  %v3692_v35 = vadd.f32 %v3691_v5, %v3690_v22  ;;  %v3693_v60 = vpop.f32.mrb[94].mxu1  ;;  %v3631_v54 = vadd.f32 %v3630_v48, %v3629_v45 }
 0x50f   :  { %v3694_v56 = vpop.f32.mrb[95].mxu1 }
 0x510   :  { %v3427_v25 = vadd.f32 %v3692_v35, %v3330_v40  ;;  %v3333_v26 = vadd.f32 %v3631_v54, %v6599_v20  ;;  %v3695_v13 = vadd.f32 %v3694_v56, %v3693_v60 }
 0x512   :  { %v3447_v19 = vadd.f32 %v4032_v58, %v3427_v25  ;;  %v3430_v49 = vadd.f32 %v3695_v13, %v3333_v26 }
 0x514   :  { %3463 = vst [vmem:[%s6720_s7 + $0x70] sm:$0xff] %v3447_v19  ;;  %v3448_v23 = vadd.f32 %v4033_v14, %v3430_v49 }
 0x516   :  { %3464 = vst [vmem:[%s6720_s7 + $0x78] sm:$0xff] %v3448_v23 }

</bundles_post_ra>
